<compile_context>
chip_gen: v5e
topology: v5e:2x2
jax: 0.10.0
libtpu: 0.0.40
codegen_flags: <defaults>
</compile_context>

<pallas_src>
import functools

import jax
import jax.numpy as jnp
from jax.experimental import pallas as pl
from jax.experimental.pallas import tpu as pltpu

H1 = 20          # hidden1 width
H2 = 20          # hidden2 width
LANES = 128      # vreg lane width
CHUNK_ROWS = 16  # rows per in-kernel chunk (2 vregs / intermediate array)
TILE_ROWS = 512  # max sublane rows per grid step -> 65536 samples/step


def _tree_sum(vals):
    """Pairwise (tree) sum of a Python list of arrays."""
    vals = list(vals)
    while len(vals) > 1:
        nxt = [vals[i] + vals[i + 1] for i in range(0, len(vals) - 1, 2)]
        if len(vals) % 2:
            nxt.append(vals[-1])
        vals = nxt
    return vals[0]


def _mlp_kernel(x_ref, w1_ref, b1_ref, w2_ref, b2_ref, w3_ref, b3_ref, o_ref):
    """One batch tile. x_ref / o_ref: [tile_rows, 128] f32, batch in lanes.

    Weights/biases are flat f32 scalar tables in SMEM:
      w1[H1], b1[H1], w2[H1*H2] (row-major [in, out]), b2[H2], w3[H2], b3[1].
    """
    # Hoist every SMEM scalar read out of the row-chunk loop.
    w1 = [w1_ref[j] for j in range(H1)]
    b1 = [b1_ref[j] for j in range(H1)]
    w2 = [[w2_ref[j * H2 + k] for k in range(H2)] for j in range(H1)]
    b2 = [b2_ref[k] for k in range(H2)]
    w3 = [w3_ref[k] for k in range(H2)]
    b3 = b3_ref[0]

    n_chunks = x_ref.shape[0] // CHUNK_ROWS

    @pl.loop(0, n_chunks)
    def _(c):
        r = pl.multiple_of(c * CHUNK_ROWS, CHUNK_ROWS)
        x = x_ref[pl.ds(r, CHUNK_ROWS), :]            # [16, 128] -> 2 vregs

        # Layer 1: Linear(1, 20) + ReLU. K == 1 -> scalar-broadcast FMA per
        # hidden unit on the VPU.
        h1 = [jnp.maximum(x * w1[j] + b1[j], 0.0) for j in range(H1)]

        # Layers 2 + 3 fused: each hidden-2 unit is reduced into the output
        # accumulators immediately, so all 20 h2 maps are never live at once.
        accs = [None, None, None, None]
        for k in range(H2):
            t = _tree_sum([h1[j] * w2[j][k] for j in range(H1)])
            h2k = jnp.maximum(t + b2[k], 0.0)
            contrib = h2k * w3[k]
            a = k % 4
            accs[a] = contrib if accs[a] is None else accs[a] + contrib

        out = (accs[0] + accs[1]) + (accs[2] + accs[3]) + b3
        o_ref[pl.ds(r, CHUNK_ROWS), :] = out


def _round_up(v, m):
    return ((v + m - 1) // m) * m


@functools.partial(jax.jit, static_argnames=("tile_rows",))
def regression_model_forward(x, params, tile_rows=TILE_ROWS):
    """x: [N, 1] float32; params: dict W1,b1,W2,b2,W3,b3 stored [in, out]."""
    n = x.shape[0]

    # --- Adaptive, lane-dense tiling (all Python ints -> static under jit).
    rows_needed = -(-n // LANES)                                 # ceil(n/128)
    rows_min = max(_round_up(rows_needed, CHUNK_ROWS), CHUNK_ROWS)
    # Aim for >= 2 grid steps (v7x: two TensorCores) without exceeding
    # tile_rows rows per step and without over-padding ragged batches.
    num_tiles_target = max(2, -(-rows_min // tile_rows))
    tile = _round_up(-(-rows_min // num_tiles_target), CHUNK_ROWS)
    tile = max(min(tile, _round_up(tile_rows, CHUNK_ROWS)), CHUNK_ROWS)
    num_tiles = -(-rows_min // tile)
    rows_total = num_tiles * tile
    padded = rows_total * LANES

    # --- Lane-dense input: [N, 1] -> [rows_total, 128] (batch in lanes).
    x_flat = x.reshape(-1).astype(jnp.float32)
    if padded != n:                           # pad only the ragged tail
        x_flat = jnp.pad(x_flat, (0, padded - n))
    x2d = x_flat.reshape(rows_total, LANES)

    # --- Flat f32 scalar tables for SMEM (1-D avoids [8,128] padding blowup).
    w1 = params["W1"].reshape(H1).astype(jnp.float32)
    b1 = params["b1"].reshape(H1).astype(jnp.float32)
    w2 = params["W2"].reshape(H1 * H2).astype(jnp.float32)
    b2 = params["b2"].reshape(H2).astype(jnp.float32)
    w3 = params["W3"].reshape(H2).astype(jnp.float32)
    b3 = params["b3"].reshape(1).astype(jnp.float32)

    smem = pl.BlockSpec(memory_space=pltpu.MemorySpace.SMEM)
    out2d = pl.pallas_call(
        _mlp_kernel,
        out_shape=jax.ShapeDtypeStruct((rows_total, LANES), jnp.float32),
        grid=(num_tiles,),
        in_specs=[
            pl.BlockSpec((tile, LANES), lambda i: (i, 0)),   # x (VMEM, pipelined)
            smem, smem, smem, smem, smem, smem,              # weights / biases
        ],
        out_specs=pl.BlockSpec((tile, LANES), lambda i: (i, 0)),
        compiler_params=pltpu.CompilerParams(
            # Independent batch tiles -> shard across TCs on v7x.
            dimension_semantics=("parallel",),
            # Per-step footprint is ~1 MiB; explicit budget leaves headroom.
            vmem_limit_bytes=32 * 1024 * 1024,
        ),
    )(x2d, w1, b1, w2, b2, w3, b3)

    # Strip padding -> exact [N, 1] semantics of the PyTorch module.
    # (Consumers that can accept the padded [rows_total, 128] slab directly
    # would save one more HBM round-trip here.)
    return out2d.reshape(-1)[:n].reshape(n, 1)


def init_params(key):
    """Deterministic init matching PyTorch nn.Linear shapes, stored [in, out]."""
    k1, k2, k3, k4, k5, k6 = jax.random.split(key, 6)

    def uinit(k, shape, fan_in):
        bound = 1.0 / jnp.sqrt(jnp.float32(fan_in))
        return jax.random.uniform(k, shape, jnp.float32, -bound, bound)

    return {
        "W1": uinit(k1, (1, H1), 1),
        "b1": uinit(k2, (1, H1), 1),
        "W2": uinit(k3, (H1, H2), H1),
        "b2": uinit(k4, (1, H2), H1),
        "W3": uinit(k5, (H2, 1), H2),
        "b3": uinit(k6, (1, 1), H2),
    }


def reference_forward(x, p):
    h1 = jnp.maximum(x @ p["W1"] + p["b1"], 0.0)
    h2 = jnp.maximum(h1 @ p["W2"] + p["b2"], 0.0)
    return h2 @ p["W3"] + p["b3"]


if __name__ == "__main__":
    key = jax.random.PRNGKey(0)
    kx, kp = jax.random.split(key)
    params = init_params(kp)

    # Small shape consistent with the module (features = 1).
    batch = 8
    x = jax.random.normal(kx, (batch, 1), dtype=jnp.float32)
    out = jax.block_until_ready(regression_model_forward(x, params))
    ref = reference_forward(x, params)
    assert out.shape == (batch, 1)
    assert jnp.allclose(out, ref, atol=1e-5, rtol=1e-5)

    # Ragged multi-tile batch exercises the grid + pad/strip path.
    batch2 = 2 * TILE_ROWS * LANES + 777
    x2 = jax.random.normal(jax.random.PRNGKey(1), (batch2, 1), dtype=jnp.float32)
    out2 = jax.block_until_ready(regression_model_forward(x2, params))
    ref2 = reference_forward(x2, params)
    assert out2.shape == (batch2, 1)
    assert jnp.allclose(out2, ref2, atol=1e-5, rtol=1e-5)

    # Exact-multiple batch exercises the no-pad fast path + 2-tile split.
    batch3 = TILE_ROWS * LANES
    x3 = jax.random.normal(jax.random.PRNGKey(2), (batch3, 1), dtype=jnp.float32)
    out3 = jax.block_until_ready(regression_model_forward(x3, params))
    ref3 = reference_forward(x3, params)
    assert out3.shape == (batch3, 1)
    assert jnp.allclose(out3, ref3, atol=1e-5, rtol=1e-5)

    print("KERNEL_OK")
</pallas_src>

<mosaic_0001>
module attributes {stable_mosaic.version = 11 : i64} {
  func.func @_mlp_kernel(%arg0: i32, %arg1: memref<16x128xf32, #tpu.memory_space<vmem>>, %arg2: memref<20xf32, #tpu.memory_space<smem>>, %arg3: memref<20xf32, #tpu.memory_space<smem>>, %arg4: memref<400xf32, #tpu.memory_space<smem>>, %arg5: memref<20xf32, #tpu.memory_space<smem>>, %arg6: memref<20xf32, #tpu.memory_space<smem>>, %arg7: memref<1xf32, #tpu.memory_space<smem>>, %arg8: memref<16x128xf32, #tpu.memory_space<vmem>>) attributes {dimension_semantics = [#tpu.dimension_semantics<parallel>], iteration_bounds = array<i64: 1>, scalar_prefetch = 0 : i64, scratch_operands = 0 : i64, tpu.core_type = #tpu.core_type<tc>, window_params = [{transform_indices = @transform_0, window_bounds = array<i64: 16, 128>}, {transform_indices = @transform_1, window_bounds = array<i64: 20>}, {transform_indices = @transform_2, window_bounds = array<i64: 20>}, {transform_indices = @transform_3, window_bounds = array<i64: 400>}, {transform_indices = @transform_4, window_bounds = array<i64: 20>}, {transform_indices = @transform_5, window_bounds = array<i64: 20>}, {transform_indices = @transform_6, window_bounds = array<i64: 1>}, {transform_indices = @transform_7, window_bounds = array<i64: 16, 128>}]} {
    %c0 = arith.constant 0 : index
    %0 = memref.load %arg2[%c0] : memref<20xf32, #tpu.memory_space<smem>>
    %c1 = arith.constant 1 : index
    %1 = memref.load %arg2[%c1] : memref<20xf32, #tpu.memory_space<smem>>
    %c2 = arith.constant 2 : index
    %2 = memref.load %arg2[%c2] : memref<20xf32, #tpu.memory_space<smem>>
    %c3 = arith.constant 3 : index
    %3 = memref.load %arg2[%c3] : memref<20xf32, #tpu.memory_space<smem>>
    %c4 = arith.constant 4 : index
    %4 = memref.load %arg2[%c4] : memref<20xf32, #tpu.memory_space<smem>>
    %c5 = arith.constant 5 : index
    %5 = memref.load %arg2[%c5] : memref<20xf32, #tpu.memory_space<smem>>
    %c6 = arith.constant 6 : index
    %6 = memref.load %arg2[%c6] : memref<20xf32, #tpu.memory_space<smem>>
    %c7 = arith.constant 7 : index
    %7 = memref.load %arg2[%c7] : memref<20xf32, #tpu.memory_space<smem>>
    %c8 = arith.constant 8 : index
    %8 = memref.load %arg2[%c8] : memref<20xf32, #tpu.memory_space<smem>>
    %c9 = arith.constant 9 : index
    %9 = memref.load %arg2[%c9] : memref<20xf32, #tpu.memory_space<smem>>
    %c10 = arith.constant 10 : index
    %10 = memref.load %arg2[%c10] : memref<20xf32, #tpu.memory_space<smem>>
    %c11 = arith.constant 11 : index
    %11 = memref.load %arg2[%c11] : memref<20xf32, #tpu.memory_space<smem>>
    %c12 = arith.constant 12 : index
    %12 = memref.load %arg2[%c12] : memref<20xf32, #tpu.memory_space<smem>>
    %c13 = arith.constant 13 : index
    %13 = memref.load %arg2[%c13] : memref<20xf32, #tpu.memory_space<smem>>
    %c14 = arith.constant 14 : index
    %14 = memref.load %arg2[%c14] : memref<20xf32, #tpu.memory_space<smem>>
    %c15 = arith.constant 15 : index
    %15 = memref.load %arg2[%c15] : memref<20xf32, #tpu.memory_space<smem>>
    %c16 = arith.constant 16 : index
    %16 = memref.load %arg2[%c16] : memref<20xf32, #tpu.memory_space<smem>>
    %c17 = arith.constant 17 : index
    %17 = memref.load %arg2[%c17] : memref<20xf32, #tpu.memory_space<smem>>
    %c18 = arith.constant 18 : index
    %18 = memref.load %arg2[%c18] : memref<20xf32, #tpu.memory_space<smem>>
    %c19 = arith.constant 19 : index
    %19 = memref.load %arg2[%c19] : memref<20xf32, #tpu.memory_space<smem>>
    %c0_0 = arith.constant 0 : index
    %20 = memref.load %arg3[%c0_0] : memref<20xf32, #tpu.memory_space<smem>>
    %c1_1 = arith.constant 1 : index
    %21 = memref.load %arg3[%c1_1] : memref<20xf32, #tpu.memory_space<smem>>
    %c2_2 = arith.constant 2 : index
    %22 = memref.load %arg3[%c2_2] : memref<20xf32, #tpu.memory_space<smem>>
    %c3_3 = arith.constant 3 : index
    %23 = memref.load %arg3[%c3_3] : memref<20xf32, #tpu.memory_space<smem>>
    %c4_4 = arith.constant 4 : index
    %24 = memref.load %arg3[%c4_4] : memref<20xf32, #tpu.memory_space<smem>>
    %c5_5 = arith.constant 5 : index
    %25 = memref.load %arg3[%c5_5] : memref<20xf32, #tpu.memory_space<smem>>
    %c6_6 = arith.constant 6 : index
    %26 = memref.load %arg3[%c6_6] : memref<20xf32, #tpu.memory_space<smem>>
    %c7_7 = arith.constant 7 : index
    %27 = memref.load %arg3[%c7_7] : memref<20xf32, #tpu.memory_space<smem>>
    %c8_8 = arith.constant 8 : index
    %28 = memref.load %arg3[%c8_8] : memref<20xf32, #tpu.memory_space<smem>>
    %c9_9 = arith.constant 9 : index
    %29 = memref.load %arg3[%c9_9] : memref<20xf32, #tpu.memory_space<smem>>
    %c10_10 = arith.constant 10 : index
    %30 = memref.load %arg3[%c10_10] : memref<20xf32, #tpu.memory_space<smem>>
    %c11_11 = arith.constant 11 : index
    %31 = memref.load %arg3[%c11_11] : memref<20xf32, #tpu.memory_space<smem>>
    %c12_12 = arith.constant 12 : index
    %32 = memref.load %arg3[%c12_12] : memref<20xf32, #tpu.memory_space<smem>>
    %c13_13 = arith.constant 13 : index
    %33 = memref.load %arg3[%c13_13] : memref<20xf32, #tpu.memory_space<smem>>
    %c14_14 = arith.constant 14 : index
    %34 = memref.load %arg3[%c14_14] : memref<20xf32, #tpu.memory_space<smem>>
    %c15_15 = arith.constant 15 : index
    %35 = memref.load %arg3[%c15_15] : memref<20xf32, #tpu.memory_space<smem>>
    %c16_16 = arith.constant 16 : index
    %36 = memref.load %arg3[%c16_16] : memref<20xf32, #tpu.memory_space<smem>>
    %c17_17 = arith.constant 17 : index
    %37 = memref.load %arg3[%c17_17] : memref<20xf32, #tpu.memory_space<smem>>
    %c18_18 = arith.constant 18 : index
    %38 = memref.load %arg3[%c18_18] : memref<20xf32, #tpu.memory_space<smem>>
    %c19_19 = arith.constant 19 : index
    %39 = memref.load %arg3[%c19_19] : memref<20xf32, #tpu.memory_space<smem>>
    %c0_20 = arith.constant 0 : index
    %40 = memref.load %arg4[%c0_20] : memref<400xf32, #tpu.memory_space<smem>>
    %c1_21 = arith.constant 1 : index
    %41 = memref.load %arg4[%c1_21] : memref<400xf32, #tpu.memory_space<smem>>
    %c2_22 = arith.constant 2 : index
    %42 = memref.load %arg4[%c2_22] : memref<400xf32, #tpu.memory_space<smem>>
    %c3_23 = arith.constant 3 : index
    %43 = memref.load %arg4[%c3_23] : memref<400xf32, #tpu.memory_space<smem>>
    %c4_24 = arith.constant 4 : index
    %44 = memref.load %arg4[%c4_24] : memref<400xf32, #tpu.memory_space<smem>>
    %c5_25 = arith.constant 5 : index
    %45 = memref.load %arg4[%c5_25] : memref<400xf32, #tpu.memory_space<smem>>
    %c6_26 = arith.constant 6 : index
    %46 = memref.load %arg4[%c6_26] : memref<400xf32, #tpu.memory_space<smem>>
    %c7_27 = arith.constant 7 : index
    %47 = memref.load %arg4[%c7_27] : memref<400xf32, #tpu.memory_space<smem>>
    %c8_28 = arith.constant 8 : index
    %48 = memref.load %arg4[%c8_28] : memref<400xf32, #tpu.memory_space<smem>>
    %c9_29 = arith.constant 9 : index
    %49 = memref.load %arg4[%c9_29] : memref<400xf32, #tpu.memory_space<smem>>
    %c10_30 = arith.constant 10 : index
    %50 = memref.load %arg4[%c10_30] : memref<400xf32, #tpu.memory_space<smem>>
    %c11_31 = arith.constant 11 : index
    %51 = memref.load %arg4[%c11_31] : memref<400xf32, #tpu.memory_space<smem>>
    %c12_32 = arith.constant 12 : index
    %52 = memref.load %arg4[%c12_32] : memref<400xf32, #tpu.memory_space<smem>>
    %c13_33 = arith.constant 13 : index
    %53 = memref.load %arg4[%c13_33] : memref<400xf32, #tpu.memory_space<smem>>
    %c14_34 = arith.constant 14 : index
    %54 = memref.load %arg4[%c14_34] : memref<400xf32, #tpu.memory_space<smem>>
    %c15_35 = arith.constant 15 : index
    %55 = memref.load %arg4[%c15_35] : memref<400xf32, #tpu.memory_space<smem>>
    %c16_36 = arith.constant 16 : index
    %56 = memref.load %arg4[%c16_36] : memref<400xf32, #tpu.memory_space<smem>>
    %c17_37 = arith.constant 17 : index
    %57 = memref.load %arg4[%c17_37] : memref<400xf32, #tpu.memory_space<smem>>
    %c18_38 = arith.constant 18 : index
    %58 = memref.load %arg4[%c18_38] : memref<400xf32, #tpu.memory_space<smem>>
    %c19_39 = arith.constant 19 : index
    %59 = memref.load %arg4[%c19_39] : memref<400xf32, #tpu.memory_space<smem>>
    %c20 = arith.constant 20 : index
    %60 = memref.load %arg4[%c20] : memref<400xf32, #tpu.memory_space<smem>>
    %c21 = arith.constant 21 : index
    %61 = memref.load %arg4[%c21] : memref<400xf32, #tpu.memory_space<smem>>
    %c22 = arith.constant 22 : index
    %62 = memref.load %arg4[%c22] : memref<400xf32, #tpu.memory_space<smem>>
    %c23 = arith.constant 23 : index
    %63 = memref.load %arg4[%c23] : memref<400xf32, #tpu.memory_space<smem>>
    %c24 = arith.constant 24 : index
    %64 = memref.load %arg4[%c24] : memref<400xf32, #tpu.memory_space<smem>>
    %c25 = arith.constant 25 : index
    %65 = memref.load %arg4[%c25] : memref<400xf32, #tpu.memory_space<smem>>
    %c26 = arith.constant 26 : index
    %66 = memref.load %arg4[%c26] : memref<400xf32, #tpu.memory_space<smem>>
    %c27 = arith.constant 27 : index
    %67 = memref.load %arg4[%c27] : memref<400xf32, #tpu.memory_space<smem>>
    %c28 = arith.constant 28 : index
    %68 = memref.load %arg4[%c28] : memref<400xf32, #tpu.memory_space<smem>>
    %c29 = arith.constant 29 : index
    %69 = memref.load %arg4[%c29] : memref<400xf32, #tpu.memory_space<smem>>
    %c30 = arith.constant 30 : index
    %70 = memref.load %arg4[%c30] : memref<400xf32, #tpu.memory_space<smem>>
    %c31 = arith.constant 31 : index
    %71 = memref.load %arg4[%c31] : memref<400xf32, #tpu.memory_space<smem>>
    %c32 = arith.constant 32 : index
    %72 = memref.load %arg4[%c32] : memref<400xf32, #tpu.memory_space<smem>>
    %c33 = arith.constant 33 : index
    %73 = memref.load %arg4[%c33] : memref<400xf32, #tpu.memory_space<smem>>
    %c34 = arith.constant 34 : index
    %74 = memref.load %arg4[%c34] : memref<400xf32, #tpu.memory_space<smem>>
    %c35 = arith.constant 35 : index
    %75 = memref.load %arg4[%c35] : memref<400xf32, #tpu.memory_space<smem>>
    %c36 = arith.constant 36 : index
    %76 = memref.load %arg4[%c36] : memref<400xf32, #tpu.memory_space<smem>>
    %c37 = arith.constant 37 : index
    %77 = memref.load %arg4[%c37] : memref<400xf32, #tpu.memory_space<smem>>
    %c38 = arith.constant 38 : index
    %78 = memref.load %arg4[%c38] : memref<400xf32, #tpu.memory_space<smem>>
    %c39 = arith.constant 39 : index
    %79 = memref.load %arg4[%c39] : memref<400xf32, #tpu.memory_space<smem>>
    %c40 = arith.constant 40 : index
    %80 = memref.load %arg4[%c40] : memref<400xf32, #tpu.memory_space<smem>>
    %c41 = arith.constant 41 : index
    %81 = memref.load %arg4[%c41] : memref<400xf32, #tpu.memory_space<smem>>
    %c42 = arith.constant 42 : index
    %82 = memref.load %arg4[%c42] : memref<400xf32, #tpu.memory_space<smem>>
    %c43 = arith.constant 43 : index
    %83 = memref.load %arg4[%c43] : memref<400xf32, #tpu.memory_space<smem>>
    %c44 = arith.constant 44 : index
    %84 = memref.load %arg4[%c44] : memref<400xf32, #tpu.memory_space<smem>>
    %c45 = arith.constant 45 : index
    %85 = memref.load %arg4[%c45] : memref<400xf32, #tpu.memory_space<smem>>
    %c46 = arith.constant 46 : index
    %86 = memref.load %arg4[%c46] : memref<400xf32, #tpu.memory_space<smem>>
    %c47 = arith.constant 47 : index
    %87 = memref.load %arg4[%c47] : memref<400xf32, #tpu.memory_space<smem>>
    %c48 = arith.constant 48 : index
    %88 = memref.load %arg4[%c48] : memref<400xf32, #tpu.memory_space<smem>>
    %c49 = arith.constant 49 : index
    %89 = memref.load %arg4[%c49] : memref<400xf32, #tpu.memory_space<smem>>
    %c50 = arith.constant 50 : index
    %90 = memref.load %arg4[%c50] : memref<400xf32, #tpu.memory_space<smem>>
    %c51 = arith.constant 51 : index
    %91 = memref.load %arg4[%c51] : memref<400xf32, #tpu.memory_space<smem>>
    %c52 = arith.constant 52 : index
    %92 = memref.load %arg4[%c52] : memref<400xf32, #tpu.memory_space<smem>>
    %c53 = arith.constant 53 : index
    %93 = memref.load %arg4[%c53] : memref<400xf32, #tpu.memory_space<smem>>
    %c54 = arith.constant 54 : index
    %94 = memref.load %arg4[%c54] : memref<400xf32, #tpu.memory_space<smem>>
    %c55 = arith.constant 55 : index
    %95 = memref.load %arg4[%c55] : memref<400xf32, #tpu.memory_space<smem>>
    %c56 = arith.constant 56 : index
    %96 = memref.load %arg4[%c56] : memref<400xf32, #tpu.memory_space<smem>>
    %c57 = arith.constant 57 : index
    %97 = memref.load %arg4[%c57] : memref<400xf32, #tpu.memory_space<smem>>
    %c58 = arith.constant 58 : index
    %98 = memref.load %arg4[%c58] : memref<400xf32, #tpu.memory_space<smem>>
    %c59 = arith.constant 59 : index
    %99 = memref.load %arg4[%c59] : memref<400xf32, #tpu.memory_space<smem>>
    %c60 = arith.constant 60 : index
    %100 = memref.load %arg4[%c60] : memref<400xf32, #tpu.memory_space<smem>>
    %c61 = arith.constant 61 : index
    %101 = memref.load %arg4[%c61] : memref<400xf32, #tpu.memory_space<smem>>
    %c62 = arith.constant 62 : index
    %102 = memref.load %arg4[%c62] : memref<400xf32, #tpu.memory_space<smem>>
    %c63 = arith.constant 63 : index
    %103 = memref.load %arg4[%c63] : memref<400xf32, #tpu.memory_space<smem>>
    %c64 = arith.constant 64 : index
    %104 = memref.load %arg4[%c64] : memref<400xf32, #tpu.memory_space<smem>>
    %c65 = arith.constant 65 : index
    %105 = memref.load %arg4[%c65] : memref<400xf32, #tpu.memory_space<smem>>
    %c66 = arith.constant 66 : index
    %106 = memref.load %arg4[%c66] : memref<400xf32, #tpu.memory_space<smem>>
    %c67 = arith.constant 67 : index
    %107 = memref.load %arg4[%c67] : memref<400xf32, #tpu.memory_space<smem>>
    %c68 = arith.constant 68 : index
    %108 = memref.load %arg4[%c68] : memref<400xf32, #tpu.memory_space<smem>>
    %c69 = arith.constant 69 : index
    %109 = memref.load %arg4[%c69] : memref<400xf32, #tpu.memory_space<smem>>
    %c70 = arith.constant 70 : index
    %110 = memref.load %arg4[%c70] : memref<400xf32, #tpu.memory_space<smem>>
    %c71 = arith.constant 71 : index
    %111 = memref.load %arg4[%c71] : memref<400xf32, #tpu.memory_space<smem>>
    %c72 = arith.constant 72 : index
    %112 = memref.load %arg4[%c72] : memref<400xf32, #tpu.memory_space<smem>>
    %c73 = arith.constant 73 : index
    %113 = memref.load %arg4[%c73] : memref<400xf32, #tpu.memory_space<smem>>
    %c74 = arith.constant 74 : index
    %114 = memref.load %arg4[%c74] : memref<400xf32, #tpu.memory_space<smem>>
    %c75 = arith.constant 75 : index
    %115 = memref.load %arg4[%c75] : memref<400xf32, #tpu.memory_space<smem>>
    %c76 = arith.constant 76 : index
    %116 = memref.load %arg4[%c76] : memref<400xf32, #tpu.memory_space<smem>>
    %c77 = arith.constant 77 : index
    %117 = memref.load %arg4[%c77] : memref<400xf32, #tpu.memory_space<smem>>
    %c78 = arith.constant 78 : index
    %118 = memref.load %arg4[%c78] : memref<400xf32, #tpu.memory_space<smem>>
    %c79 = arith.constant 79 : index
    %119 = memref.load %arg4[%c79] : memref<400xf32, #tpu.memory_space<smem>>
    %c80 = arith.constant 80 : index
    %120 = memref.load %arg4[%c80] : memref<400xf32, #tpu.memory_space<smem>>
    %c81 = arith.constant 81 : index
    %121 = memref.load %arg4[%c81] : memref<400xf32, #tpu.memory_space<smem>>
    %c82 = arith.constant 82 : index
    %122 = memref.load %arg4[%c82] : memref<400xf32, #tpu.memory_space<smem>>
    %c83 = arith.constant 83 : index
    %123 = memref.load %arg4[%c83] : memref<400xf32, #tpu.memory_space<smem>>
    %c84 = arith.constant 84 : index
    %124 = memref.load %arg4[%c84] : memref<400xf32, #tpu.memory_space<smem>>
    %c85 = arith.constant 85 : index
    %125 = memref.load %arg4[%c85] : memref<400xf32, #tpu.memory_space<smem>>
    %c86 = arith.constant 86 : index
    %126 = memref.load %arg4[%c86] : memref<400xf32, #tpu.memory_space<smem>>
    %c87 = arith.constant 87 : index
    %127 = memref.load %arg4[%c87] : memref<400xf32, #tpu.memory_space<smem>>
    %c88 = arith.constant 88 : index
    %128 = memref.load %arg4[%c88] : memref<400xf32, #tpu.memory_space<smem>>
    %c89 = arith.constant 89 : index
    %129 = memref.load %arg4[%c89] : memref<400xf32, #tpu.memory_space<smem>>
    %c90 = arith.constant 90 : index
    %130 = memref.load %arg4[%c90] : memref<400xf32, #tpu.memory_space<smem>>
    %c91 = arith.constant 91 : index
    %131 = memref.load %arg4[%c91] : memref<400xf32, #tpu.memory_space<smem>>
    %c92 = arith.constant 92 : index
    %132 = memref.load %arg4[%c92] : memref<400xf32, #tpu.memory_space<smem>>
    %c93 = arith.constant 93 : index
    %133 = memref.load %arg4[%c93] : memref<400xf32, #tpu.memory_space<smem>>
    %c94 = arith.constant 94 : index
    %134 = memref.load %arg4[%c94] : memref<400xf32, #tpu.memory_space<smem>>
    %c95 = arith.constant 95 : index
    %135 = memref.load %arg4[%c95] : memref<400xf32, #tpu.memory_space<smem>>
    %c96 = arith.constant 96 : index
    %136 = memref.load %arg4[%c96] : memref<400xf32, #tpu.memory_space<smem>>
    %c97 = arith.constant 97 : index
    %137 = memref.load %arg4[%c97] : memref<400xf32, #tpu.memory_space<smem>>
    %c98 = arith.constant 98 : index
    %138 = memref.load %arg4[%c98] : memref<400xf32, #tpu.memory_space<smem>>
    %c99 = arith.constant 99 : index
    %139 = memref.load %arg4[%c99] : memref<400xf32, #tpu.memory_space<smem>>
    %c100 = arith.constant 100 : index
    %140 = memref.load %arg4[%c100] : memref<400xf32, #tpu.memory_space<smem>>
    %c101 = arith.constant 101 : index
    %141 = memref.load %arg4[%c101] : memref<400xf32, #tpu.memory_space<smem>>
    %c102 = arith.constant 102 : index
    %142 = memref.load %arg4[%c102] : memref<400xf32, #tpu.memory_space<smem>>
    %c103 = arith.constant 103 : index
    %143 = memref.load %arg4[%c103] : memref<400xf32, #tpu.memory_space<smem>>
    %c104 = arith.constant 104 : index
    %144 = memref.load %arg4[%c104] : memref<400xf32, #tpu.memory_space<smem>>
    %c105 = arith.constant 105 : index
    %145 = memref.load %arg4[%c105] : memref<400xf32, #tpu.memory_space<smem>>
    %c106 = arith.constant 106 : index
    %146 = memref.load %arg4[%c106] : memref<400xf32, #tpu.memory_space<smem>>
    %c107 = arith.constant 107 : index
    %147 = memref.load %arg4[%c107] : memref<400xf32, #tpu.memory_space<smem>>
    %c108 = arith.constant 108 : index
    %148 = memref.load %arg4[%c108] : memref<400xf32, #tpu.memory_space<smem>>
    %c109 = arith.constant 109 : index
    %149 = memref.load %arg4[%c109] : memref<400xf32, #tpu.memory_space<smem>>
    %c110 = arith.constant 110 : index
    %150 = memref.load %arg4[%c110] : memref<400xf32, #tpu.memory_space<smem>>
    %c111 = arith.constant 111 : index
    %151 = memref.load %arg4[%c111] : memref<400xf32, #tpu.memory_space<smem>>
    %c112 = arith.constant 112 : index
    %152 = memref.load %arg4[%c112] : memref<400xf32, #tpu.memory_space<smem>>
    %c113 = arith.constant 113 : index
    %153 = memref.load %arg4[%c113] : memref<400xf32, #tpu.memory_space<smem>>
    %c114 = arith.constant 114 : index
    %154 = memref.load %arg4[%c114] : memref<400xf32, #tpu.memory_space<smem>>
    %c115 = arith.constant 115 : index
    %155 = memref.load %arg4[%c115] : memref<400xf32, #tpu.memory_space<smem>>
    %c116 = arith.constant 116 : index
    %156 = memref.load %arg4[%c116] : memref<400xf32, #tpu.memory_space<smem>>
    %c117 = arith.constant 117 : index
    %157 = memref.load %arg4[%c117] : memref<400xf32, #tpu.memory_space<smem>>
    %c118 = arith.constant 118 : index
    %158 = memref.load %arg4[%c118] : memref<400xf32, #tpu.memory_space<smem>>
    %c119 = arith.constant 119 : index
    %159 = memref.load %arg4[%c119] : memref<400xf32, #tpu.memory_space<smem>>
    %c120 = arith.constant 120 : index
    %160 = memref.load %arg4[%c120] : memref<400xf32, #tpu.memory_space<smem>>
    %c121 = arith.constant 121 : index
    %161 = memref.load %arg4[%c121] : memref<400xf32, #tpu.memory_space<smem>>
    %c122 = arith.constant 122 : index
    %162 = memref.load %arg4[%c122] : memref<400xf32, #tpu.memory_space<smem>>
    %c123 = arith.constant 123 : index
    %163 = memref.load %arg4[%c123] : memref<400xf32, #tpu.memory_space<smem>>
    %c124 = arith.constant 124 : index
    %164 = memref.load %arg4[%c124] : memref<400xf32, #tpu.memory_space<smem>>
    %c125 = arith.constant 125 : index
    %165 = memref.load %arg4[%c125] : memref<400xf32, #tpu.memory_space<smem>>
    %c126 = arith.constant 126 : index
    %166 = memref.load %arg4[%c126] : memref<400xf32, #tpu.memory_space<smem>>
    %c127 = arith.constant 127 : index
    %167 = memref.load %arg4[%c127] : memref<400xf32, #tpu.memory_space<smem>>
    %c128 = arith.constant 128 : index
    %168 = memref.load %arg4[%c128] : memref<400xf32, #tpu.memory_space<smem>>
    %c129 = arith.constant 129 : index
    %169 = memref.load %arg4[%c129] : memref<400xf32, #tpu.memory_space<smem>>
    %c130 = arith.constant 130 : index
    %170 = memref.load %arg4[%c130] : memref<400xf32, #tpu.memory_space<smem>>
    %c131 = arith.constant 131 : index
    %171 = memref.load %arg4[%c131] : memref<400xf32, #tpu.memory_space<smem>>
    %c132 = arith.constant 132 : index
    %172 = memref.load %arg4[%c132] : memref<400xf32, #tpu.memory_space<smem>>
    %c133 = arith.constant 133 : index
    %173 = memref.load %arg4[%c133] : memref<400xf32, #tpu.memory_space<smem>>
    %c134 = arith.constant 134 : index
    %174 = memref.load %arg4[%c134] : memref<400xf32, #tpu.memory_space<smem>>
    %c135 = arith.constant 135 : index
    %175 = memref.load %arg4[%c135] : memref<400xf32, #tpu.memory_space<smem>>
    %c136 = arith.constant 136 : index
    %176 = memref.load %arg4[%c136] : memref<400xf32, #tpu.memory_space<smem>>
    %c137 = arith.constant 137 : index
    %177 = memref.load %arg4[%c137] : memref<400xf32, #tpu.memory_space<smem>>
    %c138 = arith.constant 138 : index
    %178 = memref.load %arg4[%c138] : memref<400xf32, #tpu.memory_space<smem>>
    %c139 = arith.constant 139 : index
    %179 = memref.load %arg4[%c139] : memref<400xf32, #tpu.memory_space<smem>>
    %c140 = arith.constant 140 : index
    %180 = memref.load %arg4[%c140] : memref<400xf32, #tpu.memory_space<smem>>
    %c141 = arith.constant 141 : index
    %181 = memref.load %arg4[%c141] : memref<400xf32, #tpu.memory_space<smem>>
    %c142 = arith.constant 142 : index
    %182 = memref.load %arg4[%c142] : memref<400xf32, #tpu.memory_space<smem>>
    %c143 = arith.constant 143 : index
    %183 = memref.load %arg4[%c143] : memref<400xf32, #tpu.memory_space<smem>>
    %c144 = arith.constant 144 : index
    %184 = memref.load %arg4[%c144] : memref<400xf32, #tpu.memory_space<smem>>
    %c145 = arith.constant 145 : index
    %185 = memref.load %arg4[%c145] : memref<400xf32, #tpu.memory_space<smem>>
    %c146 = arith.constant 146 : index
    %186 = memref.load %arg4[%c146] : memref<400xf32, #tpu.memory_space<smem>>
    %c147 = arith.constant 147 : index
    %187 = memref.load %arg4[%c147] : memref<400xf32, #tpu.memory_space<smem>>
    %c148 = arith.constant 148 : index
    %188 = memref.load %arg4[%c148] : memref<400xf32, #tpu.memory_space<smem>>
    %c149 = arith.constant 149 : index
    %189 = memref.load %arg4[%c149] : memref<400xf32, #tpu.memory_space<smem>>
    %c150 = arith.constant 150 : index
    %190 = memref.load %arg4[%c150] : memref<400xf32, #tpu.memory_space<smem>>
    %c151 = arith.constant 151 : index
    %191 = memref.load %arg4[%c151] : memref<400xf32, #tpu.memory_space<smem>>
    %c152 = arith.constant 152 : index
    %192 = memref.load %arg4[%c152] : memref<400xf32, #tpu.memory_space<smem>>
    %c153 = arith.constant 153 : index
    %193 = memref.load %arg4[%c153] : memref<400xf32, #tpu.memory_space<smem>>
    %c154 = arith.constant 154 : index
    %194 = memref.load %arg4[%c154] : memref<400xf32, #tpu.memory_space<smem>>
    %c155 = arith.constant 155 : index
    %195 = memref.load %arg4[%c155] : memref<400xf32, #tpu.memory_space<smem>>
    %c156 = arith.constant 156 : index
    %196 = memref.load %arg4[%c156] : memref<400xf32, #tpu.memory_space<smem>>
    %c157 = arith.constant 157 : index
    %197 = memref.load %arg4[%c157] : memref<400xf32, #tpu.memory_space<smem>>
    %c158 = arith.constant 158 : index
    %198 = memref.load %arg4[%c158] : memref<400xf32, #tpu.memory_space<smem>>
    %c159 = arith.constant 159 : index
    %199 = memref.load %arg4[%c159] : memref<400xf32, #tpu.memory_space<smem>>
    %c160 = arith.constant 160 : index
    %200 = memref.load %arg4[%c160] : memref<400xf32, #tpu.memory_space<smem>>
    %c161 = arith.constant 161 : index
    %201 = memref.load %arg4[%c161] : memref<400xf32, #tpu.memory_space<smem>>
    %c162 = arith.constant 162 : index
    %202 = memref.load %arg4[%c162] : memref<400xf32, #tpu.memory_space<smem>>
    %c163 = arith.constant 163 : index
    %203 = memref.load %arg4[%c163] : memref<400xf32, #tpu.memory_space<smem>>
    %c164 = arith.constant 164 : index
    %204 = memref.load %arg4[%c164] : memref<400xf32, #tpu.memory_space<smem>>
    %c165 = arith.constant 165 : index
    %205 = memref.load %arg4[%c165] : memref<400xf32, #tpu.memory_space<smem>>
    %c166 = arith.constant 166 : index
    %206 = memref.load %arg4[%c166] : memref<400xf32, #tpu.memory_space<smem>>
    %c167 = arith.constant 167 : index
    %207 = memref.load %arg4[%c167] : memref<400xf32, #tpu.memory_space<smem>>
    %c168 = arith.constant 168 : index
    %208 = memref.load %arg4[%c168] : memref<400xf32, #tpu.memory_space<smem>>
    %c169 = arith.constant 169 : index
    %209 = memref.load %arg4[%c169] : memref<400xf32, #tpu.memory_space<smem>>
    %c170 = arith.constant 170 : index
    %210 = memref.load %arg4[%c170] : memref<400xf32, #tpu.memory_space<smem>>
    %c171 = arith.constant 171 : index
    %211 = memref.load %arg4[%c171] : memref<400xf32, #tpu.memory_space<smem>>
    %c172 = arith.constant 172 : index
    %212 = memref.load %arg4[%c172] : memref<400xf32, #tpu.memory_space<smem>>
    %c173 = arith.constant 173 : index
    %213 = memref.load %arg4[%c173] : memref<400xf32, #tpu.memory_space<smem>>
    %c174 = arith.constant 174 : index
    %214 = memref.load %arg4[%c174] : memref<400xf32, #tpu.memory_space<smem>>
    %c175 = arith.constant 175 : index
    %215 = memref.load %arg4[%c175] : memref<400xf32, #tpu.memory_space<smem>>
    %c176 = arith.constant 176 : index
    %216 = memref.load %arg4[%c176] : memref<400xf32, #tpu.memory_space<smem>>
    %c177 = arith.constant 177 : index
    %217 = memref.load %arg4[%c177] : memref<400xf32, #tpu.memory_space<smem>>
    %c178 = arith.constant 178 : index
    %218 = memref.load %arg4[%c178] : memref<400xf32, #tpu.memory_space<smem>>
    %c179 = arith.constant 179 : index
    %219 = memref.load %arg4[%c179] : memref<400xf32, #tpu.memory_space<smem>>
    %c180 = arith.constant 180 : index
    %220 = memref.load %arg4[%c180] : memref<400xf32, #tpu.memory_space<smem>>
    %c181 = arith.constant 181 : index
    %221 = memref.load %arg4[%c181] : memref<400xf32, #tpu.memory_space<smem>>
    %c182 = arith.constant 182 : index
    %222 = memref.load %arg4[%c182] : memref<400xf32, #tpu.memory_space<smem>>
    %c183 = arith.constant 183 : index
    %223 = memref.load %arg4[%c183] : memref<400xf32, #tpu.memory_space<smem>>
    %c184 = arith.constant 184 : index
    %224 = memref.load %arg4[%c184] : memref<400xf32, #tpu.memory_space<smem>>
    %c185 = arith.constant 185 : index
    %225 = memref.load %arg4[%c185] : memref<400xf32, #tpu.memory_space<smem>>
    %c186 = arith.constant 186 : index
    %226 = memref.load %arg4[%c186] : memref<400xf32, #tpu.memory_space<smem>>
    %c187 = arith.constant 187 : index
    %227 = memref.load %arg4[%c187] : memref<400xf32, #tpu.memory_space<smem>>
    %c188 = arith.constant 188 : index
    %228 = memref.load %arg4[%c188] : memref<400xf32, #tpu.memory_space<smem>>
    %c189 = arith.constant 189 : index
    %229 = memref.load %arg4[%c189] : memref<400xf32, #tpu.memory_space<smem>>
    %c190 = arith.constant 190 : index
    %230 = memref.load %arg4[%c190] : memref<400xf32, #tpu.memory_space<smem>>
    %c191 = arith.constant 191 : index
    %231 = memref.load %arg4[%c191] : memref<400xf32, #tpu.memory_space<smem>>
    %c192 = arith.constant 192 : index
    %232 = memref.load %arg4[%c192] : memref<400xf32, #tpu.memory_space<smem>>
    %c193 = arith.constant 193 : index
    %233 = memref.load %arg4[%c193] : memref<400xf32, #tpu.memory_space<smem>>
    %c194 = arith.constant 194 : index
    %234 = memref.load %arg4[%c194] : memref<400xf32, #tpu.memory_space<smem>>
    %c195 = arith.constant 195 : index
    %235 = memref.load %arg4[%c195] : memref<400xf32, #tpu.memory_space<smem>>
    %c196 = arith.constant 196 : index
    %236 = memref.load %arg4[%c196] : memref<400xf32, #tpu.memory_space<smem>>
    %c197 = arith.constant 197 : index
    %237 = memref.load %arg4[%c197] : memref<400xf32, #tpu.memory_space<smem>>
    %c198 = arith.constant 198 : index
    %238 = memref.load %arg4[%c198] : memref<400xf32, #tpu.memory_space<smem>>
    %c199 = arith.constant 199 : index
    %239 = memref.load %arg4[%c199] : memref<400xf32, #tpu.memory_space<smem>>
    %c200 = arith.constant 200 : index
    %240 = memref.load %arg4[%c200] : memref<400xf32, #tpu.memory_space<smem>>
    %c201 = arith.constant 201 : index
    %241 = memref.load %arg4[%c201] : memref<400xf32, #tpu.memory_space<smem>>
    %c202 = arith.constant 202 : index
    %242 = memref.load %arg4[%c202] : memref<400xf32, #tpu.memory_space<smem>>
    %c203 = arith.constant 203 : index
    %243 = memref.load %arg4[%c203] : memref<400xf32, #tpu.memory_space<smem>>
    %c204 = arith.constant 204 : index
    %244 = memref.load %arg4[%c204] : memref<400xf32, #tpu.memory_space<smem>>
    %c205 = arith.constant 205 : index
    %245 = memref.load %arg4[%c205] : memref<400xf32, #tpu.memory_space<smem>>
    %c206 = arith.constant 206 : index
    %246 = memref.load %arg4[%c206] : memref<400xf32, #tpu.memory_space<smem>>
    %c207 = arith.constant 207 : index
    %247 = memref.load %arg4[%c207] : memref<400xf32, #tpu.memory_space<smem>>
    %c208 = arith.constant 208 : index
    %248 = memref.load %arg4[%c208] : memref<400xf32, #tpu.memory_space<smem>>
    %c209 = arith.constant 209 : index
    %249 = memref.load %arg4[%c209] : memref<400xf32, #tpu.memory_space<smem>>
    %c210 = arith.constant 210 : index
    %250 = memref.load %arg4[%c210] : memref<400xf32, #tpu.memory_space<smem>>
    %c211 = arith.constant 211 : index
    %251 = memref.load %arg4[%c211] : memref<400xf32, #tpu.memory_space<smem>>
    %c212 = arith.constant 212 : index
    %252 = memref.load %arg4[%c212] : memref<400xf32, #tpu.memory_space<smem>>
    %c213 = arith.constant 213 : index
    %253 = memref.load %arg4[%c213] : memref<400xf32, #tpu.memory_space<smem>>
    %c214 = arith.constant 214 : index
    %254 = memref.load %arg4[%c214] : memref<400xf32, #tpu.memory_space<smem>>
    %c215 = arith.constant 215 : index
    %255 = memref.load %arg4[%c215] : memref<400xf32, #tpu.memory_space<smem>>
    %c216 = arith.constant 216 : index
    %256 = memref.load %arg4[%c216] : memref<400xf32, #tpu.memory_space<smem>>
    %c217 = arith.constant 217 : index
    %257 = memref.load %arg4[%c217] : memref<400xf32, #tpu.memory_space<smem>>
    %c218 = arith.constant 218 : index
    %258 = memref.load %arg4[%c218] : memref<400xf32, #tpu.memory_space<smem>>
    %c219 = arith.constant 219 : index
    %259 = memref.load %arg4[%c219] : memref<400xf32, #tpu.memory_space<smem>>
    %c220 = arith.constant 220 : index
    %260 = memref.load %arg4[%c220] : memref<400xf32, #tpu.memory_space<smem>>
    %c221 = arith.constant 221 : index
    %261 = memref.load %arg4[%c221] : memref<400xf32, #tpu.memory_space<smem>>
    %c222 = arith.constant 222 : index
    %262 = memref.load %arg4[%c222] : memref<400xf32, #tpu.memory_space<smem>>
    %c223 = arith.constant 223 : index
    %263 = memref.load %arg4[%c223] : memref<400xf32, #tpu.memory_space<smem>>
    %c224 = arith.constant 224 : index
    %264 = memref.load %arg4[%c224] : memref<400xf32, #tpu.memory_space<smem>>
    %c225 = arith.constant 225 : index
    %265 = memref.load %arg4[%c225] : memref<400xf32, #tpu.memory_space<smem>>
    %c226 = arith.constant 226 : index
    %266 = memref.load %arg4[%c226] : memref<400xf32, #tpu.memory_space<smem>>
    %c227 = arith.constant 227 : index
    %267 = memref.load %arg4[%c227] : memref<400xf32, #tpu.memory_space<smem>>
    %c228 = arith.constant 228 : index
    %268 = memref.load %arg4[%c228] : memref<400xf32, #tpu.memory_space<smem>>
    %c229 = arith.constant 229 : index
    %269 = memref.load %arg4[%c229] : memref<400xf32, #tpu.memory_space<smem>>
    %c230 = arith.constant 230 : index
    %270 = memref.load %arg4[%c230] : memref<400xf32, #tpu.memory_space<smem>>
    %c231 = arith.constant 231 : index
    %271 = memref.load %arg4[%c231] : memref<400xf32, #tpu.memory_space<smem>>
    %c232 = arith.constant 232 : index
    %272 = memref.load %arg4[%c232] : memref<400xf32, #tpu.memory_space<smem>>
    %c233 = arith.constant 233 : index
    %273 = memref.load %arg4[%c233] : memref<400xf32, #tpu.memory_space<smem>>
    %c234 = arith.constant 234 : index
    %274 = memref.load %arg4[%c234] : memref<400xf32, #tpu.memory_space<smem>>
    %c235 = arith.constant 235 : index
    %275 = memref.load %arg4[%c235] : memref<400xf32, #tpu.memory_space<smem>>
    %c236 = arith.constant 236 : index
    %276 = memref.load %arg4[%c236] : memref<400xf32, #tpu.memory_space<smem>>
    %c237 = arith.constant 237 : index
    %277 = memref.load %arg4[%c237] : memref<400xf32, #tpu.memory_space<smem>>
    %c238 = arith.constant 238 : index
    %278 = memref.load %arg4[%c238] : memref<400xf32, #tpu.memory_space<smem>>
    %c239 = arith.constant 239 : index
    %279 = memref.load %arg4[%c239] : memref<400xf32, #tpu.memory_space<smem>>
    %c240 = arith.constant 240 : index
    %280 = memref.load %arg4[%c240] : memref<400xf32, #tpu.memory_space<smem>>
    %c241 = arith.constant 241 : index
    %281 = memref.load %arg4[%c241] : memref<400xf32, #tpu.memory_space<smem>>
    %c242 = arith.constant 242 : index
    %282 = memref.load %arg4[%c242] : memref<400xf32, #tpu.memory_space<smem>>
    %c243 = arith.constant 243 : index
    %283 = memref.load %arg4[%c243] : memref<400xf32, #tpu.memory_space<smem>>
    %c244 = arith.constant 244 : index
    %284 = memref.load %arg4[%c244] : memref<400xf32, #tpu.memory_space<smem>>
    %c245 = arith.constant 245 : index
    %285 = memref.load %arg4[%c245] : memref<400xf32, #tpu.memory_space<smem>>
    %c246 = arith.constant 246 : index
    %286 = memref.load %arg4[%c246] : memref<400xf32, #tpu.memory_space<smem>>
    %c247 = arith.constant 247 : index
    %287 = memref.load %arg4[%c247] : memref<400xf32, #tpu.memory_space<smem>>
    %c248 = arith.constant 248 : index
    %288 = memref.load %arg4[%c248] : memref<400xf32, #tpu.memory_space<smem>>
    %c249 = arith.constant 249 : index
    %289 = memref.load %arg4[%c249] : memref<400xf32, #tpu.memory_space<smem>>
    %c250 = arith.constant 250 : index
    %290 = memref.load %arg4[%c250] : memref<400xf32, #tpu.memory_space<smem>>
    %c251 = arith.constant 251 : index
    %291 = memref.load %arg4[%c251] : memref<400xf32, #tpu.memory_space<smem>>
    %c252 = arith.constant 252 : index
    %292 = memref.load %arg4[%c252] : memref<400xf32, #tpu.memory_space<smem>>
    %c253 = arith.constant 253 : index
    %293 = memref.load %arg4[%c253] : memref<400xf32, #tpu.memory_space<smem>>
    %c254 = arith.constant 254 : index
    %294 = memref.load %arg4[%c254] : memref<400xf32, #tpu.memory_space<smem>>
    %c255 = arith.constant 255 : index
    %295 = memref.load %arg4[%c255] : memref<400xf32, #tpu.memory_space<smem>>
    %c256 = arith.constant 256 : index
    %296 = memref.load %arg4[%c256] : memref<400xf32, #tpu.memory_space<smem>>
    %c257 = arith.constant 257 : index
    %297 = memref.load %arg4[%c257] : memref<400xf32, #tpu.memory_space<smem>>
    %c258 = arith.constant 258 : index
    %298 = memref.load %arg4[%c258] : memref<400xf32, #tpu.memory_space<smem>>
    %c259 = arith.constant 259 : index
    %299 = memref.load %arg4[%c259] : memref<400xf32, #tpu.memory_space<smem>>
    %c260 = arith.constant 260 : index
    %300 = memref.load %arg4[%c260] : memref<400xf32, #tpu.memory_space<smem>>
    %c261 = arith.constant 261 : index
    %301 = memref.load %arg4[%c261] : memref<400xf32, #tpu.memory_space<smem>>
    %c262 = arith.constant 262 : index
    %302 = memref.load %arg4[%c262] : memref<400xf32, #tpu.memory_space<smem>>
    %c263 = arith.constant 263 : index
    %303 = memref.load %arg4[%c263] : memref<400xf32, #tpu.memory_space<smem>>
    %c264 = arith.constant 264 : index
    %304 = memref.load %arg4[%c264] : memref<400xf32, #tpu.memory_space<smem>>
    %c265 = arith.constant 265 : index
    %305 = memref.load %arg4[%c265] : memref<400xf32, #tpu.memory_space<smem>>
    %c266 = arith.constant 266 : index
    %306 = memref.load %arg4[%c266] : memref<400xf32, #tpu.memory_space<smem>>
    %c267 = arith.constant 267 : index
    %307 = memref.load %arg4[%c267] : memref<400xf32, #tpu.memory_space<smem>>
    %c268 = arith.constant 268 : index
    %308 = memref.load %arg4[%c268] : memref<400xf32, #tpu.memory_space<smem>>
    %c269 = arith.constant 269 : index
    %309 = memref.load %arg4[%c269] : memref<400xf32, #tpu.memory_space<smem>>
    %c270 = arith.constant 270 : index
    %310 = memref.load %arg4[%c270] : memref<400xf32, #tpu.memory_space<smem>>
    %c271 = arith.constant 271 : index
    %311 = memref.load %arg4[%c271] : memref<400xf32, #tpu.memory_space<smem>>
    %c272 = arith.constant 272 : index
    %312 = memref.load %arg4[%c272] : memref<400xf32, #tpu.memory_space<smem>>
    %c273 = arith.constant 273 : index
    %313 = memref.load %arg4[%c273] : memref<400xf32, #tpu.memory_space<smem>>
    %c274 = arith.constant 274 : index
    %314 = memref.load %arg4[%c274] : memref<400xf32, #tpu.memory_space<smem>>
    %c275 = arith.constant 275 : index
    %315 = memref.load %arg4[%c275] : memref<400xf32, #tpu.memory_space<smem>>
    %c276 = arith.constant 276 : index
    %316 = memref.load %arg4[%c276] : memref<400xf32, #tpu.memory_space<smem>>
    %c277 = arith.constant 277 : index
    %317 = memref.load %arg4[%c277] : memref<400xf32, #tpu.memory_space<smem>>
    %c278 = arith.constant 278 : index
    %318 = memref.load %arg4[%c278] : memref<400xf32, #tpu.memory_space<smem>>
    %c279 = arith.constant 279 : index
    %319 = memref.load %arg4[%c279] : memref<400xf32, #tpu.memory_space<smem>>
    %c280 = arith.constant 280 : index
    %320 = memref.load %arg4[%c280] : memref<400xf32, #tpu.memory_space<smem>>
    %c281 = arith.constant 281 : index
    %321 = memref.load %arg4[%c281] : memref<400xf32, #tpu.memory_space<smem>>
    %c282 = arith.constant 282 : index
    %322 = memref.load %arg4[%c282] : memref<400xf32, #tpu.memory_space<smem>>
    %c283 = arith.constant 283 : index
    %323 = memref.load %arg4[%c283] : memref<400xf32, #tpu.memory_space<smem>>
    %c284 = arith.constant 284 : index
    %324 = memref.load %arg4[%c284] : memref<400xf32, #tpu.memory_space<smem>>
    %c285 = arith.constant 285 : index
    %325 = memref.load %arg4[%c285] : memref<400xf32, #tpu.memory_space<smem>>
    %c286 = arith.constant 286 : index
    %326 = memref.load %arg4[%c286] : memref<400xf32, #tpu.memory_space<smem>>
    %c287 = arith.constant 287 : index
    %327 = memref.load %arg4[%c287] : memref<400xf32, #tpu.memory_space<smem>>
    %c288 = arith.constant 288 : index
    %328 = memref.load %arg4[%c288] : memref<400xf32, #tpu.memory_space<smem>>
    %c289 = arith.constant 289 : index
    %329 = memref.load %arg4[%c289] : memref<400xf32, #tpu.memory_space<smem>>
    %c290 = arith.constant 290 : index
    %330 = memref.load %arg4[%c290] : memref<400xf32, #tpu.memory_space<smem>>
    %c291 = arith.constant 291 : index
    %331 = memref.load %arg4[%c291] : memref<400xf32, #tpu.memory_space<smem>>
    %c292 = arith.constant 292 : index
    %332 = memref.load %arg4[%c292] : memref<400xf32, #tpu.memory_space<smem>>
    %c293 = arith.constant 293 : index
    %333 = memref.load %arg4[%c293] : memref<400xf32, #tpu.memory_space<smem>>
    %c294 = arith.constant 294 : index
    %334 = memref.load %arg4[%c294] : memref<400xf32, #tpu.memory_space<smem>>
    %c295 = arith.constant 295 : index
    %335 = memref.load %arg4[%c295] : memref<400xf32, #tpu.memory_space<smem>>
    %c296 = arith.constant 296 : index
    %336 = memref.load %arg4[%c296] : memref<400xf32, #tpu.memory_space<smem>>
    %c297 = arith.constant 297 : index
    %337 = memref.load %arg4[%c297] : memref<400xf32, #tpu.memory_space<smem>>
    %c298 = arith.constant 298 : index
    %338 = memref.load %arg4[%c298] : memref<400xf32, #tpu.memory_space<smem>>
    %c299 = arith.constant 299 : index
    %339 = memref.load %arg4[%c299] : memref<400xf32, #tpu.memory_space<smem>>
    %c300 = arith.constant 300 : index
    %340 = memref.load %arg4[%c300] : memref<400xf32, #tpu.memory_space<smem>>
    %c301 = arith.constant 301 : index
    %341 = memref.load %arg4[%c301] : memref<400xf32, #tpu.memory_space<smem>>
    %c302 = arith.constant 302 : index
    %342 = memref.load %arg4[%c302] : memref<400xf32, #tpu.memory_space<smem>>
    %c303 = arith.constant 303 : index
    %343 = memref.load %arg4[%c303] : memref<400xf32, #tpu.memory_space<smem>>
    %c304 = arith.constant 304 : index
    %344 = memref.load %arg4[%c304] : memref<400xf32, #tpu.memory_space<smem>>
    %c305 = arith.constant 305 : index
    %345 = memref.load %arg4[%c305] : memref<400xf32, #tpu.memory_space<smem>>
    %c306 = arith.constant 306 : index
    %346 = memref.load %arg4[%c306] : memref<400xf32, #tpu.memory_space<smem>>
    %c307 = arith.constant 307 : index
    %347 = memref.load %arg4[%c307] : memref<400xf32, #tpu.memory_space<smem>>
    %c308 = arith.constant 308 : index
    %348 = memref.load %arg4[%c308] : memref<400xf32, #tpu.memory_space<smem>>
    %c309 = arith.constant 309 : index
    %349 = memref.load %arg4[%c309] : memref<400xf32, #tpu.memory_space<smem>>
    %c310 = arith.constant 310 : index
    %350 = memref.load %arg4[%c310] : memref<400xf32, #tpu.memory_space<smem>>
    %c311 = arith.constant 311 : index
    %351 = memref.load %arg4[%c311] : memref<400xf32, #tpu.memory_space<smem>>
    %c312 = arith.constant 312 : index
    %352 = memref.load %arg4[%c312] : memref<400xf32, #tpu.memory_space<smem>>
    %c313 = arith.constant 313 : index
    %353 = memref.load %arg4[%c313] : memref<400xf32, #tpu.memory_space<smem>>
    %c314 = arith.constant 314 : index
    %354 = memref.load %arg4[%c314] : memref<400xf32, #tpu.memory_space<smem>>
    %c315 = arith.constant 315 : index
    %355 = memref.load %arg4[%c315] : memref<400xf32, #tpu.memory_space<smem>>
    %c316 = arith.constant 316 : index
    %356 = memref.load %arg4[%c316] : memref<400xf32, #tpu.memory_space<smem>>
    %c317 = arith.constant 317 : index
    %357 = memref.load %arg4[%c317] : memref<400xf32, #tpu.memory_space<smem>>
    %c318 = arith.constant 318 : index
    %358 = memref.load %arg4[%c318] : memref<400xf32, #tpu.memory_space<smem>>
    %c319 = arith.constant 319 : index
    %359 = memref.load %arg4[%c319] : memref<400xf32, #tpu.memory_space<smem>>
    %c320 = arith.constant 320 : index
    %360 = memref.load %arg4[%c320] : memref<400xf32, #tpu.memory_space<smem>>
    %c321 = arith.constant 321 : index
    %361 = memref.load %arg4[%c321] : memref<400xf32, #tpu.memory_space<smem>>
    %c322 = arith.constant 322 : index
    %362 = memref.load %arg4[%c322] : memref<400xf32, #tpu.memory_space<smem>>
    %c323 = arith.constant 323 : index
    %363 = memref.load %arg4[%c323] : memref<400xf32, #tpu.memory_space<smem>>
    %c324 = arith.constant 324 : index
    %364 = memref.load %arg4[%c324] : memref<400xf32, #tpu.memory_space<smem>>
    %c325 = arith.constant 325 : index
    %365 = memref.load %arg4[%c325] : memref<400xf32, #tpu.memory_space<smem>>
    %c326 = arith.constant 326 : index
    %366 = memref.load %arg4[%c326] : memref<400xf32, #tpu.memory_space<smem>>
    %c327 = arith.constant 327 : index
    %367 = memref.load %arg4[%c327] : memref<400xf32, #tpu.memory_space<smem>>
    %c328 = arith.constant 328 : index
    %368 = memref.load %arg4[%c328] : memref<400xf32, #tpu.memory_space<smem>>
    %c329 = arith.constant 329 : index
    %369 = memref.load %arg4[%c329] : memref<400xf32, #tpu.memory_space<smem>>
    %c330 = arith.constant 330 : index
    %370 = memref.load %arg4[%c330] : memref<400xf32, #tpu.memory_space<smem>>
    %c331 = arith.constant 331 : index
    %371 = memref.load %arg4[%c331] : memref<400xf32, #tpu.memory_space<smem>>
    %c332 = arith.constant 332 : index
    %372 = memref.load %arg4[%c332] : memref<400xf32, #tpu.memory_space<smem>>
    %c333 = arith.constant 333 : index
    %373 = memref.load %arg4[%c333] : memref<400xf32, #tpu.memory_space<smem>>
    %c334 = arith.constant 334 : index
    %374 = memref.load %arg4[%c334] : memref<400xf32, #tpu.memory_space<smem>>
    %c335 = arith.constant 335 : index
    %375 = memref.load %arg4[%c335] : memref<400xf32, #tpu.memory_space<smem>>
    %c336 = arith.constant 336 : index
    %376 = memref.load %arg4[%c336] : memref<400xf32, #tpu.memory_space<smem>>
    %c337 = arith.constant 337 : index
    %377 = memref.load %arg4[%c337] : memref<400xf32, #tpu.memory_space<smem>>
    %c338 = arith.constant 338 : index
    %378 = memref.load %arg4[%c338] : memref<400xf32, #tpu.memory_space<smem>>
    %c339 = arith.constant 339 : index
    %379 = memref.load %arg4[%c339] : memref<400xf32, #tpu.memory_space<smem>>
    %c340 = arith.constant 340 : index
    %380 = memref.load %arg4[%c340] : memref<400xf32, #tpu.memory_space<smem>>
    %c341 = arith.constant 341 : index
    %381 = memref.load %arg4[%c341] : memref<400xf32, #tpu.memory_space<smem>>
    %c342 = arith.constant 342 : index
    %382 = memref.load %arg4[%c342] : memref<400xf32, #tpu.memory_space<smem>>
    %c343 = arith.constant 343 : index
    %383 = memref.load %arg4[%c343] : memref<400xf32, #tpu.memory_space<smem>>
    %c344 = arith.constant 344 : index
    %384 = memref.load %arg4[%c344] : memref<400xf32, #tpu.memory_space<smem>>
    %c345 = arith.constant 345 : index
    %385 = memref.load %arg4[%c345] : memref<400xf32, #tpu.memory_space<smem>>
    %c346 = arith.constant 346 : index
    %386 = memref.load %arg4[%c346] : memref<400xf32, #tpu.memory_space<smem>>
    %c347 = arith.constant 347 : index
    %387 = memref.load %arg4[%c347] : memref<400xf32, #tpu.memory_space<smem>>
    %c348 = arith.constant 348 : index
    %388 = memref.load %arg4[%c348] : memref<400xf32, #tpu.memory_space<smem>>
    %c349 = arith.constant 349 : index
    %389 = memref.load %arg4[%c349] : memref<400xf32, #tpu.memory_space<smem>>
    %c350 = arith.constant 350 : index
    %390 = memref.load %arg4[%c350] : memref<400xf32, #tpu.memory_space<smem>>
    %c351 = arith.constant 351 : index
    %391 = memref.load %arg4[%c351] : memref<400xf32, #tpu.memory_space<smem>>
    %c352 = arith.constant 352 : index
    %392 = memref.load %arg4[%c352] : memref<400xf32, #tpu.memory_space<smem>>
    %c353 = arith.constant 353 : index
    %393 = memref.load %arg4[%c353] : memref<400xf32, #tpu.memory_space<smem>>
    %c354 = arith.constant 354 : index
    %394 = memref.load %arg4[%c354] : memref<400xf32, #tpu.memory_space<smem>>
    %c355 = arith.constant 355 : index
    %395 = memref.load %arg4[%c355] : memref<400xf32, #tpu.memory_space<smem>>
    %c356 = arith.constant 356 : index
    %396 = memref.load %arg4[%c356] : memref<400xf32, #tpu.memory_space<smem>>
    %c357 = arith.constant 357 : index
    %397 = memref.load %arg4[%c357] : memref<400xf32, #tpu.memory_space<smem>>
    %c358 = arith.constant 358 : index
    %398 = memref.load %arg4[%c358] : memref<400xf32, #tpu.memory_space<smem>>
    %c359 = arith.constant 359 : index
    %399 = memref.load %arg4[%c359] : memref<400xf32, #tpu.memory_space<smem>>
    %c360 = arith.constant 360 : index
    %400 = memref.load %arg4[%c360] : memref<400xf32, #tpu.memory_space<smem>>
    %c361 = arith.constant 361 : index
    %401 = memref.load %arg4[%c361] : memref<400xf32, #tpu.memory_space<smem>>
    %c362 = arith.constant 362 : index
    %402 = memref.load %arg4[%c362] : memref<400xf32, #tpu.memory_space<smem>>
    %c363 = arith.constant 363 : index
    %403 = memref.load %arg4[%c363] : memref<400xf32, #tpu.memory_space<smem>>
    %c364 = arith.constant 364 : index
    %404 = memref.load %arg4[%c364] : memref<400xf32, #tpu.memory_space<smem>>
    %c365 = arith.constant 365 : index
    %405 = memref.load %arg4[%c365] : memref<400xf32, #tpu.memory_space<smem>>
    %c366 = arith.constant 366 : index
    %406 = memref.load %arg4[%c366] : memref<400xf32, #tpu.memory_space<smem>>
    %c367 = arith.constant 367 : index
    %407 = memref.load %arg4[%c367] : memref<400xf32, #tpu.memory_space<smem>>
    %c368 = arith.constant 368 : index
    %408 = memref.load %arg4[%c368] : memref<400xf32, #tpu.memory_space<smem>>
    %c369 = arith.constant 369 : index
    %409 = memref.load %arg4[%c369] : memref<400xf32, #tpu.memory_space<smem>>
    %c370 = arith.constant 370 : index
    %410 = memref.load %arg4[%c370] : memref<400xf32, #tpu.memory_space<smem>>
    %c371 = arith.constant 371 : index
    %411 = memref.load %arg4[%c371] : memref<400xf32, #tpu.memory_space<smem>>
    %c372 = arith.constant 372 : index
    %412 = memref.load %arg4[%c372] : memref<400xf32, #tpu.memory_space<smem>>
    %c373 = arith.constant 373 : index
    %413 = memref.load %arg4[%c373] : memref<400xf32, #tpu.memory_space<smem>>
    %c374 = arith.constant 374 : index
    %414 = memref.load %arg4[%c374] : memref<400xf32, #tpu.memory_space<smem>>
    %c375 = arith.constant 375 : index
    %415 = memref.load %arg4[%c375] : memref<400xf32, #tpu.memory_space<smem>>
    %c376 = arith.constant 376 : index
    %416 = memref.load %arg4[%c376] : memref<400xf32, #tpu.memory_space<smem>>
    %c377 = arith.constant 377 : index
    %417 = memref.load %arg4[%c377] : memref<400xf32, #tpu.memory_space<smem>>
    %c378 = arith.constant 378 : index
    %418 = memref.load %arg4[%c378] : memref<400xf32, #tpu.memory_space<smem>>
    %c379 = arith.constant 379 : index
    %419 = memref.load %arg4[%c379] : memref<400xf32, #tpu.memory_space<smem>>
    %c380 = arith.constant 380 : index
    %420 = memref.load %arg4[%c380] : memref<400xf32, #tpu.memory_space<smem>>
    %c381 = arith.constant 381 : index
    %421 = memref.load %arg4[%c381] : memref<400xf32, #tpu.memory_space<smem>>
    %c382 = arith.constant 382 : index
    %422 = memref.load %arg4[%c382] : memref<400xf32, #tpu.memory_space<smem>>
    %c383 = arith.constant 383 : index
    %423 = memref.load %arg4[%c383] : memref<400xf32, #tpu.memory_space<smem>>
    %c384 = arith.constant 384 : index
    %424 = memref.load %arg4[%c384] : memref<400xf32, #tpu.memory_space<smem>>
    %c385 = arith.constant 385 : index
    %425 = memref.load %arg4[%c385] : memref<400xf32, #tpu.memory_space<smem>>
    %c386 = arith.constant 386 : index
    %426 = memref.load %arg4[%c386] : memref<400xf32, #tpu.memory_space<smem>>
    %c387 = arith.constant 387 : index
    %427 = memref.load %arg4[%c387] : memref<400xf32, #tpu.memory_space<smem>>
    %c388 = arith.constant 388 : index
    %428 = memref.load %arg4[%c388] : memref<400xf32, #tpu.memory_space<smem>>
    %c389 = arith.constant 389 : index
    %429 = memref.load %arg4[%c389] : memref<400xf32, #tpu.memory_space<smem>>
    %c390 = arith.constant 390 : index
    %430 = memref.load %arg4[%c390] : memref<400xf32, #tpu.memory_space<smem>>
    %c391 = arith.constant 391 : index
    %431 = memref.load %arg4[%c391] : memref<400xf32, #tpu.memory_space<smem>>
    %c392 = arith.constant 392 : index
    %432 = memref.load %arg4[%c392] : memref<400xf32, #tpu.memory_space<smem>>
    %c393 = arith.constant 393 : index
    %433 = memref.load %arg4[%c393] : memref<400xf32, #tpu.memory_space<smem>>
    %c394 = arith.constant 394 : index
    %434 = memref.load %arg4[%c394] : memref<400xf32, #tpu.memory_space<smem>>
    %c395 = arith.constant 395 : index
    %435 = memref.load %arg4[%c395] : memref<400xf32, #tpu.memory_space<smem>>
    %c396 = arith.constant 396 : index
    %436 = memref.load %arg4[%c396] : memref<400xf32, #tpu.memory_space<smem>>
    %c397 = arith.constant 397 : index
    %437 = memref.load %arg4[%c397] : memref<400xf32, #tpu.memory_space<smem>>
    %c398 = arith.constant 398 : index
    %438 = memref.load %arg4[%c398] : memref<400xf32, #tpu.memory_space<smem>>
    %c399 = arith.constant 399 : index
    %439 = memref.load %arg4[%c399] : memref<400xf32, #tpu.memory_space<smem>>
    %c0_40 = arith.constant 0 : index
    %440 = memref.load %arg5[%c0_40] : memref<20xf32, #tpu.memory_space<smem>>
    %c1_41 = arith.constant 1 : index
    %441 = memref.load %arg5[%c1_41] : memref<20xf32, #tpu.memory_space<smem>>
    %c2_42 = arith.constant 2 : index
    %442 = memref.load %arg5[%c2_42] : memref<20xf32, #tpu.memory_space<smem>>
    %c3_43 = arith.constant 3 : index
    %443 = memref.load %arg5[%c3_43] : memref<20xf32, #tpu.memory_space<smem>>
    %c4_44 = arith.constant 4 : index
    %444 = memref.load %arg5[%c4_44] : memref<20xf32, #tpu.memory_space<smem>>
    %c5_45 = arith.constant 5 : index
    %445 = memref.load %arg5[%c5_45] : memref<20xf32, #tpu.memory_space<smem>>
    %c6_46 = arith.constant 6 : index
    %446 = memref.load %arg5[%c6_46] : memref<20xf32, #tpu.memory_space<smem>>
    %c7_47 = arith.constant 7 : index
    %447 = memref.load %arg5[%c7_47] : memref<20xf32, #tpu.memory_space<smem>>
    %c8_48 = arith.constant 8 : index
    %448 = memref.load %arg5[%c8_48] : memref<20xf32, #tpu.memory_space<smem>>
    %c9_49 = arith.constant 9 : index
    %449 = memref.load %arg5[%c9_49] : memref<20xf32, #tpu.memory_space<smem>>
    %c10_50 = arith.constant 10 : index
    %450 = memref.load %arg5[%c10_50] : memref<20xf32, #tpu.memory_space<smem>>
    %c11_51 = arith.constant 11 : index
    %451 = memref.load %arg5[%c11_51] : memref<20xf32, #tpu.memory_space<smem>>
    %c12_52 = arith.constant 12 : index
    %452 = memref.load %arg5[%c12_52] : memref<20xf32, #tpu.memory_space<smem>>
    %c13_53 = arith.constant 13 : index
    %453 = memref.load %arg5[%c13_53] : memref<20xf32, #tpu.memory_space<smem>>
    %c14_54 = arith.constant 14 : index
    %454 = memref.load %arg5[%c14_54] : memref<20xf32, #tpu.memory_space<smem>>
    %c15_55 = arith.constant 15 : index
    %455 = memref.load %arg5[%c15_55] : memref<20xf32, #tpu.memory_space<smem>>
    %c16_56 = arith.constant 16 : index
    %456 = memref.load %arg5[%c16_56] : memref<20xf32, #tpu.memory_space<smem>>
    %c17_57 = arith.constant 17 : index
    %457 = memref.load %arg5[%c17_57] : memref<20xf32, #tpu.memory_space<smem>>
    %c18_58 = arith.constant 18 : index
    %458 = memref.load %arg5[%c18_58] : memref<20xf32, #tpu.memory_space<smem>>
    %c19_59 = arith.constant 19 : index
    %459 = memref.load %arg5[%c19_59] : memref<20xf32, #tpu.memory_space<smem>>
    %c0_60 = arith.constant 0 : index
    %460 = memref.load %arg6[%c0_60] : memref<20xf32, #tpu.memory_space<smem>>
    %c1_61 = arith.constant 1 : index
    %461 = memref.load %arg6[%c1_61] : memref<20xf32, #tpu.memory_space<smem>>
    %c2_62 = arith.constant 2 : index
    %462 = memref.load %arg6[%c2_62] : memref<20xf32, #tpu.memory_space<smem>>
    %c3_63 = arith.constant 3 : index
    %463 = memref.load %arg6[%c3_63] : memref<20xf32, #tpu.memory_space<smem>>
    %c4_64 = arith.constant 4 : index
    %464 = memref.load %arg6[%c4_64] : memref<20xf32, #tpu.memory_space<smem>>
    %c5_65 = arith.constant 5 : index
    %465 = memref.load %arg6[%c5_65] : memref<20xf32, #tpu.memory_space<smem>>
    %c6_66 = arith.constant 6 : index
    %466 = memref.load %arg6[%c6_66] : memref<20xf32, #tpu.memory_space<smem>>
    %c7_67 = arith.constant 7 : index
    %467 = memref.load %arg6[%c7_67] : memref<20xf32, #tpu.memory_space<smem>>
    %c8_68 = arith.constant 8 : index
    %468 = memref.load %arg6[%c8_68] : memref<20xf32, #tpu.memory_space<smem>>
    %c9_69 = arith.constant 9 : index
    %469 = memref.load %arg6[%c9_69] : memref<20xf32, #tpu.memory_space<smem>>
    %c10_70 = arith.constant 10 : index
    %470 = memref.load %arg6[%c10_70] : memref<20xf32, #tpu.memory_space<smem>>
    %c11_71 = arith.constant 11 : index
    %471 = memref.load %arg6[%c11_71] : memref<20xf32, #tpu.memory_space<smem>>
    %c12_72 = arith.constant 12 : index
    %472 = memref.load %arg6[%c12_72] : memref<20xf32, #tpu.memory_space<smem>>
    %c13_73 = arith.constant 13 : index
    %473 = memref.load %arg6[%c13_73] : memref<20xf32, #tpu.memory_space<smem>>
    %c14_74 = arith.constant 14 : index
    %474 = memref.load %arg6[%c14_74] : memref<20xf32, #tpu.memory_space<smem>>
    %c15_75 = arith.constant 15 : index
    %475 = memref.load %arg6[%c15_75] : memref<20xf32, #tpu.memory_space<smem>>
    %c16_76 = arith.constant 16 : index
    %476 = memref.load %arg6[%c16_76] : memref<20xf32, #tpu.memory_space<smem>>
    %c17_77 = arith.constant 17 : index
    %477 = memref.load %arg6[%c17_77] : memref<20xf32, #tpu.memory_space<smem>>
    %c18_78 = arith.constant 18 : index
    %478 = memref.load %arg6[%c18_78] : memref<20xf32, #tpu.memory_space<smem>>
    %c19_79 = arith.constant 19 : index
    %479 = memref.load %arg6[%c19_79] : memref<20xf32, #tpu.memory_space<smem>>
    %c0_80 = arith.constant 0 : index
    %480 = memref.load %arg7[%c0_80] : memref<1xf32, #tpu.memory_space<smem>>
    %c0_i32 = arith.constant 0 : i32
    %c1_i32 = arith.constant 1 : i32
    %481 = arith.muli %c0_i32, %c1_i32 : i32
    %c0_i32_81 = arith.constant 0 : i32
    %482 = arith.addi %c0_i32_81, %481 : i32
    %c16_i32 = arith.constant 16 : i32
    %483 = arith.muli %482, %c16_i32 : i32
    %484 = tpu.assume_multiple %483, 16 : i32
    %485 = arith.index_cast %484 : i32 to index
    %c0_82 = arith.constant 0 : index
    %486 = vector.load %arg1[%485, %c0_82] : memref<16x128xf32, #tpu.memory_space<vmem>>, vector<16x128xf32>
    %487 = vector.broadcast %0 : f32 to vector<16x128xf32>
    %488 = arith.mulf %486, %487 : vector<16x128xf32>
    %489 = vector.broadcast %20 : f32 to vector<16x128xf32>
    %490 = arith.addf %488, %489 : vector<16x128xf32>
    %cst = arith.constant 0.000000e+00 : f32
    %491 = vector.broadcast %cst : f32 to vector<16x128xf32>
    %492 = arith.maximumf %490, %491 : vector<16x128xf32>
    %493 = vector.broadcast %1 : f32 to vector<16x128xf32>
    %494 = arith.mulf %486, %493 : vector<16x128xf32>
    %495 = vector.broadcast %21 : f32 to vector<16x128xf32>
    %496 = arith.addf %494, %495 : vector<16x128xf32>
    %cst_83 = arith.constant 0.000000e+00 : f32
    %497 = vector.broadcast %cst_83 : f32 to vector<16x128xf32>
    %498 = arith.maximumf %496, %497 : vector<16x128xf32>
    %499 = vector.broadcast %2 : f32 to vector<16x128xf32>
    %500 = arith.mulf %486, %499 : vector<16x128xf32>
    %501 = vector.broadcast %22 : f32 to vector<16x128xf32>
    %502 = arith.addf %500, %501 : vector<16x128xf32>
    %cst_84 = arith.constant 0.000000e+00 : f32
    %503 = vector.broadcast %cst_84 : f32 to vector<16x128xf32>
    %504 = arith.maximumf %502, %503 : vector<16x128xf32>
    %505 = vector.broadcast %3 : f32 to vector<16x128xf32>
    %506 = arith.mulf %486, %505 : vector<16x128xf32>
    %507 = vector.broadcast %23 : f32 to vector<16x128xf32>
    %508 = arith.addf %506, %507 : vector<16x128xf32>
    %cst_85 = arith.constant 0.000000e+00 : f32
    %509 = vector.broadcast %cst_85 : f32 to vector<16x128xf32>
    %510 = arith.maximumf %508, %509 : vector<16x128xf32>
    %511 = vector.broadcast %4 : f32 to vector<16x128xf32>
    %512 = arith.mulf %486, %511 : vector<16x128xf32>
    %513 = vector.broadcast %24 : f32 to vector<16x128xf32>
    %514 = arith.addf %512, %513 : vector<16x128xf32>
    %cst_86 = arith.constant 0.000000e+00 : f32
    %515 = vector.broadcast %cst_86 : f32 to vector<16x128xf32>
    %516 = arith.maximumf %514, %515 : vector<16x128xf32>
    %517 = vector.broadcast %5 : f32 to vector<16x128xf32>
    %518 = arith.mulf %486, %517 : vector<16x128xf32>
    %519 = vector.broadcast %25 : f32 to vector<16x128xf32>
    %520 = arith.addf %518, %519 : vector<16x128xf32>
    %cst_87 = arith.constant 0.000000e+00 : f32
    %521 = vector.broadcast %cst_87 : f32 to vector<16x128xf32>
    %522 = arith.maximumf %520, %521 : vector<16x128xf32>
    %523 = vector.broadcast %6 : f32 to vector<16x128xf32>
    %524 = arith.mulf %486, %523 : vector<16x128xf32>
    %525 = vector.broadcast %26 : f32 to vector<16x128xf32>
    %526 = arith.addf %524, %525 : vector<16x128xf32>
    %cst_88 = arith.constant 0.000000e+00 : f32
    %527 = vector.broadcast %cst_88 : f32 to vector<16x128xf32>
    %528 = arith.maximumf %526, %527 : vector<16x128xf32>
    %529 = vector.broadcast %7 : f32 to vector<16x128xf32>
    %530 = arith.mulf %486, %529 : vector<16x128xf32>
    %531 = vector.broadcast %27 : f32 to vector<16x128xf32>
    %532 = arith.addf %530, %531 : vector<16x128xf32>
    %cst_89 = arith.constant 0.000000e+00 : f32
    %533 = vector.broadcast %cst_89 : f32 to vector<16x128xf32>
    %534 = arith.maximumf %532, %533 : vector<16x128xf32>
    %535 = vector.broadcast %8 : f32 to vector<16x128xf32>
    %536 = arith.mulf %486, %535 : vector<16x128xf32>
    %537 = vector.broadcast %28 : f32 to vector<16x128xf32>
    %538 = arith.addf %536, %537 : vector<16x128xf32>
    %cst_90 = arith.constant 0.000000e+00 : f32
    %539 = vector.broadcast %cst_90 : f32 to vector<16x128xf32>
    %540 = arith.maximumf %538, %539 : vector<16x128xf32>
    %541 = vector.broadcast %9 : f32 to vector<16x128xf32>
    %542 = arith.mulf %486, %541 : vector<16x128xf32>
    %543 = vector.broadcast %29 : f32 to vector<16x128xf32>
    %544 = arith.addf %542, %543 : vector<16x128xf32>
    %cst_91 = arith.constant 0.000000e+00 : f32
    %545 = vector.broadcast %cst_91 : f32 to vector<16x128xf32>
    %546 = arith.maximumf %544, %545 : vector<16x128xf32>
    %547 = vector.broadcast %10 : f32 to vector<16x128xf32>
    %548 = arith.mulf %486, %547 : vector<16x128xf32>
    %549 = vector.broadcast %30 : f32 to vector<16x128xf32>
    %550 = arith.addf %548, %549 : vector<16x128xf32>
    %cst_92 = arith.constant 0.000000e+00 : f32
    %551 = vector.broadcast %cst_92 : f32 to vector<16x128xf32>
    %552 = arith.maximumf %550, %551 : vector<16x128xf32>
    %553 = vector.broadcast %11 : f32 to vector<16x128xf32>
    %554 = arith.mulf %486, %553 : vector<16x128xf32>
    %555 = vector.broadcast %31 : f32 to vector<16x128xf32>
    %556 = arith.addf %554, %555 : vector<16x128xf32>
    %cst_93 = arith.constant 0.000000e+00 : f32
    %557 = vector.broadcast %cst_93 : f32 to vector<16x128xf32>
    %558 = arith.maximumf %556, %557 : vector<16x128xf32>
    %559 = vector.broadcast %12 : f32 to vector<16x128xf32>
    %560 = arith.mulf %486, %559 : vector<16x128xf32>
    %561 = vector.broadcast %32 : f32 to vector<16x128xf32>
    %562 = arith.addf %560, %561 : vector<16x128xf32>
    %cst_94 = arith.constant 0.000000e+00 : f32
    %563 = vector.broadcast %cst_94 : f32 to vector<16x128xf32>
    %564 = arith.maximumf %562, %563 : vector<16x128xf32>
    %565 = vector.broadcast %13 : f32 to vector<16x128xf32>
    %566 = arith.mulf %486, %565 : vector<16x128xf32>
    %567 = vector.broadcast %33 : f32 to vector<16x128xf32>
    %568 = arith.addf %566, %567 : vector<16x128xf32>
    %cst_95 = arith.constant 0.000000e+00 : f32
    %569 = vector.broadcast %cst_95 : f32 to vector<16x128xf32>
    %570 = arith.maximumf %568, %569 : vector<16x128xf32>
    %571 = vector.broadcast %14 : f32 to vector<16x128xf32>
    %572 = arith.mulf %486, %571 : vector<16x128xf32>
    %573 = vector.broadcast %34 : f32 to vector<16x128xf32>
    %574 = arith.addf %572, %573 : vector<16x128xf32>
    %cst_96 = arith.constant 0.000000e+00 : f32
    %575 = vector.broadcast %cst_96 : f32 to vector<16x128xf32>
    %576 = arith.maximumf %574, %575 : vector<16x128xf32>
    %577 = vector.broadcast %15 : f32 to vector<16x128xf32>
    %578 = arith.mulf %486, %577 : vector<16x128xf32>
    %579 = vector.broadcast %35 : f32 to vector<16x128xf32>
    %580 = arith.addf %578, %579 : vector<16x128xf32>
    %cst_97 = arith.constant 0.000000e+00 : f32
    %581 = vector.broadcast %cst_97 : f32 to vector<16x128xf32>
    %582 = arith.maximumf %580, %581 : vector<16x128xf32>
    %583 = vector.broadcast %16 : f32 to vector<16x128xf32>
    %584 = arith.mulf %486, %583 : vector<16x128xf32>
    %585 = vector.broadcast %36 : f32 to vector<16x128xf32>
    %586 = arith.addf %584, %585 : vector<16x128xf32>
    %cst_98 = arith.constant 0.000000e+00 : f32
    %587 = vector.broadcast %cst_98 : f32 to vector<16x128xf32>
    %588 = arith.maximumf %586, %587 : vector<16x128xf32>
    %589 = vector.broadcast %17 : f32 to vector<16x128xf32>
    %590 = arith.mulf %486, %589 : vector<16x128xf32>
    %591 = vector.broadcast %37 : f32 to vector<16x128xf32>
    %592 = arith.addf %590, %591 : vector<16x128xf32>
    %cst_99 = arith.constant 0.000000e+00 : f32
    %593 = vector.broadcast %cst_99 : f32 to vector<16x128xf32>
    %594 = arith.maximumf %592, %593 : vector<16x128xf32>
    %595 = vector.broadcast %18 : f32 to vector<16x128xf32>
    %596 = arith.mulf %486, %595 : vector<16x128xf32>
    %597 = vector.broadcast %38 : f32 to vector<16x128xf32>
    %598 = arith.addf %596, %597 : vector<16x128xf32>
    %cst_100 = arith.constant 0.000000e+00 : f32
    %599 = vector.broadcast %cst_100 : f32 to vector<16x128xf32>
    %600 = arith.maximumf %598, %599 : vector<16x128xf32>
    %601 = vector.broadcast %19 : f32 to vector<16x128xf32>
    %602 = arith.mulf %486, %601 : vector<16x128xf32>
    %603 = vector.broadcast %39 : f32 to vector<16x128xf32>
    %604 = arith.addf %602, %603 : vector<16x128xf32>
    %cst_101 = arith.constant 0.000000e+00 : f32
    %605 = vector.broadcast %cst_101 : f32 to vector<16x128xf32>
    %606 = arith.maximumf %604, %605 : vector<16x128xf32>
    %607 = vector.broadcast %40 : f32 to vector<16x128xf32>
    %608 = arith.mulf %492, %607 : vector<16x128xf32>
    %609 = vector.broadcast %60 : f32 to vector<16x128xf32>
    %610 = arith.mulf %498, %609 : vector<16x128xf32>
    %611 = vector.broadcast %80 : f32 to vector<16x128xf32>
    %612 = arith.mulf %504, %611 : vector<16x128xf32>
    %613 = vector.broadcast %100 : f32 to vector<16x128xf32>
    %614 = arith.mulf %510, %613 : vector<16x128xf32>
    %615 = vector.broadcast %120 : f32 to vector<16x128xf32>
    %616 = arith.mulf %516, %615 : vector<16x128xf32>
    %617 = vector.broadcast %140 : f32 to vector<16x128xf32>
    %618 = arith.mulf %522, %617 : vector<16x128xf32>
    %619 = vector.broadcast %160 : f32 to vector<16x128xf32>
    %620 = arith.mulf %528, %619 : vector<16x128xf32>
    %621 = vector.broadcast %180 : f32 to vector<16x128xf32>
    %622 = arith.mulf %534, %621 : vector<16x128xf32>
    %623 = vector.broadcast %200 : f32 to vector<16x128xf32>
    %624 = arith.mulf %540, %623 : vector<16x128xf32>
    %625 = vector.broadcast %220 : f32 to vector<16x128xf32>
    %626 = arith.mulf %546, %625 : vector<16x128xf32>
    %627 = vector.broadcast %240 : f32 to vector<16x128xf32>
    %628 = arith.mulf %552, %627 : vector<16x128xf32>
    %629 = vector.broadcast %260 : f32 to vector<16x128xf32>
    %630 = arith.mulf %558, %629 : vector<16x128xf32>
    %631 = vector.broadcast %280 : f32 to vector<16x128xf32>
    %632 = arith.mulf %564, %631 : vector<16x128xf32>
    %633 = vector.broadcast %300 : f32 to vector<16x128xf32>
    %634 = arith.mulf %570, %633 : vector<16x128xf32>
    %635 = vector.broadcast %320 : f32 to vector<16x128xf32>
    %636 = arith.mulf %576, %635 : vector<16x128xf32>
    %637 = vector.broadcast %340 : f32 to vector<16x128xf32>
    %638 = arith.mulf %582, %637 : vector<16x128xf32>
    %639 = vector.broadcast %360 : f32 to vector<16x128xf32>
    %640 = arith.mulf %588, %639 : vector<16x128xf32>
    %641 = vector.broadcast %380 : f32 to vector<16x128xf32>
    %642 = arith.mulf %594, %641 : vector<16x128xf32>
    %643 = vector.broadcast %400 : f32 to vector<16x128xf32>
    %644 = arith.mulf %600, %643 : vector<16x128xf32>
    %645 = vector.broadcast %420 : f32 to vector<16x128xf32>
    %646 = arith.mulf %606, %645 : vector<16x128xf32>
    %647 = arith.addf %608, %610 : vector<16x128xf32>
    %648 = arith.addf %612, %614 : vector<16x128xf32>
    %649 = arith.addf %616, %618 : vector<16x128xf32>
    %650 = arith.addf %620, %622 : vector<16x128xf32>
    %651 = arith.addf %624, %626 : vector<16x128xf32>
    %652 = arith.addf %628, %630 : vector<16x128xf32>
    %653 = arith.addf %632, %634 : vector<16x128xf32>
    %654 = arith.addf %636, %638 : vector<16x128xf32>
    %655 = arith.addf %640, %642 : vector<16x128xf32>
    %656 = arith.addf %644, %646 : vector<16x128xf32>
    %657 = arith.addf %647, %648 : vector<16x128xf32>
    %658 = arith.addf %649, %650 : vector<16x128xf32>
    %659 = arith.addf %651, %652 : vector<16x128xf32>
    %660 = arith.addf %653, %654 : vector<16x128xf32>
    %661 = arith.addf %655, %656 : vector<16x128xf32>
    %662 = arith.addf %657, %658 : vector<16x128xf32>
    %663 = arith.addf %659, %660 : vector<16x128xf32>
    %664 = arith.addf %662, %663 : vector<16x128xf32>
    %665 = arith.addf %664, %661 : vector<16x128xf32>
    %666 = vector.broadcast %440 : f32 to vector<16x128xf32>
    %667 = arith.addf %665, %666 : vector<16x128xf32>
    %cst_102 = arith.constant 0.000000e+00 : f32
    %668 = vector.broadcast %cst_102 : f32 to vector<16x128xf32>
    %669 = arith.maximumf %667, %668 : vector<16x128xf32>
    %670 = vector.broadcast %460 : f32 to vector<16x128xf32>
    %671 = arith.mulf %669, %670 : vector<16x128xf32>
    %672 = vector.broadcast %41 : f32 to vector<16x128xf32>
    %673 = arith.mulf %492, %672 : vector<16x128xf32>
    %674 = vector.broadcast %61 : f32 to vector<16x128xf32>
    %675 = arith.mulf %498, %674 : vector<16x128xf32>
    %676 = vector.broadcast %81 : f32 to vector<16x128xf32>
    %677 = arith.mulf %504, %676 : vector<16x128xf32>
    %678 = vector.broadcast %101 : f32 to vector<16x128xf32>
    %679 = arith.mulf %510, %678 : vector<16x128xf32>
    %680 = vector.broadcast %121 : f32 to vector<16x128xf32>
    %681 = arith.mulf %516, %680 : vector<16x128xf32>
    %682 = vector.broadcast %141 : f32 to vector<16x128xf32>
    %683 = arith.mulf %522, %682 : vector<16x128xf32>
    %684 = vector.broadcast %161 : f32 to vector<16x128xf32>
    %685 = arith.mulf %528, %684 : vector<16x128xf32>
    %686 = vector.broadcast %181 : f32 to vector<16x128xf32>
    %687 = arith.mulf %534, %686 : vector<16x128xf32>
    %688 = vector.broadcast %201 : f32 to vector<16x128xf32>
    %689 = arith.mulf %540, %688 : vector<16x128xf32>
    %690 = vector.broadcast %221 : f32 to vector<16x128xf32>
    %691 = arith.mulf %546, %690 : vector<16x128xf32>
    %692 = vector.broadcast %241 : f32 to vector<16x128xf32>
    %693 = arith.mulf %552, %692 : vector<16x128xf32>
    %694 = vector.broadcast %261 : f32 to vector<16x128xf32>
    %695 = arith.mulf %558, %694 : vector<16x128xf32>
    %696 = vector.broadcast %281 : f32 to vector<16x128xf32>
    %697 = arith.mulf %564, %696 : vector<16x128xf32>
    %698 = vector.broadcast %301 : f32 to vector<16x128xf32>
    %699 = arith.mulf %570, %698 : vector<16x128xf32>
    %700 = vector.broadcast %321 : f32 to vector<16x128xf32>
    %701 = arith.mulf %576, %700 : vector<16x128xf32>
    %702 = vector.broadcast %341 : f32 to vector<16x128xf32>
    %703 = arith.mulf %582, %702 : vector<16x128xf32>
    %704 = vector.broadcast %361 : f32 to vector<16x128xf32>
    %705 = arith.mulf %588, %704 : vector<16x128xf32>
    %706 = vector.broadcast %381 : f32 to vector<16x128xf32>
    %707 = arith.mulf %594, %706 : vector<16x128xf32>
    %708 = vector.broadcast %401 : f32 to vector<16x128xf32>
    %709 = arith.mulf %600, %708 : vector<16x128xf32>
    %710 = vector.broadcast %421 : f32 to vector<16x128xf32>
    %711 = arith.mulf %606, %710 : vector<16x128xf32>
    %712 = arith.addf %673, %675 : vector<16x128xf32>
    %713 = arith.addf %677, %679 : vector<16x128xf32>
    %714 = arith.addf %681, %683 : vector<16x128xf32>
    %715 = arith.addf %685, %687 : vector<16x128xf32>
    %716 = arith.addf %689, %691 : vector<16x128xf32>
    %717 = arith.addf %693, %695 : vector<16x128xf32>
    %718 = arith.addf %697, %699 : vector<16x128xf32>
    %719 = arith.addf %701, %703 : vector<16x128xf32>
    %720 = arith.addf %705, %707 : vector<16x128xf32>
    %721 = arith.addf %709, %711 : vector<16x128xf32>
    %722 = arith.addf %712, %713 : vector<16x128xf32>
    %723 = arith.addf %714, %715 : vector<16x128xf32>
    %724 = arith.addf %716, %717 : vector<16x128xf32>
    %725 = arith.addf %718, %719 : vector<16x128xf32>
    %726 = arith.addf %720, %721 : vector<16x128xf32>
    %727 = arith.addf %722, %723 : vector<16x128xf32>
    %728 = arith.addf %724, %725 : vector<16x128xf32>
    %729 = arith.addf %727, %728 : vector<16x128xf32>
    %730 = arith.addf %729, %726 : vector<16x128xf32>
    %731 = vector.broadcast %441 : f32 to vector<16x128xf32>
    %732 = arith.addf %730, %731 : vector<16x128xf32>
    %cst_103 = arith.constant 0.000000e+00 : f32
    %733 = vector.broadcast %cst_103 : f32 to vector<16x128xf32>
    %734 = arith.maximumf %732, %733 : vector<16x128xf32>
    %735 = vector.broadcast %461 : f32 to vector<16x128xf32>
    %736 = arith.mulf %734, %735 : vector<16x128xf32>
    %737 = vector.broadcast %42 : f32 to vector<16x128xf32>
    %738 = arith.mulf %492, %737 : vector<16x128xf32>
    %739 = vector.broadcast %62 : f32 to vector<16x128xf32>
    %740 = arith.mulf %498, %739 : vector<16x128xf32>
    %741 = vector.broadcast %82 : f32 to vector<16x128xf32>
    %742 = arith.mulf %504, %741 : vector<16x128xf32>
    %743 = vector.broadcast %102 : f32 to vector<16x128xf32>
    %744 = arith.mulf %510, %743 : vector<16x128xf32>
    %745 = vector.broadcast %122 : f32 to vector<16x128xf32>
    %746 = arith.mulf %516, %745 : vector<16x128xf32>
    %747 = vector.broadcast %142 : f32 to vector<16x128xf32>
    %748 = arith.mulf %522, %747 : vector<16x128xf32>
    %749 = vector.broadcast %162 : f32 to vector<16x128xf32>
    %750 = arith.mulf %528, %749 : vector<16x128xf32>
    %751 = vector.broadcast %182 : f32 to vector<16x128xf32>
    %752 = arith.mulf %534, %751 : vector<16x128xf32>
    %753 = vector.broadcast %202 : f32 to vector<16x128xf32>
    %754 = arith.mulf %540, %753 : vector<16x128xf32>
    %755 = vector.broadcast %222 : f32 to vector<16x128xf32>
    %756 = arith.mulf %546, %755 : vector<16x128xf32>
    %757 = vector.broadcast %242 : f32 to vector<16x128xf32>
    %758 = arith.mulf %552, %757 : vector<16x128xf32>
    %759 = vector.broadcast %262 : f32 to vector<16x128xf32>
    %760 = arith.mulf %558, %759 : vector<16x128xf32>
    %761 = vector.broadcast %282 : f32 to vector<16x128xf32>
    %762 = arith.mulf %564, %761 : vector<16x128xf32>
    %763 = vector.broadcast %302 : f32 to vector<16x128xf32>
    %764 = arith.mulf %570, %763 : vector<16x128xf32>
    %765 = vector.broadcast %322 : f32 to vector<16x128xf32>
    %766 = arith.mulf %576, %765 : vector<16x128xf32>
    %767 = vector.broadcast %342 : f32 to vector<16x128xf32>
    %768 = arith.mulf %582, %767 : vector<16x128xf32>
    %769 = vector.broadcast %362 : f32 to vector<16x128xf32>
    %770 = arith.mulf %588, %769 : vector<16x128xf32>
    %771 = vector.broadcast %382 : f32 to vector<16x128xf32>
    %772 = arith.mulf %594, %771 : vector<16x128xf32>
    %773 = vector.broadcast %402 : f32 to vector<16x128xf32>
    %774 = arith.mulf %600, %773 : vector<16x128xf32>
    %775 = vector.broadcast %422 : f32 to vector<16x128xf32>
    %776 = arith.mulf %606, %775 : vector<16x128xf32>
    %777 = arith.addf %738, %740 : vector<16x128xf32>
    %778 = arith.addf %742, %744 : vector<16x128xf32>
    %779 = arith.addf %746, %748 : vector<16x128xf32>
    %780 = arith.addf %750, %752 : vector<16x128xf32>
    %781 = arith.addf %754, %756 : vector<16x128xf32>
    %782 = arith.addf %758, %760 : vector<16x128xf32>
    %783 = arith.addf %762, %764 : vector<16x128xf32>
    %784 = arith.addf %766, %768 : vector<16x128xf32>
    %785 = arith.addf %770, %772 : vector<16x128xf32>
    %786 = arith.addf %774, %776 : vector<16x128xf32>
    %787 = arith.addf %777, %778 : vector<16x128xf32>
    %788 = arith.addf %779, %780 : vector<16x128xf32>
    %789 = arith.addf %781, %782 : vector<16x128xf32>
    %790 = arith.addf %783, %784 : vector<16x128xf32>
    %791 = arith.addf %785, %786 : vector<16x128xf32>
    %792 = arith.addf %787, %788 : vector<16x128xf32>
    %793 = arith.addf %789, %790 : vector<16x128xf32>
    %794 = arith.addf %792, %793 : vector<16x128xf32>
    %795 = arith.addf %794, %791 : vector<16x128xf32>
    %796 = vector.broadcast %442 : f32 to vector<16x128xf32>
    %797 = arith.addf %795, %796 : vector<16x128xf32>
    %cst_104 = arith.constant 0.000000e+00 : f32
    %798 = vector.broadcast %cst_104 : f32 to vector<16x128xf32>
    %799 = arith.maximumf %797, %798 : vector<16x128xf32>
    %800 = vector.broadcast %462 : f32 to vector<16x128xf32>
    %801 = arith.mulf %799, %800 : vector<16x128xf32>
    %802 = vector.broadcast %43 : f32 to vector<16x128xf32>
    %803 = arith.mulf %492, %802 : vector<16x128xf32>
    %804 = vector.broadcast %63 : f32 to vector<16x128xf32>
    %805 = arith.mulf %498, %804 : vector<16x128xf32>
    %806 = vector.broadcast %83 : f32 to vector<16x128xf32>
    %807 = arith.mulf %504, %806 : vector<16x128xf32>
    %808 = vector.broadcast %103 : f32 to vector<16x128xf32>
    %809 = arith.mulf %510, %808 : vector<16x128xf32>
    %810 = vector.broadcast %123 : f32 to vector<16x128xf32>
    %811 = arith.mulf %516, %810 : vector<16x128xf32>
    %812 = vector.broadcast %143 : f32 to vector<16x128xf32>
    %813 = arith.mulf %522, %812 : vector<16x128xf32>
    %814 = vector.broadcast %163 : f32 to vector<16x128xf32>
    %815 = arith.mulf %528, %814 : vector<16x128xf32>
    %816 = vector.broadcast %183 : f32 to vector<16x128xf32>
    %817 = arith.mulf %534, %816 : vector<16x128xf32>
    %818 = vector.broadcast %203 : f32 to vector<16x128xf32>
    %819 = arith.mulf %540, %818 : vector<16x128xf32>
    %820 = vector.broadcast %223 : f32 to vector<16x128xf32>
    %821 = arith.mulf %546, %820 : vector<16x128xf32>
    %822 = vector.broadcast %243 : f32 to vector<16x128xf32>
    %823 = arith.mulf %552, %822 : vector<16x128xf32>
    %824 = vector.broadcast %263 : f32 to vector<16x128xf32>
    %825 = arith.mulf %558, %824 : vector<16x128xf32>
    %826 = vector.broadcast %283 : f32 to vector<16x128xf32>
    %827 = arith.mulf %564, %826 : vector<16x128xf32>
    %828 = vector.broadcast %303 : f32 to vector<16x128xf32>
    %829 = arith.mulf %570, %828 : vector<16x128xf32>
    %830 = vector.broadcast %323 : f32 to vector<16x128xf32>
    %831 = arith.mulf %576, %830 : vector<16x128xf32>
    %832 = vector.broadcast %343 : f32 to vector<16x128xf32>
    %833 = arith.mulf %582, %832 : vector<16x128xf32>
    %834 = vector.broadcast %363 : f32 to vector<16x128xf32>
    %835 = arith.mulf %588, %834 : vector<16x128xf32>
    %836 = vector.broadcast %383 : f32 to vector<16x128xf32>
    %837 = arith.mulf %594, %836 : vector<16x128xf32>
    %838 = vector.broadcast %403 : f32 to vector<16x128xf32>
    %839 = arith.mulf %600, %838 : vector<16x128xf32>
    %840 = vector.broadcast %423 : f32 to vector<16x128xf32>
    %841 = arith.mulf %606, %840 : vector<16x128xf32>
    %842 = arith.addf %803, %805 : vector<16x128xf32>
    %843 = arith.addf %807, %809 : vector<16x128xf32>
    %844 = arith.addf %811, %813 : vector<16x128xf32>
    %845 = arith.addf %815, %817 : vector<16x128xf32>
    %846 = arith.addf %819, %821 : vector<16x128xf32>
    %847 = arith.addf %823, %825 : vector<16x128xf32>
    %848 = arith.addf %827, %829 : vector<16x128xf32>
    %849 = arith.addf %831, %833 : vector<16x128xf32>
    %850 = arith.addf %835, %837 : vector<16x128xf32>
    %851 = arith.addf %839, %841 : vector<16x128xf32>
    %852 = arith.addf %842, %843 : vector<16x128xf32>
    %853 = arith.addf %844, %845 : vector<16x128xf32>
    %854 = arith.addf %846, %847 : vector<16x128xf32>
    %855 = arith.addf %848, %849 : vector<16x128xf32>
    %856 = arith.addf %850, %851 : vector<16x128xf32>
    %857 = arith.addf %852, %853 : vector<16x128xf32>
    %858 = arith.addf %854, %855 : vector<16x128xf32>
    %859 = arith.addf %857, %858 : vector<16x128xf32>
    %860 = arith.addf %859, %856 : vector<16x128xf32>
    %861 = vector.broadcast %443 : f32 to vector<16x128xf32>
    %862 = arith.addf %860, %861 : vector<16x128xf32>
    %cst_105 = arith.constant 0.000000e+00 : f32
    %863 = vector.broadcast %cst_105 : f32 to vector<16x128xf32>
    %864 = arith.maximumf %862, %863 : vector<16x128xf32>
    %865 = vector.broadcast %463 : f32 to vector<16x128xf32>
    %866 = arith.mulf %864, %865 : vector<16x128xf32>
    %867 = vector.broadcast %44 : f32 to vector<16x128xf32>
    %868 = arith.mulf %492, %867 : vector<16x128xf32>
    %869 = vector.broadcast %64 : f32 to vector<16x128xf32>
    %870 = arith.mulf %498, %869 : vector<16x128xf32>
    %871 = vector.broadcast %84 : f32 to vector<16x128xf32>
    %872 = arith.mulf %504, %871 : vector<16x128xf32>
    %873 = vector.broadcast %104 : f32 to vector<16x128xf32>
    %874 = arith.mulf %510, %873 : vector<16x128xf32>
    %875 = vector.broadcast %124 : f32 to vector<16x128xf32>
    %876 = arith.mulf %516, %875 : vector<16x128xf32>
    %877 = vector.broadcast %144 : f32 to vector<16x128xf32>
    %878 = arith.mulf %522, %877 : vector<16x128xf32>
    %879 = vector.broadcast %164 : f32 to vector<16x128xf32>
    %880 = arith.mulf %528, %879 : vector<16x128xf32>
    %881 = vector.broadcast %184 : f32 to vector<16x128xf32>
    %882 = arith.mulf %534, %881 : vector<16x128xf32>
    %883 = vector.broadcast %204 : f32 to vector<16x128xf32>
    %884 = arith.mulf %540, %883 : vector<16x128xf32>
    %885 = vector.broadcast %224 : f32 to vector<16x128xf32>
    %886 = arith.mulf %546, %885 : vector<16x128xf32>
    %887 = vector.broadcast %244 : f32 to vector<16x128xf32>
    %888 = arith.mulf %552, %887 : vector<16x128xf32>
    %889 = vector.broadcast %264 : f32 to vector<16x128xf32>
    %890 = arith.mulf %558, %889 : vector<16x128xf32>
    %891 = vector.broadcast %284 : f32 to vector<16x128xf32>
    %892 = arith.mulf %564, %891 : vector<16x128xf32>
    %893 = vector.broadcast %304 : f32 to vector<16x128xf32>
    %894 = arith.mulf %570, %893 : vector<16x128xf32>
    %895 = vector.broadcast %324 : f32 to vector<16x128xf32>
    %896 = arith.mulf %576, %895 : vector<16x128xf32>
    %897 = vector.broadcast %344 : f32 to vector<16x128xf32>
    %898 = arith.mulf %582, %897 : vector<16x128xf32>
    %899 = vector.broadcast %364 : f32 to vector<16x128xf32>
    %900 = arith.mulf %588, %899 : vector<16x128xf32>
    %901 = vector.broadcast %384 : f32 to vector<16x128xf32>
    %902 = arith.mulf %594, %901 : vector<16x128xf32>
    %903 = vector.broadcast %404 : f32 to vector<16x128xf32>
    %904 = arith.mulf %600, %903 : vector<16x128xf32>
    %905 = vector.broadcast %424 : f32 to vector<16x128xf32>
    %906 = arith.mulf %606, %905 : vector<16x128xf32>
    %907 = arith.addf %868, %870 : vector<16x128xf32>
    %908 = arith.addf %872, %874 : vector<16x128xf32>
    %909 = arith.addf %876, %878 : vector<16x128xf32>
    %910 = arith.addf %880, %882 : vector<16x128xf32>
    %911 = arith.addf %884, %886 : vector<16x128xf32>
    %912 = arith.addf %888, %890 : vector<16x128xf32>
    %913 = arith.addf %892, %894 : vector<16x128xf32>
    %914 = arith.addf %896, %898 : vector<16x128xf32>
    %915 = arith.addf %900, %902 : vector<16x128xf32>
    %916 = arith.addf %904, %906 : vector<16x128xf32>
    %917 = arith.addf %907, %908 : vector<16x128xf32>
    %918 = arith.addf %909, %910 : vector<16x128xf32>
    %919 = arith.addf %911, %912 : vector<16x128xf32>
    %920 = arith.addf %913, %914 : vector<16x128xf32>
    %921 = arith.addf %915, %916 : vector<16x128xf32>
    %922 = arith.addf %917, %918 : vector<16x128xf32>
    %923 = arith.addf %919, %920 : vector<16x128xf32>
    %924 = arith.addf %922, %923 : vector<16x128xf32>
    %925 = arith.addf %924, %921 : vector<16x128xf32>
    %926 = vector.broadcast %444 : f32 to vector<16x128xf32>
    %927 = arith.addf %925, %926 : vector<16x128xf32>
    %cst_106 = arith.constant 0.000000e+00 : f32
    %928 = vector.broadcast %cst_106 : f32 to vector<16x128xf32>
    %929 = arith.maximumf %927, %928 : vector<16x128xf32>
    %930 = vector.broadcast %464 : f32 to vector<16x128xf32>
    %931 = arith.mulf %929, %930 : vector<16x128xf32>
    %932 = arith.addf %671, %931 : vector<16x128xf32>
    %933 = vector.broadcast %45 : f32 to vector<16x128xf32>
    %934 = arith.mulf %492, %933 : vector<16x128xf32>
    %935 = vector.broadcast %65 : f32 to vector<16x128xf32>
    %936 = arith.mulf %498, %935 : vector<16x128xf32>
    %937 = vector.broadcast %85 : f32 to vector<16x128xf32>
    %938 = arith.mulf %504, %937 : vector<16x128xf32>
    %939 = vector.broadcast %105 : f32 to vector<16x128xf32>
    %940 = arith.mulf %510, %939 : vector<16x128xf32>
    %941 = vector.broadcast %125 : f32 to vector<16x128xf32>
    %942 = arith.mulf %516, %941 : vector<16x128xf32>
    %943 = vector.broadcast %145 : f32 to vector<16x128xf32>
    %944 = arith.mulf %522, %943 : vector<16x128xf32>
    %945 = vector.broadcast %165 : f32 to vector<16x128xf32>
    %946 = arith.mulf %528, %945 : vector<16x128xf32>
    %947 = vector.broadcast %185 : f32 to vector<16x128xf32>
    %948 = arith.mulf %534, %947 : vector<16x128xf32>
    %949 = vector.broadcast %205 : f32 to vector<16x128xf32>
    %950 = arith.mulf %540, %949 : vector<16x128xf32>
    %951 = vector.broadcast %225 : f32 to vector<16x128xf32>
    %952 = arith.mulf %546, %951 : vector<16x128xf32>
    %953 = vector.broadcast %245 : f32 to vector<16x128xf32>
    %954 = arith.mulf %552, %953 : vector<16x128xf32>
    %955 = vector.broadcast %265 : f32 to vector<16x128xf32>
    %956 = arith.mulf %558, %955 : vector<16x128xf32>
    %957 = vector.broadcast %285 : f32 to vector<16x128xf32>
    %958 = arith.mulf %564, %957 : vector<16x128xf32>
    %959 = vector.broadcast %305 : f32 to vector<16x128xf32>
    %960 = arith.mulf %570, %959 : vector<16x128xf32>
    %961 = vector.broadcast %325 : f32 to vector<16x128xf32>
    %962 = arith.mulf %576, %961 : vector<16x128xf32>
    %963 = vector.broadcast %345 : f32 to vector<16x128xf32>
    %964 = arith.mulf %582, %963 : vector<16x128xf32>
    %965 = vector.broadcast %365 : f32 to vector<16x128xf32>
    %966 = arith.mulf %588, %965 : vector<16x128xf32>
    %967 = vector.broadcast %385 : f32 to vector<16x128xf32>
    %968 = arith.mulf %594, %967 : vector<16x128xf32>
    %969 = vector.broadcast %405 : f32 to vector<16x128xf32>
    %970 = arith.mulf %600, %969 : vector<16x128xf32>
    %971 = vector.broadcast %425 : f32 to vector<16x128xf32>
    %972 = arith.mulf %606, %971 : vector<16x128xf32>
    %973 = arith.addf %934, %936 : vector<16x128xf32>
    %974 = arith.addf %938, %940 : vector<16x128xf32>
    %975 = arith.addf %942, %944 : vector<16x128xf32>
    %976 = arith.addf %946, %948 : vector<16x128xf32>
    %977 = arith.addf %950, %952 : vector<16x128xf32>
    %978 = arith.addf %954, %956 : vector<16x128xf32>
    %979 = arith.addf %958, %960 : vector<16x128xf32>
    %980 = arith.addf %962, %964 : vector<16x128xf32>
    %981 = arith.addf %966, %968 : vector<16x128xf32>
    %982 = arith.addf %970, %972 : vector<16x128xf32>
    %983 = arith.addf %973, %974 : vector<16x128xf32>
    %984 = arith.addf %975, %976 : vector<16x128xf32>
    %985 = arith.addf %977, %978 : vector<16x128xf32>
    %986 = arith.addf %979, %980 : vector<16x128xf32>
    %987 = arith.addf %981, %982 : vector<16x128xf32>
    %988 = arith.addf %983, %984 : vector<16x128xf32>
    %989 = arith.addf %985, %986 : vector<16x128xf32>
    %990 = arith.addf %988, %989 : vector<16x128xf32>
    %991 = arith.addf %990, %987 : vector<16x128xf32>
    %992 = vector.broadcast %445 : f32 to vector<16x128xf32>
    %993 = arith.addf %991, %992 : vector<16x128xf32>
    %cst_107 = arith.constant 0.000000e+00 : f32
    %994 = vector.broadcast %cst_107 : f32 to vector<16x128xf32>
    %995 = arith.maximumf %993, %994 : vector<16x128xf32>
    %996 = vector.broadcast %465 : f32 to vector<16x128xf32>
    %997 = arith.mulf %995, %996 : vector<16x128xf32>
    %998 = arith.addf %736, %997 : vector<16x128xf32>
    %999 = vector.broadcast %46 : f32 to vector<16x128xf32>
    %1000 = arith.mulf %492, %999 : vector<16x128xf32>
    %1001 = vector.broadcast %66 : f32 to vector<16x128xf32>
    %1002 = arith.mulf %498, %1001 : vector<16x128xf32>
    %1003 = vector.broadcast %86 : f32 to vector<16x128xf32>
    %1004 = arith.mulf %504, %1003 : vector<16x128xf32>
    %1005 = vector.broadcast %106 : f32 to vector<16x128xf32>
    %1006 = arith.mulf %510, %1005 : vector<16x128xf32>
    %1007 = vector.broadcast %126 : f32 to vector<16x128xf32>
    %1008 = arith.mulf %516, %1007 : vector<16x128xf32>
    %1009 = vector.broadcast %146 : f32 to vector<16x128xf32>
    %1010 = arith.mulf %522, %1009 : vector<16x128xf32>
    %1011 = vector.broadcast %166 : f32 to vector<16x128xf32>
    %1012 = arith.mulf %528, %1011 : vector<16x128xf32>
    %1013 = vector.broadcast %186 : f32 to vector<16x128xf32>
    %1014 = arith.mulf %534, %1013 : vector<16x128xf32>
    %1015 = vector.broadcast %206 : f32 to vector<16x128xf32>
    %1016 = arith.mulf %540, %1015 : vector<16x128xf32>
    %1017 = vector.broadcast %226 : f32 to vector<16x128xf32>
    %1018 = arith.mulf %546, %1017 : vector<16x128xf32>
    %1019 = vector.broadcast %246 : f32 to vector<16x128xf32>
    %1020 = arith.mulf %552, %1019 : vector<16x128xf32>
    %1021 = vector.broadcast %266 : f32 to vector<16x128xf32>
    %1022 = arith.mulf %558, %1021 : vector<16x128xf32>
    %1023 = vector.broadcast %286 : f32 to vector<16x128xf32>
    %1024 = arith.mulf %564, %1023 : vector<16x128xf32>
    %1025 = vector.broadcast %306 : f32 to vector<16x128xf32>
    %1026 = arith.mulf %570, %1025 : vector<16x128xf32>
    %1027 = vector.broadcast %326 : f32 to vector<16x128xf32>
    %1028 = arith.mulf %576, %1027 : vector<16x128xf32>
    %1029 = vector.broadcast %346 : f32 to vector<16x128xf32>
    %1030 = arith.mulf %582, %1029 : vector<16x128xf32>
    %1031 = vector.broadcast %366 : f32 to vector<16x128xf32>
    %1032 = arith.mulf %588, %1031 : vector<16x128xf32>
    %1033 = vector.broadcast %386 : f32 to vector<16x128xf32>
    %1034 = arith.mulf %594, %1033 : vector<16x128xf32>
    %1035 = vector.broadcast %406 : f32 to vector<16x128xf32>
    %1036 = arith.mulf %600, %1035 : vector<16x128xf32>
    %1037 = vector.broadcast %426 : f32 to vector<16x128xf32>
    %1038 = arith.mulf %606, %1037 : vector<16x128xf32>
    %1039 = arith.addf %1000, %1002 : vector<16x128xf32>
    %1040 = arith.addf %1004, %1006 : vector<16x128xf32>
    %1041 = arith.addf %1008, %1010 : vector<16x128xf32>
    %1042 = arith.addf %1012, %1014 : vector<16x128xf32>
    %1043 = arith.addf %1016, %1018 : vector<16x128xf32>
    %1044 = arith.addf %1020, %1022 : vector<16x128xf32>
    %1045 = arith.addf %1024, %1026 : vector<16x128xf32>
    %1046 = arith.addf %1028, %1030 : vector<16x128xf32>
    %1047 = arith.addf %1032, %1034 : vector<16x128xf32>
    %1048 = arith.addf %1036, %1038 : vector<16x128xf32>
    %1049 = arith.addf %1039, %1040 : vector<16x128xf32>
    %1050 = arith.addf %1041, %1042 : vector<16x128xf32>
    %1051 = arith.addf %1043, %1044 : vector<16x128xf32>
    %1052 = arith.addf %1045, %1046 : vector<16x128xf32>
    %1053 = arith.addf %1047, %1048 : vector<16x128xf32>
    %1054 = arith.addf %1049, %1050 : vector<16x128xf32>
    %1055 = arith.addf %1051, %1052 : vector<16x128xf32>
    %1056 = arith.addf %1054, %1055 : vector<16x128xf32>
    %1057 = arith.addf %1056, %1053 : vector<16x128xf32>
    %1058 = vector.broadcast %446 : f32 to vector<16x128xf32>
    %1059 = arith.addf %1057, %1058 : vector<16x128xf32>
    %cst_108 = arith.constant 0.000000e+00 : f32
    %1060 = vector.broadcast %cst_108 : f32 to vector<16x128xf32>
    %1061 = arith.maximumf %1059, %1060 : vector<16x128xf32>
    %1062 = vector.broadcast %466 : f32 to vector<16x128xf32>
    %1063 = arith.mulf %1061, %1062 : vector<16x128xf32>
    %1064 = arith.addf %801, %1063 : vector<16x128xf32>
    %1065 = vector.broadcast %47 : f32 to vector<16x128xf32>
    %1066 = arith.mulf %492, %1065 : vector<16x128xf32>
    %1067 = vector.broadcast %67 : f32 to vector<16x128xf32>
    %1068 = arith.mulf %498, %1067 : vector<16x128xf32>
    %1069 = vector.broadcast %87 : f32 to vector<16x128xf32>
    %1070 = arith.mulf %504, %1069 : vector<16x128xf32>
    %1071 = vector.broadcast %107 : f32 to vector<16x128xf32>
    %1072 = arith.mulf %510, %1071 : vector<16x128xf32>
    %1073 = vector.broadcast %127 : f32 to vector<16x128xf32>
    %1074 = arith.mulf %516, %1073 : vector<16x128xf32>
    %1075 = vector.broadcast %147 : f32 to vector<16x128xf32>
    %1076 = arith.mulf %522, %1075 : vector<16x128xf32>
    %1077 = vector.broadcast %167 : f32 to vector<16x128xf32>
    %1078 = arith.mulf %528, %1077 : vector<16x128xf32>
    %1079 = vector.broadcast %187 : f32 to vector<16x128xf32>
    %1080 = arith.mulf %534, %1079 : vector<16x128xf32>
    %1081 = vector.broadcast %207 : f32 to vector<16x128xf32>
    %1082 = arith.mulf %540, %1081 : vector<16x128xf32>
    %1083 = vector.broadcast %227 : f32 to vector<16x128xf32>
    %1084 = arith.mulf %546, %1083 : vector<16x128xf32>
    %1085 = vector.broadcast %247 : f32 to vector<16x128xf32>
    %1086 = arith.mulf %552, %1085 : vector<16x128xf32>
    %1087 = vector.broadcast %267 : f32 to vector<16x128xf32>
    %1088 = arith.mulf %558, %1087 : vector<16x128xf32>
    %1089 = vector.broadcast %287 : f32 to vector<16x128xf32>
    %1090 = arith.mulf %564, %1089 : vector<16x128xf32>
    %1091 = vector.broadcast %307 : f32 to vector<16x128xf32>
    %1092 = arith.mulf %570, %1091 : vector<16x128xf32>
    %1093 = vector.broadcast %327 : f32 to vector<16x128xf32>
    %1094 = arith.mulf %576, %1093 : vector<16x128xf32>
    %1095 = vector.broadcast %347 : f32 to vector<16x128xf32>
    %1096 = arith.mulf %582, %1095 : vector<16x128xf32>
    %1097 = vector.broadcast %367 : f32 to vector<16x128xf32>
    %1098 = arith.mulf %588, %1097 : vector<16x128xf32>
    %1099 = vector.broadcast %387 : f32 to vector<16x128xf32>
    %1100 = arith.mulf %594, %1099 : vector<16x128xf32>
    %1101 = vector.broadcast %407 : f32 to vector<16x128xf32>
    %1102 = arith.mulf %600, %1101 : vector<16x128xf32>
    %1103 = vector.broadcast %427 : f32 to vector<16x128xf32>
    %1104 = arith.mulf %606, %1103 : vector<16x128xf32>
    %1105 = arith.addf %1066, %1068 : vector<16x128xf32>
    %1106 = arith.addf %1070, %1072 : vector<16x128xf32>
    %1107 = arith.addf %1074, %1076 : vector<16x128xf32>
    %1108 = arith.addf %1078, %1080 : vector<16x128xf32>
    %1109 = arith.addf %1082, %1084 : vector<16x128xf32>
    %1110 = arith.addf %1086, %1088 : vector<16x128xf32>
    %1111 = arith.addf %1090, %1092 : vector<16x128xf32>
    %1112 = arith.addf %1094, %1096 : vector<16x128xf32>
    %1113 = arith.addf %1098, %1100 : vector<16x128xf32>
    %1114 = arith.addf %1102, %1104 : vector<16x128xf32>
    %1115 = arith.addf %1105, %1106 : vector<16x128xf32>
    %1116 = arith.addf %1107, %1108 : vector<16x128xf32>
    %1117 = arith.addf %1109, %1110 : vector<16x128xf32>
    %1118 = arith.addf %1111, %1112 : vector<16x128xf32>
    %1119 = arith.addf %1113, %1114 : vector<16x128xf32>
    %1120 = arith.addf %1115, %1116 : vector<16x128xf32>
    %1121 = arith.addf %1117, %1118 : vector<16x128xf32>
    %1122 = arith.addf %1120, %1121 : vector<16x128xf32>
    %1123 = arith.addf %1122, %1119 : vector<16x128xf32>
    %1124 = vector.broadcast %447 : f32 to vector<16x128xf32>
    %1125 = arith.addf %1123, %1124 : vector<16x128xf32>
    %cst_109 = arith.constant 0.000000e+00 : f32
    %1126 = vector.broadcast %cst_109 : f32 to vector<16x128xf32>
    %1127 = arith.maximumf %1125, %1126 : vector<16x128xf32>
    %1128 = vector.broadcast %467 : f32 to vector<16x128xf32>
    %1129 = arith.mulf %1127, %1128 : vector<16x128xf32>
    %1130 = arith.addf %866, %1129 : vector<16x128xf32>
    %1131 = vector.broadcast %48 : f32 to vector<16x128xf32>
    %1132 = arith.mulf %492, %1131 : vector<16x128xf32>
    %1133 = vector.broadcast %68 : f32 to vector<16x128xf32>
    %1134 = arith.mulf %498, %1133 : vector<16x128xf32>
    %1135 = vector.broadcast %88 : f32 to vector<16x128xf32>
    %1136 = arith.mulf %504, %1135 : vector<16x128xf32>
    %1137 = vector.broadcast %108 : f32 to vector<16x128xf32>
    %1138 = arith.mulf %510, %1137 : vector<16x128xf32>
    %1139 = vector.broadcast %128 : f32 to vector<16x128xf32>
    %1140 = arith.mulf %516, %1139 : vector<16x128xf32>
    %1141 = vector.broadcast %148 : f32 to vector<16x128xf32>
    %1142 = arith.mulf %522, %1141 : vector<16x128xf32>
    %1143 = vector.broadcast %168 : f32 to vector<16x128xf32>
    %1144 = arith.mulf %528, %1143 : vector<16x128xf32>
    %1145 = vector.broadcast %188 : f32 to vector<16x128xf32>
    %1146 = arith.mulf %534, %1145 : vector<16x128xf32>
    %1147 = vector.broadcast %208 : f32 to vector<16x128xf32>
    %1148 = arith.mulf %540, %1147 : vector<16x128xf32>
    %1149 = vector.broadcast %228 : f32 to vector<16x128xf32>
    %1150 = arith.mulf %546, %1149 : vector<16x128xf32>
    %1151 = vector.broadcast %248 : f32 to vector<16x128xf32>
    %1152 = arith.mulf %552, %1151 : vector<16x128xf32>
    %1153 = vector.broadcast %268 : f32 to vector<16x128xf32>
    %1154 = arith.mulf %558, %1153 : vector<16x128xf32>
    %1155 = vector.broadcast %288 : f32 to vector<16x128xf32>
    %1156 = arith.mulf %564, %1155 : vector<16x128xf32>
    %1157 = vector.broadcast %308 : f32 to vector<16x128xf32>
    %1158 = arith.mulf %570, %1157 : vector<16x128xf32>
    %1159 = vector.broadcast %328 : f32 to vector<16x128xf32>
    %1160 = arith.mulf %576, %1159 : vector<16x128xf32>
    %1161 = vector.broadcast %348 : f32 to vector<16x128xf32>
    %1162 = arith.mulf %582, %1161 : vector<16x128xf32>
    %1163 = vector.broadcast %368 : f32 to vector<16x128xf32>
    %1164 = arith.mulf %588, %1163 : vector<16x128xf32>
    %1165 = vector.broadcast %388 : f32 to vector<16x128xf32>
    %1166 = arith.mulf %594, %1165 : vector<16x128xf32>
    %1167 = vector.broadcast %408 : f32 to vector<16x128xf32>
    %1168 = arith.mulf %600, %1167 : vector<16x128xf32>
    %1169 = vector.broadcast %428 : f32 to vector<16x128xf32>
    %1170 = arith.mulf %606, %1169 : vector<16x128xf32>
    %1171 = arith.addf %1132, %1134 : vector<16x128xf32>
    %1172 = arith.addf %1136, %1138 : vector<16x128xf32>
    %1173 = arith.addf %1140, %1142 : vector<16x128xf32>
    %1174 = arith.addf %1144, %1146 : vector<16x128xf32>
    %1175 = arith.addf %1148, %1150 : vector<16x128xf32>
    %1176 = arith.addf %1152, %1154 : vector<16x128xf32>
    %1177 = arith.addf %1156, %1158 : vector<16x128xf32>
    %1178 = arith.addf %1160, %1162 : vector<16x128xf32>
    %1179 = arith.addf %1164, %1166 : vector<16x128xf32>
    %1180 = arith.addf %1168, %1170 : vector<16x128xf32>
    %1181 = arith.addf %1171, %1172 : vector<16x128xf32>
    %1182 = arith.addf %1173, %1174 : vector<16x128xf32>
    %1183 = arith.addf %1175, %1176 : vector<16x128xf32>
    %1184 = arith.addf %1177, %1178 : vector<16x128xf32>
    %1185 = arith.addf %1179, %1180 : vector<16x128xf32>
    %1186 = arith.addf %1181, %1182 : vector<16x128xf32>
    %1187 = arith.addf %1183, %1184 : vector<16x128xf32>
    %1188 = arith.addf %1186, %1187 : vector<16x128xf32>
    %1189 = arith.addf %1188, %1185 : vector<16x128xf32>
    %1190 = vector.broadcast %448 : f32 to vector<16x128xf32>
    %1191 = arith.addf %1189, %1190 : vector<16x128xf32>
    %cst_110 = arith.constant 0.000000e+00 : f32
    %1192 = vector.broadcast %cst_110 : f32 to vector<16x128xf32>
    %1193 = arith.maximumf %1191, %1192 : vector<16x128xf32>
    %1194 = vector.broadcast %468 : f32 to vector<16x128xf32>
    %1195 = arith.mulf %1193, %1194 : vector<16x128xf32>
    %1196 = arith.addf %932, %1195 : vector<16x128xf32>
    %1197 = vector.broadcast %49 : f32 to vector<16x128xf32>
    %1198 = arith.mulf %492, %1197 : vector<16x128xf32>
    %1199 = vector.broadcast %69 : f32 to vector<16x128xf32>
    %1200 = arith.mulf %498, %1199 : vector<16x128xf32>
    %1201 = vector.broadcast %89 : f32 to vector<16x128xf32>
    %1202 = arith.mulf %504, %1201 : vector<16x128xf32>
    %1203 = vector.broadcast %109 : f32 to vector<16x128xf32>
    %1204 = arith.mulf %510, %1203 : vector<16x128xf32>
    %1205 = vector.broadcast %129 : f32 to vector<16x128xf32>
    %1206 = arith.mulf %516, %1205 : vector<16x128xf32>
    %1207 = vector.broadcast %149 : f32 to vector<16x128xf32>
    %1208 = arith.mulf %522, %1207 : vector<16x128xf32>
    %1209 = vector.broadcast %169 : f32 to vector<16x128xf32>
    %1210 = arith.mulf %528, %1209 : vector<16x128xf32>
    %1211 = vector.broadcast %189 : f32 to vector<16x128xf32>
    %1212 = arith.mulf %534, %1211 : vector<16x128xf32>
    %1213 = vector.broadcast %209 : f32 to vector<16x128xf32>
    %1214 = arith.mulf %540, %1213 : vector<16x128xf32>
    %1215 = vector.broadcast %229 : f32 to vector<16x128xf32>
    %1216 = arith.mulf %546, %1215 : vector<16x128xf32>
    %1217 = vector.broadcast %249 : f32 to vector<16x128xf32>
    %1218 = arith.mulf %552, %1217 : vector<16x128xf32>
    %1219 = vector.broadcast %269 : f32 to vector<16x128xf32>
    %1220 = arith.mulf %558, %1219 : vector<16x128xf32>
    %1221 = vector.broadcast %289 : f32 to vector<16x128xf32>
    %1222 = arith.mulf %564, %1221 : vector<16x128xf32>
    %1223 = vector.broadcast %309 : f32 to vector<16x128xf32>
    %1224 = arith.mulf %570, %1223 : vector<16x128xf32>
    %1225 = vector.broadcast %329 : f32 to vector<16x128xf32>
    %1226 = arith.mulf %576, %1225 : vector<16x128xf32>
    %1227 = vector.broadcast %349 : f32 to vector<16x128xf32>
    %1228 = arith.mulf %582, %1227 : vector<16x128xf32>
    %1229 = vector.broadcast %369 : f32 to vector<16x128xf32>
    %1230 = arith.mulf %588, %1229 : vector<16x128xf32>
    %1231 = vector.broadcast %389 : f32 to vector<16x128xf32>
    %1232 = arith.mulf %594, %1231 : vector<16x128xf32>
    %1233 = vector.broadcast %409 : f32 to vector<16x128xf32>
    %1234 = arith.mulf %600, %1233 : vector<16x128xf32>
    %1235 = vector.broadcast %429 : f32 to vector<16x128xf32>
    %1236 = arith.mulf %606, %1235 : vector<16x128xf32>
    %1237 = arith.addf %1198, %1200 : vector<16x128xf32>
    %1238 = arith.addf %1202, %1204 : vector<16x128xf32>
    %1239 = arith.addf %1206, %1208 : vector<16x128xf32>
    %1240 = arith.addf %1210, %1212 : vector<16x128xf32>
    %1241 = arith.addf %1214, %1216 : vector<16x128xf32>
    %1242 = arith.addf %1218, %1220 : vector<16x128xf32>
    %1243 = arith.addf %1222, %1224 : vector<16x128xf32>
    %1244 = arith.addf %1226, %1228 : vector<16x128xf32>
    %1245 = arith.addf %1230, %1232 : vector<16x128xf32>
    %1246 = arith.addf %1234, %1236 : vector<16x128xf32>
    %1247 = arith.addf %1237, %1238 : vector<16x128xf32>
    %1248 = arith.addf %1239, %1240 : vector<16x128xf32>
    %1249 = arith.addf %1241, %1242 : vector<16x128xf32>
    %1250 = arith.addf %1243, %1244 : vector<16x128xf32>
    %1251 = arith.addf %1245, %1246 : vector<16x128xf32>
    %1252 = arith.addf %1247, %1248 : vector<16x128xf32>
    %1253 = arith.addf %1249, %1250 : vector<16x128xf32>
    %1254 = arith.addf %1252, %1253 : vector<16x128xf32>
    %1255 = arith.addf %1254, %1251 : vector<16x128xf32>
    %1256 = vector.broadcast %449 : f32 to vector<16x128xf32>
    %1257 = arith.addf %1255, %1256 : vector<16x128xf32>
    %cst_111 = arith.constant 0.000000e+00 : f32
    %1258 = vector.broadcast %cst_111 : f32 to vector<16x128xf32>
    %1259 = arith.maximumf %1257, %1258 : vector<16x128xf32>
    %1260 = vector.broadcast %469 : f32 to vector<16x128xf32>
    %1261 = arith.mulf %1259, %1260 : vector<16x128xf32>
    %1262 = arith.addf %998, %1261 : vector<16x128xf32>
    %1263 = vector.broadcast %50 : f32 to vector<16x128xf32>
    %1264 = arith.mulf %492, %1263 : vector<16x128xf32>
    %1265 = vector.broadcast %70 : f32 to vector<16x128xf32>
    %1266 = arith.mulf %498, %1265 : vector<16x128xf32>
    %1267 = vector.broadcast %90 : f32 to vector<16x128xf32>
    %1268 = arith.mulf %504, %1267 : vector<16x128xf32>
    %1269 = vector.broadcast %110 : f32 to vector<16x128xf32>
    %1270 = arith.mulf %510, %1269 : vector<16x128xf32>
    %1271 = vector.broadcast %130 : f32 to vector<16x128xf32>
    %1272 = arith.mulf %516, %1271 : vector<16x128xf32>
    %1273 = vector.broadcast %150 : f32 to vector<16x128xf32>
    %1274 = arith.mulf %522, %1273 : vector<16x128xf32>
    %1275 = vector.broadcast %170 : f32 to vector<16x128xf32>
    %1276 = arith.mulf %528, %1275 : vector<16x128xf32>
    %1277 = vector.broadcast %190 : f32 to vector<16x128xf32>
    %1278 = arith.mulf %534, %1277 : vector<16x128xf32>
    %1279 = vector.broadcast %210 : f32 to vector<16x128xf32>
    %1280 = arith.mulf %540, %1279 : vector<16x128xf32>
    %1281 = vector.broadcast %230 : f32 to vector<16x128xf32>
    %1282 = arith.mulf %546, %1281 : vector<16x128xf32>
    %1283 = vector.broadcast %250 : f32 to vector<16x128xf32>
    %1284 = arith.mulf %552, %1283 : vector<16x128xf32>
    %1285 = vector.broadcast %270 : f32 to vector<16x128xf32>
    %1286 = arith.mulf %558, %1285 : vector<16x128xf32>
    %1287 = vector.broadcast %290 : f32 to vector<16x128xf32>
    %1288 = arith.mulf %564, %1287 : vector<16x128xf32>
    %1289 = vector.broadcast %310 : f32 to vector<16x128xf32>
    %1290 = arith.mulf %570, %1289 : vector<16x128xf32>
    %1291 = vector.broadcast %330 : f32 to vector<16x128xf32>
    %1292 = arith.mulf %576, %1291 : vector<16x128xf32>
    %1293 = vector.broadcast %350 : f32 to vector<16x128xf32>
    %1294 = arith.mulf %582, %1293 : vector<16x128xf32>
    %1295 = vector.broadcast %370 : f32 to vector<16x128xf32>
    %1296 = arith.mulf %588, %1295 : vector<16x128xf32>
    %1297 = vector.broadcast %390 : f32 to vector<16x128xf32>
    %1298 = arith.mulf %594, %1297 : vector<16x128xf32>
    %1299 = vector.broadcast %410 : f32 to vector<16x128xf32>
    %1300 = arith.mulf %600, %1299 : vector<16x128xf32>
    %1301 = vector.broadcast %430 : f32 to vector<16x128xf32>
    %1302 = arith.mulf %606, %1301 : vector<16x128xf32>
    %1303 = arith.addf %1264, %1266 : vector<16x128xf32>
    %1304 = arith.addf %1268, %1270 : vector<16x128xf32>
    %1305 = arith.addf %1272, %1274 : vector<16x128xf32>
    %1306 = arith.addf %1276, %1278 : vector<16x128xf32>
    %1307 = arith.addf %1280, %1282 : vector<16x128xf32>
    %1308 = arith.addf %1284, %1286 : vector<16x128xf32>
    %1309 = arith.addf %1288, %1290 : vector<16x128xf32>
    %1310 = arith.addf %1292, %1294 : vector<16x128xf32>
    %1311 = arith.addf %1296, %1298 : vector<16x128xf32>
    %1312 = arith.addf %1300, %1302 : vector<16x128xf32>
    %1313 = arith.addf %1303, %1304 : vector<16x128xf32>
    %1314 = arith.addf %1305, %1306 : vector<16x128xf32>
    %1315 = arith.addf %1307, %1308 : vector<16x128xf32>
    %1316 = arith.addf %1309, %1310 : vector<16x128xf32>
    %1317 = arith.addf %1311, %1312 : vector<16x128xf32>
    %1318 = arith.addf %1313, %1314 : vector<16x128xf32>
    %1319 = arith.addf %1315, %1316 : vector<16x128xf32>
    %1320 = arith.addf %1318, %1319 : vector<16x128xf32>
    %1321 = arith.addf %1320, %1317 : vector<16x128xf32>
    %1322 = vector.broadcast %450 : f32 to vector<16x128xf32>
    %1323 = arith.addf %1321, %1322 : vector<16x128xf32>
    %cst_112 = arith.constant 0.000000e+00 : f32
    %1324 = vector.broadcast %cst_112 : f32 to vector<16x128xf32>
    %1325 = arith.maximumf %1323, %1324 : vector<16x128xf32>
    %1326 = vector.broadcast %470 : f32 to vector<16x128xf32>
    %1327 = arith.mulf %1325, %1326 : vector<16x128xf32>
    %1328 = arith.addf %1064, %1327 : vector<16x128xf32>
    %1329 = vector.broadcast %51 : f32 to vector<16x128xf32>
    %1330 = arith.mulf %492, %1329 : vector<16x128xf32>
    %1331 = vector.broadcast %71 : f32 to vector<16x128xf32>
    %1332 = arith.mulf %498, %1331 : vector<16x128xf32>
    %1333 = vector.broadcast %91 : f32 to vector<16x128xf32>
    %1334 = arith.mulf %504, %1333 : vector<16x128xf32>
    %1335 = vector.broadcast %111 : f32 to vector<16x128xf32>
    %1336 = arith.mulf %510, %1335 : vector<16x128xf32>
    %1337 = vector.broadcast %131 : f32 to vector<16x128xf32>
    %1338 = arith.mulf %516, %1337 : vector<16x128xf32>
    %1339 = vector.broadcast %151 : f32 to vector<16x128xf32>
    %1340 = arith.mulf %522, %1339 : vector<16x128xf32>
    %1341 = vector.broadcast %171 : f32 to vector<16x128xf32>
    %1342 = arith.mulf %528, %1341 : vector<16x128xf32>
    %1343 = vector.broadcast %191 : f32 to vector<16x128xf32>
    %1344 = arith.mulf %534, %1343 : vector<16x128xf32>
    %1345 = vector.broadcast %211 : f32 to vector<16x128xf32>
    %1346 = arith.mulf %540, %1345 : vector<16x128xf32>
    %1347 = vector.broadcast %231 : f32 to vector<16x128xf32>
    %1348 = arith.mulf %546, %1347 : vector<16x128xf32>
    %1349 = vector.broadcast %251 : f32 to vector<16x128xf32>
    %1350 = arith.mulf %552, %1349 : vector<16x128xf32>
    %1351 = vector.broadcast %271 : f32 to vector<16x128xf32>
    %1352 = arith.mulf %558, %1351 : vector<16x128xf32>
    %1353 = vector.broadcast %291 : f32 to vector<16x128xf32>
    %1354 = arith.mulf %564, %1353 : vector<16x128xf32>
    %1355 = vector.broadcast %311 : f32 to vector<16x128xf32>
    %1356 = arith.mulf %570, %1355 : vector<16x128xf32>
    %1357 = vector.broadcast %331 : f32 to vector<16x128xf32>
    %1358 = arith.mulf %576, %1357 : vector<16x128xf32>
    %1359 = vector.broadcast %351 : f32 to vector<16x128xf32>
    %1360 = arith.mulf %582, %1359 : vector<16x128xf32>
    %1361 = vector.broadcast %371 : f32 to vector<16x128xf32>
    %1362 = arith.mulf %588, %1361 : vector<16x128xf32>
    %1363 = vector.broadcast %391 : f32 to vector<16x128xf32>
    %1364 = arith.mulf %594, %1363 : vector<16x128xf32>
    %1365 = vector.broadcast %411 : f32 to vector<16x128xf32>
    %1366 = arith.mulf %600, %1365 : vector<16x128xf32>
    %1367 = vector.broadcast %431 : f32 to vector<16x128xf32>
    %1368 = arith.mulf %606, %1367 : vector<16x128xf32>
    %1369 = arith.addf %1330, %1332 : vector<16x128xf32>
    %1370 = arith.addf %1334, %1336 : vector<16x128xf32>
    %1371 = arith.addf %1338, %1340 : vector<16x128xf32>
    %1372 = arith.addf %1342, %1344 : vector<16x128xf32>
    %1373 = arith.addf %1346, %1348 : vector<16x128xf32>
    %1374 = arith.addf %1350, %1352 : vector<16x128xf32>
    %1375 = arith.addf %1354, %1356 : vector<16x128xf32>
    %1376 = arith.addf %1358, %1360 : vector<16x128xf32>
    %1377 = arith.addf %1362, %1364 : vector<16x128xf32>
    %1378 = arith.addf %1366, %1368 : vector<16x128xf32>
    %1379 = arith.addf %1369, %1370 : vector<16x128xf32>
    %1380 = arith.addf %1371, %1372 : vector<16x128xf32>
    %1381 = arith.addf %1373, %1374 : vector<16x128xf32>
    %1382 = arith.addf %1375, %1376 : vector<16x128xf32>
    %1383 = arith.addf %1377, %1378 : vector<16x128xf32>
    %1384 = arith.addf %1379, %1380 : vector<16x128xf32>
    %1385 = arith.addf %1381, %1382 : vector<16x128xf32>
    %1386 = arith.addf %1384, %1385 : vector<16x128xf32>
    %1387 = arith.addf %1386, %1383 : vector<16x128xf32>
    %1388 = vector.broadcast %451 : f32 to vector<16x128xf32>
    %1389 = arith.addf %1387, %1388 : vector<16x128xf32>
    %cst_113 = arith.constant 0.000000e+00 : f32
    %1390 = vector.broadcast %cst_113 : f32 to vector<16x128xf32>
    %1391 = arith.maximumf %1389, %1390 : vector<16x128xf32>
    %1392 = vector.broadcast %471 : f32 to vector<16x128xf32>
    %1393 = arith.mulf %1391, %1392 : vector<16x128xf32>
    %1394 = arith.addf %1130, %1393 : vector<16x128xf32>
    %1395 = vector.broadcast %52 : f32 to vector<16x128xf32>
    %1396 = arith.mulf %492, %1395 : vector<16x128xf32>
    %1397 = vector.broadcast %72 : f32 to vector<16x128xf32>
    %1398 = arith.mulf %498, %1397 : vector<16x128xf32>
    %1399 = vector.broadcast %92 : f32 to vector<16x128xf32>
    %1400 = arith.mulf %504, %1399 : vector<16x128xf32>
    %1401 = vector.broadcast %112 : f32 to vector<16x128xf32>
    %1402 = arith.mulf %510, %1401 : vector<16x128xf32>
    %1403 = vector.broadcast %132 : f32 to vector<16x128xf32>
    %1404 = arith.mulf %516, %1403 : vector<16x128xf32>
    %1405 = vector.broadcast %152 : f32 to vector<16x128xf32>
    %1406 = arith.mulf %522, %1405 : vector<16x128xf32>
    %1407 = vector.broadcast %172 : f32 to vector<16x128xf32>
    %1408 = arith.mulf %528, %1407 : vector<16x128xf32>
    %1409 = vector.broadcast %192 : f32 to vector<16x128xf32>
    %1410 = arith.mulf %534, %1409 : vector<16x128xf32>
    %1411 = vector.broadcast %212 : f32 to vector<16x128xf32>
    %1412 = arith.mulf %540, %1411 : vector<16x128xf32>
    %1413 = vector.broadcast %232 : f32 to vector<16x128xf32>
    %1414 = arith.mulf %546, %1413 : vector<16x128xf32>
    %1415 = vector.broadcast %252 : f32 to vector<16x128xf32>
    %1416 = arith.mulf %552, %1415 : vector<16x128xf32>
    %1417 = vector.broadcast %272 : f32 to vector<16x128xf32>
    %1418 = arith.mulf %558, %1417 : vector<16x128xf32>
    %1419 = vector.broadcast %292 : f32 to vector<16x128xf32>
    %1420 = arith.mulf %564, %1419 : vector<16x128xf32>
    %1421 = vector.broadcast %312 : f32 to vector<16x128xf32>
    %1422 = arith.mulf %570, %1421 : vector<16x128xf32>
    %1423 = vector.broadcast %332 : f32 to vector<16x128xf32>
    %1424 = arith.mulf %576, %1423 : vector<16x128xf32>
    %1425 = vector.broadcast %352 : f32 to vector<16x128xf32>
    %1426 = arith.mulf %582, %1425 : vector<16x128xf32>
    %1427 = vector.broadcast %372 : f32 to vector<16x128xf32>
    %1428 = arith.mulf %588, %1427 : vector<16x128xf32>
    %1429 = vector.broadcast %392 : f32 to vector<16x128xf32>
    %1430 = arith.mulf %594, %1429 : vector<16x128xf32>
    %1431 = vector.broadcast %412 : f32 to vector<16x128xf32>
    %1432 = arith.mulf %600, %1431 : vector<16x128xf32>
    %1433 = vector.broadcast %432 : f32 to vector<16x128xf32>
    %1434 = arith.mulf %606, %1433 : vector<16x128xf32>
    %1435 = arith.addf %1396, %1398 : vector<16x128xf32>
    %1436 = arith.addf %1400, %1402 : vector<16x128xf32>
    %1437 = arith.addf %1404, %1406 : vector<16x128xf32>
    %1438 = arith.addf %1408, %1410 : vector<16x128xf32>
    %1439 = arith.addf %1412, %1414 : vector<16x128xf32>
    %1440 = arith.addf %1416, %1418 : vector<16x128xf32>
    %1441 = arith.addf %1420, %1422 : vector<16x128xf32>
    %1442 = arith.addf %1424, %1426 : vector<16x128xf32>
    %1443 = arith.addf %1428, %1430 : vector<16x128xf32>
    %1444 = arith.addf %1432, %1434 : vector<16x128xf32>
    %1445 = arith.addf %1435, %1436 : vector<16x128xf32>
    %1446 = arith.addf %1437, %1438 : vector<16x128xf32>
    %1447 = arith.addf %1439, %1440 : vector<16x128xf32>
    %1448 = arith.addf %1441, %1442 : vector<16x128xf32>
    %1449 = arith.addf %1443, %1444 : vector<16x128xf32>
    %1450 = arith.addf %1445, %1446 : vector<16x128xf32>
    %1451 = arith.addf %1447, %1448 : vector<16x128xf32>
    %1452 = arith.addf %1450, %1451 : vector<16x128xf32>
    %1453 = arith.addf %1452, %1449 : vector<16x128xf32>
    %1454 = vector.broadcast %452 : f32 to vector<16x128xf32>
    %1455 = arith.addf %1453, %1454 : vector<16x128xf32>
    %cst_114 = arith.constant 0.000000e+00 : f32
    %1456 = vector.broadcast %cst_114 : f32 to vector<16x128xf32>
    %1457 = arith.maximumf %1455, %1456 : vector<16x128xf32>
    %1458 = vector.broadcast %472 : f32 to vector<16x128xf32>
    %1459 = arith.mulf %1457, %1458 : vector<16x128xf32>
    %1460 = arith.addf %1196, %1459 : vector<16x128xf32>
    %1461 = vector.broadcast %53 : f32 to vector<16x128xf32>
    %1462 = arith.mulf %492, %1461 : vector<16x128xf32>
    %1463 = vector.broadcast %73 : f32 to vector<16x128xf32>
    %1464 = arith.mulf %498, %1463 : vector<16x128xf32>
    %1465 = vector.broadcast %93 : f32 to vector<16x128xf32>
    %1466 = arith.mulf %504, %1465 : vector<16x128xf32>
    %1467 = vector.broadcast %113 : f32 to vector<16x128xf32>
    %1468 = arith.mulf %510, %1467 : vector<16x128xf32>
    %1469 = vector.broadcast %133 : f32 to vector<16x128xf32>
    %1470 = arith.mulf %516, %1469 : vector<16x128xf32>
    %1471 = vector.broadcast %153 : f32 to vector<16x128xf32>
    %1472 = arith.mulf %522, %1471 : vector<16x128xf32>
    %1473 = vector.broadcast %173 : f32 to vector<16x128xf32>
    %1474 = arith.mulf %528, %1473 : vector<16x128xf32>
    %1475 = vector.broadcast %193 : f32 to vector<16x128xf32>
    %1476 = arith.mulf %534, %1475 : vector<16x128xf32>
    %1477 = vector.broadcast %213 : f32 to vector<16x128xf32>
    %1478 = arith.mulf %540, %1477 : vector<16x128xf32>
    %1479 = vector.broadcast %233 : f32 to vector<16x128xf32>
    %1480 = arith.mulf %546, %1479 : vector<16x128xf32>
    %1481 = vector.broadcast %253 : f32 to vector<16x128xf32>
    %1482 = arith.mulf %552, %1481 : vector<16x128xf32>
    %1483 = vector.broadcast %273 : f32 to vector<16x128xf32>
    %1484 = arith.mulf %558, %1483 : vector<16x128xf32>
    %1485 = vector.broadcast %293 : f32 to vector<16x128xf32>
    %1486 = arith.mulf %564, %1485 : vector<16x128xf32>
    %1487 = vector.broadcast %313 : f32 to vector<16x128xf32>
    %1488 = arith.mulf %570, %1487 : vector<16x128xf32>
    %1489 = vector.broadcast %333 : f32 to vector<16x128xf32>
    %1490 = arith.mulf %576, %1489 : vector<16x128xf32>
    %1491 = vector.broadcast %353 : f32 to vector<16x128xf32>
    %1492 = arith.mulf %582, %1491 : vector<16x128xf32>
    %1493 = vector.broadcast %373 : f32 to vector<16x128xf32>
    %1494 = arith.mulf %588, %1493 : vector<16x128xf32>
    %1495 = vector.broadcast %393 : f32 to vector<16x128xf32>
    %1496 = arith.mulf %594, %1495 : vector<16x128xf32>
    %1497 = vector.broadcast %413 : f32 to vector<16x128xf32>
    %1498 = arith.mulf %600, %1497 : vector<16x128xf32>
    %1499 = vector.broadcast %433 : f32 to vector<16x128xf32>
    %1500 = arith.mulf %606, %1499 : vector<16x128xf32>
    %1501 = arith.addf %1462, %1464 : vector<16x128xf32>
    %1502 = arith.addf %1466, %1468 : vector<16x128xf32>
    %1503 = arith.addf %1470, %1472 : vector<16x128xf32>
    %1504 = arith.addf %1474, %1476 : vector<16x128xf32>
    %1505 = arith.addf %1478, %1480 : vector<16x128xf32>
    %1506 = arith.addf %1482, %1484 : vector<16x128xf32>
    %1507 = arith.addf %1486, %1488 : vector<16x128xf32>
    %1508 = arith.addf %1490, %1492 : vector<16x128xf32>
    %1509 = arith.addf %1494, %1496 : vector<16x128xf32>
    %1510 = arith.addf %1498, %1500 : vector<16x128xf32>
    %1511 = arith.addf %1501, %1502 : vector<16x128xf32>
    %1512 = arith.addf %1503, %1504 : vector<16x128xf32>
    %1513 = arith.addf %1505, %1506 : vector<16x128xf32>
    %1514 = arith.addf %1507, %1508 : vector<16x128xf32>
    %1515 = arith.addf %1509, %1510 : vector<16x128xf32>
    %1516 = arith.addf %1511, %1512 : vector<16x128xf32>
    %1517 = arith.addf %1513, %1514 : vector<16x128xf32>
    %1518 = arith.addf %1516, %1517 : vector<16x128xf32>
    %1519 = arith.addf %1518, %1515 : vector<16x128xf32>
    %1520 = vector.broadcast %453 : f32 to vector<16x128xf32>
    %1521 = arith.addf %1519, %1520 : vector<16x128xf32>
    %cst_115 = arith.constant 0.000000e+00 : f32
    %1522 = vector.broadcast %cst_115 : f32 to vector<16x128xf32>
    %1523 = arith.maximumf %1521, %1522 : vector<16x128xf32>
    %1524 = vector.broadcast %473 : f32 to vector<16x128xf32>
    %1525 = arith.mulf %1523, %1524 : vector<16x128xf32>
    %1526 = arith.addf %1262, %1525 : vector<16x128xf32>
    %1527 = vector.broadcast %54 : f32 to vector<16x128xf32>
    %1528 = arith.mulf %492, %1527 : vector<16x128xf32>
    %1529 = vector.broadcast %74 : f32 to vector<16x128xf32>
    %1530 = arith.mulf %498, %1529 : vector<16x128xf32>
    %1531 = vector.broadcast %94 : f32 to vector<16x128xf32>
    %1532 = arith.mulf %504, %1531 : vector<16x128xf32>
    %1533 = vector.broadcast %114 : f32 to vector<16x128xf32>
    %1534 = arith.mulf %510, %1533 : vector<16x128xf32>
    %1535 = vector.broadcast %134 : f32 to vector<16x128xf32>
    %1536 = arith.mulf %516, %1535 : vector<16x128xf32>
    %1537 = vector.broadcast %154 : f32 to vector<16x128xf32>
    %1538 = arith.mulf %522, %1537 : vector<16x128xf32>
    %1539 = vector.broadcast %174 : f32 to vector<16x128xf32>
    %1540 = arith.mulf %528, %1539 : vector<16x128xf32>
    %1541 = vector.broadcast %194 : f32 to vector<16x128xf32>
    %1542 = arith.mulf %534, %1541 : vector<16x128xf32>
    %1543 = vector.broadcast %214 : f32 to vector<16x128xf32>
    %1544 = arith.mulf %540, %1543 : vector<16x128xf32>
    %1545 = vector.broadcast %234 : f32 to vector<16x128xf32>
    %1546 = arith.mulf %546, %1545 : vector<16x128xf32>
    %1547 = vector.broadcast %254 : f32 to vector<16x128xf32>
    %1548 = arith.mulf %552, %1547 : vector<16x128xf32>
    %1549 = vector.broadcast %274 : f32 to vector<16x128xf32>
    %1550 = arith.mulf %558, %1549 : vector<16x128xf32>
    %1551 = vector.broadcast %294 : f32 to vector<16x128xf32>
    %1552 = arith.mulf %564, %1551 : vector<16x128xf32>
    %1553 = vector.broadcast %314 : f32 to vector<16x128xf32>
    %1554 = arith.mulf %570, %1553 : vector<16x128xf32>
    %1555 = vector.broadcast %334 : f32 to vector<16x128xf32>
    %1556 = arith.mulf %576, %1555 : vector<16x128xf32>
    %1557 = vector.broadcast %354 : f32 to vector<16x128xf32>
    %1558 = arith.mulf %582, %1557 : vector<16x128xf32>
    %1559 = vector.broadcast %374 : f32 to vector<16x128xf32>
    %1560 = arith.mulf %588, %1559 : vector<16x128xf32>
    %1561 = vector.broadcast %394 : f32 to vector<16x128xf32>
    %1562 = arith.mulf %594, %1561 : vector<16x128xf32>
    %1563 = vector.broadcast %414 : f32 to vector<16x128xf32>
    %1564 = arith.mulf %600, %1563 : vector<16x128xf32>
    %1565 = vector.broadcast %434 : f32 to vector<16x128xf32>
    %1566 = arith.mulf %606, %1565 : vector<16x128xf32>
    %1567 = arith.addf %1528, %1530 : vector<16x128xf32>
    %1568 = arith.addf %1532, %1534 : vector<16x128xf32>
    %1569 = arith.addf %1536, %1538 : vector<16x128xf32>
    %1570 = arith.addf %1540, %1542 : vector<16x128xf32>
    %1571 = arith.addf %1544, %1546 : vector<16x128xf32>
    %1572 = arith.addf %1548, %1550 : vector<16x128xf32>
    %1573 = arith.addf %1552, %1554 : vector<16x128xf32>
    %1574 = arith.addf %1556, %1558 : vector<16x128xf32>
    %1575 = arith.addf %1560, %1562 : vector<16x128xf32>
    %1576 = arith.addf %1564, %1566 : vector<16x128xf32>
    %1577 = arith.addf %1567, %1568 : vector<16x128xf32>
    %1578 = arith.addf %1569, %1570 : vector<16x128xf32>
    %1579 = arith.addf %1571, %1572 : vector<16x128xf32>
    %1580 = arith.addf %1573, %1574 : vector<16x128xf32>
    %1581 = arith.addf %1575, %1576 : vector<16x128xf32>
    %1582 = arith.addf %1577, %1578 : vector<16x128xf32>
    %1583 = arith.addf %1579, %1580 : vector<16x128xf32>
    %1584 = arith.addf %1582, %1583 : vector<16x128xf32>
    %1585 = arith.addf %1584, %1581 : vector<16x128xf32>
    %1586 = vector.broadcast %454 : f32 to vector<16x128xf32>
    %1587 = arith.addf %1585, %1586 : vector<16x128xf32>
    %cst_116 = arith.constant 0.000000e+00 : f32
    %1588 = vector.broadcast %cst_116 : f32 to vector<16x128xf32>
    %1589 = arith.maximumf %1587, %1588 : vector<16x128xf32>
    %1590 = vector.broadcast %474 : f32 to vector<16x128xf32>
    %1591 = arith.mulf %1589, %1590 : vector<16x128xf32>
    %1592 = arith.addf %1328, %1591 : vector<16x128xf32>
    %1593 = vector.broadcast %55 : f32 to vector<16x128xf32>
    %1594 = arith.mulf %492, %1593 : vector<16x128xf32>
    %1595 = vector.broadcast %75 : f32 to vector<16x128xf32>
    %1596 = arith.mulf %498, %1595 : vector<16x128xf32>
    %1597 = vector.broadcast %95 : f32 to vector<16x128xf32>
    %1598 = arith.mulf %504, %1597 : vector<16x128xf32>
    %1599 = vector.broadcast %115 : f32 to vector<16x128xf32>
    %1600 = arith.mulf %510, %1599 : vector<16x128xf32>
    %1601 = vector.broadcast %135 : f32 to vector<16x128xf32>
    %1602 = arith.mulf %516, %1601 : vector<16x128xf32>
    %1603 = vector.broadcast %155 : f32 to vector<16x128xf32>
    %1604 = arith.mulf %522, %1603 : vector<16x128xf32>
    %1605 = vector.broadcast %175 : f32 to vector<16x128xf32>
    %1606 = arith.mulf %528, %1605 : vector<16x128xf32>
    %1607 = vector.broadcast %195 : f32 to vector<16x128xf32>
    %1608 = arith.mulf %534, %1607 : vector<16x128xf32>
    %1609 = vector.broadcast %215 : f32 to vector<16x128xf32>
    %1610 = arith.mulf %540, %1609 : vector<16x128xf32>
    %1611 = vector.broadcast %235 : f32 to vector<16x128xf32>
    %1612 = arith.mulf %546, %1611 : vector<16x128xf32>
    %1613 = vector.broadcast %255 : f32 to vector<16x128xf32>
    %1614 = arith.mulf %552, %1613 : vector<16x128xf32>
    %1615 = vector.broadcast %275 : f32 to vector<16x128xf32>
    %1616 = arith.mulf %558, %1615 : vector<16x128xf32>
    %1617 = vector.broadcast %295 : f32 to vector<16x128xf32>
    %1618 = arith.mulf %564, %1617 : vector<16x128xf32>
    %1619 = vector.broadcast %315 : f32 to vector<16x128xf32>
    %1620 = arith.mulf %570, %1619 : vector<16x128xf32>
    %1621 = vector.broadcast %335 : f32 to vector<16x128xf32>
    %1622 = arith.mulf %576, %1621 : vector<16x128xf32>
    %1623 = vector.broadcast %355 : f32 to vector<16x128xf32>
    %1624 = arith.mulf %582, %1623 : vector<16x128xf32>
    %1625 = vector.broadcast %375 : f32 to vector<16x128xf32>
    %1626 = arith.mulf %588, %1625 : vector<16x128xf32>
    %1627 = vector.broadcast %395 : f32 to vector<16x128xf32>
    %1628 = arith.mulf %594, %1627 : vector<16x128xf32>
    %1629 = vector.broadcast %415 : f32 to vector<16x128xf32>
    %1630 = arith.mulf %600, %1629 : vector<16x128xf32>
    %1631 = vector.broadcast %435 : f32 to vector<16x128xf32>
    %1632 = arith.mulf %606, %1631 : vector<16x128xf32>
    %1633 = arith.addf %1594, %1596 : vector<16x128xf32>
    %1634 = arith.addf %1598, %1600 : vector<16x128xf32>
    %1635 = arith.addf %1602, %1604 : vector<16x128xf32>
    %1636 = arith.addf %1606, %1608 : vector<16x128xf32>
    %1637 = arith.addf %1610, %1612 : vector<16x128xf32>
    %1638 = arith.addf %1614, %1616 : vector<16x128xf32>
    %1639 = arith.addf %1618, %1620 : vector<16x128xf32>
    %1640 = arith.addf %1622, %1624 : vector<16x128xf32>
    %1641 = arith.addf %1626, %1628 : vector<16x128xf32>
    %1642 = arith.addf %1630, %1632 : vector<16x128xf32>
    %1643 = arith.addf %1633, %1634 : vector<16x128xf32>
    %1644 = arith.addf %1635, %1636 : vector<16x128xf32>
    %1645 = arith.addf %1637, %1638 : vector<16x128xf32>
    %1646 = arith.addf %1639, %1640 : vector<16x128xf32>
    %1647 = arith.addf %1641, %1642 : vector<16x128xf32>
    %1648 = arith.addf %1643, %1644 : vector<16x128xf32>
    %1649 = arith.addf %1645, %1646 : vector<16x128xf32>
    %1650 = arith.addf %1648, %1649 : vector<16x128xf32>
    %1651 = arith.addf %1650, %1647 : vector<16x128xf32>
    %1652 = vector.broadcast %455 : f32 to vector<16x128xf32>
    %1653 = arith.addf %1651, %1652 : vector<16x128xf32>
    %cst_117 = arith.constant 0.000000e+00 : f32
    %1654 = vector.broadcast %cst_117 : f32 to vector<16x128xf32>
    %1655 = arith.maximumf %1653, %1654 : vector<16x128xf32>
    %1656 = vector.broadcast %475 : f32 to vector<16x128xf32>
    %1657 = arith.mulf %1655, %1656 : vector<16x128xf32>
    %1658 = arith.addf %1394, %1657 : vector<16x128xf32>
    %1659 = vector.broadcast %56 : f32 to vector<16x128xf32>
    %1660 = arith.mulf %492, %1659 : vector<16x128xf32>
    %1661 = vector.broadcast %76 : f32 to vector<16x128xf32>
    %1662 = arith.mulf %498, %1661 : vector<16x128xf32>
    %1663 = vector.broadcast %96 : f32 to vector<16x128xf32>
    %1664 = arith.mulf %504, %1663 : vector<16x128xf32>
    %1665 = vector.broadcast %116 : f32 to vector<16x128xf32>
    %1666 = arith.mulf %510, %1665 : vector<16x128xf32>
    %1667 = vector.broadcast %136 : f32 to vector<16x128xf32>
    %1668 = arith.mulf %516, %1667 : vector<16x128xf32>
    %1669 = vector.broadcast %156 : f32 to vector<16x128xf32>
    %1670 = arith.mulf %522, %1669 : vector<16x128xf32>
    %1671 = vector.broadcast %176 : f32 to vector<16x128xf32>
    %1672 = arith.mulf %528, %1671 : vector<16x128xf32>
    %1673 = vector.broadcast %196 : f32 to vector<16x128xf32>
    %1674 = arith.mulf %534, %1673 : vector<16x128xf32>
    %1675 = vector.broadcast %216 : f32 to vector<16x128xf32>
    %1676 = arith.mulf %540, %1675 : vector<16x128xf32>
    %1677 = vector.broadcast %236 : f32 to vector<16x128xf32>
    %1678 = arith.mulf %546, %1677 : vector<16x128xf32>
    %1679 = vector.broadcast %256 : f32 to vector<16x128xf32>
    %1680 = arith.mulf %552, %1679 : vector<16x128xf32>
    %1681 = vector.broadcast %276 : f32 to vector<16x128xf32>
    %1682 = arith.mulf %558, %1681 : vector<16x128xf32>
    %1683 = vector.broadcast %296 : f32 to vector<16x128xf32>
    %1684 = arith.mulf %564, %1683 : vector<16x128xf32>
    %1685 = vector.broadcast %316 : f32 to vector<16x128xf32>
    %1686 = arith.mulf %570, %1685 : vector<16x128xf32>
    %1687 = vector.broadcast %336 : f32 to vector<16x128xf32>
    %1688 = arith.mulf %576, %1687 : vector<16x128xf32>
    %1689 = vector.broadcast %356 : f32 to vector<16x128xf32>
    %1690 = arith.mulf %582, %1689 : vector<16x128xf32>
    %1691 = vector.broadcast %376 : f32 to vector<16x128xf32>
    %1692 = arith.mulf %588, %1691 : vector<16x128xf32>
    %1693 = vector.broadcast %396 : f32 to vector<16x128xf32>
    %1694 = arith.mulf %594, %1693 : vector<16x128xf32>
    %1695 = vector.broadcast %416 : f32 to vector<16x128xf32>
    %1696 = arith.mulf %600, %1695 : vector<16x128xf32>
    %1697 = vector.broadcast %436 : f32 to vector<16x128xf32>
    %1698 = arith.mulf %606, %1697 : vector<16x128xf32>
    %1699 = arith.addf %1660, %1662 : vector<16x128xf32>
    %1700 = arith.addf %1664, %1666 : vector<16x128xf32>
    %1701 = arith.addf %1668, %1670 : vector<16x128xf32>
    %1702 = arith.addf %1672, %1674 : vector<16x128xf32>
    %1703 = arith.addf %1676, %1678 : vector<16x128xf32>
    %1704 = arith.addf %1680, %1682 : vector<16x128xf32>
    %1705 = arith.addf %1684, %1686 : vector<16x128xf32>
    %1706 = arith.addf %1688, %1690 : vector<16x128xf32>
    %1707 = arith.addf %1692, %1694 : vector<16x128xf32>
    %1708 = arith.addf %1696, %1698 : vector<16x128xf32>
    %1709 = arith.addf %1699, %1700 : vector<16x128xf32>
    %1710 = arith.addf %1701, %1702 : vector<16x128xf32>
    %1711 = arith.addf %1703, %1704 : vector<16x128xf32>
    %1712 = arith.addf %1705, %1706 : vector<16x128xf32>
    %1713 = arith.addf %1707, %1708 : vector<16x128xf32>
    %1714 = arith.addf %1709, %1710 : vector<16x128xf32>
    %1715 = arith.addf %1711, %1712 : vector<16x128xf32>
    %1716 = arith.addf %1714, %1715 : vector<16x128xf32>
    %1717 = arith.addf %1716, %1713 : vector<16x128xf32>
    %1718 = vector.broadcast %456 : f32 to vector<16x128xf32>
    %1719 = arith.addf %1717, %1718 : vector<16x128xf32>
    %cst_118 = arith.constant 0.000000e+00 : f32
    %1720 = vector.broadcast %cst_118 : f32 to vector<16x128xf32>
    %1721 = arith.maximumf %1719, %1720 : vector<16x128xf32>
    %1722 = vector.broadcast %476 : f32 to vector<16x128xf32>
    %1723 = arith.mulf %1721, %1722 : vector<16x128xf32>
    %1724 = arith.addf %1460, %1723 : vector<16x128xf32>
    %1725 = vector.broadcast %57 : f32 to vector<16x128xf32>
    %1726 = arith.mulf %492, %1725 : vector<16x128xf32>
    %1727 = vector.broadcast %77 : f32 to vector<16x128xf32>
    %1728 = arith.mulf %498, %1727 : vector<16x128xf32>
    %1729 = vector.broadcast %97 : f32 to vector<16x128xf32>
    %1730 = arith.mulf %504, %1729 : vector<16x128xf32>
    %1731 = vector.broadcast %117 : f32 to vector<16x128xf32>
    %1732 = arith.mulf %510, %1731 : vector<16x128xf32>
    %1733 = vector.broadcast %137 : f32 to vector<16x128xf32>
    %1734 = arith.mulf %516, %1733 : vector<16x128xf32>
    %1735 = vector.broadcast %157 : f32 to vector<16x128xf32>
    %1736 = arith.mulf %522, %1735 : vector<16x128xf32>
    %1737 = vector.broadcast %177 : f32 to vector<16x128xf32>
    %1738 = arith.mulf %528, %1737 : vector<16x128xf32>
    %1739 = vector.broadcast %197 : f32 to vector<16x128xf32>
    %1740 = arith.mulf %534, %1739 : vector<16x128xf32>
    %1741 = vector.broadcast %217 : f32 to vector<16x128xf32>
    %1742 = arith.mulf %540, %1741 : vector<16x128xf32>
    %1743 = vector.broadcast %237 : f32 to vector<16x128xf32>
    %1744 = arith.mulf %546, %1743 : vector<16x128xf32>
    %1745 = vector.broadcast %257 : f32 to vector<16x128xf32>
    %1746 = arith.mulf %552, %1745 : vector<16x128xf32>
    %1747 = vector.broadcast %277 : f32 to vector<16x128xf32>
    %1748 = arith.mulf %558, %1747 : vector<16x128xf32>
    %1749 = vector.broadcast %297 : f32 to vector<16x128xf32>
    %1750 = arith.mulf %564, %1749 : vector<16x128xf32>
    %1751 = vector.broadcast %317 : f32 to vector<16x128xf32>
    %1752 = arith.mulf %570, %1751 : vector<16x128xf32>
    %1753 = vector.broadcast %337 : f32 to vector<16x128xf32>
    %1754 = arith.mulf %576, %1753 : vector<16x128xf32>
    %1755 = vector.broadcast %357 : f32 to vector<16x128xf32>
    %1756 = arith.mulf %582, %1755 : vector<16x128xf32>
    %1757 = vector.broadcast %377 : f32 to vector<16x128xf32>
    %1758 = arith.mulf %588, %1757 : vector<16x128xf32>
    %1759 = vector.broadcast %397 : f32 to vector<16x128xf32>
    %1760 = arith.mulf %594, %1759 : vector<16x128xf32>
    %1761 = vector.broadcast %417 : f32 to vector<16x128xf32>
    %1762 = arith.mulf %600, %1761 : vector<16x128xf32>
    %1763 = vector.broadcast %437 : f32 to vector<16x128xf32>
    %1764 = arith.mulf %606, %1763 : vector<16x128xf32>
    %1765 = arith.addf %1726, %1728 : vector<16x128xf32>
    %1766 = arith.addf %1730, %1732 : vector<16x128xf32>
    %1767 = arith.addf %1734, %1736 : vector<16x128xf32>
    %1768 = arith.addf %1738, %1740 : vector<16x128xf32>
    %1769 = arith.addf %1742, %1744 : vector<16x128xf32>
    %1770 = arith.addf %1746, %1748 : vector<16x128xf32>
    %1771 = arith.addf %1750, %1752 : vector<16x128xf32>
    %1772 = arith.addf %1754, %1756 : vector<16x128xf32>
    %1773 = arith.addf %1758, %1760 : vector<16x128xf32>
    %1774 = arith.addf %1762, %1764 : vector<16x128xf32>
    %1775 = arith.addf %1765, %1766 : vector<16x128xf32>
    %1776 = arith.addf %1767, %1768 : vector<16x128xf32>
    %1777 = arith.addf %1769, %1770 : vector<16x128xf32>
    %1778 = arith.addf %1771, %1772 : vector<16x128xf32>
    %1779 = arith.addf %1773, %1774 : vector<16x128xf32>
    %1780 = arith.addf %1775, %1776 : vector<16x128xf32>
    %1781 = arith.addf %1777, %1778 : vector<16x128xf32>
    %1782 = arith.addf %1780, %1781 : vector<16x128xf32>
    %1783 = arith.addf %1782, %1779 : vector<16x128xf32>
    %1784 = vector.broadcast %457 : f32 to vector<16x128xf32>
    %1785 = arith.addf %1783, %1784 : vector<16x128xf32>
    %cst_119 = arith.constant 0.000000e+00 : f32
    %1786 = vector.broadcast %cst_119 : f32 to vector<16x128xf32>
    %1787 = arith.maximumf %1785, %1786 : vector<16x128xf32>
    %1788 = vector.broadcast %477 : f32 to vector<16x128xf32>
    %1789 = arith.mulf %1787, %1788 : vector<16x128xf32>
    %1790 = arith.addf %1526, %1789 : vector<16x128xf32>
    %1791 = vector.broadcast %58 : f32 to vector<16x128xf32>
    %1792 = arith.mulf %492, %1791 : vector<16x128xf32>
    %1793 = vector.broadcast %78 : f32 to vector<16x128xf32>
    %1794 = arith.mulf %498, %1793 : vector<16x128xf32>
    %1795 = vector.broadcast %98 : f32 to vector<16x128xf32>
    %1796 = arith.mulf %504, %1795 : vector<16x128xf32>
    %1797 = vector.broadcast %118 : f32 to vector<16x128xf32>
    %1798 = arith.mulf %510, %1797 : vector<16x128xf32>
    %1799 = vector.broadcast %138 : f32 to vector<16x128xf32>
    %1800 = arith.mulf %516, %1799 : vector<16x128xf32>
    %1801 = vector.broadcast %158 : f32 to vector<16x128xf32>
    %1802 = arith.mulf %522, %1801 : vector<16x128xf32>
    %1803 = vector.broadcast %178 : f32 to vector<16x128xf32>
    %1804 = arith.mulf %528, %1803 : vector<16x128xf32>
    %1805 = vector.broadcast %198 : f32 to vector<16x128xf32>
    %1806 = arith.mulf %534, %1805 : vector<16x128xf32>
    %1807 = vector.broadcast %218 : f32 to vector<16x128xf32>
    %1808 = arith.mulf %540, %1807 : vector<16x128xf32>
    %1809 = vector.broadcast %238 : f32 to vector<16x128xf32>
    %1810 = arith.mulf %546, %1809 : vector<16x128xf32>
    %1811 = vector.broadcast %258 : f32 to vector<16x128xf32>
    %1812 = arith.mulf %552, %1811 : vector<16x128xf32>
    %1813 = vector.broadcast %278 : f32 to vector<16x128xf32>
    %1814 = arith.mulf %558, %1813 : vector<16x128xf32>
    %1815 = vector.broadcast %298 : f32 to vector<16x128xf32>
    %1816 = arith.mulf %564, %1815 : vector<16x128xf32>
    %1817 = vector.broadcast %318 : f32 to vector<16x128xf32>
    %1818 = arith.mulf %570, %1817 : vector<16x128xf32>
    %1819 = vector.broadcast %338 : f32 to vector<16x128xf32>
    %1820 = arith.mulf %576, %1819 : vector<16x128xf32>
    %1821 = vector.broadcast %358 : f32 to vector<16x128xf32>
    %1822 = arith.mulf %582, %1821 : vector<16x128xf32>
    %1823 = vector.broadcast %378 : f32 to vector<16x128xf32>
    %1824 = arith.mulf %588, %1823 : vector<16x128xf32>
    %1825 = vector.broadcast %398 : f32 to vector<16x128xf32>
    %1826 = arith.mulf %594, %1825 : vector<16x128xf32>
    %1827 = vector.broadcast %418 : f32 to vector<16x128xf32>
    %1828 = arith.mulf %600, %1827 : vector<16x128xf32>
    %1829 = vector.broadcast %438 : f32 to vector<16x128xf32>
    %1830 = arith.mulf %606, %1829 : vector<16x128xf32>
    %1831 = arith.addf %1792, %1794 : vector<16x128xf32>
    %1832 = arith.addf %1796, %1798 : vector<16x128xf32>
    %1833 = arith.addf %1800, %1802 : vector<16x128xf32>
    %1834 = arith.addf %1804, %1806 : vector<16x128xf32>
    %1835 = arith.addf %1808, %1810 : vector<16x128xf32>
    %1836 = arith.addf %1812, %1814 : vector<16x128xf32>
    %1837 = arith.addf %1816, %1818 : vector<16x128xf32>
    %1838 = arith.addf %1820, %1822 : vector<16x128xf32>
    %1839 = arith.addf %1824, %1826 : vector<16x128xf32>
    %1840 = arith.addf %1828, %1830 : vector<16x128xf32>
    %1841 = arith.addf %1831, %1832 : vector<16x128xf32>
    %1842 = arith.addf %1833, %1834 : vector<16x128xf32>
    %1843 = arith.addf %1835, %1836 : vector<16x128xf32>
    %1844 = arith.addf %1837, %1838 : vector<16x128xf32>
    %1845 = arith.addf %1839, %1840 : vector<16x128xf32>
    %1846 = arith.addf %1841, %1842 : vector<16x128xf32>
    %1847 = arith.addf %1843, %1844 : vector<16x128xf32>
    %1848 = arith.addf %1846, %1847 : vector<16x128xf32>
    %1849 = arith.addf %1848, %1845 : vector<16x128xf32>
    %1850 = vector.broadcast %458 : f32 to vector<16x128xf32>
    %1851 = arith.addf %1849, %1850 : vector<16x128xf32>
    %cst_120 = arith.constant 0.000000e+00 : f32
    %1852 = vector.broadcast %cst_120 : f32 to vector<16x128xf32>
    %1853 = arith.maximumf %1851, %1852 : vector<16x128xf32>
    %1854 = vector.broadcast %478 : f32 to vector<16x128xf32>
    %1855 = arith.mulf %1853, %1854 : vector<16x128xf32>
    %1856 = arith.addf %1592, %1855 : vector<16x128xf32>
    %1857 = vector.broadcast %59 : f32 to vector<16x128xf32>
    %1858 = arith.mulf %492, %1857 : vector<16x128xf32>
    %1859 = vector.broadcast %79 : f32 to vector<16x128xf32>
    %1860 = arith.mulf %498, %1859 : vector<16x128xf32>
    %1861 = vector.broadcast %99 : f32 to vector<16x128xf32>
    %1862 = arith.mulf %504, %1861 : vector<16x128xf32>
    %1863 = vector.broadcast %119 : f32 to vector<16x128xf32>
    %1864 = arith.mulf %510, %1863 : vector<16x128xf32>
    %1865 = vector.broadcast %139 : f32 to vector<16x128xf32>
    %1866 = arith.mulf %516, %1865 : vector<16x128xf32>
    %1867 = vector.broadcast %159 : f32 to vector<16x128xf32>
    %1868 = arith.mulf %522, %1867 : vector<16x128xf32>
    %1869 = vector.broadcast %179 : f32 to vector<16x128xf32>
    %1870 = arith.mulf %528, %1869 : vector<16x128xf32>
    %1871 = vector.broadcast %199 : f32 to vector<16x128xf32>
    %1872 = arith.mulf %534, %1871 : vector<16x128xf32>
    %1873 = vector.broadcast %219 : f32 to vector<16x128xf32>
    %1874 = arith.mulf %540, %1873 : vector<16x128xf32>
    %1875 = vector.broadcast %239 : f32 to vector<16x128xf32>
    %1876 = arith.mulf %546, %1875 : vector<16x128xf32>
    %1877 = vector.broadcast %259 : f32 to vector<16x128xf32>
    %1878 = arith.mulf %552, %1877 : vector<16x128xf32>
    %1879 = vector.broadcast %279 : f32 to vector<16x128xf32>
    %1880 = arith.mulf %558, %1879 : vector<16x128xf32>
    %1881 = vector.broadcast %299 : f32 to vector<16x128xf32>
    %1882 = arith.mulf %564, %1881 : vector<16x128xf32>
    %1883 = vector.broadcast %319 : f32 to vector<16x128xf32>
    %1884 = arith.mulf %570, %1883 : vector<16x128xf32>
    %1885 = vector.broadcast %339 : f32 to vector<16x128xf32>
    %1886 = arith.mulf %576, %1885 : vector<16x128xf32>
    %1887 = vector.broadcast %359 : f32 to vector<16x128xf32>
    %1888 = arith.mulf %582, %1887 : vector<16x128xf32>
    %1889 = vector.broadcast %379 : f32 to vector<16x128xf32>
    %1890 = arith.mulf %588, %1889 : vector<16x128xf32>
    %1891 = vector.broadcast %399 : f32 to vector<16x128xf32>
    %1892 = arith.mulf %594, %1891 : vector<16x128xf32>
    %1893 = vector.broadcast %419 : f32 to vector<16x128xf32>
    %1894 = arith.mulf %600, %1893 : vector<16x128xf32>
    %1895 = vector.broadcast %439 : f32 to vector<16x128xf32>
    %1896 = arith.mulf %606, %1895 : vector<16x128xf32>
    %1897 = arith.addf %1858, %1860 : vector<16x128xf32>
    %1898 = arith.addf %1862, %1864 : vector<16x128xf32>
    %1899 = arith.addf %1866, %1868 : vector<16x128xf32>
    %1900 = arith.addf %1870, %1872 : vector<16x128xf32>
    %1901 = arith.addf %1874, %1876 : vector<16x128xf32>
    %1902 = arith.addf %1878, %1880 : vector<16x128xf32>
    %1903 = arith.addf %1882, %1884 : vector<16x128xf32>
    %1904 = arith.addf %1886, %1888 : vector<16x128xf32>
    %1905 = arith.addf %1890, %1892 : vector<16x128xf32>
    %1906 = arith.addf %1894, %1896 : vector<16x128xf32>
    %1907 = arith.addf %1897, %1898 : vector<16x128xf32>
    %1908 = arith.addf %1899, %1900 : vector<16x128xf32>
    %1909 = arith.addf %1901, %1902 : vector<16x128xf32>
    %1910 = arith.addf %1903, %1904 : vector<16x128xf32>
    %1911 = arith.addf %1905, %1906 : vector<16x128xf32>
    %1912 = arith.addf %1907, %1908 : vector<16x128xf32>
    %1913 = arith.addf %1909, %1910 : vector<16x128xf32>
    %1914 = arith.addf %1912, %1913 : vector<16x128xf32>
    %1915 = arith.addf %1914, %1911 : vector<16x128xf32>
    %1916 = vector.broadcast %459 : f32 to vector<16x128xf32>
    %1917 = arith.addf %1915, %1916 : vector<16x128xf32>
    %cst_121 = arith.constant 0.000000e+00 : f32
    %1918 = vector.broadcast %cst_121 : f32 to vector<16x128xf32>
    %1919 = arith.maximumf %1917, %1918 : vector<16x128xf32>
    %1920 = vector.broadcast %479 : f32 to vector<16x128xf32>
    %1921 = arith.mulf %1919, %1920 : vector<16x128xf32>
    %1922 = arith.addf %1658, %1921 : vector<16x128xf32>
    %1923 = arith.addf %1724, %1790 : vector<16x128xf32>
    %1924 = arith.addf %1856, %1922 : vector<16x128xf32>
    %1925 = arith.addf %1923, %1924 : vector<16x128xf32>
    %1926 = vector.broadcast %480 : f32 to vector<16x128xf32>
    %1927 = arith.addf %1925, %1926 : vector<16x128xf32>
    %1928 = arith.index_cast %484 : i32 to index
    %c0_122 = arith.constant 0 : index
    %1929 = vector.load %arg8[%1928, %c0_122] : memref<16x128xf32, #tpu.memory_space<vmem>>, vector<16x128xf32>
    tpu.vector_store %arg8[%1928, %c0_122], %1927 {strides = array<i32>} : memref<16x128xf32, #tpu.memory_space<vmem>>, vector<16x128xf32>,
    %c1_i32_123 = arith.constant 1 : i32
    return
  }
  func.func @transform_0(%arg0: i32) -> (i32, i32) {
    %c0_i32 = arith.constant 0 : i32
    %c0_i32_0 = arith.constant 0 : i32
    return %arg0, %c0_i32 : i32, i32
  }
  func.func @transform_1(%arg0: i32) -> i32 {
    %c0_i32 = arith.constant 0 : i32
    %c0_i32_0 = arith.constant 0 : i32
    return %c0_i32 : i32
  }
  func.func @transform_2(%arg0: i32) -> i32 {
    %c0_i32 = arith.constant 0 : i32
    %c0_i32_0 = arith.constant 0 : i32
    return %c0_i32 : i32
  }
  func.func @transform_3(%arg0: i32) -> i32 {
    %c0_i32 = arith.constant 0 : i32
    %c0_i32_0 = arith.constant 0 : i32
    return %c0_i32 : i32
  }
  func.func @transform_4(%arg0: i32) -> i32 {
    %c0_i32 = arith.constant 0 : i32
    %c0_i32_0 = arith.constant 0 : i32
    return %c0_i32 : i32
  }
  func.func @transform_5(%arg0: i32) -> i32 {
    %c0_i32 = arith.constant 0 : i32
    %c0_i32_0 = arith.constant 0 : i32
    return %c0_i32 : i32
  }
  func.func @transform_6(%arg0: i32) -> i32 {
    %c0_i32 = arith.constant 0 : i32
    %c0_i32_0 = arith.constant 0 : i32
    return %c0_i32 : i32
  }
  func.func @transform_7(%arg0: i32) -> (i32, i32) {
    %c0_i32 = arith.constant 0 : i32
    %c0_i32_0 = arith.constant 0 : i32
    return %arg0, %c0_i32 : i32, i32
  }
}

</mosaic_0001>

<bundles_post_ra>
// kernel: regression_model_forward.1
= control target key start
LH: loop header
LB: loop body
LE: loop exit
PB: predicated region body
PF: predicated region fallthrough
CT: control target
= control target key end

     0   :  { %13 = vsyncpa [#allocation4], 0  ;;  %s6552_s0 = inlined_call_operand.vmem [shape: f32[16,128], index: 0, kind: input, shape index: {}]   ;;  %s6553_s1 = inlined_call_operand.vmem [shape: f32[20], index: 1, kind: input, shape index: {}]   ;;  %s6554_s2 = inlined_call_operand.vmem [shape: f32[20], index: 2, kind: input, shape index: {}]   ;;  %s6555_s3 = inlined_call_operand.vmem [shape: f32[400], index: 3, kind: input, shape index: {}]   ;;  %s6556_s4 = inlined_call_operand.vmem [shape: f32[20], index: 4, kind: input, shape index: {}]   ;;  %s6557_s5 = inlined_call_operand.vmem [shape: f32[20], index: 5, kind: input, shape index: {}]   ;;  %s6558_s6 = inlined_call_operand.<no memory space> [shape: f32[1], index: 6, kind: input, shape index: {}]   ;;  %s6559_s7 = inlined_call_operand.vmem [shape: f32[16,128], index: 7, kind: output, shape index: {}]  }
   0x1   :  { %14 = vsyncpa [#allocation6], 0  ;;  %s32_s26 = sshll.u32 %s6554_s2, 4  ;;  %s33_s26 = int_to_ptr.vmem [resolvable:$true] %s32_s26 }
   0x2   :  { %15 = vsyncpa [#allocation9], 0  ;;  %s50_s29 = sshll.u32 %s6556_s4, 4  ;;  %s3445_s30 = smov [#allocation5]   ;;  %s51_s29 = int_to_ptr.vmem [resolvable:$true] %s50_s29 }
   0x3   :  { %35 = dma.vmem_to_smem %s33_s26, 16, %s3445_s30, [#allocation6]  }
   0x4   :  { %s3446_s8 = smov [#allocation8]   ;;  %s23_s11 = sshll.u32 %s6553_s1, 4  ;;  %s24_s11 = int_to_ptr.vmem [resolvable:$true] %s23_s11 }
   0x5   :  { %53 = dma.vmem_to_smem %s51_s29, 16, %s3446_s8, [#allocation9]  }
   0x6   :  { %s41_s2 = sshll.u32 %s6555_s3, 4  ;;  %s3447_s14 = smov [#allocation3]   ;;  %s42_s2 = int_to_ptr.vmem [resolvable:$true] %s41_s2 }
   0x7   :  { %26 = dma.vmem_to_smem %s24_s11, 16, %s3447_s14, [#allocation4]  }
   0x8   :  { %s3448_s15 = smov [#allocation7]   ;;  %s59_s17 = sshll.u32 %s6557_s5, 4  ;;  %s60_s17 = int_to_ptr.vmem [resolvable:$true] %s59_s17 }
   0x9   :  { %44 = dma.vmem_to_smem %s42_s2, 64, %s3448_s15, [#allocation6]  }
   0xa   :  { %s3449_s18 = smov [#allocation10]  }
   0xb   :  { %62 = dma.vmem_to_smem %s60_s17, 16, %s3449_s18, [#allocation9]  }
   0xc   :  { %3439 = dma.done.wait [#allocation4], 16  }
   0xd   :  { %3440 = vsyncadd [#allocation4], 4294967280 }
   0xe   :  { %3441 = dma.done.wait [#allocation6], 80  }
   0xf   :  { %3442 = vsyncadd [#allocation6], 4294967216 }
  0x10   :  { %3443 = dma.done.wait [#allocation9], 32  }
  0x11   :  { %3444 = vsyncadd [#allocation9], 4294967264 }
  0x12   :  { %85 = sfence }
  0x13   :  { %s86_s1 = sld [smem:[#allocation3]]  ;;  %v3526_v0 = vld [vmem:[%s6552_s0] sm:$0xff]  ;;  %v3531_v1 = vld [vmem:[%s6552_s0 + $0x8] sm:$0xff] }
  0x14   :  { %s2899_s3 = sld [smem:[#allocation3 + $0x1]] }
  0x15   :  { %s2900_s19 = sld [smem:[#allocation3 + $0x2]] }
  0x16   :  { %s3505_s20 = sld [smem:[#allocation3 + $0x3]] }
  0x17   :  { %s3507_s21 = sld [smem:[#allocation3 + $0x4]] }
  0x18   :  { %s3509_s22 = sld [smem:[#allocation3 + $0x5]] }
  0x19   :  { %s106_s5 = sld [smem:[#allocation5]]  ;;  %v569_v2 = vstv %s86_s1 }
  0x1a   :  { %s3511_s23 = sld [smem:[#allocation5 + $0x1]]  ;;  %v577_v3 = vstv %s2899_s3  ;;  %v570_v4 = vmul.f32 %v569_v2, %v3526_v0  ;;  %v571_v5 = vmul.f32 %v569_v2, %v3531_v1 }
  0x1b   :  { %s3513_s24 = sld [smem:[#allocation3 + $0x6]]  ;;  %v578_v6 = vmul.f32 %v577_v3, %v3526_v0  ;;  %v585_v7 = vstv %s2900_s19  ;;  %v579_v10 = vmul.f32 %v577_v3, %v3531_v1 }
  0x1c   :  { %s3515_s25 = sld [smem:[#allocation5 + $0x2]]  ;;  %v586_v11 = vmul.f32 %v585_v7, %v3526_v0  ;;  %v587_v12 = vmul.f32 %v585_v7, %v3531_v1  ;;  %v593_v13 = vstv %s3505_s20 }
  0x1d   :  { %s3517_s26 = sld [smem:[#allocation3 + $0x7]]  ;;  %v594_v18 = vmul.f32 %v593_v13, %v3526_v0  ;;  %v595_v19 = vmul.f32 %v593_v13, %v3531_v1  ;;  %v601_v21 = vstv %s3507_s21 }
  0x1e   :  { %s3519_s27 = sld [smem:[#allocation5 + $0x3]]  ;;  %v609_v22 = vstv %s3509_s22  ;;  %v602_v26 = vmul.f32 %v601_v21, %v3526_v0  ;;  %v603_v27 = vmul.f32 %v601_v21, %v3531_v1 }
  0x1f   :  { %s3521_s28 = sld [smem:[#allocation3 + $0x8]]  ;;  %v572_v8 = vstv %s106_s5  ;;  %v610_v29 = vmul.f32 %v609_v22, %v3526_v0  ;;  %v611_v31 = vmul.f32 %v609_v22, %v3531_v1 }
  0x20   :  { %s3533_s10 = sld [smem:[#allocation5 + $0x4]]  ;;  %v580_v9 = vstv %s3511_s23  ;;  %v573_v15 = vadd.f32 %v572_v8, %v570_v4  ;;  %v574_v16 = vadd.f32 %v572_v8, %v571_v5 }
  0x21   :  { %s3535_s11 = sld [smem:[#allocation5 + $0x5]]  ;;  %v581_v17 = vadd.f32 %v580_v9, %v578_v6  ;;  %v582_v23 = vadd.f32 %v580_v9, %v579_v10  ;;  %v617_v33 = vstv %s3513_s24 }
  0x22   :  { %s3540_s12 = sld [smem:[#allocation3 + $0x9]]  ;;  %v588_v14 = vstv %s3515_s25  ;;  %v3576_v34 = vmax.f32 %v573_v15, 0.0  ;;  %v3578_v35 = vmax.f32 %v574_v16, 0.0  ;;  %v618_v40 = vmul.f32 %v617_v33, %v3526_v0 }
  0x23   :  { %s3543_s0 = sld [smem:[#allocation5 + $0x6]]  ;;  %v589_v24 = vadd.f32 %v588_v14, %v586_v11  ;;  %v590_v25 = vadd.f32 %v588_v14, %v587_v12  ;;  %v3580_v36 = vmax.f32 %v581_v17, 0.0  ;;  %v3588_v42 = vmax.f32 %v582_v23, 0.0 }
  0x24   :  { %s3549_s13 = sld [smem:[#allocation3 + $0xa]]  ;;  %v596_v20 = vstv %s3519_s27  ;;  %6680 = vst [vmem:[#allocation14_spill] sm:$0xff] %v3578_v35  ;;  %v619_v44 = vmul.f32 %v617_v33, %v3531_v1  ;;  %v625_v45 = vstv %s3517_s26 }
  0x25   :  { %s3552_s2 = sld [smem:[#allocation3 + $0xb]]  ;;  %v597_v30 = vadd.f32 %v596_v20, %v594_v18  ;;  %6681 = vst [vmem:[#allocation15_spill] sm:$0xff] %v3580_v36  ;;  %v598_v37 = vadd.f32 %v596_v20, %v595_v19  ;;  %v3594_v46 = vmax.f32 %v589_v24, 0.0  ;;  %v3596_v47 = vmax.f32 %v590_v25, 0.0 }
  0x26   :  { %s3555_s14 = sld [smem:[#allocation5 + $0x7]]  ;;  %v604_v28 = vstv %s3533_s10  ;;  %6682 = vst [vmem:[#allocation16_spill] sm:$0xff] %v3588_v42  ;;  %v633_v53 = vstv %s3521_s28  ;;  %v626_v56 = vmul.f32 %v625_v45, %v3526_v0  ;;  %v627_v60 = vmul.f32 %v625_v45, %v3531_v1 }
  0x27   :  { %s3561_s15 = sld [smem:[#allocation3 + $0xc]]  ;;  %v612_v32 = vstv %s3535_s11  ;;  %v605_v38 = vadd.f32 %v604_v28, %v602_v26  ;;  %v606_v39 = vadd.f32 %v604_v28, %v603_v27  ;;  %6683 = vst [vmem:[#allocation17_spill] sm:$0xff] %v3594_v46  ;;  %v3598_v48 = vmax.f32 %v597_v30, 0.0 }
  0x28   :  { %s3563_s4 = sld [smem:[#allocation3 + $0xd]]  ;;  %v613_v43 = vadd.f32 %v612_v32, %v610_v29  ;;  %6684 = vst [vmem:[#allocation18_spill] sm:$0xff] %v3596_v47  ;;  %v614_v49 = vadd.f32 %v612_v32, %v611_v31  ;;  %v3602_v50 = vmax.f32 %v598_v37, 0.0  ;;  %v641_v57 = vstv %s3540_s12 }
  0x29   :  { %s3569_s16 = sld [smem:[#allocation5 + $0x8]]  ;;  %v620_v41 = vstv %s3543_s0  ;;  %6685 = vst [vmem:[#allocation19_spill] sm:$0xff] %v3598_v48  ;;  %v3608_v54 = vmax.f32 %v605_v38, 0.0  ;;  %v3610_v55 = vmax.f32 %v606_v39, 0.0  ;;  %v634_v61 = vmul.f32 %v633_v53, %v3526_v0 }
  0x2a   :  { %s3574_s17 = sld [smem:[#allocation5 + $0x9]]  ;;  %6686 = vst [vmem:[#allocation20_spill] sm:$0xff] %v3602_v50  ;;  %v621_v51 = vadd.f32 %v620_v41, %v618_v40  ;;  %v3616_v58 = vmax.f32 %v613_v43, 0.0  ;;  %v622_v59 = vadd.f32 %v620_v41, %v619_v44  ;;  %v3622_v62 = vmax.f32 %v614_v49, 0.0 }
  0x2b   :  { %s3582_s18 = sld [smem:[#allocation3 + $0xe]]  ;;  %6687 = vst [vmem:[#allocation21_spill] sm:$0xff] %v3608_v54  ;;  %v635_v63 = vmul.f32 %v633_v53, %v3531_v1  ;;  %v649_v3 = vstv %s3549_s13  ;;  %v642_v5 = vmul.f32 %v641_v57, %v3526_v0  ;;  %v643_v6 = vmul.f32 %v641_v57, %v3531_v1 }
  0x2c   :  { %s3586_s1 = sld [smem:[#allocation5 + $0xa]]  ;;  %v628_v52 = vstv %s3555_s14  ;;  %6688 = vst [vmem:[#allocation22_spill] sm:$0xff] %v3610_v55  ;;  %v3629_v4 = vmax.f32 %v621_v51, 0.0  ;;  %v650_v9 = vmul.f32 %v649_v3, %v3526_v0  ;;  %v651_v10 = vmul.f32 %v649_v3, %v3531_v1 }
  0x2d   :  { %s3592_s3 = sld [smem:[#allocation5 + $0xb]]  ;;  %6689 = vst [vmem:[#allocation23_spill] sm:$0xff] %v3616_v58  ;;  %v629_v8 = vadd.f32 %v628_v52, %v626_v56  ;;  %v657_v11 = vstv %s3552_s2  ;;  %v3641_v12 = vmax.f32 %v622_v59, 0.0  ;;  %v630_v13 = vadd.f32 %v628_v52, %v627_v60 }
  0x2e   :  { %s3600_s19 = sld [smem:[#allocation3 + $0xf]]  ;;  %6690 = vst [vmem:[#allocation24_spill] sm:$0xff] %v3622_v62  ;;  %v658_v17 = vmul.f32 %v657_v11, %v3526_v0  ;;  %v659_v18 = vmul.f32 %v657_v11, %v3531_v1  ;;  %v665_v22 = vstv %s3561_s15  ;;  %v673_v23 = vstv %s3563_s4 }
  0x2f   :  { %s3606_s20 = sld [smem:[#allocation5 + $0xc]]  ;;  %v636_v2 = vstv %s3569_s16  ;;  %6691 = vst [vmem:[#allocation25_spill] sm:$0xff] %v3629_v4  ;;  %v3655_v24 = vmax.f32 %v629_v8, 0.0  ;;  %v666_v30 = vmul.f32 %v665_v22, %v3526_v0  ;;  %v667_v31 = vmul.f32 %v665_v22, %v3531_v1 }
  0x30   :  { %s3614_s21 = sld [smem:[#allocation3 + $0x10]]  ;;  %v644_v7 = vstv %s3574_s17  ;;  %6692 = vst [vmem:[#allocation26_spill] sm:$0xff] %v3641_v12  ;;  %v637_v14 = vadd.f32 %v636_v2, %v634_v61  ;;  %v638_v16 = vadd.f32 %v636_v2, %v635_v63  ;;  %v3664_v32 = vmax.f32 %v630_v13, 0.0 }
  0x31   :  { %s3620_s22 = sld [smem:[#allocation3 + $0x11]]  ;;  %v645_v20 = vadd.f32 %v644_v7, %v642_v5  ;;  %v646_v21 = vadd.f32 %v644_v7, %v643_v6  ;;  %6693 = vst [vmem:[#allocation27_spill] sm:$0xff] %v3655_v24  ;;  %v674_v38 = vmul.f32 %v673_v23, %v3526_v0  ;;  %v681_v43 = vstv %s3582_s18 }
  0x32   :  { %s3627_s5 = sld [smem:[#allocation5 + $0xd]]  ;;  %v652_v15 = vstv %s3586_s1  ;;  %6694 = vst [vmem:[#allocation28_spill] sm:$0xff] %v3664_v32  ;;  %v3666_v33 = vmax.f32 %v637_v14, 0.0  ;;  %v3668_v37 = vmax.f32 %v638_v16, 0.0  ;;  %v675_v49 = vmul.f32 %v673_v23, %v3531_v1 }
  0x33   :  { %s3634_s23 = sld [smem:[#allocation3 + $0x12]]  ;;  %v660_v19 = vstv %s3592_s3  ;;  %v653_v25 = vadd.f32 %v652_v15, %v650_v9  ;;  %v654_v26 = vadd.f32 %v652_v15, %v651_v10  ;;  %v3673_v39 = vmax.f32 %v645_v20, 0.0 }
  0x34   :  { %s3639_s24 = sld [smem:[#allocation3 + $0x13]]  ;;  %v661_v28 = vadd.f32 %v660_v19, %v658_v17  ;;  %v662_v29 = vadd.f32 %v660_v19, %v659_v18  ;;  %6695 = vst [vmem:[#allocation29_spill] sm:$0xff] %v3666_v33  ;;  %v3675_v40 = vmax.f32 %v646_v21, 0.0  ;;  %v689_v51 = vstv %s3600_s19 }
  0x35   :  { %s3644_s25 = sld [smem:[#allocation5 + $0xe]]  ;;  %v668_v27 = vstv %s3606_s20  ;;  %6696 = vst [vmem:[#allocation30_spill] sm:$0xff] %v3668_v37  ;;  %v3685_v52 = vmax.f32 %v653_v25, 0.0  ;;  %v3687_v53 = vmax.f32 %v654_v26, 0.0  ;;  %v682_v60 = vmul.f32 %v681_v43, %v3526_v0 }
  0x36   :  { %s3649_s26 = sld [smem:[#allocation5 + $0xf]]  ;;  %6697 = vst [vmem:[#allocation31_spill] sm:$0xff] %v3673_v39  ;;  %v669_v44 = vadd.f32 %v668_v27, %v666_v30  ;;  %v670_v45 = vadd.f32 %v668_v27, %v667_v31  ;;  %v3689_v56 = vmax.f32 %v661_v28, 0.0  ;;  %v3691_v57 = vmax.f32 %v662_v29, 0.0 }
  0x37   :  { %s3653_s27 = sld [smem:[#allocation5 + $0x10]]  ;;  %6698 = vst [vmem:[#allocation32_spill] sm:$0xff] %v3675_v40  ;;  %v683_v61 = vmul.f32 %v681_v43, %v3531_v1  ;;  %v690_v2 = vmul.f32 %v689_v51, %v3526_v0  ;;  %v691_v3 = vmul.f32 %v689_v51, %v3531_v1  ;;  %v697_v5 = vstv %s3614_s21 }
  0x38   :  { %s3658_s28 = sld [smem:[#allocation5 + $0x11]]  ;;  %v676_v41 = vstv %s3627_s5  ;;  %6699 = vst [vmem:[#allocation33_spill] sm:$0xff] %v3685_v52  ;;  %v705_v6 = vstv %s3620_s22  ;;  %v3706_v7 = vmax.f32 %v669_v44, 0.0  ;;  %v3708_v8 = vmax.f32 %v670_v45, 0.0 }
  0x39   :  { %s3662_s29 = sld [smem:[#allocation5 + $0x12]]  ;;  %6700 = vst [vmem:[#allocation34_spill] sm:$0xff] %v3687_v53  ;;  %v677_v59 = vadd.f32 %v676_v41, %v674_v38  ;;  %v678_v9 = vadd.f32 %v676_v41, %v675_v49  ;;  %v698_v11 = vmul.f32 %v697_v5, %v3526_v0  ;;  %v699_v13 = vmul.f32 %v697_v5, %v3531_v1 }
  0x3a   :  { %s3671_s30 = sld [smem:[#allocation5 + $0x13]]  ;;  %6701 = vst [vmem:[#allocation35_spill] sm:$0xff] %v3689_v56  ;;  %v706_v15 = vmul.f32 %v705_v6, %v3526_v0  ;;  %v707_v17 = vmul.f32 %v705_v6, %v3531_v1  ;;  %v713_v19 = vstv %s3634_s23  ;;  %v721_v28 = vstv %s3639_s24 }
  0x3b   :  { %s3679_s8 = sld [smem:[#allocation7]]  ;;  %6702 = vst [vmem:[#allocation36_spill] sm:$0xff] %v3691_v57  ;;  %v684_v63 = vstv %s3644_s25  ;;  %v714_v26 = vmul.f32 %v713_v19, %v3526_v0  ;;  %v715_v27 = vmul.f32 %v713_v19, %v3531_v1  ;;  %v3732_v29 = vmax.f32 %v677_v59, 0.0 }
  0x3c   :  { %s3683_s9 = sld [smem:[#allocation7 + $0x14]]  ;;  %6703 = vst [vmem:[#allocation37_spill] sm:$0xff] %v3706_v7  ;;  %v692_v10 = vstv %s3649_s26  ;;  %v685_v16 = vadd.f32 %v684_v63, %v682_v60  ;;  %v686_v20 = vadd.f32 %v684_v63, %v683_v61  ;;  %v3734_v30 = vmax.f32 %v678_v9, 0.0 }
  0x3d   :  { %s3693_s10 = sld [smem:[#allocation7 + $0x28]]  ;;  %6704 = vst [vmem:[#allocation38_spill] sm:$0xff] %v3708_v8  ;;  %v700_v14 = vstv %s3653_s27  ;;  %v693_v21 = vadd.f32 %v692_v10, %v690_v2  ;;  %v694_v22 = vadd.f32 %v692_v10, %v691_v3  ;;  %v722_v43 = vmul.f32 %v721_v28, %v3526_v0 }
  0x3e   :  { %s3698_s11 = sld [smem:[#allocation7 + $0x3c]]  ;;  %v708_v18 = vstv %s3658_s28  ;;  %v701_v25 = vadd.f32 %v700_v14, %v698_v11  ;;  %6705 = vst [vmem:[#allocation39_spill] sm:$0xff] %v3732_v29  ;;  %v702_v31 = vadd.f32 %v700_v14, %v699_v13  ;;  %v723_v44 = vmul.f32 %v721_v28, %v3531_v1 }
  0x3f   :  { %s3704_s12 = sld [smem:[#allocation7 + $0x50]]  ;;  %v716_v23 = vstv %s3662_s29  ;;  %6706 = vst [vmem:[#allocation40_spill] sm:$0xff] %v3734_v30  ;;  %v709_v38 = vadd.f32 %v708_v18, %v706_v15  ;;  %v710_v41 = vadd.f32 %v708_v18, %v707_v17  ;;  %v3743_v49 = vmax.f32 %v685_v16, 0.0 }
  0x40   :  { %s3711_s0 = sld [smem:[#allocation7 + $0x64]]  ;;  %v724_v45 = vstv %s3671_s30  ;;  %v3745_v51 = vmax.f32 %v686_v20, 0.0  ;;  %v717_v59 = vadd.f32 %v716_v23, %v714_v26  ;;  %v718_v60 = vadd.f32 %v716_v23, %v715_v27 }
  0x41   :  { %s3717_s13 = sld [smem:[#allocation7 + $0x78]]  ;;  %6707 = vst [vmem:[#allocation41_spill] sm:$0xff] %v3743_v49  ;;  %v3749_v61 = vmax.f32 %v693_v21, 0.0  ;;  %v3751_v63 = vmax.f32 %v694_v22, 0.0  ;;  %v3753_v0 = vmax.f32 %v701_v25, 0.0  ;;  %v729_v1 = vstv %s3679_s8 }
  0x42   :  { %s3722_s2 = sld [smem:[#allocation7 + $0x8c]]  ;;  %6708 = vst [vmem:[#allocation42_spill] sm:$0xff] %v3745_v51  ;;  %v3758_v2 = vmax.f32 %v702_v31, 0.0  ;;  %v725_v3 = vadd.f32 %v724_v45, %v722_v43  ;;  %v726_v5 = vadd.f32 %v724_v45, %v723_v44  ;;  %v732_v6 = vstv %s3683_s9 }
  0x43   :  { %s3725_s14 = sld [smem:[#allocation7 + $0xa0]]  ;;  %6709 = vst [vmem:[#allocation43_spill] sm:$0xff] %v3749_v61  ;;  %v3763_v9 = vmax.f32 %v709_v38, 0.0  ;;  %v3765_v10 = vmax.f32 %v710_v41, 0.0  ;;  %v735_v11 = vstv %s3693_s10  ;;  %v3771_v14 = vmax.f32 %v717_v59, 0.0 }
  0x44   :  { %s3730_s15 = sld [smem:[#allocation7 + $0xb4]]  ;;  %6710 = vst [vmem:[#allocation44_spill] sm:$0xff] %v3751_v63  ;;  %v738_v13 = vstv %s3698_s11  ;;  %v3773_v15 = vmax.f32 %v718_v60, 0.0  ;;  %v730_v16 = vmul.f32 %v729_v1, %v3576_v34  ;;  %v731_v17 = vmul.f32 %v729_v1, %v3578_v35 }
  0x45   :  { %s3736_s4 = sld [smem:[#allocation7 + $0xc8]]  ;;  %6711 = vst [vmem:[#allocation45_spill] sm:$0xff] %v3753_v0  ;;  %v733_v18 = vmul.f32 %v732_v6, %v3580_v36  ;;  %v734_v19 = vmul.f32 %v732_v6, %v3588_v42  ;;  %v741_v20 = vstv %s3704_s12  ;;  %v3785_v22 = vmax.f32 %v725_v3, 0.0 }
  0x46   :  { %s3741_s16 = sld [smem:[#allocation7 + $0xdc]]  ;;  %6712 = vst [vmem:[#allocation46_spill] sm:$0xff] %v3758_v2  ;;  %v744_v21 = vstv %s3711_s0  ;;  %v3787_v23 = vmax.f32 %v726_v5, 0.0  ;;  %v736_v25 = vmul.f32 %v735_v11, %v3594_v46  ;;  %v737_v27 = vmul.f32 %v735_v11, %v3596_v47 }
  0x47   :  { %s3747_s17 = sld [smem:[#allocation7 + $0xf0]]  ;;  %6713 = vst [vmem:[#allocation47_spill] sm:$0xff] %v3763_v9  ;;  %v747_v26 = vstv %s3717_s13  ;;  %v739_v28 = vmul.f32 %v738_v13, %v3598_v48  ;;  %v740_v31 = vmul.f32 %v738_v13, %v3602_v50  ;;  %v742_v41 = vmul.f32 %v741_v20, %v3608_v54 }
  0x48   :  { %s3756_s18 = sld [smem:[#allocation7 + $0x104]]  ;;  %6714 = vst [vmem:[#allocation48_spill] sm:$0xff] %v3765_v10  ;;  %v750_v38 = vstv %s3722_s2  ;;  %v743_v43 = vmul.f32 %v741_v20, %v3610_v55  ;;  %v745_v44 = vmul.f32 %v744_v21, %v3616_v58  ;;  %v746_v59 = vmul.f32 %v744_v21, %v3622_v62 }
  0x49   :  { %s3761_s1 = sld [smem:[#allocation7 + $0x118]]  ;;  %6715 = vst [vmem:[#allocation49_spill] sm:$0xff] %v3771_v14  ;;  %v753_v45 = vstv %s3725_s14  ;;  %v748_v60 = vmul.f32 %v747_v26, %v3629_v4  ;;  %v749_v5 = vmul.f32 %v747_v26, %v3641_v12  ;;  %v751_v6 = vmul.f32 %v750_v38, %v3655_v24 }
  0x4a   :  { %s3769_s3 = sld [smem:[#allocation7 + $0x12c]]  ;;  %6716 = vst [vmem:[#allocation50_spill] sm:$0xff] %v3773_v15  ;;  %v756_v1 = vstv %s3730_s15  ;;  %v752_v11 = vmul.f32 %v750_v38, %v3664_v32  ;;  %v754_v20 = vmul.f32 %v753_v45, %v3666_v33  ;;  %v755_v58 = vmul.f32 %v753_v45, %v3668_v37 }
  0x4b   :  { %s3777_s19 = sld [smem:[#allocation7 + $0x140]]  ;;  %6717 = vst [vmem:[#allocation51_spill] sm:$0xff] %v3785_v22  ;;  %v759_v3 = vstv %s3736_s4  ;;  %v757_v21 = vmul.f32 %v756_v1, %v3673_v39  ;;  %v758_v4 = vmul.f32 %v756_v1, %v3675_v40 }
  0x4c   :  { %s3783_s20 = sld [smem:[#allocation7 + $0x154]]  ;;  %v762_v13 = vstv %s3741_s16  ;;  %v760_v62 = vmul.f32 %v759_v3, %v3685_v52  ;;  %v761_v38 = vmul.f32 %v759_v3, %v3687_v53  ;;  %v796_v24 = vadd.f32 %v752_v11, %v749_v5 }
  0x4d   :  { %s3791_s21 = sld [smem:[#allocation7 + $0x168]]  ;;  %v765_v55 = vstv %s3747_s17  ;;  %v763_v32 = vmul.f32 %v762_v13, %v3689_v56  ;;  %v764_v45 = vmul.f32 %v762_v13, %v3691_v57  ;;  %v797_v12 = vadd.f32 %v757_v21, %v754_v20 }
  0x4e   :  { %s3797_s22 = sld [smem:[#allocation7 + $0x17c]]  ;;  %v768_v54 = vstv %s3756_s18  ;;  %v766_v1 = vmul.f32 %v765_v55, %v3706_v7  ;;  %v767_v40 = vmul.f32 %v765_v55, %v3708_v8  ;;  %v792_v8 = vadd.f32 %v740_v31, %v737_v27 }
  0x4f   :  { %v771_v26 = vstv %s3761_s1  ;;  %s3819_s5 = sld [smem:[#allocation7 + $0x1]]  ;;  %v769_v52 = vmul.f32 %v768_v54, %v3732_v29  ;;  %v770_v39 = vmul.f32 %v768_v54, %v3734_v30  ;;  %v789_v29 = vadd.f32 %v733_v18, %v730_v16 }
  0x50   :  { %v774_v37 = vstv %s3769_s3  ;;  %s3825_s23 = sld [smem:[#allocation7 + $0x15]]  ;;  %v772_v3 = vmul.f32 %v771_v26, %v3743_v49  ;;  %v773_v56 = vmul.f32 %v771_v26, %v3745_v51  ;;  %v790_v54 = vadd.f32 %v734_v19, %v731_v17 }
  0x51   :  { %s3831_s24 = sld [smem:[#allocation7 + $0x29]]  ;;  %v777_v53 = vstv %s3777_s19  ;;  %v775_v57 = vmul.f32 %v774_v37, %v3749_v61  ;;  %v776_v7 = vmul.f32 %v774_v37, %v3751_v63  ;;  %v791_v30 = vadd.f32 %v739_v28, %v736_v25 }
  0x52   :  { %v780_v13 = vstv %s3783_s20  ;;  %s3837_s25 = sld [smem:[#allocation7 + $0x3d]]  ;;  %v793_v49 = vadd.f32 %v745_v44, %v742_v41  ;;  %v794_v26 = vadd.f32 %v746_v59, %v743_v43  ;;  %v795_v51 = vadd.f32 %v751_v6, %v748_v60 }
  0x53   :  { %v783_v33 = vstv %s3791_s21  ;;  %s3843_s26 = sld [smem:[#allocation7 + $0x51]]  ;;  %v798_v61 = vadd.f32 %v758_v4, %v755_v58  ;;  %v799_v50 = vadd.f32 %v763_v32, %v760_v62  ;;  %v801_v37 = vadd.f32 %v769_v52, %v766_v1  ;;  %v6718_v1 = vld [vmem:[#allocation19_spill] sm:$0xff] }
  0x54   :  { %v786_v55 = vstv %s3797_s22  ;;  %s3845_s27 = sld [smem:[#allocation7 + $0x65]]  ;;  %v800_v63 = vadd.f32 %v764_v45, %v761_v38  ;;  %v802_v48 = vadd.f32 %v770_v39, %v767_v40  ;;  %v803_v16 = vadd.f32 %v775_v57, %v772_v3 }
  0x55   :  { %s3847_s28 = sld [smem:[#allocation7 + $0x79]]  ;;  %v804_v17 = vadd.f32 %v776_v7, %v773_v56  ;;  %v778_v18 = vmul.f32 %v777_v53, %v3753_v0  ;;  %v781_v19 = vmul.f32 %v780_v13, %v3763_v9  ;;  %v784_v25 = vmul.f32 %v783_v33, %v3771_v14 }
  0x56   :  { %s3849_s29 = sld [smem:[#allocation7 + $0x8d]]  ;;  %v787_v27 = vmul.f32 %v786_v55, %v3785_v22  ;;  %v779_v58 = vmul.f32 %v777_v53, %v3758_v2  ;;  %v782_v62 = vmul.f32 %v780_v13, %v3765_v10  ;;  %v785_v4 = vmul.f32 %v783_v33, %v3773_v15  ;;  %v6719_v13 = vld [vmem:[#allocation20_spill] sm:$0xff] }
  0x57   :  { %s3851_s30 = sld [smem:[#allocation7 + $0xa1]]  ;;  %v788_v32 = vmul.f32 %v786_v55, %v3787_v23  ;;  %v809_v39 = vadd.f32 %v791_v30, %v789_v29  ;;  %v811_v40 = vadd.f32 %v795_v51, %v793_v49  ;;  %v813_v52 = vadd.f32 %v799_v50, %v797_v12 }
  0x58   :  { %s3857_s8 = sld [smem:[#allocation7 + $0xb5]]  ;;  %v815_v56 = vadd.f32 %v803_v16, %v801_v37  ;;  %v810_v57 = vadd.f32 %v792_v8, %v790_v54  ;;  %v812_v7 = vadd.f32 %v796_v24, %v794_v26  ;;  %v814_v28 = vadd.f32 %v800_v63, %v798_v61  ;;  %v6720_v26 = vld [vmem:[#allocation21_spill] sm:$0xff]  ;;  %v6721_v16 = vld [vmem:[#allocation22_spill] sm:$0xff] }
  0x59   :  { %s3863_s9 = sld [smem:[#allocation7 + $0xc9]]  ;;  %v816_v53 = vadd.f32 %v804_v17, %v802_v48  ;;  %v805_v33 = vadd.f32 %v781_v19, %v778_v18  ;;  %v807_v31 = vadd.f32 %v787_v27, %v784_v25  ;;  %v806_v41 = vadd.f32 %v782_v62, %v779_v58  ;;  %v6722_v25 = vld [vmem:[#allocation23_spill] sm:$0xff]  ;;  %v6723_v58 = vld [vmem:[#allocation24_spill] sm:$0xff] }
  0x5a   :  { %s3865_s10 = sld [smem:[#allocation7 + $0xdd]]  ;;  %v808_v29 = vadd.f32 %v788_v32, %v785_v4  ;;  %v819_v50 = vadd.f32 %v811_v40, %v809_v39  ;;  %v821_v12 = vadd.f32 %v815_v56, %v813_v52  ;;  %v835_v30 = vstv %s3819_s5  ;;  %v6724_v4 = vld [vmem:[#allocation25_spill] sm:$0xff]  ;;  %v6725_v40 = vld [vmem:[#allocation26_spill] sm:$0xff]  ;;  %v6726_v56 = vld [vmem:[#allocation27_spill] sm:$0xff] }
  0x5b   :  { %s3867_s11 = sld [smem:[#allocation7 + $0xf1]]  ;;  %v820_v24 = vadd.f32 %v812_v7, %v810_v57  ;;  %v822_v48 = vadd.f32 %v816_v53, %v814_v28  ;;  %v838_v8 = vstv %s3825_s23  ;;  %v3879_v49 = vadd.f32 %v807_v31, %v805_v33  ;;  %v6727_v7 = vld [vmem:[#allocation28_spill] sm:$0xff]  ;;  %v6728_v33 = vld [vmem:[#allocation29_spill] sm:$0xff] }
  0x5c   :  { %s3869_s12 = sld [smem:[#allocation7 + $0x105]]  ;;  %v841_v51 = vstv %s3831_s24  ;;  %v3884_v61 = vadd.f32 %v808_v29, %v806_v41  ;;  %v3887_v63 = vmul.f32 %v835_v30, %v3576_v34  ;;  %v3890_v43 = vmul.f32 %v835_v30, %v3578_v35  ;;  %v6729_v41 = vld [vmem:[#allocation30_spill] sm:$0xff]  ;;  %v6731_v30 = vld [vmem:[#allocation32_spill] sm:$0xff] }
  0x5d   :  { %s3871_s0 = sld [smem:[#allocation7 + $0x119]]  ;;  %v844_v44 = vstv %s3837_s25  ;;  %v3895_v59 = vadd.f32 %v821_v12, %v819_v50  ;;  %v839_v60 = vmul.f32 %v838_v8, %v3580_v36  ;;  %v840_v5 = vmul.f32 %v838_v8, %v3588_v42  ;;  %v6730_v50 = vld [vmem:[#allocation31_spill] sm:$0xff] }
  0x5e   :  { %s3874_s13 = sld [smem:[#allocation7 + $0x12d]]  ;;  %v847_v6 = vstv %s3843_s26  ;;  %v3902_v11 = vadd.f32 %v822_v48, %v820_v24  ;;  %v842_v20 = vmul.f32 %v841_v51, %v3594_v46  ;;  %v850_v21 = vstv %s3845_s27  ;;  %v6732_v48 = vld [vmem:[#allocation33_spill] sm:$0xff] }
  0x5f   :  { %s3877_s2 = sld [smem:[#allocation7 + $0x141]]  ;;  %v853_v38 = vstv %s3847_s28  ;;  %v843_v45 = vmul.f32 %v841_v51, %v3596_v47  ;;  %v845_v3 = vmul.f32 %v844_v44, %v6718_v1  ;;  %v846_v55 = vmul.f32 %v844_v44, %v6719_v13  ;;  %v6733_v51 = vld [vmem:[#allocation34_spill] sm:$0xff]  ;;  %v6742_v13 = vld [vmem:[#allocation43_spill] sm:$0xff]  ;;  %v6743_v47 = vld [vmem:[#allocation44_spill] sm:$0xff] }
  0x60   :  { %s3882_s14 = sld [smem:[#allocation7 + $0x155]]  ;;  %v856_v54 = vstv %s3849_s29  ;;  %v848_v37 = vmul.f32 %v847_v6, %v6720_v26  ;;  %v849_v17 = vmul.f32 %v847_v6, %v6721_v16  ;;  %v859_v18 = vstv %s3851_s30  ;;  %v6741_v16 = vld [vmem:[#allocation42_spill] sm:$0xff] }
  0x61   :  { %s3893_s15 = sld [smem:[#allocation7 + $0x169]]  ;;  %v862_v19 = vstv %s3857_s8  ;;  %v851_v27 = vmul.f32 %v850_v21, %v6722_v25  ;;  %v852_v62 = vmul.f32 %v850_v21, %v6723_v58  ;;  %v854_v32 = vmul.f32 %v853_v38, %v6724_v4  ;;  %v6738_v4 = vld [vmem:[#allocation39_spill] sm:$0xff]  ;;  %v6739_v25 = vld [vmem:[#allocation40_spill] sm:$0xff] }
  0x62   :  { %s3900_s4 = sld [smem:[#allocation7 + $0x17d]]  ;;  %v865_v39 = vstv %s3863_s9  ;;  %v855_v52 = vmul.f32 %v853_v38, %v6725_v40  ;;  %v857_v57 = vmul.f32 %v856_v54, %v6726_v56  ;;  %v858_v28 = vmul.f32 %v856_v54, %v6727_v7  ;;  %v6734_v38 = vld [vmem:[#allocation35_spill] sm:$0xff]  ;;  %v6735_v7 = vld [vmem:[#allocation36_spill] sm:$0xff] }
  0x63   :  { %v868_v53 = vstv %s3865_s10  ;;  %v860_v31 = vmul.f32 %v859_v18, %v6728_v33  ;;  %v861_v29 = vmul.f32 %v859_v18, %v6729_v41  ;;  %v863_v12 = vmul.f32 %v862_v19, %v6730_v50  ;;  %s3931_s16 = sld [smem:[#allocation7 + $0x2]] }
  0x64   :  { %v864_v24 = vmul.f32 %v862_v19, %v6731_v30  ;;  %v866_v8 = vmul.f32 %v865_v39, %v6732_v48  ;;  %v867_v44 = vmul.f32 %v865_v39, %v6733_v51  ;;  %v871_v6 = vstv %s3867_s11  ;;  %s3937_s17 = sld [smem:[#allocation7 + $0x16]]  ;;  %v6736_v48 = vld [vmem:[#allocation37_spill] sm:$0xff]  ;;  %v6737_v51 = vld [vmem:[#allocation38_spill] sm:$0xff] }
  0x65   :  { %v874_v21 = vstv %s3869_s12  ;;  %v869_v54 = vmul.f32 %v868_v53, %v6734_v38  ;;  %v870_v33 = vmul.f32 %v868_v53, %v6735_v7  ;;  %v877_v56 = vstv %s3871_s0  ;;  %s3943_s18 = sld [smem:[#allocation7 + $0x2a]]  ;;  %v6740_v53 = vld [vmem:[#allocation41_spill] sm:$0xff] }
  0x66   :  { %v880_v40 = vstv %s3874_s13  ;;  %v883_v18 = vstv %s3877_s2  ;;  %v886_v50 = vstv %s3882_s14  ;;  %v872_v39 = vmul.f32 %v871_v6, %v6736_v48  ;;  %s3949_s1 = sld [smem:[#allocation7 + $0x3e]] }
  0x67   :  { %v889_v41 = vstv %s3893_s15  ;;  %v873_v30 = vmul.f32 %v871_v6, %v6737_v51  ;;  %v875_v58 = vmul.f32 %v874_v21, %v6738_v4  ;;  %v876_v38 = vmul.f32 %v874_v21, %v6739_v25  ;;  %s3955_s3 = sld [smem:[#allocation7 + $0x52]] }
  0x68   :  { %v892_v19 = vstv %s3900_s4  ;;  %v878_v7 = vmul.f32 %v877_v56, %v6740_v53  ;;  %v879_v26 = vmul.f32 %v877_v56, %v6741_v16  ;;  %v881_v1 = vmul.f32 %v880_v40, %v6742_v13  ;;  %s3961_s19 = sld [smem:[#allocation8]] }
  0x69   :  { %v882_v46 = vmul.f32 %v880_v40, %v6743_v47  ;;  %v884_v48 = vmul.f32 %v883_v18, %v3753_v0  ;;  %v887_v6 = vmul.f32 %v886_v50, %v3763_v9  ;;  %v890_v4 = vmul.f32 %v889_v41, %v3771_v14  ;;  %s3964_s20 = sld [smem:[#allocation7 + $0x66]] }
  0x6a   :  { %v893_v21 = vmul.f32 %v892_v19, %v3785_v22  ;;  %v895_v53 = vadd.f32 %v839_v60, %v3887_v63  ;;  %v897_v25 = vadd.f32 %v845_v3, %v842_v20  ;;  %v899_v56 = vadd.f32 %v851_v27, %v848_v37  ;;  %s3967_s21 = sld [smem:[#allocation7 + $0x7a]] }
  0x6b   :  { %v901_v16 = vadd.f32 %v857_v57, %v854_v32  ;;  %v896_v40 = vadd.f32 %v840_v5, %v3890_v43  ;;  %v898_v47 = vadd.f32 %v846_v55, %v843_v45  ;;  %v903_v13 = vadd.f32 %v863_v12, %v860_v31  ;;  %s3969_s22 = sld [smem:[#allocation7 + $0x8e]] }
  0x6c   :  { %v905_v0 = vadd.f32 %v869_v54, %v866_v8  ;;  %v900_v9 = vadd.f32 %v852_v62, %v849_v17  ;;  %v902_v14 = vadd.f32 %v858_v28, %v855_v52  ;;  %v907_v51 = vadd.f32 %v875_v58, %v872_v39  ;;  %s3971_s5 = sld [smem:[#allocation7 + $0xa2]]  ;;  %v6747_v8 = vld [vmem:[#allocation19_spill] sm:$0xff]  ;;  %v6750_v39 = vld [vmem:[#allocation22_spill] sm:$0xff] }
  0x6d   :  { %v909_v22 = vadd.f32 %v881_v1, %v878_v7  ;;  %v904_v42 = vadd.f32 %v864_v24, %v861_v29  ;;  %v906_v63 = vadd.f32 %v870_v33, %v867_v44  ;;  %v908_v60 = vadd.f32 %v876_v38, %v873_v30  ;;  %s3975_s23 = sld [smem:[#allocation7 + $0xb6]]  ;;  %v6746_v24 = vld [vmem:[#allocation18_spill] sm:$0xff]  ;;  %v6748_v44 = vld [vmem:[#allocation20_spill] sm:$0xff] }
  0x6e   :  { %v910_v20 = vadd.f32 %v882_v46, %v879_v26  ;;  %v885_v3 = vmul.f32 %v883_v18, %v3758_v2  ;;  %v888_v43 = vmul.f32 %v886_v50, %v3765_v10  ;;  %v915_v5 = vadd.f32 %v897_v25, %v895_v53  ;;  %s3979_s24 = sld [smem:[#allocation7 + $0xca]]  ;;  %v6745_v50 = vld [vmem:[#allocation17_spill] sm:$0xff] }
  0x6f   :  { %v917_v45 = vadd.f32 %v901_v16, %v899_v56  ;;  %v891_v55 = vmul.f32 %v889_v41, %v3773_v15  ;;  %v894_v1 = vmul.f32 %v892_v19, %v3787_v23  ;;  %v919_v37 = vadd.f32 %v905_v0, %v903_v13  ;;  %s3981_s25 = sld [smem:[#allocation7 + $0xde]]  ;;  %v6744_v41 = vld [vmem:[#allocation16_spill] sm:$0xff]  ;;  %v6749_v18 = vld [vmem:[#allocation21_spill] sm:$0xff]  ;;  %v6763_v0 = vld [vmem:[#allocation35_spill] sm:$0xff] }
  0x70   :  { %v921_v17 = vadd.f32 %v909_v22, %v907_v51  ;;  %v911_v46 = vadd.f32 %v887_v6, %v884_v48  ;;  %v913_v26 = vadd.f32 %v893_v21, %v890_v4  ;;  %v916_v27 = vadd.f32 %v898_v47, %v896_v40  ;;  %s3983_s26 = sld [smem:[#allocation7 + $0xf2]]  ;;  %v6751_v6 = vld [vmem:[#allocation23_spill] sm:$0xff]  ;;  %v6752_v56 = vld [vmem:[#allocation24_spill] sm:$0xff] }
  0x71   :  { %v918_v58 = vadd.f32 %v902_v14, %v900_v9  ;;  %v920_v16 = vadd.f32 %v906_v63, %v904_v42  ;;  %v922_v25 = vadd.f32 %v910_v20, %v908_v60  ;;  %v925_v62 = vadd.f32 %v917_v45, %v915_v5  ;;  %s3986_s27 = sld [smem:[#allocation7 + $0x106]]  ;;  %v6753_v63 = vld [vmem:[#allocation25_spill] sm:$0xff]  ;;  %v6754_v5 = vld [vmem:[#allocation26_spill] sm:$0xff] }
  0x72   :  { %v927_v32 = vadd.f32 %v921_v17, %v919_v37  ;;  %v3990_v22 = vadd.f32 %v3895_v59, %v3879_v49  ;;  %v3994_v47 = vadd.f32 %v3902_v11, %v3884_v61  ;;  %v3996_v9 = vadd.f32 %v888_v43, %v885_v3  ;;  %s3999_s28 = sld [smem:[#allocation7 + $0x11a]]  ;;  %v6756_v37 = vld [vmem:[#allocation28_spill] sm:$0xff] }
  0x73   :  { %v941_v42 = vstv %s3931_s16  ;;  %v4001_v14 = vadd.f32 %v894_v1, %v891_v55  ;;  %v4003_v13 = vadd.f32 %v913_v26, %v911_v46  ;;  %v944_v4 = vstv %s3937_s17  ;;  %s4007_s29 = sld [smem:[#allocation7 + $0x12e]]  ;;  %v6755_v55 = vld [vmem:[#allocation27_spill] sm:$0xff]  ;;  %v6757_v26 = vld [vmem:[#allocation29_spill] sm:$0xff] }
  0x74   :  { %v947_v52 = vstv %s3943_s18  ;;  %v4009_v49 = vadd.f32 %v918_v58, %v916_v27  ;;  %v4011_v61 = vadd.f32 %v922_v25, %v920_v16  ;;  %v4013_v59 = vadd.f32 %v927_v32, %v925_v62  ;;  %s4016_s30 = sld [smem:[#allocation7 + $0x142]]  ;;  %v6758_v58 = vld [vmem:[#allocation30_spill] sm:$0xff]  ;;  %v6759_v25 = vld [vmem:[#allocation31_spill] sm:$0xff]  ;;  %v6760_v32 = vld [vmem:[#allocation32_spill] sm:$0xff] }
  0x75   :  { %v950_v11 = vstv %s3949_s1  ;;  %v942_v57 = vmul.f32 %v941_v42, %v3576_v34  ;;  %v943_v7 = vmul.f32 %v941_v42, %v3578_v35  ;;  %v953_v28 = vstv %s3955_s3  ;;  %s4022_s8 = sld [smem:[#allocation7 + $0x156]] }
  0x76   :  { %v956_v33 = vstv %s3964_s20  ;;  %v945_v31 = vmul.f32 %v944_v4, %v3580_v36  ;;  %v946_v29 = vmul.f32 %v944_v4, %v6744_v41  ;;  %v948_v12 = vmul.f32 %v947_v52, %v6745_v50  ;;  %s4032_s9 = sld [smem:[#allocation7 + $0x16a]]  ;;  %v6761_v4 = vld [vmem:[#allocation33_spill] sm:$0xff] }
  0x77   :  { %v959_v30 = vstv %s3967_s21  ;;  %v949_v48 = vmul.f32 %v947_v52, %v6746_v24  ;;  %v951_v51 = vmul.f32 %v950_v11, %v6747_v8  ;;  %v952_v38 = vmul.f32 %v950_v11, %v6748_v44  ;;  %s4038_s10 = sld [smem:[#allocation7 + $0x17e]]  ;;  %v6762_v11 = vld [vmem:[#allocation34_spill] sm:$0xff]  ;;  %v6774_v24 = vld [vmem:[#allocation47_spill] sm:$0xff] }
  0x78   :  { %v962_v54 = vstv %s3969_s22  ;;  %v954_v19 = vmul.f32 %v953_v28, %v6749_v18  ;;  %v955_v53 = vmul.f32 %v953_v28, %v6750_v39  ;;  %v957_v21 = vmul.f32 %v956_v33, %v6751_v6  ;;  %s4064_s11 = sld [smem:[#allocation7 + $0x3]]  ;;  %v6770_v39 = vld [vmem:[#allocation42_spill] sm:$0xff]  ;;  %v6773_v18 = vld [vmem:[#allocation45_spill] sm:$0xff] }
  0x79   :  { %v958_v40 = vmul.f32 %v956_v33, %v6752_v56  ;;  %v960_v60 = vmul.f32 %v959_v30, %v6753_v63  ;;  %v965_v20 = vstv %s3971_s5  ;;  %v968_v3 = vstv %s3975_s23  ;;  %v6766_v56 = vld [vmem:[#allocation38_spill] sm:$0xff]  ;;  %s4070_s12 = sld [smem:[#allocation7 + $0x17]] }
  0x7a   :  { %v971_v43 = vstv %s3979_s24  ;;  %v961_v45 = vmul.f32 %v959_v30, %v6754_v5  ;;  %v963_v1 = vmul.f32 %v962_v54, %v6755_v55  ;;  %v964_v17 = vmul.f32 %v962_v54, %v6756_v37  ;;  %v6764_v54 = vld [vmem:[#allocation36_spill] sm:$0xff]  ;;  %v6765_v5 = vld [vmem:[#allocation37_spill] sm:$0xff]  ;;  %s4076_s0 = sld [smem:[#allocation8 + $0x1]] }
  0x7b   :  { %v974_v46 = vstv %s3981_s25  ;;  %v966_v27 = vmul.f32 %v965_v20, %v6757_v26  ;;  %v967_v16 = vmul.f32 %v965_v20, %v6758_v58  ;;  %v969_v62 = vmul.f32 %v968_v3, %v6759_v25  ;;  %v6769_v58 = vld [vmem:[#allocation41_spill] sm:$0xff]  ;;  %s4082_s13 = sld [smem:[#allocation7 + $0x2b]] }
  0x7c   :  { %v970_v42 = vmul.f32 %v968_v3, %v6760_v32  ;;  %v972_v52 = vmul.f32 %v971_v43, %v6761_v4  ;;  %v973_v28 = vmul.f32 %v971_v43, %v6762_v11  ;;  %v977_v33 = vstv %s3983_s26  ;;  %v6767_v4 = vld [vmem:[#allocation39_spill] sm:$0xff]  ;;  %v6768_v11 = vld [vmem:[#allocation40_spill] sm:$0xff]  ;;  %s4086_s2 = sld [smem:[#allocation7 + $0x3f]] }
  0x7d   :  { %v980_v30 = vstv %s3986_s27  ;;  %v975_v55 = vmul.f32 %v974_v46, %v6763_v0  ;;  %v976_v37 = vmul.f32 %v974_v46, %v6764_v54  ;;  %v978_v63 = vmul.f32 %v977_v33, %v6765_v5  ;;  %v6771_v5 = vld [vmem:[#allocation43_spill] sm:$0xff]  ;;  %s4088_s14 = sld [smem:[#allocation7 + $0x53]] }
  0x7e   :  { %v979_v26 = vmul.f32 %v977_v33, %v6766_v56  ;;  %v983_v6 = vstv %s3999_s28  ;;  %v986_v20 = vstv %s4007_s29  ;;  %v989_v25 = vstv %s4016_s30  ;;  %v6772_v56 = vld [vmem:[#allocation44_spill] sm:$0xff]  ;;  %s4090_s15 = sld [smem:[#allocation7 + $0x67]] }
  0x7f   :  { %v992_v3 = vstv %s4022_s8  ;;  %v981_v43 = vmul.f32 %v980_v30, %v6767_v4  ;;  %v982_v32 = vmul.f32 %v980_v30, %v6768_v11  ;;  %v984_v0 = vmul.f32 %v983_v6, %v6769_v58  ;;  %s4092_s4 = sld [smem:[#allocation7 + $0x7b]] }
  0x80   :  { %v985_v46 = vmul.f32 %v983_v6, %v6770_v39  ;;  %v987_v33 = vmul.f32 %v986_v20, %v6771_v5  ;;  %v988_v54 = vmul.f32 %v986_v20, %v6772_v56  ;;  %v990_v44 = vmul.f32 %v989_v25, %v6773_v18  ;;  %v6775_v6 = vld [vmem:[#allocation49_spill] sm:$0xff]  ;;  %s4096_s16 = sld [smem:[#allocation7 + $0x8f]] }
  0x81   :  { %v991_v8 = vmul.f32 %v989_v25, %v3758_v2  ;;  %v993_v4 = vmul.f32 %v992_v3, %v6774_v24  ;;  %v994_v30 = vmul.f32 %v992_v3, %v3765_v10  ;;  %v995_v11 = vstv %s4032_s9  ;;  %s4102_s17 = sld [smem:[#allocation8 + $0x2]] }
  0x82   :  { %v998_v58 = vstv %s4038_s10  ;;  %v996_v39 = vmul.f32 %v995_v11, %v6775_v6  ;;  %v997_v5 = vmul.f32 %v995_v11, %v3773_v15  ;;  %v1001_v50 = vadd.f32 %v945_v31, %v942_v57  ;;  %v6776_v57 = vld [vmem:[#allocation51_spill] sm:$0xff]  ;;  %s4104_s18 = sld [smem:[#allocation7 + $0xa3]] }
  0x83   :  { %v1002_v20 = vadd.f32 %v946_v29, %v943_v7  ;;  %v1003_v18 = vadd.f32 %v951_v51, %v948_v12  ;;  %v1004_v25 = vadd.f32 %v952_v38, %v949_v48  ;;  %v1005_v2 = vadd.f32 %v957_v21, %v954_v19  ;;  %s4109_s1 = sld [smem:[#allocation7 + $0xb7]] }
  0x84   :  { %v1006_v56 = vadd.f32 %v958_v40, %v955_v53  ;;  %v1007_v24 = vadd.f32 %v963_v1, %v960_v60  ;;  %v1008_v3 = vadd.f32 %v964_v17, %v961_v45  ;;  %v1009_v10 = vadd.f32 %v969_v62, %v966_v27  ;;  %s4111_s3 = sld [smem:[#allocation7 + $0xcb]]  ;;  %v6779_v27 = vld [vmem:[#allocation14_spill] sm:$0xff]  ;;  %v6801_v17 = vld [vmem:[#allocation36_spill] sm:$0xff] }
  0x85   :  { %v1010_v41 = vadd.f32 %v970_v42, %v967_v16  ;;  %v1011_v36 = vadd.f32 %v975_v55, %v972_v52  ;;  %v1012_v6 = vadd.f32 %v976_v37, %v973_v28  ;;  %v1013_v35 = vadd.f32 %v981_v43, %v978_v63  ;;  %s4113_s20 = sld [smem:[#allocation7 + $0xdf]]  ;;  %v6780_v16 = vld [vmem:[#allocation15_spill] sm:$0xff]  ;;  %v6782_v28 = vld [vmem:[#allocation17_spill] sm:$0xff]  ;;  %v6783_v43 = vld [vmem:[#allocation18_spill] sm:$0xff] }
  0x86   :  { %v1014_v11 = vadd.f32 %v982_v32, %v979_v26  ;;  %v999_v7 = vmul.f32 %v998_v58, %v6776_v57  ;;  %v1000_v31 = vmul.f32 %v998_v58, %v3787_v23  ;;  %v1015_v29 = vadd.f32 %v987_v33, %v984_v0  ;;  %s4115_s21 = sld [smem:[#allocation7 + $0xf3]]  ;;  %v6781_v32 = vld [vmem:[#allocation16_spill] sm:$0xff]  ;;  %v6784_v33 = vld [vmem:[#allocation19_spill] sm:$0xff] }
  0x87   :  { %v1016_v12 = vadd.f32 %v988_v54, %v985_v46  ;;  %v924_v48 = vadd.f32 %v4001_v14, %v3996_v9  ;;  %v930_v51 = vadd.f32 %v4011_v61, %v4009_v49  ;;  %v1021_v38 = vadd.f32 %v1003_v18, %v1001_v50  ;;  %s4128_s22 = sld [smem:[#allocation7 + $0x107]] }
  0x88   :  { %v1022_v19 = vadd.f32 %v1004_v25, %v1002_v20  ;;  %v1023_v53 = vadd.f32 %v1007_v24, %v1005_v2  ;;  %v1024_v21 = vadd.f32 %v1008_v3, %v1006_v56  ;;  %v1025_v40 = vadd.f32 %v1011_v36, %v1009_v10  ;;  %s4133_s5 = sld [smem:[#allocation7 + $0x11b]]  ;;  %v6785_v3 = vld [vmem:[#allocation20_spill] sm:$0xff] }
  0x89   :  { %v1026_v63 = vadd.f32 %v1012_v6, %v1010_v41  ;;  %v931_v0 = vadd.f32 %v4013_v59, %v4003_v13  ;;  %v933_v60 = vstv %s4076_s0  ;;  %v1027_v45 = vadd.f32 %v1015_v29, %v1013_v35  ;;  %s4144_s23 = sld [smem:[#allocation7 + $0x143]] }
  0x8a   :  { %v1028_v9 = vadd.f32 %v1016_v12, %v1014_v11  ;;  %v1017_v14 = vadd.f32 %v993_v4, %v990_v44  ;;  %v1018_v49 = vadd.f32 %v994_v30, %v991_v8  ;;  %v1019_v61 = vadd.f32 %v999_v7, %v996_v39  ;;  %s4150_s24 = sld [smem:[#allocation7 + $0x157]]  ;;  %v6787_v12 = vld [vmem:[#allocation22_spill] sm:$0xff] }
  0x8b   :  { %v1020_v2 = vadd.f32 %v1000_v31, %v997_v5  ;;  %v1031_v36 = vadd.f32 %v1023_v53, %v1021_v38  ;;  %v1032_v10 = vadd.f32 %v1024_v21, %v1022_v19  ;;  %v1033_v41 = vadd.f32 %v1027_v45, %v1025_v40  ;;  %s4156_s25 = sld [smem:[#allocation7 + $0x16b]]  ;;  %v6786_v31 = vld [vmem:[#allocation21_spill] sm:$0xff]  ;;  %v6789_v53 = vld [vmem:[#allocation24_spill] sm:$0xff] }
  0x8c   :  { %v1034_v13 = vadd.f32 %v1028_v9, %v1026_v63  ;;  %v932_v35 = vadd.f32 %v930_v51, %v924_v48  ;;  %v6777_v59 = vstv %s3961_s19  ;;  %v1047_v44 = vstv %s4064_s11  ;;  %s4137_s19 = sld [smem:[#allocation7 + $0x12f]]  ;;  %v6788_v51 = vld [vmem:[#allocation23_spill] sm:$0xff]  ;;  %v6790_v40 = vld [vmem:[#allocation25_spill] sm:$0xff] }
  0x8d   :  { %v4120_v50 = vadd.f32 %v6777_v59, %v3990_v22  ;;  %v6778_v24 = vmov %v6777_v59  ;;  %v4130_v18 = vadd.f32 %v933_v60, %v931_v0  ;;  %v1029_v39 = vadd.f32 %v1019_v61, %v1017_v14  ;;  %s4164_s26 = sld [smem:[#allocation7 + $0x17f]]  ;;  %v6791_v0 = vld [vmem:[#allocation26_spill] sm:$0xff]  ;;  %v6792_v9 = vld [vmem:[#allocation27_spill] sm:$0xff] }
  0x8e   :  { %v4125_v8 = vadd.f32 %v6778_v24, %v3994_v47  ;;  %v1030_v56 = vadd.f32 %v1020_v2, %v1018_v49  ;;  %v1050_v5 = vstv %s4070_s12  ;;  %v1035_v55 = vadd.f32 %v1033_v41, %v1031_v36  ;;  %v6793_v49 = vld [vmem:[#allocation28_spill] sm:$0xff]  ;;  %s4190_s27 = sld [smem:[#allocation7 + $0x4]] }
  0x8f   :  { %v1036_v1 = vadd.f32 %v1034_v13, %v1032_v10  ;;  %v1053_v22 = vstv %s4082_s13  ;;  %v1056_v37 = vstv %s4086_s2  ;;  %v4139_v47 = vadd.f32 %v933_v60, %v932_v35  ;;  %v6794_v10 = vld [vmem:[#allocation29_spill] sm:$0xff]  ;;  %v6795_v13 = vld [vmem:[#allocation30_spill] sm:$0xff]  ;;  %s4196_s28 = sld [smem:[#allocation7 + $0x18]] }
  0x90   :  { %v1048_v26 = vmul.f32 %v1047_v44, %v3576_v34  ;;  %v1049_v58 = vmul.f32 %v1047_v44, %v6779_v27  ;;  %v1051_v62 = vmul.f32 %v1050_v5, %v6780_v16  ;;  %v1052_v42 = vmul.f32 %v1050_v5, %v6781_v32  ;;  %v6796_v44 = vld [vmem:[#allocation31_spill] sm:$0xff]  ;;  %s4202_s29 = sld [smem:[#allocation10]] }
  0x91   :  { %v1059_v4 = vstv %s4088_s14  ;;  %v1062_v52 = vstv %s4090_s15  ;;  %v1054_v54 = vmul.f32 %v1053_v22, %v6782_v28  ;;  %v1055_v46 = vmul.f32 %v1053_v22, %v6783_v43  ;;  %v6798_v22 = vld [vmem:[#allocation33_spill] sm:$0xff]  ;;  %s4208_s30 = sld [smem:[#allocation10 + $0x1]] }
  0x92   :  { %v1057_v30 = vmul.f32 %v1056_v37, %v6784_v33  ;;  %v1065_v6 = vstv %s4092_s4  ;;  %v4158_v20 = vadd.f32 %v1035_v55, %v1029_v39  ;;  %v4160_v25 = vadd.f32 %v1036_v1, %v1030_v56  ;;  %v6797_v56 = vld [vmem:[#allocation32_spill] sm:$0xff]  ;;  %s4210_s8 = sld [smem:[#allocation7 + $0x2c]] }
  0x93   :  { %v1058_v11 = vmul.f32 %v1056_v37, %v6785_v3  ;;  %v1068_v7 = vstv %s4096_s16  ;;  %v1060_v29 = vmul.f32 %v1059_v4, %v6786_v31  ;;  %v1061_v48 = vmul.f32 %v1059_v4, %v6787_v12  ;;  %v6799_v4 = vld [vmem:[#allocation34_spill] sm:$0xff]  ;;  %s4212_s9 = sld [smem:[#allocation7 + $0x40]] }
  0x94   :  { %v1063_v38 = vmul.f32 %v1062_v52, %v6788_v51  ;;  %v1071_v19 = vstv %s4104_s18  ;;  %v1064_v21 = vmul.f32 %v1062_v52, %v6789_v53  ;;  %v1066_v63 = vmul.f32 %v1065_v6, %v6790_v40  ;;  %v6809_v51 = vld [vmem:[#allocation44_spill] sm:$0xff]  ;;  %s4214_s10 = sld [smem:[#allocation7 + $0x54]] }
  0x95   :  { %v1067_v60 = vmul.f32 %v1065_v6, %v6791_v0  ;;  %v1074_v45 = vstv %s4109_s1  ;;  %v1069_v14 = vmul.f32 %v1068_v7, %v6792_v9  ;;  %v1070_v61 = vmul.f32 %v1068_v7, %v6793_v49  ;;  %v6800_v6 = vld [vmem:[#allocation35_spill] sm:$0xff]  ;;  %v6805_v9 = vld [vmem:[#allocation40_spill] sm:$0xff]  ;;  %s4216_s11 = sld [smem:[#allocation7 + $0x68]] }
  0x96   :  { %v1077_v2 = vstv %s4111_s3  ;;  %v1080_v36 = vstv %s4113_s20  ;;  %v1072_v41 = vmul.f32 %v1071_v19, %v6794_v10  ;;  %v1073_v35 = vmul.f32 %v1071_v19, %v6795_v13  ;;  %v6802_v13 = vld [vmem:[#allocation37_spill] sm:$0xff]  ;;  %v6803_v10 = vld [vmem:[#allocation38_spill] sm:$0xff]  ;;  %s4222_s12 = sld [smem:[#allocation10 + $0x2]] }
  0x97   :  { %v1083_v59 = vstv %s4115_s21  ;;  %v1086_v24 = vstv %s4128_s22  ;;  %v1075_v39 = vmul.f32 %v1074_v45, %v6796_v44  ;;  %v1076_v5 = vmul.f32 %v1074_v45, %v6797_v56  ;;  %v6804_v56 = vld [vmem:[#allocation39_spill] sm:$0xff]  ;;  %s4228_s0 = sld [smem:[#allocation7 + $0x7c]] }
  0x98   :  { %v1089_v55 = vstv %s4133_s5  ;;  %v1092_v1 = vstv %s4137_s19  ;;  %v1078_v37 = vmul.f32 %v1077_v2, %v6798_v22  ;;  %v1079_v52 = vmul.f32 %v1077_v2, %v6799_v4  ;;  %v6806_v22 = vld [vmem:[#allocation41_spill] sm:$0xff]  ;;  %v6807_v4 = vld [vmem:[#allocation42_spill] sm:$0xff]  ;;  %s4230_s13 = sld [smem:[#allocation7 + $0x90]] }
  0x99   :  { %v1081_v7 = vmul.f32 %v1080_v36, %v6800_v6  ;;  %v1082_v19 = vmul.f32 %v1080_v36, %v6801_v17  ;;  %v1084_v44 = vmul.f32 %v1083_v59, %v6802_v13  ;;  %v1085_v45 = vmul.f32 %v1083_v59, %v6803_v10  ;;  %v6808_v6 = vld [vmem:[#allocation43_spill] sm:$0xff]  ;;  %s4232_s2 = sld [smem:[#allocation8 + $0x3]] }
  0x9a   :  { %v1087_v49 = vmul.f32 %v1086_v24, %v6804_v56  ;;  %v1088_v0 = vmul.f32 %v1086_v24, %v6805_v9  ;;  %v1090_v2 = vmul.f32 %v1089_v55, %v6806_v22  ;;  %v1091_v40 = vmul.f32 %v1089_v55, %v6807_v4  ;;  %s4238_s14 = sld [smem:[#allocation7 + $0xa4]] }
  0x9b   :  { %v1093_v53 = vmul.f32 %v1092_v1, %v6808_v6  ;;  %v1094_v36 = vmul.f32 %v1092_v1, %v6809_v51  ;;  %v1095_v17 = vstv %s4144_s23  ;;  %v1098_v13 = vstv %s4150_s24  ;;  %s4252_s15 = sld [smem:[#allocation7 + $0xb8]] }
  0x9c   :  { %v1101_v12 = vstv %s4156_s25  ;;  %v1104_v59 = vstv %s4164_s26  ;;  %v1107_v56 = vadd.f32 %v1051_v62, %v1048_v26  ;;  %v1108_v24 = vadd.f32 %v1052_v42, %v1049_v58  ;;  %v6810_v62 = vld [vmem:[#allocation45_spill] sm:$0xff]  ;;  %s4254_s4 = sld [smem:[#allocation7 + $0xcc]] }
  0x9d   :  { %v1109_v9 = vadd.f32 %v1057_v30, %v1054_v54  ;;  %v1110_v10 = vadd.f32 %v1058_v11, %v1055_v46  ;;  %v1111_v22 = vadd.f32 %v1063_v38, %v1060_v29  ;;  %v1112_v55 = vadd.f32 %v1064_v21, %v1061_v48  ;;  %v6811_v54 = vld [vmem:[#allocation46_spill] sm:$0xff]  ;;  %v6812_v30 = vld [vmem:[#allocation47_spill] sm:$0xff]  ;;  %v6813_v29 = vld [vmem:[#allocation48_spill] sm:$0xff]  ;;  %s4256_s16 = sld [smem:[#allocation7 + $0xe0]] }
  0x9e   :  { %v1113_v4 = vadd.f32 %v1069_v14, %v1066_v63  ;;  %v1114_v6 = vadd.f32 %v1070_v61, %v1067_v60  ;;  %v1115_v1 = vadd.f32 %v1075_v39, %v1072_v41  ;;  %v1116_v51 = vadd.f32 %v1076_v5, %v1073_v35  ;;  %v6814_v38 = vld [vmem:[#allocation49_spill] sm:$0xff]  ;;  %s4270_s18 = sld [smem:[#allocation7 + $0x108]] }
  0x9f   :  { %v1117_v31 = vadd.f32 %v1081_v7, %v1078_v37  ;;  %v1118_v3 = vadd.f32 %v1082_v19, %v1079_v52  ;;  %v1119_v33 = vadd.f32 %v1087_v49, %v1084_v44  ;;  %v1120_v43 = vadd.f32 %v1088_v0, %v1085_v45  ;;  %s4274_s1 = sld [smem:[#allocation7 + $0x11c]] }
  0xa0   :  { %v1121_v26 = vadd.f32 %v1093_v53, %v1090_v2  ;;  %v1122_v58 = vadd.f32 %v1094_v36, %v1091_v40  ;;  %v1096_v42 = vmul.f32 %v1095_v17, %v6810_v62  ;;  %v1097_v46 = vmul.f32 %v1095_v17, %v6811_v54  ;;  %s4278_s3 = sld [smem:[#allocation7 + $0x130]] }
  0xa1   :  { %v1099_v11 = vmul.f32 %v1098_v13, %v6812_v30  ;;  %v1100_v48 = vmul.f32 %v1098_v13, %v6813_v29  ;;  %v1102_v21 = vmul.f32 %v1101_v12, %v6814_v38  ;;  %v1103_v63 = vmul.f32 %v1101_v12, %v3773_v15  ;;  %s4284_s20 = sld [smem:[#allocation7 + $0x144]] }
  0xa2   :  { %v1105_v53 = vmul.f32 %v1104_v59, %v6776_v57  ;;  %v1106_v40 = vmul.f32 %v1104_v59, %v3787_v23  ;;  %v1127_v0 = vadd.f32 %v1109_v9, %v1107_v56  ;;  %v1129_v17 = vadd.f32 %v1113_v4, %v1111_v22  ;;  %s4290_s21 = sld [smem:[#allocation7 + $0x158]] }
  0xa3   :  { %v1131_v60 = vadd.f32 %v1117_v31, %v1115_v1  ;;  %v1133_v14 = vadd.f32 %v1121_v26, %v1119_v33  ;;  %v1128_v49 = vadd.f32 %v1110_v10, %v1108_v24  ;;  %v1130_v61 = vadd.f32 %v1114_v6, %v1112_v55  ;;  %s4299_s22 = sld [smem:[#allocation7 + $0x16c]] }
  0xa4   :  { %v1132_v41 = vadd.f32 %v1118_v3, %v1116_v51  ;;  %v1134_v12 = vadd.f32 %v1122_v58, %v1120_v43  ;;  %v830_v13 = vmax.f32 %v4120_v50, 0.0  ;;  %v831_v35 = vmax.f32 %v4125_v8, 0.0  ;;  %s4310_s5 = sld [smem:[#allocation7 + $0x180]] }
  0xa5   :  { %v832_v44 = vstv %s4202_s29  ;;  %v938_v39 = vstv %s4208_s30  ;;  %v936_v31 = vmax.f32 %v4130_v18, 0.0  ;;  %v937_v33 = vmax.f32 %v4139_v47, 0.0  ;;  %s4328_s19 = sld [smem:[#allocation7 + $0x5]] }
  0xa6   :  { %v6815_v9 = vstv %s4102_s17  ;;  %v1123_v50 = vadd.f32 %v1099_v11, %v1096_v42  ;;  %v1125_v8 = vadd.f32 %v1105_v53, %v1102_v21  ;;  %v1137_v51 = vadd.f32 %v1129_v17, %v1127_v0  ;;  %s4262_s17 = sld [smem:[#allocation7 + $0xf4]]  ;;  %v6822_v53 = vld [vmem:[#allocation18_spill] sm:$0xff] }
  0xa7   :  { %v4245_v10 = vadd.f32 %v6815_v9, %v4158_v20  ;;  %v6816_v43 = vmov %v6815_v9  ;;  %v1139_v56 = vadd.f32 %v1133_v14, %v1131_v60  ;;  %v1124_v18 = vadd.f32 %v1100_v48, %v1097_v46  ;;  %v6823_v14 = vld [vmem:[#allocation19_spill] sm:$0xff]  ;;  %s4334_s23 = sld [smem:[#allocation7 + $0x19]] }
  0xa8   :  { %v4250_v3 = vadd.f32 %v6816_v43, %v4160_v25  ;;  %v1126_v47 = vadd.f32 %v1106_v40, %v1103_v63  ;;  %v1138_v20 = vadd.f32 %v1130_v61, %v1128_v49  ;;  %v1140_v5 = vadd.f32 %v1134_v12, %v1132_v41  ;;  %v6824_v61 = vld [vmem:[#allocation20_spill] sm:$0xff]  ;;  %v6827_v9 = vld [vmem:[#allocation23_spill] sm:$0xff]  ;;  %s4340_s24 = sld [smem:[#allocation7 + $0x2d]] }
  0xa9   :  { %v4258_v25 = vmul.f32 %v832_v44, %v830_v13  ;;  %v4260_v22 = vmul.f32 %v832_v44, %v831_v35  ;;  %v4264_v37 = vmul.f32 %v938_v39, %v936_v31  ;;  %v4266_v4 = vmul.f32 %v938_v39, %v937_v33  ;;  %v6825_v13 = vld [vmem:[#allocation21_spill] sm:$0xff]  ;;  %v6826_v44 = vld [vmem:[#allocation22_spill] sm:$0xff]  ;;  %s4346_s25 = sld [smem:[#allocation7 + $0x41]] }
  0xaa   :  { %6817 = vst [vmem:[#allocation14_spill] sm:$0xff] %v4250_v3  ;;  %v1153_v6 = vstv %s4190_s27  ;;  %v1135_v7 = vadd.f32 %v1125_v8, %v1123_v50  ;;  %v1141_v19 = vadd.f32 %v1139_v56, %v1137_v51  ;;  %v1156_v45 = vstv %s4196_s28  ;;  %v6828_v50 = vld [vmem:[#allocation24_spill] sm:$0xff]  ;;  %v6829_v51 = vld [vmem:[#allocation25_spill] sm:$0xff]  ;;  %v6839_v3 = vld [vmem:[#allocation35_spill] sm:$0xff]  ;;  %s4352_s26 = sld [smem:[#allocation7 + $0x55]] }
  0xab   :  { %6818 = vst [vmem:[#allocation52_spill] sm:$0xff] %v4258_v25  ;;  %v1159_v2 = vstv %s4210_s8  ;;  %v1136_v24 = vadd.f32 %v1126_v47, %v1124_v18  ;;  %v1142_v55 = vadd.f32 %v1140_v5, %v1138_v20  ;;  %v1154_v26 = vmul.f32 %v1153_v6, %v3576_v34  ;;  %v6830_v18 = vld [vmem:[#allocation26_spill] sm:$0xff]  ;;  %v6831_v20 = vld [vmem:[#allocation27_spill] sm:$0xff]  ;;  %s4356_s27 = sld [smem:[#allocation10 + $0x3]] }
  0xac   :  { %6819 = vst [vmem:[#allocation53_spill] sm:$0xff] %v4260_v22  ;;  %v1155_v58 = vmul.f32 %v1153_v6, %v6779_v27  ;;  %v1162_v42 = vstv %s4212_s9  ;;  %v1157_v46 = vmul.f32 %v1156_v45, %v6780_v16  ;;  %v1158_v11 = vmul.f32 %v1156_v45, %v6781_v32  ;;  %v6832_v6 = vld [vmem:[#allocation28_spill] sm:$0xff]  ;;  %v6838_v22 = vld [vmem:[#allocation34_spill] sm:$0xff]  ;;  %s4359_s28 = sld [smem:[#allocation7 + $0x69]] }
  0xad   :  { %6820 = vst [vmem:[#allocation54_spill] sm:$0xff] %v4264_v37  ;;  %v1160_v48 = vmul.f32 %v1159_v2, %v6782_v28  ;;  %v1165_v21 = vstv %s4214_s10  ;;  %v4292_v63 = vadd.f32 %v1141_v19, %v1135_v7  ;;  %v4295_v40 = vmul.f32 %v1159_v2, %v6822_v53  ;;  %v6833_v2 = vld [vmem:[#allocation29_spill] sm:$0xff]  ;;  %s4361_s29 = sld [smem:[#allocation7 + $0x7d]] }
  0xae   :  { %6821 = vst [vmem:[#allocation55_spill] sm:$0xff] %v4266_v4  ;;  %v1168_v0 = vstv %s4216_s11  ;;  %v1171_v17 = vstv %s4228_s0  ;;  %v4301_v60 = vadd.f32 %v1142_v55, %v1136_v24  ;;  %v1163_v49 = vmul.f32 %v1162_v42, %v6823_v14  ;;  %v6834_v55 = vld [vmem:[#allocation30_spill] sm:$0xff]  ;;  %v6837_v37 = vld [vmem:[#allocation33_spill] sm:$0xff]  ;;  %s4365_s30 = sld [smem:[#allocation7 + $0x91]] }
  0xaf   :  { %v1164_v41 = vmul.f32 %v1162_v42, %v6824_v61  ;;  %v1174_v12 = vstv %s4230_s13  ;;  %v1166_v35 = vmul.f32 %v1165_v21, %v6825_v13  ;;  %v1167_v39 = vmul.f32 %v1165_v21, %v6826_v44  ;;  %v6835_v21 = vld [vmem:[#allocation31_spill] sm:$0xff]  ;;  %v6846_v44 = vld [vmem:[#allocation40_spill] sm:$0xff]  ;;  %s4367_s8 = sld [smem:[#allocation7 + $0xa5]] }
  0xb0   :  { %v1177_v31 = vstv %s4238_s14  ;;  %v1180_v33 = vstv %s4252_s15  ;;  %v1169_v43 = vmul.f32 %v1168_v0, %v6827_v9  ;;  %v1170_v8 = vmul.f32 %v1168_v0, %v6828_v50  ;;  %v6836_v0 = vld [vmem:[#allocation32_spill] sm:$0xff]  ;;  %s4381_s9 = sld [smem:[#allocation7 + $0xb9]] }
  0xb1   :  { %v1172_v56 = vmul.f32 %v1171_v17, %v6829_v51  ;;  %v1173_v47 = vmul.f32 %v1171_v17, %v6830_v18  ;;  %v1175_v5 = vmul.f32 %v1174_v12, %v6831_v20  ;;  %v1176_v7 = vmul.f32 %v1174_v12, %v6832_v6  ;;  %v6843_v51 = vld [vmem:[#allocation39_spill] sm:$0xff]  ;;  %v6848_v61 = vld [vmem:[#allocation44_spill] sm:$0xff]  ;;  %s4383_s10 = sld [smem:[#allocation7 + $0xcd]] }
  0xb2   :  { %v1183_v19 = vstv %s4254_s4  ;;  %v1186_v45 = vstv %s4256_s16  ;;  %v1178_v24 = vmul.f32 %v1177_v31, %v6833_v2  ;;  %v1179_v42 = vmul.f32 %v1177_v31, %v6834_v55  ;;  %v6840_v31 = vld [vmem:[#allocation36_spill] sm:$0xff]  ;;  %v6841_v55 = vld [vmem:[#allocation37_spill] sm:$0xff]  ;;  %s4387_s11 = sld [smem:[#allocation7 + $0xe1]] }
  0xb3   :  { %v1181_v59 = vmul.f32 %v1180_v33, %v6835_v21  ;;  %v1189_v52 = vstv %s4262_s17  ;;  %v1182_v36 = vmul.f32 %v1180_v33, %v6836_v0  ;;  %v1192_v1 = vstv %s4270_s18  ;;  %v6842_v0 = vld [vmem:[#allocation38_spill] sm:$0xff]  ;;  %s4389_s0 = sld [smem:[#allocation7 + $0xf5]] }
  0xb4   :  { %v1195_v4 = vstv %s4274_s1  ;;  %v1198_v17 = vstv %s4278_s3  ;;  %v1184_v12 = vmul.f32 %v1183_v19, %v6837_v37  ;;  %v1185_v25 = vmul.f32 %v1183_v19, %v6838_v22  ;;  %v6844_v37 = vld [vmem:[#allocation41_spill] sm:$0xff]  ;;  %v6845_v19 = vld [vmem:[#allocation43_spill] sm:$0xff]  ;;  %s4400_s13 = sld [smem:[#allocation7 + $0x109]] }
  0xb5   :  { %v1187_v2 = vmul.f32 %v1186_v45, %v6839_v3  ;;  %v1201_v6 = vstv %s4284_s20  ;;  %v1188_v21 = vmul.f32 %v1186_v45, %v6840_v31  ;;  %v1190_v33 = vmul.f32 %v1189_v52, %v6841_v55  ;;  %v6847_v45 = vld [vmem:[#allocation42_spill] sm:$0xff]  ;;  %s4413_s14 = sld [smem:[#allocation7 + $0x131]] }
  0xb6   :  { %v1191_v20 = vmul.f32 %v1189_v52, %v6842_v0  ;;  %v1204_v18 = vstv %s4290_s21  ;;  %v1193_v50 = vmul.f32 %v1192_v1, %v6843_v51  ;;  %v1196_v9 = vmul.f32 %v1195_v4, %v6844_v37  ;;  %s4423_s15 = sld [smem:[#allocation7 + $0x145]] }
  0xb7   :  { %v1199_v22 = vmul.f32 %v1198_v17, %v6845_v19  ;;  %v1207_v3 = vstv %s4299_s22  ;;  %v1194_v13 = vmul.f32 %v1192_v1, %v6846_v44  ;;  %v1197_v31 = vmul.f32 %v1195_v4, %v6847_v45  ;;  %s4431_s4 = sld [smem:[#allocation7 + $0x159]] }
  0xb8   :  { %v1200_v55 = vmul.f32 %v1198_v17, %v6848_v61  ;;  %v1202_v52 = vmul.f32 %v1201_v6, %v6810_v62  ;;  %v1205_v0 = vmul.f32 %v1204_v18, %v6812_v30  ;;  %v1210_v51 = vstv %s4310_s5  ;;  %s4438_s16 = sld [smem:[#allocation7 + $0x16d]] }
  0xb9   :  { %v1213_v14 = vadd.f32 %v1157_v46, %v1154_v26  ;;  %v1214_v37 = vadd.f32 %v1158_v11, %v1155_v58  ;;  %v1208_v19 = vmul.f32 %v1207_v3, %v6814_v38  ;;  %v1215_v53 = vadd.f32 %v1163_v49, %v1160_v48  ;;  %s4448_s17 = sld [smem:[#allocation7 + $0x181]] }
  0xba   :  { %v1217_v28 = vadd.f32 %v1169_v43, %v1166_v35  ;;  %v1219_v1 = vadd.f32 %v1175_v5, %v1172_v56  ;;  %v1221_v4 = vadd.f32 %v1181_v59, %v1178_v24  ;;  %v1223_v17 = vadd.f32 %v1187_v2, %v1184_v12  ;;  %s4470_s18 = sld [smem:[#allocation7 + $0x6]] }
  0xbb   :  { %v1225_v62 = vadd.f32 %v1193_v50, %v1190_v33  ;;  %v1227_v61 = vadd.f32 %v1199_v22, %v1196_v9  ;;  %v1211_v26 = vmul.f32 %v1210_v51, %v6776_v57  ;;  %v1216_v58 = vadd.f32 %v1164_v41, %v4295_v40  ;;  %s4476_s1 = sld [smem:[#allocation7 + $0x1a]] }
  0xbc   :  { %v1218_v46 = vadd.f32 %v1170_v8, %v1167_v39  ;;  %v1220_v11 = vadd.f32 %v1176_v7, %v1173_v47  ;;  %v1222_v48 = vadd.f32 %v1182_v36, %v1179_v42  ;;  %v1224_v49 = vadd.f32 %v1188_v21, %v1185_v25  ;;  %s4482_s3 = sld [smem:[#allocation8 + $0x4]] }
  0xbd   :  { %v1226_v35 = vadd.f32 %v1194_v13, %v1191_v20  ;;  %v1228_v43 = vadd.f32 %v1200_v55, %v1197_v31  ;;  %v6849_v59 = vstv %s4232_s2  ;;  %v1203_v40 = vmul.f32 %v1201_v6, %v6811_v54  ;;  %s4404_s2 = sld [smem:[#allocation7 + $0x11d]] }
  0xbe   :  { %v4372_v50 = vadd.f32 %v6849_v59, %v4292_v63  ;;  %v6850_v22 = vmov %v6849_v59  ;;  %v1206_v41 = vmul.f32 %v1204_v18, %v6813_v29  ;;  %v1233_v25 = vadd.f32 %v1215_v53, %v1213_v14  ;;  %s4488_s20 = sld [smem:[#allocation7 + $0x2e]] }
  0xbf   :  { %v4377_v9 = vadd.f32 %v6850_v22, %v4301_v60  ;;  %v1235_v36 = vadd.f32 %v1219_v1, %v1217_v28  ;;  %v1237_v13 = vadd.f32 %v1223_v17, %v1221_v4  ;;  %v1239_v39 = vadd.f32 %v1227_v61, %v1225_v62  ;;  %v6854_v4 = vld [vmem:[#allocation17_spill] sm:$0xff]  ;;  %s4494_s21 = sld [smem:[#allocation7 + $0x42]] }
  0xc0   :  { %v1209_v63 = vmul.f32 %v1207_v3, %v3773_v15  ;;  %v1212_v60 = vmul.f32 %v1210_v51, %v3787_v23  ;;  %v1229_v8 = vadd.f32 %v1205_v0, %v1202_v52  ;;  %v1231_v56 = vadd.f32 %v1211_v26, %v1208_v19  ;;  %v6858_v22 = vld [vmem:[#allocation21_spill] sm:$0xff]  ;;  %v6869_v3 = vld [vmem:[#allocation32_spill] sm:$0xff]  ;;  %s4500_s22 = sld [smem:[#allocation7 + $0x56]] }
  0xc1   :  { %v1234_v18 = vadd.f32 %v1216_v58, %v1214_v37  ;;  %v1236_v47 = vadd.f32 %v1220_v11, %v1218_v46  ;;  %v1238_v20 = vadd.f32 %v1224_v49, %v1222_v48  ;;  %v1240_v28 = vadd.f32 %v1228_v43, %v1226_v35  ;;  %v6855_v46 = vld [vmem:[#allocation18_spill] sm:$0xff]  ;;  %v6856_v48 = vld [vmem:[#allocation19_spill] sm:$0xff]  ;;  %v6857_v35 = vld [vmem:[#allocation20_spill] sm:$0xff]  ;;  %s4506_s5 = sld [smem:[#allocation7 + $0x6a]] }
  0xc2   :  { %v6851_v62 = vmax.f32 %v4245_v10, 0.0  ;;  %v6852_v53 = vstv %s4222_s12  ;;  %v1261_v51 = vstv %s4328_s19  ;;  %v1243_v5 = vadd.f32 %v1235_v36, %v1233_v25  ;;  %v6868_v37 = vld [vmem:[#allocation31_spill] sm:$0xff]  ;;  %s4509_s19 = sld [smem:[#allocation7 + $0x7e]] }
  0xc3   :  { %v1245_v6 = vadd.f32 %v1239_v39, %v1237_v13  ;;  %v1264_v7 = vstv %s4334_s23  ;;  %v4406_v2 = vadd.f32 %v1206_v41, %v1203_v40  ;;  %v4408_v10 = vadd.f32 %v1212_v60, %v1209_v63  ;;  %v6859_v41 = vld [vmem:[#allocation22_spill] sm:$0xff]  ;;  %v6860_v39 = vld [vmem:[#allocation23_spill] sm:$0xff]  ;;  %v6861_v60 = vld [vmem:[#allocation24_spill] sm:$0xff]  ;;  %s4511_s23 = sld [smem:[#allocation7 + $0x92]] }
  0xc4   :  { %v4395_v14 = vmul.f32 %v6852_v53, %v6851_v62  ;;  %v4410_v24 = vadd.f32 %v1231_v56, %v1229_v8  ;;  %v1267_v55 = vstv %s4340_s24  ;;  %v4415_v42 = vadd.f32 %v1236_v47, %v1234_v18  ;;  %v6862_v56 = vld [vmem:[#allocation25_spill] sm:$0xff]  ;;  %v6864_v62 = vld [vmem:[#allocation27_spill] sm:$0xff]  ;;  %s4516_s24 = sld [smem:[#allocation7 + $0xa6]] }
  0xc5   :  { %v4417_v21 = vadd.f32 %v1240_v28, %v1238_v20  ;;  %v4420_v0 = vmul.f32 %v1261_v51, %v3576_v34  ;;  %v1270_v12 = vstv %s4346_s25  ;;  %v4426_v31 = vmul.f32 %v1261_v51, %v6779_v27  ;;  %v6863_v20 = vld [vmem:[#allocation26_spill] sm:$0xff]  ;;  %v6865_v51 = vld [vmem:[#allocation28_spill] sm:$0xff]  ;;  %s4518_s25 = sld [smem:[#allocation7 + $0xba]] }
  0xc6   :  { %6853 = vst [vmem:[#allocation56_spill] sm:$0xff] %v4395_v14  ;;  %v1265_v33 = vmul.f32 %v1264_v7, %v6780_v16  ;;  %v1266_v19 = vmul.f32 %v1264_v7, %v6781_v32  ;;  %v1273_v52 = vstv %s4352_s26  ;;  %v4433_v1 = vadd.f32 %v1245_v6, %v1243_v5  ;;  %v6866_v7 = vld [vmem:[#allocation29_spill] sm:$0xff]  ;;  %s4527_s26 = sld [smem:[#allocation7 + $0xce]] }
  0xc7   :  { %v1268_v17 = vmul.f32 %v1267_v55, %v6854_v4  ;;  %v1276_v26 = vstv %s4359_s28  ;;  %v1279_v58 = vstv %s4361_s29  ;;  %v4441_v11 = vmul.f32 %v1267_v55, %v6855_v46  ;;  %s4529_s28 = sld [smem:[#allocation7 + $0xe2]] }
  0xc8   :  { %v1271_v49 = vmul.f32 %v1270_v12, %v6856_v48  ;;  %v4445_v43 = vmul.f32 %v1270_v12, %v6857_v35  ;;  %v1282_v59 = vstv %s4365_s30  ;;  %v1274_v40 = vmul.f32 %v1273_v52, %v6858_v22  ;;  %v6867_v12 = vld [vmem:[#allocation30_spill] sm:$0xff]  ;;  %v6876_v35 = vld [vmem:[#allocation39_spill] sm:$0xff]  ;;  %s4531_s29 = sld [smem:[#allocation7 + $0xf6]] }
  0xc9   :  { %v1275_v25 = vmul.f32 %v1273_v52, %v6859_v41  ;;  %v1285_v36 = vstv %s4367_s8  ;;  %v1288_v13 = vstv %s4381_s9  ;;  %v1277_v63 = vmul.f32 %v1276_v26, %v6860_v39  ;;  %v6873_v39 = vld [vmem:[#allocation36_spill] sm:$0xff]  ;;  %s4533_s30 = sld [smem:[#allocation7 + $0x10a]] }
  0xca   :  { %v1278_v8 = vmul.f32 %v1276_v26, %v6861_v60  ;;  %v1280_v18 = vmul.f32 %v1279_v58, %v6862_v56  ;;  %v1291_v47 = vstv %s4383_s10  ;;  %v1281_v28 = vmul.f32 %v1279_v58, %v6863_v20  ;;  %v6870_v56 = vld [vmem:[#allocation33_spill] sm:$0xff]  ;;  %s4554_s8 = sld [smem:[#allocation7 + $0x11e]] }
  0xcb   :  { %v1283_v53 = vmul.f32 %v1282_v59, %v6864_v62  ;;  %v1284_v5 = vmul.f32 %v1282_v59, %v6865_v51  ;;  %v1294_v6 = vstv %s4387_s11  ;;  %v1286_v55 = vmul.f32 %v1285_v36, %v6866_v7  ;;  %v6871_v59 = vld [vmem:[#allocation34_spill] sm:$0xff]  ;;  %v6872_v62 = vld [vmem:[#allocation35_spill] sm:$0xff]  ;;  %s4578_s9 = sld [smem:[#allocation7 + $0x15a]] }
  0xcc   :  { %v1287_v52 = vmul.f32 %v1285_v36, %v6867_v12  ;;  %v1289_v61 = vmul.f32 %v1288_v13, %v6868_v37  ;;  %v1297_v26 = vstv %s4389_s0  ;;  %v1290_v14 = vmul.f32 %v1288_v13, %v6869_v3  ;;  %v6874_v37 = vld [vmem:[#allocation37_spill] sm:$0xff]  ;;  %v6875_v13 = vld [vmem:[#allocation38_spill] sm:$0xff]  ;;  %s4593_s10 = sld [smem:[#allocation7 + $0x16e]] }
  0xcd   :  { %v1292_v60 = vmul.f32 %v1291_v47, %v6870_v56  ;;  %v1300_v58 = vstv %s4400_s13  ;;  %v1303_v20 = vstv %s4404_s2  ;;  %v1293_v51 = vmul.f32 %v1291_v47, %v6871_v59  ;;  %v6877_v59 = vld [vmem:[#allocation41_spill] sm:$0xff]  ;;  %s4599_s11 = sld [smem:[#allocation7 + $0x182]] }
  0xce   :  { %v1295_v7 = vmul.f32 %v1294_v6, %v6872_v62  ;;  %v1296_v41 = vmul.f32 %v1294_v6, %v6873_v39  ;;  %v1306_v36 = vstv %s4413_s14  ;;  %v1298_v12 = vmul.f32 %v1297_v26, %v6874_v37  ;;  %v6878_v39 = vld [vmem:[#allocation43_spill] sm:$0xff]  ;;  %v6879_v37 = vld [vmem:[#allocation44_spill] sm:$0xff]  ;;  %s4617_s0 = sld [smem:[#allocation7 + $0x7]] }
  0xcf   :  { %v1299_v3 = vmul.f32 %v1297_v26, %v6875_v13  ;;  %v1309_v56 = vstv %s4423_s15  ;;  %v1312_v22 = vstv %s4431_s4  ;;  %v1301_v48 = vmul.f32 %v1300_v58, %v6876_v35  ;;  %v6880_v13 = vld [vmem:[#allocation45_spill] sm:$0xff]  ;;  %s4623_s13 = sld [smem:[#allocation7 + $0x1b]] }
  0xd0   :  { %v1302_v47 = vmul.f32 %v1300_v58, %v6846_v44  ;;  %v1304_v62 = vmul.f32 %v1303_v20, %v6877_v59  ;;  %v1315_v46 = vstv %s4438_s16  ;;  %v1305_v6 = vmul.f32 %v1303_v20, %v6847_v45  ;;  %s4629_s2 = sld [smem:[#allocation7 + $0x2f]] }
  0xd1   :  { %v1307_v4 = vmul.f32 %v1306_v36, %v6878_v39  ;;  %v1308_v32 = vmul.f32 %v1306_v36, %v6879_v37  ;;  %v1318_v26 = vstv %s4448_s17  ;;  %v1310_v16 = vmul.f32 %v1309_v56, %v6880_v13  ;;  %s4635_s14 = sld [smem:[#allocation7 + $0x43]] }
  0xd2   :  { %v1311_v35 = vmul.f32 %v1309_v56, %v6811_v54  ;;  %v1313_v58 = vmul.f32 %v1312_v22, %v6812_v30  ;;  %v1314_v59 = vmul.f32 %v1312_v22, %v6813_v29  ;;  %v1316_v44 = vmul.f32 %v1315_v46, %v6814_v38  ;;  %s4641_s15 = sld [smem:[#allocation8 + $0x5]] }
  0xd3   :  { %v1317_v20 = vmul.f32 %v1315_v46, %v3773_v15  ;;  %v1321_v39 = vadd.f32 %v1265_v33, %v4420_v0  ;;  %v1322_v36 = vadd.f32 %v1266_v19, %v4426_v31  ;;  %v1319_v13 = vmul.f32 %v1318_v26, %v6776_v57  ;;  %s4645_s4 = sld [smem:[#allocation10 + $0x4]] }
  0xd4   :  { %v1323_v37 = vadd.f32 %v1271_v49, %v1268_v17  ;;  %v1325_v56 = vadd.f32 %v1277_v63, %v1274_v40  ;;  %v1327_v54 = vadd.f32 %v1283_v53, %v1280_v18  ;;  %v1329_v22 = vadd.f32 %v1289_v61, %v1286_v55  ;;  %s4647_s16 = sld [smem:[#allocation7 + $0x57]] }
  0xd5   :  { %v1331_v29 = vadd.f32 %v1295_v7, %v1292_v60  ;;  %v1333_v30 = vadd.f32 %v1301_v48, %v1298_v12  ;;  %v1335_v38 = vadd.f32 %v1307_v4, %v1304_v62  ;;  %v1320_v0 = vmul.f32 %v1318_v26, %v3787_v23  ;;  %s4649_s17 = sld [smem:[#allocation7 + $0x6b]] }
  0xd6   :  { %v1324_v31 = vadd.f32 %v4445_v43, %v4441_v11  ;;  %v1326_v33 = vadd.f32 %v1278_v8, %v1275_v25  ;;  %v1328_v19 = vadd.f32 %v1284_v5, %v1281_v28  ;;  %v1330_v17 = vadd.f32 %v1290_v14, %v1287_v52 }
  0xd7   :  { %v1332_v46 = vadd.f32 %v1296_v41, %v1293_v51  ;;  %v1334_v49 = vadd.f32 %v1302_v47, %v1299_v3  ;;  %v1336_v40 = vadd.f32 %v1308_v32, %v1305_v6  ;;  %v1242_v61 = vadd.f32 %v4408_v10, %v4406_v2  ;;  %v6892_v47 = vld [vmem:[#allocation16_spill] sm:$0xff] }
  0xd8   :  { %v1248_v4 = vadd.f32 %v4417_v21, %v4415_v42  ;;  %v1249_v48 = vadd.f32 %v4433_v1, %v4410_v24  ;;  %v6644_v11 = vstv %s4482_s3  ;;  %v1341_v43 = vadd.f32 %v1323_v37, %v1321_v39 }
  0xd9   :  { %v1343_v14 = vadd.f32 %v1327_v54, %v1325_v56  ;;  %v1345_v32 = vadd.f32 %v1331_v29, %v1329_v22  ;;  %v1347_v3 = vadd.f32 %v1335_v38, %v1333_v30  ;;  %v1337_v2 = vadd.f32 %v1313_v58, %v1310_v16  ;;  %v6881_v54 = vld [vmem:[#allocation14_spill] sm:$0xff] }
  0xda   :  { %v1338_v10 = vadd.f32 %v1314_v59, %v1311_v35  ;;  %v1339_v41 = vadd.f32 %v1319_v13, %v1316_v44  ;;  %v1340_v42 = vadd.f32 %v1320_v0, %v1317_v20  ;;  %v1342_v24 = vadd.f32 %v1324_v31, %v1322_v36  ;;  %v6891_v59 = vld [vmem:[#allocation15_spill] sm:$0xff]  ;;  %v6893_v20 = vld [vmem:[#allocation17_spill] sm:$0xff]  ;;  %v6894_v0 = vld [vmem:[#allocation18_spill] sm:$0xff] }
  0xdb   :  { %v1344_v21 = vadd.f32 %v1328_v19, %v1326_v33  ;;  %v1346_v1 = vadd.f32 %v1332_v46, %v1330_v17  ;;  %v1348_v37 = vadd.f32 %v1336_v40, %v1334_v49  ;;  %v6882_v29 = vmax.f32 %v6881_v54, 0.0  ;;  %v6895_v33 = vld [vmem:[#allocation19_spill] sm:$0xff]  ;;  %v6896_v49 = vld [vmem:[#allocation20_spill] sm:$0xff] }
  0xdc   :  { %v6883_v30 = vstv %s4222_s12  ;;  %v6885_v16 = vmax.f32 %v4372_v50, 0.0  ;;  %v6886_v44 = vstv %s4356_s27  ;;  %v6888_v25 = vmax.f32 %v4377_v9, 0.0  ;;  %s4559_s12 = sld [smem:[#allocation7 + $0x132]] }
  0xdd   :  { %v4539_v38 = vmul.f32 %v6883_v30, %v6882_v29  ;;  %v6889_v39 = vmov %v6886_v44  ;;  %v1369_v60 = vstv %s4470_s18  ;;  %v4556_v8 = vadd.f32 %v1248_v4, %v1242_v61  ;;  %s4570_s27 = sld [smem:[#allocation7 + $0x146]]  ;;  %v6897_v61 = vld [vmem:[#allocation21_spill] sm:$0xff]  ;;  %v6904_v29 = vld [vmem:[#allocation28_spill] sm:$0xff] }
  0xde   :  { %v4545_v35 = vmul.f32 %v6886_v44, %v6885_v16  ;;  %v4551_v63 = vmul.f32 %v6889_v39, %v6888_v25  ;;  %v1351_v18 = vadd.f32 %v1343_v14, %v1341_v43  ;;  %v1353_v28 = vadd.f32 %v1347_v3, %v1345_v32  ;;  %v6899_v32 = vld [vmem:[#allocation23_spill] sm:$0xff]  ;;  %v6905_v16 = vld [vmem:[#allocation29_spill] sm:$0xff]  ;;  %v6906_v25 = vld [vmem:[#allocation30_spill] sm:$0xff]  ;;  %s4651_s18 = sld [smem:[#allocation7 + $0x7f]] }
  0xdf   :  { %6884 = vst [vmem:[#allocation14_spill] sm:$0xff] %v4539_v38  ;;  %v1372_v62 = vstv %s4476_s1  ;;  %v4563_v50 = vadd.f32 %v6644_v11, %v1249_v48  ;;  %v4565_v9 = vadd.f32 %v1339_v41, %v1337_v2  ;;  %v4567_v53 = vadd.f32 %v1340_v42, %v1338_v10  ;;  %v6898_v48 = vld [vmem:[#allocation22_spill] sm:$0xff]  ;;  %v6900_v2 = vld [vmem:[#allocation24_spill] sm:$0xff]  ;;  %v6901_v41 = vld [vmem:[#allocation25_spill] sm:$0xff]  ;;  %s4655_s1 = sld [smem:[#allocation7 + $0x93]] }
  0xe0   :  { %6887 = vst [vmem:[#allocation57_spill] sm:$0xff] %v4545_v35  ;;  %v1375_v51 = vstv %s4488_s20  ;;  %v4572_v5 = vadd.f32 %v1344_v21, %v1342_v24  ;;  %v4574_v7 = vadd.f32 %v1348_v37, %v1346_v1  ;;  %v1370_v55 = vmul.f32 %v1369_v60, %v3576_v34  ;;  %v6902_v21 = vld [vmem:[#allocation26_spill] sm:$0xff]  ;;  %v6903_v37 = vld [vmem:[#allocation27_spill] sm:$0xff]  ;;  %s4661_s20 = sld [smem:[#allocation7 + $0xa7]] }
  0xe1   :  { %6890 = vst [vmem:[#allocation58_spill] sm:$0xff] %v4551_v63  ;;  %v1378_v12 = vstv %s4494_s21  ;;  %v1371_v52 = vmul.f32 %v1369_v60, %v6779_v27  ;;  %v1373_v13 = vmul.f32 %v1372_v62, %v6891_v59  ;;  %v1374_v6 = vmul.f32 %v1372_v62, %v6892_v47  ;;  %v6907_v60 = vld [vmem:[#allocation31_spill] sm:$0xff]  ;;  %v6910_v11 = vld [vmem:[#allocation34_spill] sm:$0xff]  ;;  %s4663_s21 = sld [smem:[#allocation7 + $0xbb]] }
  0xe2   :  { %v1381_v26 = vstv %s4500_s22  ;;  %v4584_v58 = vadd.f32 %v1353_v28, %v1351_v18  ;;  %v1376_v36 = vmul.f32 %v1375_v51, %v6893_v20  ;;  %v1384_v56 = vstv %s4506_s5  ;;  %s4665_s22 = sld [smem:[#allocation7 + $0xcf]] }
  0xe3   :  { %v1387_v22 = vstv %s4509_s19  ;;  %v1377_v31 = vmul.f32 %v1375_v51, %v6894_v0  ;;  %v1379_v19 = vmul.f32 %v1378_v12, %v6895_v33  ;;  %v1390_v17 = vstv %s4511_s23  ;;  %v6908_v51 = vld [vmem:[#allocation32_spill] sm:$0xff]  ;;  %v6921_v33 = vld [vmem:[#allocation47_spill] sm:$0xff]  ;;  %s4671_s5 = sld [smem:[#allocation7 + $0xe3]] }
  0xe4   :  { %v1393_v46 = vstv %s4516_s24  ;;  %v1380_v40 = vmul.f32 %v1378_v12, %v6896_v49  ;;  %v1382_v4 = vmul.f32 %v1381_v26, %v6897_v61  ;;  %v1383_v43 = vmul.f32 %v1381_v26, %v6898_v48  ;;  %v6909_v26 = vld [vmem:[#allocation33_spill] sm:$0xff]  ;;  %v6919_v49 = vld [vmem:[#allocation44_spill] sm:$0xff]  ;;  %s4675_s19 = sld [smem:[#allocation7 + $0xf7]] }
  0xe5   :  { %v1396_v14 = vstv %s4518_s25  ;;  %v1385_v3 = vmul.f32 %v1384_v56, %v6899_v32  ;;  %v1386_v10 = vmul.f32 %v1384_v56, %v6900_v2  ;;  %v1388_v42 = vmul.f32 %v1387_v22, %v6901_v41  ;;  %v6917_v2 = vld [vmem:[#allocation41_spill] sm:$0xff]  ;;  %s4683_s23 = sld [smem:[#allocation7 + $0x10b]] }
  0xe6   :  { %v1399_v24 = vstv %s4527_s26  ;;  %v1389_v1 = vmul.f32 %v1387_v22, %v6902_v21  ;;  %v1391_v54 = vmul.f32 %v1390_v17, %v6903_v37  ;;  %v1392_v30 = vmul.f32 %v1390_v17, %v6904_v29  ;;  %v6916_v21 = vld [vmem:[#allocation40_spill] sm:$0xff]  ;;  %s4687_s24 = sld [smem:[#allocation7 + $0x11f]] }
  0xe7   :  { %v1394_v44 = vmul.f32 %v1393_v46, %v6905_v16  ;;  %v1395_v39 = vmul.f32 %v1393_v46, %v6906_v25  ;;  %v1397_v18 = vmul.f32 %v1396_v14, %v6907_v60  ;;  %v1402_v28 = vstv %s4529_s28  ;;  %v6911_v46 = vld [vmem:[#allocation35_spill] sm:$0xff]  ;;  %v6912_v25 = vld [vmem:[#allocation36_spill] sm:$0xff]  ;;  %s4710_s25 = sld [smem:[#allocation7 + $0x147]] }
  0xe8   :  { %v1405_v62 = vstv %s4531_s29  ;;  %v1398_v12 = vmul.f32 %v1396_v14, %v6908_v51  ;;  %v1400_v56 = vmul.f32 %v1399_v24, %v6909_v26  ;;  %v1401_v63 = vmul.f32 %v1399_v24, %v6910_v11  ;;  %v6913_v14 = vld [vmem:[#allocation37_spill] sm:$0xff]  ;;  %v6914_v26 = vld [vmem:[#allocation38_spill] sm:$0xff]  ;;  %v6915_v24 = vld [vmem:[#allocation39_spill] sm:$0xff]  ;;  %s4717_s26 = sld [smem:[#allocation7 + $0x15b]] }
  0xe9   :  { %v1408_v22 = vstv %s4533_s30  ;;  %v1411_v35 = vstv %s4554_s8  ;;  %v1414_v38 = vstv %s4559_s12  ;;  %v1417_v17 = vstv %s4570_s27  ;;  %s4728_s28 = sld [smem:[#allocation7 + $0x16f]] }
  0xea   :  { %v1420_v29 = vstv %s4578_s9  ;;  %v1403_v60 = vmul.f32 %v1402_v28, %v6911_v46  ;;  %v1404_v16 = vmul.f32 %v1402_v28, %v6912_v25  ;;  %v1406_v51 = vmul.f32 %v1405_v62, %v6913_v14  ;;  %v6918_v46 = vld [vmem:[#allocation43_spill] sm:$0xff]  ;;  %v6920_v25 = vld [vmem:[#allocation45_spill] sm:$0xff]  ;;  %s4734_s29 = sld [smem:[#allocation7 + $0x183]] }
  0xeb   :  { %v1407_v37 = vmul.f32 %v1405_v62, %v6914_v26  ;;  %v1409_v11 = vmul.f32 %v1408_v22, %v6915_v24  ;;  %v1410_v41 = vmul.f32 %v1408_v22, %v6916_v21  ;;  %v1412_v32 = vmul.f32 %v1411_v35, %v6917_v2  ;;  %s4752_s30 = sld [smem:[#allocation7 + $0x8]] }
  0xec   :  { %v1413_v48 = vmul.f32 %v1411_v35, %v6847_v45  ;;  %v1415_v61 = vmul.f32 %v1414_v38, %v6918_v46  ;;  %v1416_v28 = vmul.f32 %v1414_v38, %v6919_v49  ;;  %v1418_v14 = vmul.f32 %v1417_v17, %v6920_v25  ;;  %s4758_s8 = sld [smem:[#allocation7 + $0x1c]] }
  0xed   :  { %v1421_v62 = vmul.f32 %v1420_v29, %v6921_v33  ;;  %v1423_v26 = vstv %s4593_s10  ;;  %v1426_v24 = vstv %s4599_s11  ;;  %v1429_v0 = vadd.f32 %v1373_v13, %v1370_v55  ;;  %v6922_v55 = vld [vmem:[#allocation49_spill] sm:$0xff]  ;;  %s4764_s12 = sld [smem:[#allocation7 + $0x30]] }
  0xee   :  { %v1430_v22 = vadd.f32 %v1374_v6, %v1371_v52  ;;  %v1431_v2 = vadd.f32 %v1379_v19, %v1376_v36  ;;  %v1432_v35 = vadd.f32 %v1380_v40, %v1377_v31  ;;  %v1433_v45 = vadd.f32 %v1385_v3, %v1382_v4  ;;  %v6923_v31 = vld [vmem:[#allocation46_spill] sm:$0xff]  ;;  %v6924_v40 = vld [vmem:[#allocation48_spill] sm:$0xff]  ;;  %s4770_s27 = sld [smem:[#allocation7 + $0x44]] }
  0xef   :  { %v1434_v21 = vadd.f32 %v1386_v10, %v1383_v43  ;;  %v1435_v46 = vadd.f32 %v1391_v54, %v1388_v42  ;;  %v1436_v38 = vadd.f32 %v1392_v30, %v1389_v1  ;;  %v1437_v49 = vadd.f32 %v1397_v18, %v1394_v44  ;;  %s4776_s9 = sld [smem:[#allocation8 + $0x6]] }
  0xf0   :  { %v1438_v25 = vadd.f32 %v1398_v12, %v1395_v39  ;;  %v1439_v33 = vadd.f32 %v1403_v60, %v1400_v56  ;;  %v1440_v20 = vadd.f32 %v1404_v16, %v1401_v63  ;;  %v1441_v47 = vadd.f32 %v1409_v11, %v1406_v51  ;;  %v6926_v51 = vld [vmem:[#allocation15_spill] sm:$0xff]  ;;  %s4782_s10 = sld [smem:[#allocation7 + $0x58]] }
  0xf1   :  { %v1442_v59 = vadd.f32 %v1410_v41, %v1407_v37  ;;  %v1424_v52 = vmul.f32 %v1423_v26, %v6922_v55  ;;  %v1427_v13 = vmul.f32 %v1426_v24, %v6776_v57  ;;  %v1443_v6 = vadd.f32 %v1415_v61, %v1412_v32  ;;  %s4788_s11 = sld [smem:[#allocation7 + $0x6c]] }
  0xf2   :  { %v1444_v36 = vadd.f32 %v1416_v28, %v1413_v48  ;;  %v1419_v19 = vmul.f32 %v1417_v17, %v6923_v31  ;;  %v1422_v4 = vmul.f32 %v1420_v29, %v6924_v40  ;;  %v1425_v43 = vmul.f32 %v1423_v26, %v3773_v15  ;;  %v6927_v26 = vld [vmem:[#allocation16_spill] sm:$0xff] }
  0xf3   :  { %v1428_v63 = vmul.f32 %v1426_v24, %v3787_v23  ;;  %v1449_v11 = vadd.f32 %v1431_v2, %v1429_v0  ;;  %v1450_v3 = vadd.f32 %v1432_v35, %v1430_v22  ;;  %v1451_v10 = vadd.f32 %v1435_v46, %v1433_v45  ;;  %v6929_v22 = vld [vmem:[#allocation18_spill] sm:$0xff] }
  0xf4   :  { %v1453_v41 = vadd.f32 %v1439_v33, %v1437_v49  ;;  %v1452_v61 = vadd.f32 %v1436_v38, %v1434_v21  ;;  %v1454_v48 = vadd.f32 %v1440_v20, %v1438_v25  ;;  %v1455_v32 = vadd.f32 %v1443_v6, %v1441_v47  ;;  %v6930_v38 = vld [vmem:[#allocation19_spill] sm:$0xff]  ;;  %v6945_v33 = vld [vmem:[#allocation34_spill] sm:$0xff] }
  0xf5   :  { %v1456_v42 = vadd.f32 %v1444_v36, %v1442_v59  ;;  %v1356_v1 = vadd.f32 %v4574_v7, %v4572_v5  ;;  %v1357_v0 = vadd.f32 %v4584_v58, %v4565_v9  ;;  %v1445_v2 = vadd.f32 %v1421_v62, %v1418_v14  ;;  %v6928_v14 = vld [vmem:[#allocation17_spill] sm:$0xff] }
  0xf6   :  { %v1447_v45 = vadd.f32 %v1427_v13, %v1424_v52  ;;  %v6646_v49 = vstv %s4641_s15  ;;  %v1446_v20 = vadd.f32 %v1422_v4, %v1419_v19  ;;  %v1448_v47 = vadd.f32 %v1428_v63, %v1425_v43  ;;  %v6931_v13 = vld [vmem:[#allocation20_spill] sm:$0xff]  ;;  %v6932_v19 = vld [vmem:[#allocation21_spill] sm:$0xff]  ;;  %v6933_v43 = vld [vmem:[#allocation22_spill] sm:$0xff] }
  0xf7   :  { %v6925_v59 = vstv %s4482_s3  ;;  %v1459_v5 = vadd.f32 %v1451_v10, %v1449_v11  ;;  %v1461_v7 = vadd.f32 %v1455_v32, %v1453_v41  ;;  %v1477_v9 = vstv %s4617_s0  ;;  %s4699_s3 = sld [smem:[#allocation7 + $0x133]]  ;;  %v6934_v10 = vld [vmem:[#allocation23_spill] sm:$0xff]  ;;  %v6936_v32 = vld [vmem:[#allocation25_spill] sm:$0xff] }
  0xf8   :  { %v4680_v21 = vadd.f32 %v6925_v59, %v4556_v8  ;;  %v1460_v37 = vadd.f32 %v1452_v61, %v1450_v3  ;;  %v1462_v54 = vadd.f32 %v1456_v42, %v1454_v48  ;;  %v1480_v29 = vstv %s4623_s13  ;;  %v6935_v61 = vld [vmem:[#allocation24_spill] sm:$0xff]  ;;  %s4790_s0 = sld [smem:[#allocation10 + $0x5]] }
  0xf9   :  { %v4690_v30 = vadd.f32 %v1356_v1, %v4567_v53  ;;  %v4694_v8 = vadd.f32 %v6646_v49, %v1357_v0  ;;  %v4696_v16 = vadd.f32 %v1447_v45, %v1445_v2  ;;  %v1483_v44 = vstv %s4629_s2  ;;  %v6937_v1 = vld [vmem:[#allocation26_spill] sm:$0xff]  ;;  %v6938_v2 = vld [vmem:[#allocation27_spill] sm:$0xff]  ;;  %s4792_s13 = sld [smem:[#allocation10 + $0x6]] }
  0xfa   :  { %v4701_v25 = vadd.f32 %v1448_v47, %v1446_v20  ;;  %v4704_v39 = vmul.f32 %v1477_v9, %v3576_v34  ;;  %v4707_v60 = vmul.f32 %v1477_v9, %v6779_v27  ;;  %v1486_v53 = vstv %s4635_s14  ;;  %v6939_v20 = vld [vmem:[#allocation28_spill] sm:$0xff]  ;;  %s4794_s2 = sld [smem:[#allocation7 + $0x80]] }
  0xfb   :  { %v4712_v18 = vadd.f32 %v1461_v7, %v1459_v5  ;;  %v1481_v12 = vmul.f32 %v1480_v29, %v6926_v51  ;;  %v1482_v56 = vmul.f32 %v1480_v29, %v6927_v26  ;;  %v1489_v17 = vstv %s4647_s16  ;;  %v6940_v7 = vld [vmem:[#allocation29_spill] sm:$0xff]  ;;  %v6942_v29 = vld [vmem:[#allocation31_spill] sm:$0xff]  ;;  %s4798_s14 = sld [smem:[#allocation7 + $0x94]] }
  0xfc   :  { %v4719_v46 = vadd.f32 %v1462_v54, %v1460_v37  ;;  %v1484_v24 = vmul.f32 %v1483_v44, %v6928_v14  ;;  %v1492_v28 = vstv %s4649_s17  ;;  %v1495_v62 = vstv %s4651_s18  ;;  %v6941_v37 = vld [vmem:[#allocation30_spill] sm:$0xff]  ;;  %v6957_v26 = vld [vmem:[#allocation47_spill] sm:$0xff]  ;;  %s4807_s16 = sld [smem:[#allocation8 + $0x7]] }
  0xfd   :  { %v1485_v35 = vmul.f32 %v1483_v44, %v6929_v22  ;;  %v1487_v52 = vmul.f32 %v1486_v53, %v6930_v38  ;;  %v1488_v6 = vmul.f32 %v1486_v53, %v6931_v13  ;;  %v1498_v36 = vstv %s4655_s1  ;;  %v6943_v53 = vld [vmem:[#allocation32_spill] sm:$0xff]  ;;  %v6956_v38 = vld [vmem:[#allocation45_spill] sm:$0xff]  ;;  %s4809_s17 = sld [smem:[#allocation7 + $0xa8]] }
  0xfe   :  { %v1490_v4 = vmul.f32 %v1489_v17, %v6932_v19  ;;  %v1491_v63 = vmul.f32 %v1489_v17, %v6933_v43  ;;  %v1501_v11 = vstv %s4661_s20  ;;  %v1504_v3 = vstv %s4663_s21  ;;  %v6952_v43 = vld [vmem:[#allocation41_spill] sm:$0xff]  ;;  %v6955_v19 = vld [vmem:[#allocation44_spill] sm:$0xff]  ;;  %s4816_s18 = sld [smem:[#allocation7 + $0xd0]] }
  0xff   :  { %v1493_v41 = vmul.f32 %v1492_v28, %v6934_v10  ;;  %v1494_v48 = vmul.f32 %v1492_v28, %v6935_v61  ;;  %v1496_v42 = vmul.f32 %v1495_v62, %v6936_v32  ;;  %v1497_v0 = vmul.f32 %v1495_v62, %v6937_v1  ;;  %v6944_v28 = vld [vmem:[#allocation33_spill] sm:$0xff]  ;;  %v6947_v1 = vld [vmem:[#allocation36_spill] sm:$0xff]  ;;  %s4818_s1 = sld [smem:[#allocation7 + $0xe4]] }
 0x100   :  { %v1499_v45 = vmul.f32 %v1498_v36, %v6938_v2  ;;  %v1500_v47 = vmul.f32 %v1498_v36, %v6939_v20  ;;  %v1507_v59 = vstv %s4665_s22  ;;  %v1510_v5 = vstv %s4671_s5  ;;  %v6946_v20 = vld [vmem:[#allocation35_spill] sm:$0xff]  ;;  %v6948_v32 = vld [vmem:[#allocation37_spill] sm:$0xff]  ;;  %v6951_v10 = vld [vmem:[#allocation40_spill] sm:$0xff]  ;;  %s4830_s20 = sld [smem:[#allocation7 + $0xf8]] }
 0x101   :  { %v1502_v9 = vmul.f32 %v1501_v11, %v6940_v7  ;;  %v1503_v54 = vmul.f32 %v1501_v11, %v6941_v37  ;;  %v1505_v44 = vmul.f32 %v1504_v3, %v6942_v29  ;;  %v1506_v17 = vmul.f32 %v1504_v3, %v6943_v53  ;;  %v6949_v11 = vld [vmem:[#allocation38_spill] sm:$0xff]  ;;  %s4836_s21 = sld [smem:[#allocation7 + $0x10c]] }
 0x102   :  { %v1508_v62 = vmul.f32 %v1507_v59, %v6944_v28  ;;  %v1509_v58 = vmul.f32 %v1507_v59, %v6945_v33  ;;  %v1513_v49 = vstv %s4675_s19  ;;  %v1516_v36 = vstv %s4683_s23  ;;  %v6950_v33 = vld [vmem:[#allocation39_spill] sm:$0xff]  ;;  %s4841_s22 = sld [smem:[#allocation7 + $0x120]] }
 0x103   :  { %v1511_v2 = vmul.f32 %v1510_v5, %v6946_v20  ;;  %v1512_v7 = vmul.f32 %v1510_v5, %v6947_v1  ;;  %v1514_v61 = vmul.f32 %v1513_v49, %v6948_v32  ;;  %v1515_v37 = vmul.f32 %v1513_v49, %v6949_v11  ;;  %v6953_v1 = vld [vmem:[#allocation42_spill] sm:$0xff]  ;;  %v6954_v49 = vld [vmem:[#allocation43_spill] sm:$0xff]  ;;  %s4845_s5 = sld [smem:[#allocation7 + $0x134]] }
 0x104   :  { %v1519_v29 = vstv %s4687_s24  ;;  %v1522_v3 = vstv %s4699_s3  ;;  %v1525_v28 = vstv %s4710_s25  ;;  %v1528_v59 = vstv %s4717_s26  ;;  %s4851_s19 = sld [smem:[#allocation7 + $0x148]] }
 0x105   :  { %v1517_v53 = vmul.f32 %v1516_v36, %v6950_v33  ;;  %v1518_v20 = vmul.f32 %v1516_v36, %v6951_v10  ;;  %v1520_v5 = vmul.f32 %v1519_v29, %v6952_v43  ;;  %v1521_v32 = vmul.f32 %v1519_v29, %v6953_v1  ;;  %s4861_s23 = sld [smem:[#allocation7 + $0x15c]] }
 0x106   :  { %v1523_v11 = vmul.f32 %v1522_v3, %v6954_v49  ;;  %v1524_v13 = vmul.f32 %v1522_v3, %v6955_v19  ;;  %v1526_v22 = vmul.f32 %v1525_v28, %v6956_v38  ;;  %v1527_v14 = vmul.f32 %v1525_v28, %v6923_v31  ;;  %s4869_s24 = sld [smem:[#allocation7 + $0x170]] }
 0x107   :  { %v1529_v33 = vmul.f32 %v1528_v59, %v6957_v26  ;;  %v1530_v36 = vmul.f32 %v1528_v59, %v6924_v40  ;;  %v1531_v10 = vstv %s4728_s28  ;;  %v1534_v43 = vstv %s4734_s29  ;;  %s4875_s3 = sld [smem:[#allocation7 + $0x184]] }
 0x108   :  { %v1532_v29 = vmul.f32 %v1531_v10, %v6922_v55  ;;  %v1533_v49 = vmul.f32 %v1531_v10, %v3773_v15  ;;  %v1537_v3 = vadd.f32 %v1481_v12, %v4704_v39  ;;  %v1538_v38 = vadd.f32 %v1482_v56, %v4707_v60  ;;  %s4905_s25 = sld [smem:[#allocation7 + $0x9]] }
 0x109   :  { %v1539_v28 = vadd.f32 %v1487_v52, %v1484_v24  ;;  %v1540_v31 = vadd.f32 %v1488_v6, %v1485_v35  ;;  %v1541_v19 = vadd.f32 %v1493_v41, %v1490_v4  ;;  %v1542_v26 = vadd.f32 %v1494_v48, %v1491_v63  ;;  %s4911_s26 = sld [smem:[#allocation7 + $0x1d]] }
 0x10a   :  { %v1543_v59 = vadd.f32 %v1499_v45, %v1496_v42  ;;  %v1544_v40 = vadd.f32 %v1500_v47, %v1497_v0  ;;  %v1545_v1 = vadd.f32 %v1505_v44, %v1502_v9  ;;  %v1546_v51 = vadd.f32 %v1506_v17, %v1503_v54  ;;  %v6979_v17 = vld [vmem:[#allocation33_spill] sm:$0xff]  ;;  %s4915_s28 = sld [smem:[#allocation7 + $0x31]] }
 0x10b   :  { %v1547_v10 = vadd.f32 %v1511_v2, %v1508_v62  ;;  %v1548_v15 = vadd.f32 %v1512_v7, %v1509_v58  ;;  %v1549_v39 = vadd.f32 %v1517_v53, %v1514_v61  ;;  %v1550_v12 = vadd.f32 %v1518_v20, %v1515_v37  ;;  %v6978_v2 = vld [vmem:[#allocation32_spill] sm:$0xff]  ;;  %s4917_s29 = sld [smem:[#allocation7 + $0x45]] }
 0x10c   :  { %v1535_v60 = vmul.f32 %v1534_v43, %v6776_v57  ;;  %v1536_v56 = vmul.f32 %v1534_v43, %v3787_v23  ;;  %v1551_v24 = vadd.f32 %v1523_v11, %v1520_v5  ;;  %v1552_v35 = vadd.f32 %v1524_v13, %v1521_v32  ;;  %v6961_v5 = vld [vmem:[#allocation15_spill] sm:$0xff] }
 0x10d   :  { %v6958_v52 = vstv %s4641_s15  ;;  %v1465_v58 = vadd.f32 %v4712_v18, %v4696_v16  ;;  %v1557_v4 = vadd.f32 %v1539_v28, %v1537_v3  ;;  %v1558_v63 = vadd.f32 %v1540_v31, %v1538_v38  ;;  %s4814_s15 = sld [smem:[#allocation7 + $0xbc]] }
 0x10e   :  { %v4803_v6 = vadd.f32 %v6958_v52, %v4690_v30  ;;  %v1559_v41 = vadd.f32 %v1543_v59, %v1541_v19  ;;  %v1560_v61 = vadd.f32 %v1544_v40, %v1542_v26  ;;  %v1561_v48 = vadd.f32 %v1547_v10, %v1545_v1  ;;  %v6963_v59 = vld [vmem:[#allocation17_spill] sm:$0xff]  ;;  %v6981_v1 = vld [vmem:[#allocation35_spill] sm:$0xff] }
 0x10f   :  { %v1562_v42 = vadd.f32 %v1548_v15, %v1546_v51  ;;  %v1466_v13 = vadd.f32 %v4719_v46, %v4701_v25  ;;  %v1467_v43 = vstv %s4776_s9  ;;  %v1563_v30 = vadd.f32 %v1551_v24, %v1549_v39  ;;  %v6964_v39 = vld [vmem:[#allocation18_spill] sm:$0xff]  ;;  %s4933_s9 = sld [smem:[#allocation7 + $0x95]] }
 0x110   :  { %v1564_v32 = vadd.f32 %v1552_v35, %v1550_v12  ;;  %v1553_v16 = vadd.f32 %v1529_v33, %v1526_v22  ;;  %v1554_v31 = vadd.f32 %v1530_v36, %v1527_v14  ;;  %v1555_v18 = vadd.f32 %v1535_v60, %v1532_v29  ;;  %v6962_v36 = vld [vmem:[#allocation16_spill] sm:$0xff]  ;;  %v6965_v60 = vld [vmem:[#allocation19_spill] sm:$0xff]  ;;  %v6980_v14 = vld [vmem:[#allocation34_spill] sm:$0xff] }
 0x111   :  { %v1556_v40 = vadd.f32 %v1536_v56, %v1533_v49  ;;  %v1567_v15 = vadd.f32 %v1559_v41, %v1557_v4  ;;  %v1568_v51 = vadd.f32 %v1560_v61, %v1558_v63  ;;  %v1569_v26 = vadd.f32 %v1563_v30, %v1561_v48  ;;  %v6967_v41 = vld [vmem:[#allocation21_spill] sm:$0xff]  ;;  %v6968_v48 = vld [vmem:[#allocation22_spill] sm:$0xff] }
 0x112   :  { %v1570_v25 = vadd.f32 %v1564_v32, %v1562_v42  ;;  %v6959_v38 = vmax.f32 %v4563_v50, 0.0  ;;  %v6960_v19 = vstv %s4645_s4  ;;  %v4828_v22 = vadd.f32 %v1467_v43, %v1465_v58  ;;  %v6966_v58 = vld [vmem:[#allocation20_spill] sm:$0xff] }
 0x113   :  { %v1585_v45 = vstv %s4752_s30  ;;  %v4838_v50 = vadd.f32 %v1467_v43, %v1466_v13  ;;  %v1565_v20 = vadd.f32 %v1555_v18, %v1553_v16  ;;  %v1566_v47 = vadd.f32 %v1556_v40, %v1554_v31  ;;  %v6969_v13 = vld [vmem:[#allocation23_spill] sm:$0xff]  ;;  %v6970_v32 = vld [vmem:[#allocation24_spill] sm:$0xff]  ;;  %v6971_v31 = vld [vmem:[#allocation25_spill] sm:$0xff]  ;;  %s4919_s30 = sld [smem:[#allocation7 + $0x59]] }
 0x114   :  { %v4825_v33 = vmul.f32 %v6960_v19, %v6959_v38  ;;  %v1588_v7 = vstv %s4758_s8  ;;  %v1571_v9 = vadd.f32 %v1569_v26, %v1567_v15  ;;  %v1572_v37 = vadd.f32 %v1570_v25, %v1568_v51  ;;  %v6972_v51 = vld [vmem:[#allocation26_spill] sm:$0xff]  ;;  %v6973_v25 = vld [vmem:[#allocation27_spill] sm:$0xff]  ;;  %v6974_v19 = vld [vmem:[#allocation28_spill] sm:$0xff]  ;;  %s4921_s8 = sld [smem:[#allocation7 + $0x6d]] }
 0x115   :  { %v1591_v54 = vstv %s4764_s12  ;;  %v1594_v44 = vstv %s4770_s27  ;;  %v1586_v62 = vmul.f32 %v1585_v45, %v3576_v34  ;;  %v1587_v11 = vmul.f32 %v1585_v45, %v6779_v27  ;;  %s4925_s12 = sld [smem:[#allocation10 + $0x7]] }
 0x116   :  { %v1589_v49 = vmul.f32 %v1588_v7, %v6961_v5  ;;  %v1590_v29 = vmul.f32 %v1588_v7, %v6962_v36  ;;  %v1597_v3 = vstv %s4782_s10  ;;  %v1600_v28 = vstv %s4788_s11  ;;  %s4931_s27 = sld [smem:[#allocation7 + $0x81]] }
 0x117   :  { %v1592_v10 = vmul.f32 %v1591_v54, %v6963_v59  ;;  %v1593_v12 = vmul.f32 %v1591_v54, %v6964_v39  ;;  %v1595_v56 = vmul.f32 %v1594_v44, %v6965_v60  ;;  %v1603_v24 = vstv %s4794_s2  ;;  %v6990_v60 = vld [vmem:[#allocation44_spill] sm:$0xff]  ;;  %s4935_s10 = sld [smem:[#allocation8 + $0x8]] }
 0x118   :  { %v4863_v35 = vadd.f32 %v1571_v9, %v1565_v20  ;;  %v4865_v52 = vadd.f32 %v1572_v37, %v1566_v47  ;;  %v1596_v4 = vmul.f32 %v1594_v44, %v6966_v58  ;;  %v1606_v63 = vstv %s4798_s14  ;;  %v6975_v47 = vld [vmem:[#allocation29_spill] sm:$0xff]  ;;  %v6976_v9 = vld [vmem:[#allocation30_spill] sm:$0xff]  ;;  %s4952_s11 = sld [smem:[#allocation7 + $0xa9]] }
 0x119   :  { %v1598_v61 = vmul.f32 %v1597_v3, %v6967_v41  ;;  %v1599_v42 = vmul.f32 %v1597_v3, %v6968_v48  ;;  %v1601_v43 = vmul.f32 %v1600_v28, %v6969_v13  ;;  %v1609_v30 = vstv %s4809_s17  ;;  %v6977_v3 = vld [vmem:[#allocation31_spill] sm:$0xff]  ;;  %s4972_s2 = sld [smem:[#allocation7 + $0xe5]] }
 0x11a   :  { %v1602_v16 = vmul.f32 %v1600_v28, %v6970_v32  ;;  %v1604_v18 = vmul.f32 %v1603_v24, %v6971_v31  ;;  %v1612_v40 = vstv %s4814_s15  ;;  %v1615_v15 = vstv %s4816_s18  ;;  %v6984_v31 = vld [vmem:[#allocation38_spill] sm:$0xff]  ;;  %v6989_v41 = vld [vmem:[#allocation43_spill] sm:$0xff]  ;;  %s4983_s14 = sld [smem:[#allocation7 + $0xf9]] }
 0x11b   :  { %v1605_v26 = vmul.f32 %v1603_v24, %v6972_v51  ;;  %v1607_v38 = vmul.f32 %v1606_v63, %v6973_v25  ;;  %v1608_v45 = vmul.f32 %v1606_v63, %v6974_v19  ;;  %v1618_v20 = vstv %s4818_s1  ;;  %s4998_s17 = sld [smem:[#allocation7 + $0x121]] }
 0x11c   :  { %v1610_v7 = vmul.f32 %v1609_v30, %v6975_v47  ;;  %v1611_v37 = vmul.f32 %v1609_v30, %v6976_v9  ;;  %v1621_v54 = vstv %s4830_s20  ;;  %v1624_v44 = vstv %s4836_s21  ;;  %v6982_v47 = vld [vmem:[#allocation36_spill] sm:$0xff]  ;;  %v6983_v9 = vld [vmem:[#allocation37_spill] sm:$0xff]  ;;  %s5011_s15 = sld [smem:[#allocation7 + $0x149]] }
 0x11d   :  { %v1613_v28 = vmul.f32 %v1612_v40, %v6977_v3  ;;  %v1614_v53 = vmul.f32 %v1612_v40, %v6978_v2  ;;  %v1616_v0 = vmul.f32 %v1615_v15, %v6979_v17  ;;  %v1617_v24 = vmul.f32 %v1615_v15, %v6980_v14  ;;  %v6985_v3 = vld [vmem:[#allocation39_spill] sm:$0xff]  ;;  %v6986_v40 = vld [vmem:[#allocation40_spill] sm:$0xff]  ;;  %v6987_v17 = vld [vmem:[#allocation41_spill] sm:$0xff]  ;;  %s5017_s18 = sld [smem:[#allocation7 + $0x15d]] }
 0x11e   :  { %v1619_v46 = vmul.f32 %v1618_v20, %v6981_v1  ;;  %v1627_v25 = vstv %s4841_s22  ;;  %v1630_v63 = vstv %s4845_s5  ;;  %v1633_v19 = vstv %s4851_s19  ;;  %v6988_v15 = vld [vmem:[#allocation42_spill] sm:$0xff]  ;;  %s5023_s1 = sld [smem:[#allocation7 + $0x171]] }
 0x11f   :  { %v1620_v30 = vmul.f32 %v1618_v20, %v6982_v47  ;;  %v1622_v51 = vmul.f32 %v1621_v54, %v6983_v9  ;;  %v1623_v32 = vmul.f32 %v1621_v54, %v6984_v31  ;;  %v1625_v13 = vmul.f32 %v1624_v44, %v6985_v3  ;;  %v6991_v20 = vld [vmem:[#allocation45_spill] sm:$0xff]  ;;  %v6992_v9 = vld [vmem:[#allocation46_spill] sm:$0xff]  ;;  %s5031_s20 = sld [smem:[#allocation7 + $0x185]] }
 0x120   :  { %v1626_v2 = vmul.f32 %v1624_v44, %v6986_v40  ;;  %v1628_v48 = vmul.f32 %v1627_v25, %v6987_v17  ;;  %v1629_v14 = vmul.f32 %v1627_v25, %v6988_v15  ;;  %v1636_v1 = vstv %s4861_s23  ;;  %s5057_s21 = sld [smem:[#allocation7 + $0xa]] }
 0x121   :  { %v1631_v58 = vmul.f32 %v1630_v63, %v6989_v41  ;;  %v1632_v39 = vmul.f32 %v1630_v63, %v6990_v60  ;;  %v1634_v47 = vmul.f32 %v1633_v19, %v6991_v20  ;;  %v1635_v59 = vmul.f32 %v1633_v19, %v6992_v9  ;;  %s5063_s22 = sld [smem:[#allocation7 + $0x1e]] }
 0x122   :  { %v1639_v54 = vstv %s4869_s24  ;;  %v1642_v3 = vstv %s4875_s3  ;;  %v1645_v44 = vadd.f32 %v1589_v49, %v1586_v62  ;;  %v1646_v40 = vadd.f32 %v1590_v29, %v1587_v11  ;;  %v6993_v62 = vld [vmem:[#allocation47_spill] sm:$0xff]  ;;  %v6994_v49 = vld [vmem:[#allocation48_spill] sm:$0xff]  ;;  %s5069_s5 = sld [smem:[#allocation7 + $0x32]] }
 0x123   :  { %v1647_v25 = vadd.f32 %v1595_v56, %v1592_v10  ;;  %v1648_v15 = vadd.f32 %v1596_v4, %v1593_v12  ;;  %v1649_v17 = vadd.f32 %v1601_v43, %v1598_v61  ;;  %v1650_v31 = vadd.f32 %v1602_v16, %v1599_v42  ;;  %s5075_s19 = sld [smem:[#allocation7 + $0x46]] }
 0x124   :  { %v1651_v41 = vadd.f32 %v1607_v38, %v1604_v18  ;;  %v1652_v63 = vadd.f32 %v1608_v45, %v1605_v26  ;;  %v1653_v60 = vadd.f32 %v1613_v28, %v1610_v7  ;;  %v1654_v20 = vadd.f32 %v1614_v53, %v1611_v37  ;;  %v6995_v53 = vld [vmem:[#allocation50_spill] sm:$0xff]  ;;  %s5077_s23 = sld [smem:[#allocation7 + $0x5a]] }
 0x125   :  { %v1655_v19 = vadd.f32 %v1619_v46, %v1616_v0  ;;  %v1656_v9 = vadd.f32 %v1620_v30, %v1617_v24  ;;  %v1657_v36 = vadd.f32 %v1625_v13, %v1622_v51  ;;  %v1658_v5 = vadd.f32 %v1626_v2, %v1623_v32  ;;  %v7010_v30 = vld [vmem:[#allocation54_spill] sm:$0xff]  ;;  %s5079_s24 = sld [smem:[#allocation7 + $0x6e]] }
 0x126   :  { %v1637_v11 = vmul.f32 %v1636_v1, %v6993_v62  ;;  %v1638_v29 = vmul.f32 %v1636_v1, %v6994_v49  ;;  %v1659_v10 = vadd.f32 %v1631_v58, %v1628_v48  ;;  %v1660_v12 = vadd.f32 %v1632_v39, %v1629_v14  ;;  %s5081_s3 = sld [smem:[#allocation10 + $0x8]] }
 0x127   :  { %v1640_v56 = vmul.f32 %v1639_v54, %v6922_v55  ;;  %v1641_v4 = vmul.f32 %v1639_v54, %v6995_v53  ;;  %v1643_v46 = vmul.f32 %v1642_v3, %v6776_v57  ;;  %v1644_v0 = vmul.f32 %v1642_v3, %v3787_v23 }
 0x128   :  { %v1665_v2 = vadd.f32 %v1647_v25, %v1645_v44  ;;  %v1666_v1 = vadd.f32 %v1648_v15, %v1646_v40  ;;  %v1667_v14 = vadd.f32 %v1651_v41, %v1649_v17  ;;  %v1668_v39 = vadd.f32 %v1652_v63, %v1650_v31  ;;  %v7015_v44 = vld [vmem:[#allocation56_spill] sm:$0xff] }
 0x129   :  { %v1669_v58 = vadd.f32 %v1655_v19, %v1653_v60  ;;  %v1670_v61 = vadd.f32 %v1656_v9, %v1654_v20  ;;  %v1671_v48 = vadd.f32 %v1659_v10, %v1657_v36  ;;  %v1672_v42 = vadd.f32 %v1660_v12, %v1658_v5  ;;  %v7003_v5 = vld [vmem:[#allocation52_spill] sm:$0xff] }
 0x12a   :  { %v6996_v13 = vmax.f32 %v4680_v21, 0.0  ;;  %v6997_v43 = vstv %s4645_s4  ;;  %v6998_v16 = vmax.f32 %v4694_v8, 0.0  ;;  %v6999_v18 = vstv %s4790_s0  ;;  %s4968_s4 = sld [smem:[#allocation7 + $0xbd]] }
 0x12b   :  { %v7000_v17 = vmax.f32 %v4803_v6, 0.0  ;;  %v7001_v41 = vmov %v6999_v18  ;;  %v7002_v26 = vstv %s4807_s16  ;;  %v4956_v36 = vadd.f32 %v4825_v33, %v7003_v5  ;;  %s4970_s0 = sld [smem:[#allocation7 + $0xd1]]  ;;  %v7022_v5 = vld [vmem:[#allocation20_spill] sm:$0xff] }
 0x12c   :  { %v1258_v32 = vmul.f32 %v6997_v43, %v6996_v13  ;;  %v1365_v51 = vmul.f32 %v6999_v18, %v6998_v16  ;;  %v1576_v60 = vadd.f32 %v7002_v26, %v4863_v35  ;;  %v1471_v21 = vmax.f32 %v4838_v50, 0.0  ;;  %s4994_s16 = sld [smem:[#allocation7 + $0x10d]]  ;;  %v7020_v18 = vld [vmem:[#allocation18_spill] sm:$0xff] }
 0x12d   :  { %v1366_v31 = vmul.f32 %v7001_v41, %v7000_v17  ;;  %7004 = vst [vmem:[#allocation52_spill] sm:$0xff] %v4956_v36  ;;  %v7005_v38 = vmax.f32 %v4828_v22, 0.0  ;;  %v7006_v8 = vstv %s4792_s13  ;;  %v7007_v7 = vmov %v7002_v26  ;;  %s5002_s13 = sld [smem:[#allocation7 + $0x135]]  ;;  %v7021_v17 = vld [vmem:[#allocation19_spill] sm:$0xff] }
 0x12e   :  { %v4966_v6 = vadd.f32 %v7007_v7, %v4865_v52  ;;  %v1661_v35 = vadd.f32 %v1637_v11, %v1634_v47  ;;  %v1662_v9 = vadd.f32 %v1638_v29, %v1635_v59  ;;  %v1663_v37 = vadd.f32 %v1643_v46, %v1640_v56  ;;  %v7008_v52 = vld [vmem:[#allocation53_spill] sm:$0xff]  ;;  %v7012_v59 = vld [vmem:[#allocation55_spill] sm:$0xff]  ;;  %v7024_v7 = vld [vmem:[#allocation22_spill] sm:$0xff] }
 0x12f   :  { %v1473_v45 = vmul.f32 %v7006_v8, %v7005_v38  ;;  %v1664_v33 = vadd.f32 %v1644_v0, %v1641_v4  ;;  %v1675_v50 = vadd.f32 %v1667_v14, %v1665_v2  ;;  %v1676_v3 = vadd.f32 %v1668_v39, %v1666_v1  ;;  %v7037_v36 = vld [vmem:[#allocation35_spill] sm:$0xff] }
 0x130   :  { %v1677_v22 = vadd.f32 %v1671_v48, %v1669_v58  ;;  %v1678_v28 = vadd.f32 %v1672_v42, %v1670_v61  ;;  %v4975_v24 = vadd.f32 %v1258_v32, %v7008_v52  ;;  %v4978_v40 = vadd.f32 %v1365_v51, %v7010_v30  ;;  %v7017_v58 = vld [vmem:[#allocation15_spill] sm:$0xff]  ;;  %v7018_v48 = vld [vmem:[#allocation16_spill] sm:$0xff]  ;;  %v7019_v32 = vld [vmem:[#allocation17_spill] sm:$0xff] }
 0x131   :  { %v4981_v47 = vadd.f32 %v1366_v31, %v7012_v59  ;;  %v1578_v15 = vmax.f32 %v1576_v60, 0.0  ;;  %v7014_v20 = vmov %v7006_v8  ;;  %v4990_v25 = vadd.f32 %v1473_v45, %v7015_v44  ;;  %v7023_v8 = vld [vmem:[#allocation21_spill] sm:$0xff]  ;;  %v7028_v52 = vld [vmem:[#allocation26_spill] sm:$0xff]  ;;  %v7030_v44 = vld [vmem:[#allocation28_spill] sm:$0xff] }
 0x132   :  { %7009 = vst [vmem:[#allocation53_spill] sm:$0xff] %v4975_v24  ;;  %v4987_v54 = vmul.f32 %v7014_v20, %v1471_v21  ;;  %v6651_v63 = vstv %s4925_s12  ;;  %v1693_v19 = vstv %s4905_s25  ;;  %v1673_v29 = vadd.f32 %v1663_v37, %v1661_v35  ;;  %v7036_v24 = vld [vmem:[#allocation34_spill] sm:$0xff]  ;;  %s5083_s25 = sld [smem:[#allocation7 + $0x82]] }
 0x133   :  { %7011 = vst [vmem:[#allocation54_spill] sm:$0xff] %v4978_v40  ;;  %v1674_v10 = vadd.f32 %v1664_v33, %v1662_v9  ;;  %v1696_v12 = vstv %s4911_s26  ;;  %v1679_v56 = vadd.f32 %v1677_v22, %v1675_v50  ;;  %v1680_v4 = vadd.f32 %v1678_v28, %v1676_v3  ;;  %v7025_v9 = vld [vmem:[#allocation23_spill] sm:$0xff]  ;;  %v7026_v50 = vld [vmem:[#allocation24_spill] sm:$0xff]  ;;  %v7027_v22 = vld [vmem:[#allocation25_spill] sm:$0xff]  ;;  %s5089_s26 = sld [smem:[#allocation7 + $0x96]] }
 0x134   :  { %7013 = vst [vmem:[#allocation55_spill] sm:$0xff] %v4981_v47  ;;  %v1699_v46 = vstv %s4915_s28  ;;  %v1702_v0 = vstv %s4917_s29  ;;  %v5006_v2 = vmul.f32 %v6651_v63, %v1578_v15  ;;  %v1694_v14 = vmul.f32 %v1693_v19, %v3576_v34  ;;  %v7029_v15 = vld [vmem:[#allocation27_spill] sm:$0xff]  ;;  %v7035_v47 = vld [vmem:[#allocation33_spill] sm:$0xff]  ;;  %s5095_s28 = sld [smem:[#allocation7 + $0xaa]] }
 0x135   :  { %7016 = vst [vmem:[#allocation56_spill] sm:$0xff] %v4990_v25  ;;  %v1695_v39 = vmul.f32 %v1693_v19, %v6779_v27  ;;  %v1697_v61 = vmul.f32 %v1696_v12, %v7017_v58  ;;  %v1698_v42 = vmul.f32 %v1696_v12, %v7018_v48  ;;  %v1705_v13 = vstv %s4919_s30  ;;  %v7031_v12 = vld [vmem:[#allocation29_spill] sm:$0xff]  ;;  %v7033_v63 = vld [vmem:[#allocation31_spill] sm:$0xff]  ;;  %s5097_s29 = sld [smem:[#allocation7 + $0xbe]] }
 0x136   :  { %v1708_v43 = vstv %s4921_s8  ;;  %v1700_v16 = vmul.f32 %v1699_v46, %v7019_v32  ;;  %v1701_v51 = vmul.f32 %v1699_v46, %v7020_v18  ;;  %v1703_v41 = vmul.f32 %v1702_v0, %v7021_v17  ;;  %s5099_s30 = sld [smem:[#allocation7 + $0xd2]] }
 0x137   :  { %v1711_v31 = vstv %s4931_s27  ;;  %v5025_v26 = vadd.f32 %v1679_v56, %v1673_v29  ;;  %v5027_v60 = vadd.f32 %v1680_v4, %v1674_v10  ;;  %v1704_v21 = vmul.f32 %v1702_v0, %v7022_v5  ;;  %v7032_v4 = vld [vmem:[#allocation30_spill] sm:$0xff]  ;;  %s5111_s8 = sld [smem:[#allocation7 + $0xe6]] }
 0x138   :  { %v1714_v38 = vstv %s4933_s9  ;;  %v1706_v45 = vmul.f32 %v1705_v13, %v7023_v8  ;;  %v1707_v35 = vmul.f32 %v1705_v13, %v7024_v7  ;;  %v1709_v37 = vmul.f32 %v1708_v43, %v7025_v9  ;;  %v7046_v8 = vld [vmem:[#allocation44_spill] sm:$0xff]  ;;  %s5123_s27 = sld [smem:[#allocation7 + $0xfa]] }
 0x139   :  { %v1717_v33 = vstv %s4952_s11  ;;  %v1710_v3 = vmul.f32 %v1708_v43, %v7026_v50  ;;  %v1712_v28 = vmul.f32 %v1711_v31, %v7027_v22  ;;  %v1713_v30 = vmul.f32 %v1711_v31, %v7028_v52  ;;  %v7034_v43 = vld [vmem:[#allocation32_spill] sm:$0xff]  ;;  %s5130_s9 = sld [smem:[#allocation7 + $0x10e]] }
 0x13a   :  { %v1720_v59 = vstv %s4968_s4  ;;  %v1715_v20 = vmul.f32 %v1714_v38, %v7029_v15  ;;  %v1716_v19 = vmul.f32 %v1714_v38, %v7030_v44  ;;  %v1723_v29 = vstv %s4970_s0  ;;  %v7040_v15 = vld [vmem:[#allocation38_spill] sm:$0xff]  ;;  %v7042_v22 = vld [vmem:[#allocation40_spill] sm:$0xff]  ;;  %s5152_s11 = sld [smem:[#allocation7 + $0x14a]] }
 0x13b   :  { %v1726_v10 = vstv %s4972_s2  ;;  %v1718_v56 = vmul.f32 %v1717_v33, %v7031_v12  ;;  %v1719_v46 = vmul.f32 %v1717_v33, %v7032_v4  ;;  %v1729_v0 = vstv %s4983_s14  ;;  %v7038_v12 = vld [vmem:[#allocation36_spill] sm:$0xff]  ;;  %v7039_v4 = vld [vmem:[#allocation37_spill] sm:$0xff]  ;;  %s5159_s4 = sld [smem:[#allocation7 + $0x15e]] }
 0x13c   :  { %v1732_v13 = vstv %s4994_s16  ;;  %v1721_v11 = vmul.f32 %v1720_v59, %v7033_v63  ;;  %v1722_v1 = vmul.f32 %v1720_v59, %v7034_v43  ;;  %v1735_v31 = vstv %s4998_s17  ;;  %v7041_v59 = vld [vmem:[#allocation39_spill] sm:$0xff]  ;;  %s5166_s0 = sld [smem:[#allocation7 + $0x172]] }
 0x13d   :  { %v1738_v25 = vstv %s5002_s13  ;;  %v1724_v40 = vmul.f32 %v1723_v29, %v7035_v47  ;;  %v1725_v38 = vmul.f32 %v1723_v29, %v7036_v24  ;;  %v1727_v44 = vmul.f32 %v1726_v10, %v7037_v36  ;;  %v7043_v47 = vld [vmem:[#allocation41_spill] sm:$0xff]  ;;  %v7044_v24 = vld [vmem:[#allocation43_spill] sm:$0xff]  ;;  %s5176_s2 = sld [smem:[#allocation7 + $0x186]] }
 0x13e   :  { %v1728_v33 = vmul.f32 %v1726_v10, %v7038_v12  ;;  %v1730_v63 = vmul.f32 %v1729_v0, %v7039_v4  ;;  %v1731_v52 = vmul.f32 %v1729_v0, %v7040_v15  ;;  %v1733_v43 = vmul.f32 %v1732_v13, %v7041_v59  ;;  %v7045_v10 = vld [vmem:[#allocation42_spill] sm:$0xff]  ;;  %s5198_s14 = sld [smem:[#allocation7 + $0xb]] }
 0x13f   :  { %v1734_v50 = vmul.f32 %v1732_v13, %v7042_v22  ;;  %v1736_v29 = vmul.f32 %v1735_v31, %v7043_v47  ;;  %v1739_v9 = vmul.f32 %v1738_v25, %v7044_v24  ;;  %v1741_v36 = vstv %s5011_s15  ;;  %s5204_s16 = sld [smem:[#allocation7 + $0x1f]] }
 0x140   :  { %v1744_v7 = vstv %s5017_s18  ;;  %v1737_v12 = vmul.f32 %v1735_v31, %v7045_v10  ;;  %v1740_v4 = vmul.f32 %v1738_v25, %v7046_v8  ;;  %v1747_v5 = vstv %s5023_s1  ;;  %s5210_s17 = sld [smem:[#allocation8 + $0x9]] }
 0x141   :  { %v1750_v0 = vstv %s5031_s20  ;;  %v1753_v59 = vadd.f32 %v1697_v61, %v1694_v14  ;;  %v1754_v13 = vadd.f32 %v1698_v42, %v1695_v39  ;;  %v1755_v22 = vadd.f32 %v1703_v41, %v1700_v16  ;;  %v7047_v61 = vld [vmem:[#allocation45_spill] sm:$0xff]  ;;  %s5216_s13 = sld [smem:[#allocation7 + $0x33]] }
 0x142   :  { %v1756_v15 = vadd.f32 %v1704_v21, %v1701_v51  ;;  %v1757_v47 = vadd.f32 %v1709_v37, %v1706_v45  ;;  %v1758_v24 = vadd.f32 %v1710_v3, %v1707_v35  ;;  %v1759_v17 = vadd.f32 %v1715_v20, %v1712_v28  ;;  %s5222_s15 = sld [smem:[#allocation7 + $0x47]] }
 0x143   :  { %v1760_v18 = vadd.f32 %v1716_v19, %v1713_v30  ;;  %v1761_v32 = vadd.f32 %v1721_v11, %v1718_v56  ;;  %v1763_v31 = vadd.f32 %v1727_v44, %v1724_v40  ;;  %v1765_v10 = vadd.f32 %v1733_v43, %v1730_v63  ;;  %v7048_v40 = vld [vmem:[#allocation46_spill] sm:$0xff]  ;;  %s5228_s18 = sld [smem:[#allocation7 + $0x5b]] }
 0x144   :  { %v1767_v25 = vadd.f32 %v1739_v9, %v1736_v29  ;;  %v1762_v8 = vadd.f32 %v1722_v1, %v1719_v46  ;;  %v1764_v48 = vadd.f32 %v1728_v33, %v1725_v38  ;;  %v1766_v14 = vadd.f32 %v1734_v50, %v1731_v52  ;;  %s5234_s1 = sld [smem:[#allocation7 + $0x6f]] }
 0x145   :  { %v1768_v39 = vadd.f32 %v1740_v4, %v1737_v12  ;;  %v1742_v42 = vmul.f32 %v1741_v36, %v7047_v61  ;;  %v1745_v16 = vmul.f32 %v1744_v7, %v6993_v62  ;;  %v1748_v51 = vmul.f32 %v1747_v5, %v6922_v55  ;;  %s5237_s20 = sld [smem:[#allocation7 + $0x83]] }
 0x146   :  { %v1751_v41 = vmul.f32 %v1750_v0, %v6776_v57  ;;  %v1743_v63 = vmul.f32 %v1741_v36, %v7048_v40  ;;  %v1746_v11 = vmul.f32 %v1744_v7, %v6994_v49  ;;  %v1749_v1 = vmul.f32 %v1747_v5, %v6995_v53 }
 0x147   :  { %v1752_v21 = vmul.f32 %v1750_v0, %v3787_v23  ;;  %v1773_v45 = vadd.f32 %v1755_v22, %v1753_v59  ;;  %v1775_v35 = vadd.f32 %v1759_v17, %v1757_v47  ;;  %v1777_v9 = vadd.f32 %v1763_v31, %v1761_v32 }
 0x148   :  { %v1779_v37 = vadd.f32 %v1767_v25, %v1765_v10  ;;  %v1774_v50 = vadd.f32 %v1756_v15, %v1754_v13  ;;  %v1776_v3 = vadd.f32 %v1760_v18, %v1758_v24  ;;  %v1778_v28 = vadd.f32 %v1764_v48, %v1762_v8  ;;  %v7051_v24 = vld [vmem:[#allocation14_spill] sm:$0xff]  ;;  %v7057_v13 = vld [vmem:[#allocation16_spill] sm:$0xff] }
 0x149   :  { %v1780_v36 = vadd.f32 %v1768_v39, %v1766_v14  ;;  %v7049_v5 = vstv %s4935_s10  ;;  %v1769_v47 = vadd.f32 %v1745_v16, %v1742_v42  ;;  %v1771_v32 = vadd.f32 %v1751_v41, %v1748_v51  ;;  %s5141_s10 = sld [smem:[#allocation7 + $0x136]]  ;;  %v7058_v39 = vld [vmem:[#allocation17_spill] sm:$0xff]  ;;  %v7059_v41 = vld [vmem:[#allocation18_spill] sm:$0xff] }
 0x14a   :  { %v5104_v7 = vadd.f32 %v7049_v5, %v5025_v26  ;;  %v7050_v22 = vmov %v7049_v5  ;;  %v5115_v48 = vadd.f32 %v4987_v54, %v7051_v24  ;;  %v7053_v18 = vmax.f32 %v4966_v6, 0.0  ;;  %v7064_v5 = vld [vmem:[#allocation23_spill] sm:$0xff]  ;;  %v7066_v24 = vld [vmem:[#allocation25_spill] sm:$0xff]  ;;  %v7073_v54 = vld [vmem:[#allocation32_spill] sm:$0xff] }
 0x14b   :  { %v5109_v52 = vadd.f32 %v7050_v22, %v5027_v60  ;;  %v7054_v17 = vstv %s4925_s12  ;;  %v1770_v26 = vadd.f32 %v1746_v11, %v1743_v63  ;;  %v1772_v30 = vadd.f32 %v1752_v21, %v1749_v1  ;;  %v7055_v60 = vld [vmem:[#allocation57_spill] sm:$0xff]  ;;  %s5134_s12 = sld [smem:[#allocation7 + $0x122]]  ;;  %v7060_v11 = vld [vmem:[#allocation19_spill] sm:$0xff]  ;;  %v7061_v21 = vld [vmem:[#allocation20_spill] sm:$0xff] }
 0x14c   :  { %7052 = vst [vmem:[#allocation14_spill] sm:$0xff] %v5115_v48  ;;  %v5121_v8 = vmul.f32 %v7054_v17, %v7053_v18  ;;  %v5127_v15 = vadd.f32 %v5006_v2, %v7055_v60  ;;  %v1783_v20 = vadd.f32 %v1775_v35, %v1773_v45  ;;  %v1785_v44 = vadd.f32 %v1779_v37, %v1777_v9  ;;  %v7062_v9 = vld [vmem:[#allocation21_spill] sm:$0xff]  ;;  %v7068_v60 = vld [vmem:[#allocation27_spill] sm:$0xff] }
 0x14d   :  { %v1801_v19 = vstv %s5057_s21  ;;  %v1784_v6 = vadd.f32 %v1776_v3, %v1774_v50  ;;  %v1786_v12 = vadd.f32 %v1780_v36, %v1778_v28  ;;  %v1804_v56 = vstv %s5063_s22  ;;  %v7063_v50 = vld [vmem:[#allocation22_spill] sm:$0xff]  ;;  %s5239_s21 = sld [smem:[#allocation7 + $0x97]] }
 0x14e   :  { %7056 = vst [vmem:[#allocation57_spill] sm:$0xff] %v5127_v15  ;;  %v5138_v2 = vadd.f32 %v1771_v32, %v1769_v47  ;;  %v1807_v43 = vstv %s5069_s5  ;;  %v5143_v38 = vadd.f32 %v1772_v30, %v1770_v26  ;;  %v5146_v33 = vmul.f32 %v1801_v19, %v3576_v34  ;;  %v7065_v47 = vld [vmem:[#allocation24_spill] sm:$0xff]  ;;  %v7067_v26 = vld [vmem:[#allocation26_spill] sm:$0xff]  ;;  %v7074_v15 = vld [vmem:[#allocation33_spill] sm:$0xff]  ;;  %s5244_s22 = sld [smem:[#allocation7 + $0xab]] }
 0x14f   :  { %v5149_v59 = vmul.f32 %v1801_v19, %v6779_v27  ;;  %v1810_v29 = vstv %s5075_s19  ;;  %v5154_v10 = vadd.f32 %v1785_v44, %v1783_v20  ;;  %v1805_v0 = vmul.f32 %v1804_v56, %v7017_v58  ;;  %v7069_v44 = vld [vmem:[#allocation28_spill] sm:$0xff]  ;;  %s5246_s5 = sld [smem:[#allocation7 + $0xbf]] }
 0x150   :  { %v1806_v31 = vmul.f32 %v1804_v56, %v7057_v13  ;;  %v1813_v25 = vstv %s5077_s23  ;;  %v5161_v14 = vadd.f32 %v1786_v12, %v1784_v6  ;;  %v1808_v42 = vmul.f32 %v1807_v43, %v7058_v39  ;;  %v7070_v12 = vld [vmem:[#allocation29_spill] sm:$0xff]  ;;  %s5257_s19 = sld [smem:[#allocation7 + $0xd3]] }
 0x151   :  { %v1816_v16 = vstv %s5079_s24  ;;  %v1819_v51 = vstv %s5083_s25  ;;  %v5169_v63 = vmul.f32 %v1807_v43, %v7059_v41  ;;  %v1811_v1 = vmul.f32 %v1810_v29, %v7060_v11  ;;  %v7071_v43 = vld [vmem:[#allocation30_spill] sm:$0xff]  ;;  %v7084_v41 = vld [vmem:[#allocation43_spill] sm:$0xff]  ;;  %s5259_s23 = sld [smem:[#allocation7 + $0xe7]] }
 0x152   :  { %v5173_v45 = vmul.f32 %v1810_v29, %v7061_v21  ;;  %v1822_v35 = vstv %s5089_s26  ;;  %v1814_v37 = vmul.f32 %v1813_v25, %v7062_v9  ;;  %v1815_v3 = vmul.f32 %v1813_v25, %v7063_v50  ;;  %v7072_v25 = vld [vmem:[#allocation31_spill] sm:$0xff]  ;;  %v7081_v21 = vld [vmem:[#allocation40_spill] sm:$0xff]  ;;  %s5261_s24 = sld [smem:[#allocation7 + $0xfb]] }
 0x153   :  { %v1825_v28 = vstv %s5095_s28  ;;  %v1828_v36 = vstv %s5097_s29  ;;  %v1817_v22 = vmul.f32 %v1816_v16, %v7064_v5  ;;  %v1818_v32 = vmul.f32 %v1816_v16, %v7065_v47  ;;  %v7080_v50 = vld [vmem:[#allocation39_spill] sm:$0xff]  ;;  %s5263_s25 = sld [smem:[#allocation7 + $0x10f]] }
 0x154   :  { %v1820_v18 = vmul.f32 %v1819_v51, %v7066_v24  ;;  %v1831_v17 = vstv %s5099_s30  ;;  %v1821_v30 = vmul.f32 %v1819_v51, %v7067_v26  ;;  %v1823_v20 = vmul.f32 %v1822_v35, %v7068_v60  ;;  %v7076_v60 = vld [vmem:[#allocation35_spill] sm:$0xff]  ;;  %v7077_v24 = vld [vmem:[#allocation36_spill] sm:$0xff]  ;;  %s5279_s26 = sld [smem:[#allocation7 + $0x123]] }
 0x155   :  { %v1824_v19 = vmul.f32 %v1822_v35, %v7069_v44  ;;  %v1834_v6 = vstv %s5111_s8  ;;  %v1826_v56 = vmul.f32 %v1825_v28, %v7070_v12  ;;  %v1827_v29 = vmul.f32 %v1825_v28, %v7071_v43  ;;  %v7075_v35 = vld [vmem:[#allocation34_spill] sm:$0xff]  ;;  %s5284_s28 = sld [smem:[#allocation7 + $0x137]] }
 0x156   :  { %v1829_v46 = vmul.f32 %v1828_v36, %v7072_v25  ;;  %v1837_v16 = vstv %s5123_s27  ;;  %v1830_v4 = vmul.f32 %v1828_v36, %v7073_v54  ;;  %v1832_v48 = vmul.f32 %v1831_v17, %v7074_v15  ;;  %v7078_v25 = vld [vmem:[#allocation37_spill] sm:$0xff]  ;;  %v7079_v36 = vld [vmem:[#allocation38_spill] sm:$0xff]  ;;  %s5301_s29 = sld [smem:[#allocation7 + $0x15f]] }
 0x157   :  { %v1840_v51 = vstv %s5130_s9  ;;  %v1843_v26 = vstv %s5134_s12  ;;  %v1833_v44 = vmul.f32 %v1831_v17, %v7075_v35  ;;  %v1835_v12 = vmul.f32 %v1834_v6, %v7076_v60  ;;  %v7082_v35 = vld [vmem:[#allocation41_spill] sm:$0xff]  ;;  %s5316_s30 = sld [smem:[#allocation7 + $0x173]] }
 0x158   :  { %v1836_v47 = vmul.f32 %v1834_v6, %v7077_v24  ;;  %v1846_v28 = vstv %s5141_s10  ;;  %v1838_v43 = vmul.f32 %v1837_v16, %v7078_v25  ;;  %v1839_v54 = vmul.f32 %v1837_v16, %v7079_v36  ;;  %v7083_v6 = vld [vmem:[#allocation42_spill] sm:$0xff]  ;;  %v7085_v25 = vld [vmem:[#allocation44_spill] sm:$0xff]  ;;  %s5322_s8 = sld [smem:[#allocation7 + $0x187]] }
 0x159   :  { %v1849_v15 = vstv %s5152_s11  ;;  %v1852_v5 = vstv %s5159_s4  ;;  %v1841_v9 = vmul.f32 %v1840_v51, %v7080_v50  ;;  %v1842_v17 = vmul.f32 %v1840_v51, %v7081_v21  ;;  %s5340_s27 = sld [smem:[#allocation7 + $0xc]] }
 0x15a   :  { %v1844_v60 = vmul.f32 %v1843_v26, %v7082_v35  ;;  %v1855_v11 = vstv %s5166_s0  ;;  %v1845_v24 = vmul.f32 %v1843_v26, %v7083_v6  ;;  %v1847_v39 = vmul.f32 %v1846_v28, %v7084_v41  ;;  %s5346_s9 = sld [smem:[#allocation7 + $0x20]] }
 0x15b   :  { %v1848_v13 = vmul.f32 %v1846_v28, %v7085_v25  ;;  %v1858_v16 = vstv %s5176_s2  ;;  %v1850_v36 = vmul.f32 %v1849_v15, %v7047_v61  ;;  %v1851_v50 = vmul.f32 %v1849_v15, %v7048_v40  ;;  %s5352_s12 = sld [smem:[#allocation7 + $0x34]] }
 0x15c   :  { %v1853_v51 = vmul.f32 %v1852_v5, %v6993_v62  ;;  %v1854_v35 = vmul.f32 %v1852_v5, %v6994_v49  ;;  %v1856_v21 = vmul.f32 %v1855_v11, %v6922_v55  ;;  %v1857_v26 = vmul.f32 %v1855_v11, %v6995_v53  ;;  %s5358_s10 = sld [smem:[#allocation7 + $0x48]] }
 0x15d   :  { %v1861_v41 = vadd.f32 %v1805_v0, %v5146_v33  ;;  %v1862_v28 = vadd.f32 %v1806_v31, %v5149_v59  ;;  %v1859_v61 = vmul.f32 %v1858_v16, %v6776_v57  ;;  %v1863_v25 = vadd.f32 %v1811_v1, %v1808_v42  ;;  %s5364_s11 = sld [smem:[#allocation8 + $0xa]] }
 0x15e   :  { %v1865_v15 = vadd.f32 %v1817_v22, %v1814_v37  ;;  %v1867_v40 = vadd.f32 %v1823_v20, %v1820_v18  ;;  %v1869_v5 = vadd.f32 %v1829_v46, %v1826_v56  ;;  %v1871_v49 = vadd.f32 %v1835_v12, %v1832_v48  ;;  %s5368_s4 = sld [smem:[#allocation10 + $0x9]] }
 0x15f   :  { %v1873_v62 = vadd.f32 %v1841_v9, %v1838_v43  ;;  %v1875_v55 = vadd.f32 %v1847_v39, %v1844_v60  ;;  %v1860_v33 = vmul.f32 %v1858_v16, %v3787_v23  ;;  %v1864_v59 = vadd.f32 %v5173_v45, %v5169_v63  ;;  %s5370_s0 = sld [smem:[#allocation7 + $0x5c]] }
 0x160   :  { %v1866_v0 = vadd.f32 %v1818_v32, %v1815_v3  ;;  %v1868_v31 = vadd.f32 %v1824_v19, %v1821_v30  ;;  %v1870_v42 = vadd.f32 %v1830_v4, %v1827_v29  ;;  %v1872_v11 = vadd.f32 %v1836_v47, %v1833_v44  ;;  %s5372_s2 = sld [smem:[#allocation7 + $0x70]] }
 0x161   :  { %v1874_v1 = vadd.f32 %v1842_v17, %v1839_v54  ;;  %v1876_v37 = vadd.f32 %v1848_v13, %v1845_v24  ;;  %v7086_v48 = vmax.f32 %v5104_v7, 0.0  ;;  %v7087_v46 = vstv %s5081_s3  ;;  %s5293_s3 = sld [smem:[#allocation7 + $0x14b]] }
 0x162   :  { %v1789_v9 = vadd.f32 %v5154_v10, %v5138_v2  ;;  %v1790_v63 = vadd.f32 %v5161_v14, %v5143_v38  ;;  %v1791_v45 = vstv %s5210_s17  ;;  %v1881_v3 = vadd.f32 %v1863_v25, %v1861_v41  ;;  %s5384_s17 = sld [smem:[#allocation7 + $0xac]] }
 0x163   :  { %v1689_v39 = vmul.f32 %v7087_v46, %v7086_v48  ;;  %v1883_v4 = vadd.f32 %v1867_v40, %v1865_v15  ;;  %v1885_v54 = vadd.f32 %v1871_v49, %v1869_v5  ;;  %v1887_v13 = vadd.f32 %v1875_v55, %v1873_v62  ;;  %v7088_v40 = vld [vmem:[#allocation58_spill] sm:$0xff] }
 0x164   :  { %v1877_v7 = vadd.f32 %v1853_v51, %v1850_v36  ;;  %v1878_v22 = vadd.f32 %v1854_v35, %v1851_v50  ;;  %v1879_v47 = vadd.f32 %v1859_v61, %v1856_v21  ;;  %v1880_v32 = vadd.f32 %v1860_v33, %v1857_v26  ;;  %v7093_v61 = vld [vmem:[#allocation52_spill] sm:$0xff]  ;;  %v7096_v51 = vld [vmem:[#allocation17_spill] sm:$0xff]  ;;  %v7097_v5 = vld [vmem:[#allocation18_spill] sm:$0xff] }
 0x165   :  { %v1882_v2 = vadd.f32 %v1864_v59, %v1862_v28  ;;  %v1884_v38 = vadd.f32 %v1868_v31, %v1866_v0  ;;  %v1886_v10 = vadd.f32 %v1872_v11, %v1870_v42  ;;  %v1888_v14 = vadd.f32 %v1876_v37, %v1874_v1  ;;  %v7095_v35 = vld [vmem:[#allocation16_spill] sm:$0xff]  ;;  %v7098_v59 = vld [vmem:[#allocation19_spill] sm:$0xff]  ;;  %v7100_v37 = vld [vmem:[#allocation21_spill] sm:$0xff] }
 0x166   :  { %v5267_v49 = vadd.f32 %v5121_v8, %v7088_v40  ;;  %v7090_v55 = vmax.f32 %v5109_v52, 0.0  ;;  %v7091_v62 = vmov %v7087_v46  ;;  %v5276_v21 = vadd.f32 %v1689_v39, %v7093_v61  ;;  %v7099_v11 = vld [vmem:[#allocation20_spill] sm:$0xff]  ;;  %v7101_v46 = vld [vmem:[#allocation22_spill] sm:$0xff]  ;;  %v7110_v61 = vld [vmem:[#allocation31_spill] sm:$0xff] }
 0x167   :  { %v1909_v50 = vstv %s5198_s14  ;;  %v5281_v24 = vadd.f32 %v1791_v45, %v1789_v9  ;;  %v1891_v18 = vadd.f32 %v1883_v4, %v1881_v3  ;;  %v1893_v30 = vadd.f32 %v1887_v13, %v1885_v54  ;;  %v7103_v3 = vld [vmem:[#allocation24_spill] sm:$0xff]  ;;  %v7104_v54 = vld [vmem:[#allocation25_spill] sm:$0xff]  ;;  %s5374_s14 = sld [smem:[#allocation7 + $0x84]] }
 0x168   :  { %7089 = vst [vmem:[#allocation58_spill] sm:$0xff] %v5267_v49  ;;  %v5273_v41 = vmul.f32 %v7091_v62, %v7090_v55  ;;  %v1912_v60 = vstv %s5204_s16  ;;  %v5286_v8 = vadd.f32 %v1791_v45, %v1790_v63  ;;  %v5288_v52 = vadd.f32 %v1879_v47, %v1877_v7  ;;  %v7102_v63 = vld [vmem:[#allocation23_spill] sm:$0xff]  ;;  %v7109_v55 = vld [vmem:[#allocation30_spill] sm:$0xff]  ;;  %s5378_s16 = sld [smem:[#allocation7 + $0x98]] }
 0x169   :  { %7094 = vst [vmem:[#allocation52_spill] sm:$0xff] %v5276_v21  ;;  %v5290_v20 = vadd.f32 %v1880_v32, %v1878_v22  ;;  %v1915_v44 = vstv %s5216_s13  ;;  %v5295_v19 = vadd.f32 %v1884_v38, %v1882_v2  ;;  %v5297_v12 = vadd.f32 %v1888_v14, %v1886_v10  ;;  %v7105_v22 = vld [vmem:[#allocation26_spill] sm:$0xff]  ;;  %v7106_v32 = vld [vmem:[#allocation27_spill] sm:$0xff]  ;;  %v7107_v38 = vld [vmem:[#allocation28_spill] sm:$0xff]  ;;  %s5386_s13 = sld [smem:[#allocation7 + $0xc0]] }
 0x16a   :  { %7092 = vst [vmem:[#allocation59_spill] sm:$0xff] %v5273_v41  ;;  %v1910_v56 = vmul.f32 %v1909_v50, %v3576_v34  ;;  %v1918_v43 = vstv %s5222_s15  ;;  %v1911_v29 = vmul.f32 %v1909_v50, %v6779_v27  ;;  %v1913_v25 = vmul.f32 %v1912_v60, %v7017_v58  ;;  %v7108_v14 = vld [vmem:[#allocation29_spill] sm:$0xff]  ;;  %s5388_s15 = sld [smem:[#allocation7 + $0xd4]] }
 0x16b   :  { %v1914_v36 = vmul.f32 %v1912_v60, %v7095_v35  ;;  %v1921_v17 = vstv %s5228_s18  ;;  %v5307_v16 = vadd.f32 %v1893_v30, %v1891_v18  ;;  %v1916_v26 = vmul.f32 %v1915_v44, %v7096_v51  ;;  %v7111_v60 = vld [vmem:[#allocation32_spill] sm:$0xff]  ;;  %s5394_s18 = sld [smem:[#allocation7 + $0xe8]] }
 0x16c   :  { %v1924_v28 = vstv %s5234_s1  ;;  %v1927_v15 = vstv %s5237_s20  ;;  %v1917_v33 = vmul.f32 %v1915_v44, %v7097_v5  ;;  %v1919_v0 = vmul.f32 %v1918_v43, %v7098_v59  ;;  %v7124_v59 = vld [vmem:[#allocation47_spill] sm:$0xff]  ;;  %s5398_s1 = sld [smem:[#allocation7 + $0xfc]] }
 0x16d   :  { %v1930_v31 = vstv %s5239_s21  ;;  %v1933_v42 = vstv %s5244_s22  ;;  %v1920_v1 = vmul.f32 %v1918_v43, %v7099_v11  ;;  %v1922_v48 = vmul.f32 %v1921_v17, %v7100_v37  ;;  %v7112_v43 = vld [vmem:[#allocation33_spill] sm:$0xff]  ;;  %v7122_v11 = vld [vmem:[#allocation44_spill] sm:$0xff]  ;;  %s5402_s20 = sld [smem:[#allocation7 + $0x110]] }
 0x16e   :  { %v1923_v39 = vmul.f32 %v1921_v17, %v7101_v46  ;;  %v1936_v9 = vstv %s5246_s5  ;;  %v1925_v45 = vmul.f32 %v1924_v28, %v7102_v63  ;;  %v1926_v4 = vmul.f32 %v1924_v28, %v7103_v3  ;;  %v7113_v28 = vld [vmem:[#allocation34_spill] sm:$0xff]  ;;  %v7120_v3 = vld [vmem:[#allocation41_spill] sm:$0xff]  ;;  %s5406_s21 = sld [smem:[#allocation7 + $0x124]] }
 0x16f   :  { %v1928_v13 = vmul.f32 %v1927_v15, %v7104_v54  ;;  %v1939_v7 = vstv %s5257_s19  ;;  %v1929_v47 = vmul.f32 %v1927_v15, %v7105_v22  ;;  %v1931_v2 = vmul.f32 %v1930_v31, %v7106_v32  ;;  %v7119_v22 = vld [vmem:[#allocation40_spill] sm:$0xff]  ;;  %s5418_s22 = sld [smem:[#allocation7 + $0x138]] }
 0x170   :  { %v1932_v10 = vmul.f32 %v1930_v31, %v7107_v38  ;;  %v1934_v40 = vmul.f32 %v1933_v42, %v7108_v14  ;;  %v1935_v62 = vmul.f32 %v1933_v42, %v7109_v55  ;;  %v1937_v50 = vmul.f32 %v1936_v9, %v7110_v61  ;;  %v7114_v42 = vld [vmem:[#allocation35_spill] sm:$0xff]  ;;  %v7115_v55 = vld [vmem:[#allocation36_spill] sm:$0xff]  ;;  %s5429_s5 = sld [smem:[#allocation7 + $0x14c]] }
 0x171   :  { %v1942_v18 = vstv %s5259_s23  ;;  %v1945_v30 = vstv %s5261_s24  ;;  %v1938_v44 = vmul.f32 %v1936_v9, %v7111_v60  ;;  %v1940_v17 = vmul.f32 %v1939_v7, %v7112_v43  ;;  %v7116_v9 = vld [vmem:[#allocation37_spill] sm:$0xff]  ;;  %v7117_v43 = vld [vmem:[#allocation38_spill] sm:$0xff]  ;;  %s5436_s19 = sld [smem:[#allocation7 + $0x160]] }
 0x172   :  { %v1941_v21 = vmul.f32 %v1939_v7, %v7113_v28  ;;  %v1948_v15 = vstv %s5263_s25  ;;  %v1951_v49 = vstv %s5279_s26  ;;  %v1954_v41 = vstv %s5284_s28  ;;  %v7118_v7 = vld [vmem:[#allocation39_spill] sm:$0xff]  ;;  %s5447_s23 = sld [smem:[#allocation7 + $0x174]] }
 0x173   :  { %v1957_v31 = vstv %s5293_s3  ;;  %v1960_v38 = vstv %s5301_s29  ;;  %v1943_v61 = vmul.f32 %v1942_v18, %v7114_v42  ;;  %v1944_v14 = vmul.f32 %v1942_v18, %v7115_v55  ;;  %v7121_v42 = vld [vmem:[#allocation43_spill] sm:$0xff]  ;;  %v7123_v55 = vld [vmem:[#allocation45_spill] sm:$0xff]  ;;  %s5453_s24 = sld [smem:[#allocation7 + $0x188]] }
 0x174   :  { %v1946_v60 = vmul.f32 %v1945_v30, %v7116_v9  ;;  %v1947_v32 = vmul.f32 %v1945_v30, %v7117_v43  ;;  %v1949_v28 = vmul.f32 %v1948_v15, %v7118_v7  ;;  %v1950_v54 = vmul.f32 %v1948_v15, %v7119_v22  ;;  %s5471_s25 = sld [smem:[#allocation7 + $0xd]] }
 0x175   :  { %v1952_v63 = vmul.f32 %v1951_v49, %v7120_v3  ;;  %v1953_v46 = vmul.f32 %v1951_v49, %v7083_v6  ;;  %v1955_v37 = vmul.f32 %v1954_v41, %v7121_v42  ;;  %v1956_v18 = vmul.f32 %v1954_v41, %v7122_v11  ;;  %s5477_s26 = sld [smem:[#allocation7 + $0x21]] }
 0x176   :  { %v1958_v9 = vmul.f32 %v1957_v31, %v7123_v55  ;;  %v1961_v30 = vmul.f32 %v1960_v38, %v7124_v59  ;;  %v1963_v43 = vstv %s5316_s30  ;;  %v1966_v7 = vstv %s5322_s8  ;;  %s5483_s28 = sld [smem:[#allocation7 + $0x35]] }
 0x177   :  { %v1969_v5 = vadd.f32 %v1913_v25, %v1910_v56  ;;  %v1970_v15 = vadd.f32 %v1914_v36, %v1911_v29  ;;  %v1971_v3 = vadd.f32 %v1919_v0, %v1916_v26  ;;  %v1972_v49 = vadd.f32 %v1920_v1, %v1917_v33  ;;  %v7125_v56 = vld [vmem:[#allocation49_spill] sm:$0xff]  ;;  %v7126_v33 = vld [vmem:[#allocation46_spill] sm:$0xff]  ;;  %v7127_v1 = vld [vmem:[#allocation48_spill] sm:$0xff]  ;;  %s5489_s3 = sld [smem:[#allocation7 + $0x49]] }
 0x178   :  { %v1973_v6 = vadd.f32 %v1925_v45, %v1922_v48  ;;  %v1974_v22 = vadd.f32 %v1926_v4, %v1923_v39  ;;  %v1975_v42 = vadd.f32 %v1931_v2, %v1928_v13  ;;  %v1976_v41 = vadd.f32 %v1932_v10, %v1929_v47  ;;  %s5495_s29 = sld [smem:[#allocation8 + $0xb]] }
 0x179   :  { %v1977_v11 = vadd.f32 %v1937_v50, %v1934_v40  ;;  %v1978_v55 = vadd.f32 %v1938_v44, %v1935_v62  ;;  %v1979_v59 = vadd.f32 %v1943_v61, %v1940_v17  ;;  %v1980_v51 = vadd.f32 %v1944_v14, %v1941_v21  ;;  %v7128_v44 = vld [vmem:[#allocation15_spill] sm:$0xff]  ;;  %v7129_v17 = vld [vmem:[#allocation16_spill] sm:$0xff]  ;;  %s5501_s30 = sld [smem:[#allocation7 + $0x5d]] }
 0x17a   :  { %v1981_v35 = vadd.f32 %v1949_v28, %v1946_v60  ;;  %v1982_v58 = vadd.f32 %v1950_v54, %v1947_v32  ;;  %v1964_v29 = vmul.f32 %v1963_v43, %v7125_v56  ;;  %v1967_v25 = vmul.f32 %v1966_v7, %v6776_v57  ;;  %s5507_s8 = sld [smem:[#allocation7 + $0x71]] }
 0x17b   :  { %v1983_v36 = vadd.f32 %v1955_v37, %v1952_v63  ;;  %v1984_v26 = vadd.f32 %v1956_v18, %v1953_v46  ;;  %v1959_v0 = vmul.f32 %v1957_v31, %v7126_v33  ;;  %v1962_v48 = vmul.f32 %v1960_v38, %v7127_v1 }
 0x17c   :  { %v1965_v39 = vmul.f32 %v1963_v43, %v6995_v53  ;;  %v1968_v21 = vmul.f32 %v1966_v7, %v3787_v23  ;;  %v1989_v45 = vadd.f32 %v1971_v3, %v1969_v5  ;;  %v1990_v4 = vadd.f32 %v1972_v49, %v1970_v15  ;;  %v7131_v15 = vld [vmem:[#allocation18_spill] sm:$0xff] }
 0x17d   :  { %v1991_v54 = vadd.f32 %v1975_v42, %v1973_v6  ;;  %v1993_v13 = vadd.f32 %v1979_v59, %v1977_v11  ;;  %v1992_v37 = vadd.f32 %v1976_v41, %v1974_v22  ;;  %v1994_v46 = vadd.f32 %v1980_v51, %v1978_v55  ;;  %v7132_v41 = vld [vmem:[#allocation19_spill] sm:$0xff]  ;;  %v7147_v6 = vld [vmem:[#allocation34_spill] sm:$0xff] }
 0x17e   :  { %v1995_v63 = vadd.f32 %v1983_v36, %v1981_v35  ;;  %v1996_v47 = vadd.f32 %v1984_v26, %v1982_v58  ;;  %v1896_v32 = vadd.f32 %v5297_v12, %v5295_v19  ;;  %v1897_v2 = vadd.f32 %v5307_v16, %v5288_v52  ;;  %v7146_v52 = vld [vmem:[#allocation33_spill] sm:$0xff] }
 0x17f   :  { %v1985_v5 = vadd.f32 %v1961_v30, %v1958_v9  ;;  %v1987_v3 = vadd.f32 %v1967_v25, %v1964_v29  ;;  %v6659_v59 = vstv %s5364_s11  ;;  %v1986_v51 = vadd.f32 %v1962_v48, %v1959_v0  ;;  %v7130_v9 = vld [vmem:[#allocation17_spill] sm:$0xff]  ;;  %v7133_v25 = vld [vmem:[#allocation20_spill] sm:$0xff] }
 0x180   :  { %v1988_v35 = vadd.f32 %v1968_v21, %v1965_v39  ;;  %v1999_v11 = vadd.f32 %v1991_v54, %v1989_v45  ;;  %v2001_v19 = vadd.f32 %v1995_v63, %v1993_v13  ;;  %v2017_v12 = vstv %s5340_s27  ;;  %v7134_v0 = vld [vmem:[#allocation21_spill] sm:$0xff]  ;;  %v7135_v39 = vld [vmem:[#allocation22_spill] sm:$0xff]  ;;  %v7136_v54 = vld [vmem:[#allocation23_spill] sm:$0xff]  ;;  %s5509_s27 = sld [smem:[#allocation10 + $0xa]] }
 0x181   :  { %v2000_v16 = vadd.f32 %v1992_v37, %v1990_v4  ;;  %v2002_v22 = vadd.f32 %v1996_v47, %v1994_v46  ;;  %v2020_v38 = vstv %s5346_s9  ;;  %v5409_v10 = vadd.f32 %v1896_v32, %v5290_v20  ;;  %v7137_v37 = vld [vmem:[#allocation24_spill] sm:$0xff]  ;;  %v7138_v63 = vld [vmem:[#allocation25_spill] sm:$0xff]  ;;  %v7139_v32 = vld [vmem:[#allocation26_spill] sm:$0xff]  ;;  %s5511_s9 = sld [smem:[#allocation10 + $0xb]] }
 0x182   :  { %v5413_v14 = vadd.f32 %v6659_v59, %v1897_v2  ;;  %v5415_v40 = vadd.f32 %v1987_v3, %v1985_v5  ;;  %v2023_v55 = vstv %s5352_s12  ;;  %v5420_v62 = vadd.f32 %v1988_v35, %v1986_v51  ;;  %v7140_v5 = vld [vmem:[#allocation27_spill] sm:$0xff]  ;;  %v7141_v51 = vld [vmem:[#allocation28_spill] sm:$0xff]  ;;  %s5513_s12 = sld [smem:[#allocation7 + $0x85]] }
 0x183   :  { %v5423_v61 = vmul.f32 %v2017_v12, %v3576_v34  ;;  %v5426_v50 = vmul.f32 %v2017_v12, %v6779_v27  ;;  %v2026_v20 = vstv %s5358_s10  ;;  %v5431_v60 = vadd.f32 %v2001_v19, %v1999_v11  ;;  %v7142_v12 = vld [vmem:[#allocation29_spill] sm:$0xff]  ;;  %s5517_s10 = sld [smem:[#allocation7 + $0x99]] }
 0x184   :  { %v2021_v43 = vmul.f32 %v2020_v38, %v7128_v44  ;;  %v2022_v28 = vmul.f32 %v2020_v38, %v7129_v17  ;;  %v2029_v31 = vstv %s5370_s0  ;;  %v5438_v42 = vadd.f32 %v2002_v22, %v2000_v16  ;;  %v7143_v22 = vld [vmem:[#allocation30_spill] sm:$0xff]  ;;  %v7159_v17 = vld [vmem:[#allocation47_spill] sm:$0xff]  ;;  %s5526_s0 = sld [smem:[#allocation8 + $0xc]] }
 0x185   :  { %v2024_v7 = vmul.f32 %v2023_v55, %v7130_v9  ;;  %v2032_v18 = vstv %s5372_s2  ;;  %v2035_v30 = vstv %s5374_s14  ;;  %v2025_v49 = vmul.f32 %v2023_v55, %v7131_v15  ;;  %v7144_v55 = vld [vmem:[#allocation31_spill] sm:$0xff]  ;;  %s5528_s2 = sld [smem:[#allocation7 + $0xad]] }
 0x186   :  { %v2027_v29 = vmul.f32 %v2026_v20, %v7132_v41  ;;  %v2028_v36 = vmul.f32 %v2026_v20, %v7133_v25  ;;  %v2038_v26 = vstv %s5378_s16  ;;  %v2030_v48 = vmul.f32 %v2029_v31, %v7134_v0  ;;  %v7157_v0 = vld [vmem:[#allocation44_spill] sm:$0xff]  ;;  %v7158_v41 = vld [vmem:[#allocation45_spill] sm:$0xff]  ;;  %s5535_s14 = sld [smem:[#allocation7 + $0xd5]] }
 0x187   :  { %v2031_v21 = vmul.f32 %v2029_v31, %v7135_v39  ;;  %v2041_v45 = vstv %s5384_s17  ;;  %v2044_v4 = vstv %s5386_s13  ;;  %v2033_v13 = vmul.f32 %v2032_v18, %v7136_v54  ;;  %v7145_v31 = vld [vmem:[#allocation32_spill] sm:$0xff]  ;;  %v7154_v39 = vld [vmem:[#allocation41_spill] sm:$0xff]  ;;  %s5537_s16 = sld [smem:[#allocation7 + $0xe9]] }
 0x188   :  { %v2034_v46 = vmul.f32 %v2032_v18, %v7137_v37  ;;  %v2036_v47 = vmul.f32 %v2035_v30, %v7138_v63  ;;  %v2037_v2 = vmul.f32 %v2035_v30, %v7139_v32  ;;  %v2039_v3 = vmul.f32 %v2038_v26, %v7140_v5  ;;  %v7149_v32 = vld [vmem:[#allocation36_spill] sm:$0xff]  ;;  %v7150_v63 = vld [vmem:[#allocation37_spill] sm:$0xff]  ;;  %s5554_s17 = sld [smem:[#allocation7 + $0xfd]] }
 0x189   :  { %v2040_v35 = vmul.f32 %v2038_v26, %v7141_v51  ;;  %v2047_v11 = vstv %s5388_s15  ;;  %v2050_v19 = vstv %s5394_s18  ;;  %v2042_v16 = vmul.f32 %v2041_v45, %v7142_v12  ;;  %v7148_v51 = vld [vmem:[#allocation35_spill] sm:$0xff]  ;;  %v7153_v54 = vld [vmem:[#allocation40_spill] sm:$0xff]  ;;  %s5560_s13 = sld [smem:[#allocation7 + $0x111]] }
 0x18a   :  { %v2043_v38 = vmul.f32 %v2041_v45, %v7143_v22  ;;  %v2045_v20 = vmul.f32 %v2044_v4, %v7144_v55  ;;  %v2046_v18 = vmul.f32 %v2044_v4, %v7145_v31  ;;  %v2048_v30 = vmul.f32 %v2047_v11, %v7146_v52  ;;  %v7151_v45 = vld [vmem:[#allocation38_spill] sm:$0xff]  ;;  %s5569_s15 = sld [smem:[#allocation7 + $0x139]] }
 0x18b   :  { %v2049_v58 = vmul.f32 %v2047_v11, %v7147_v6  ;;  %v2053_v59 = vstv %s5398_s1  ;;  %v2056_v26 = vstv %s5402_s20  ;;  %v2051_v5 = vmul.f32 %v2050_v19, %v7148_v51  ;;  %v7152_v6 = vld [vmem:[#allocation39_spill] sm:$0xff]  ;;  %s5575_s18 = sld [smem:[#allocation7 + $0x14d]] }
 0x18c   :  { %v2052_v12 = vmul.f32 %v2050_v19, %v7149_v32  ;;  %v2054_v37 = vmul.f32 %v2053_v59, %v7150_v63  ;;  %v2055_v22 = vmul.f32 %v2053_v59, %v7151_v45  ;;  %v2059_v55 = vstv %s5406_s21  ;;  %v7155_v32 = vld [vmem:[#allocation42_spill] sm:$0xff]  ;;  %v7156_v59 = vld [vmem:[#allocation43_spill] sm:$0xff]  ;;  %s5585_s1 = sld [smem:[#allocation7 + $0x161]] }
 0x18d   :  { %v2062_v4 = vstv %s5418_s22  ;;  %v2065_v52 = vstv %s5429_s5  ;;  %v2068_v11 = vstv %s5436_s19  ;;  %v2057_v31 = vmul.f32 %v2056_v26, %v7152_v6  ;;  %s5593_s20 = sld [smem:[#allocation7 + $0x175]] }
 0x18e   :  { %v2058_v51 = vmul.f32 %v2056_v26, %v7153_v54  ;;  %v2060_v19 = vmul.f32 %v2059_v55, %v7154_v39  ;;  %v2061_v63 = vmul.f32 %v2059_v55, %v7155_v32  ;;  %v2063_v45 = vmul.f32 %v2062_v4, %v7156_v59  ;;  %s5599_s21 = sld [smem:[#allocation7 + $0x189]] }
 0x18f   :  { %v2064_v25 = vmul.f32 %v2062_v4, %v7157_v0  ;;  %v2066_v15 = vmul.f32 %v2065_v52, %v7158_v41  ;;  %v2067_v9 = vmul.f32 %v2065_v52, %v7126_v33  ;;  %v2069_v6 = vmul.f32 %v2068_v11, %v7159_v17  ;;  %s5629_s22 = sld [smem:[#allocation7 + $0xe]] }
 0x190   :  { %v2070_v26 = vmul.f32 %v2068_v11, %v7127_v1  ;;  %v2071_v54 = vstv %s5447_s23  ;;  %v2074_v39 = vstv %s5453_s24  ;;  %v2077_v4 = vadd.f32 %v2021_v43, %v5423_v61  ;;  %s5635_s5 = sld [smem:[#allocation7 + $0x22]] }
 0x191   :  { %v2072_v55 = vmul.f32 %v2071_v54, %v7125_v56  ;;  %v2073_v59 = vmul.f32 %v2071_v54, %v6995_v53  ;;  %v2078_v41 = vadd.f32 %v2022_v28, %v5426_v50  ;;  %v2079_v52 = vadd.f32 %v2027_v29, %v2024_v7  ;;  %s5639_s19 = sld [smem:[#allocation7 + $0x36]] }
 0x192   :  { %v2080_v33 = vadd.f32 %v2028_v36, %v2025_v49  ;;  %v2081_v0 = vadd.f32 %v2033_v13, %v2030_v48  ;;  %v2082_v17 = vadd.f32 %v2034_v46, %v2031_v21  ;;  %v2083_v11 = vadd.f32 %v2039_v3, %v2036_v47  ;;  %v7183_v3 = vld [vmem:[#allocation33_spill] sm:$0xff]  ;;  %s5641_s23 = sld [smem:[#allocation7 + $0x4a]] }
 0x193   :  { %v2084_v1 = vadd.f32 %v2040_v35, %v2037_v2  ;;  %v2085_v32 = vadd.f32 %v2045_v20, %v2042_v16  ;;  %v2086_v44 = vadd.f32 %v2046_v18, %v2043_v38  ;;  %v2087_v54 = vadd.f32 %v2051_v5, %v2048_v30  ;;  %s5643_s24 = sld [smem:[#allocation7 + $0x5e]] }
 0x194   :  { %v2088_v53 = vadd.f32 %v2052_v12, %v2049_v58  ;;  %v2089_v61 = vadd.f32 %v2057_v31, %v2054_v37  ;;  %v2090_v43 = vadd.f32 %v2058_v51, %v2055_v22  ;;  %v2075_v50 = vmul.f32 %v2074_v39, %v6776_v57 }
 0x195   :  { %v2076_v28 = vmul.f32 %v2074_v39, %v3787_v23  ;;  %v2091_v7 = vadd.f32 %v2063_v45, %v2060_v19  ;;  %v2092_v49 = vadd.f32 %v2064_v25, %v2061_v63  ;;  %v7160_v29 = vstv %s5364_s11  ;;  %s5533_s11 = sld [smem:[#allocation7 + $0xc1]] }
 0x196   :  { %v5522_v36 = vadd.f32 %v7160_v29, %v5409_v10  ;;  %v2005_v58 = vadd.f32 %v5431_v60, %v5415_v40  ;;  %v2097_v48 = vadd.f32 %v2079_v52, %v2077_v4  ;;  %v2098_v21 = vadd.f32 %v2080_v33, %v2078_v41 }
 0x197   :  { %v2099_v13 = vadd.f32 %v2083_v11, %v2081_v0  ;;  %v2100_v37 = vadd.f32 %v2084_v1, %v2082_v17  ;;  %v2101_v46 = vadd.f32 %v2087_v54, %v2085_v32  ;;  %v2102_v47 = vadd.f32 %v2088_v53, %v2086_v44  ;;  %v7167_v54 = vld [vmem:[#allocation17_spill] sm:$0xff]  ;;  %v7185_v32 = vld [vmem:[#allocation35_spill] sm:$0xff] }
 0x198   :  { %v2006_v25 = vadd.f32 %v5438_v42, %v5420_v62  ;;  %v2007_v10 = vstv %s5495_s29  ;;  %v2103_v39 = vadd.f32 %v2091_v7, %v2089_v61  ;;  %v2104_v63 = vadd.f32 %v2092_v49, %v2090_v43  ;;  %v7168_v43 = vld [vmem:[#allocation18_spill] sm:$0xff]  ;;  %s5659_s29 = sld [smem:[#allocation8 + $0xd]] }
 0x199   :  { %v2093_v33 = vadd.f32 %v2069_v6, %v2066_v15  ;;  %v2094_v40 = vadd.f32 %v2070_v26, %v2067_v9  ;;  %v2095_v60 = vadd.f32 %v2075_v50, %v2072_v55  ;;  %v2096_v1 = vadd.f32 %v2076_v28, %v2073_v59  ;;  %v7165_v59 = vld [vmem:[#allocation15_spill] sm:$0xff]  ;;  %v7166_v55 = vld [vmem:[#allocation16_spill] sm:$0xff] }
 0x19a   :  { %v2107_v53 = vadd.f32 %v2099_v13, %v2097_v48  ;;  %v2108_v44 = vadd.f32 %v2100_v37, %v2098_v21  ;;  %v2109_v17 = vadd.f32 %v2103_v39, %v2101_v46  ;;  %v2110_v62 = vadd.f32 %v2104_v63, %v2102_v47  ;;  %v7169_v28 = vld [vmem:[#allocation19_spill] sm:$0xff]  ;;  %v7170_v48 = vld [vmem:[#allocation20_spill] sm:$0xff]  ;;  %v7171_v37 = vld [vmem:[#allocation21_spill] sm:$0xff] }
 0x19b   :  { %v7161_v42 = vmax.f32 %v5281_v24, 0.0  ;;  %v7162_v41 = vstv %s5368_s4  ;;  %v7163_v6 = vmax.f32 %v5286_v8, 0.0  ;;  %v5552_v2 = vadd.f32 %v2007_v10, %v2005_v58  ;;  %s5565_s4 = sld [smem:[#allocation7 + $0x125]]  ;;  %v7172_v47 = vld [vmem:[#allocation22_spill] sm:$0xff] }
 0x19c   :  { %v7164_v9 = vmov %v7162_v41  ;;  %v2125_v51 = vstv %s5471_s25  ;;  %v5562_v8 = vadd.f32 %v2007_v10, %v2006_v25  ;;  %v2105_v35 = vadd.f32 %v2095_v60, %v2093_v33  ;;  %v7173_v10 = vld [vmem:[#allocation23_spill] sm:$0xff]  ;;  %v7174_v33 = vld [vmem:[#allocation24_spill] sm:$0xff]  ;;  %v7175_v60 = vld [vmem:[#allocation25_spill] sm:$0xff]  ;;  %s5645_s25 = sld [smem:[#allocation7 + $0x72]] }
 0x19d   :  { %v5543_v0 = vmul.f32 %v7162_v41, %v7161_v42  ;;  %v5549_v15 = vmul.f32 %v7164_v9, %v7163_v6  ;;  %v2106_v12 = vadd.f32 %v2096_v1, %v2094_v40  ;;  %v2128_v16 = vstv %s5477_s26  ;;  %v7177_v42 = vld [vmem:[#allocation27_spill] sm:$0xff]  ;;  %v7178_v6 = vld [vmem:[#allocation28_spill] sm:$0xff]  ;;  %v7184_v24 = vld [vmem:[#allocation34_spill] sm:$0xff]  ;;  %s5649_s26 = sld [smem:[#allocation7 + $0x86]] }
 0x19e   :  { %v2111_v22 = vadd.f32 %v2109_v17, %v2107_v53  ;;  %v2112_v38 = vadd.f32 %v2110_v62, %v2108_v44  ;;  %v2131_v20 = vstv %s5483_s28  ;;  %v2134_v31 = vstv %s5489_s3  ;;  %v7176_v17 = vld [vmem:[#allocation26_spill] sm:$0xff]  ;;  %s5654_s28 = sld [smem:[#allocation10 + $0xc]] }
 0x19f   :  { %v2126_v45 = vmul.f32 %v2125_v51, %v3576_v34  ;;  %v2127_v19 = vmul.f32 %v2125_v51, %v6779_v27  ;;  %v2129_v26 = vmul.f32 %v2128_v16, %v7165_v59  ;;  %v2130_v4 = vmul.f32 %v2128_v16, %v7166_v55  ;;  %v7180_v16 = vld [vmem:[#allocation30_spill] sm:$0xff]  ;;  %s5657_s3 = sld [smem:[#allocation7 + $0x9a]] }
 0x1a0   :  { %v2137_v52 = vstv %s5501_s30  ;;  %v2140_v11 = vstv %s5507_s8  ;;  %v2132_v61 = vmul.f32 %v2131_v20, %v7167_v54  ;;  %v2133_v50 = vmul.f32 %v2131_v20, %v7168_v43  ;;  %s5674_s30 = sld [smem:[#allocation7 + $0xae]] }
 0x1a1   :  { %v2135_v7 = vmul.f32 %v2134_v31, %v7169_v28  ;;  %v2143_v49 = vstv %s5513_s12  ;;  %v5587_v29 = vadd.f32 %v2111_v22, %v2105_v35  ;;  %v5589_v58 = vadd.f32 %v2112_v38, %v2106_v12  ;;  %v7179_v35 = vld [vmem:[#allocation29_spill] sm:$0xff]  ;;  %v7194_v28 = vld [vmem:[#allocation44_spill] sm:$0xff]  ;;  %s5676_s8 = sld [smem:[#allocation7 + $0xc2]] }
 0x1a2   :  { %v2136_v21 = vmul.f32 %v2134_v31, %v7170_v48  ;;  %v2146_v13 = vstv %s5517_s10  ;;  %v2138_v46 = vmul.f32 %v2137_v52, %v7171_v37  ;;  %v2139_v25 = vmul.f32 %v2137_v52, %v7172_v47  ;;  %v7181_v31 = vld [vmem:[#allocation31_spill] sm:$0xff]  ;;  %s5698_s12 = sld [smem:[#allocation7 + $0xea]] }
 0x1a3   :  { %v2141_v39 = vmul.f32 %v2140_v11, %v7173_v10  ;;  %v2149_v63 = vstv %s5528_s2  ;;  %v2142_v40 = vmul.f32 %v2140_v11, %v7174_v33  ;;  %v2144_v1 = vmul.f32 %v2143_v49, %v7175_v60  ;;  %v7182_v11 = vld [vmem:[#allocation32_spill] sm:$0xff]  ;;  %v7188_v60 = vld [vmem:[#allocation38_spill] sm:$0xff]  ;;  %v7193_v37 = vld [vmem:[#allocation43_spill] sm:$0xff]  ;;  %s5714_s10 = sld [smem:[#allocation7 + $0xfe]] }
 0x1a4   :  { %v2152_v53 = vstv %s5533_s11  ;;  %v2155_v44 = vstv %s5535_s14  ;;  %v2145_v62 = vmul.f32 %v2143_v49, %v7176_v17  ;;  %v2147_v41 = vmul.f32 %v2146_v13, %v7177_v42  ;;  %s5730_s2 = sld [smem:[#allocation7 + $0x13a]] }
 0x1a5   :  { %v2148_v9 = vmul.f32 %v2146_v13, %v7178_v6  ;;  %v2158_v51 = vstv %s5537_s16  ;;  %v2150_v12 = vmul.f32 %v2149_v63, %v7179_v35  ;;  %v2151_v22 = vmul.f32 %v2149_v63, %v7180_v16  ;;  %v7186_v35 = vld [vmem:[#allocation36_spill] sm:$0xff]  ;;  %v7187_v16 = vld [vmem:[#allocation37_spill] sm:$0xff]  ;;  %s5736_s11 = sld [smem:[#allocation7 + $0x14e]] }
 0x1a6   :  { %v2161_v38 = vstv %s5554_s17  ;;  %v2164_v20 = vstv %s5560_s13  ;;  %v2153_v52 = vmul.f32 %v2152_v53, %v7181_v31  ;;  %v2154_v30 = vmul.f32 %v2152_v53, %v7182_v11  ;;  %v7189_v31 = vld [vmem:[#allocation39_spill] sm:$0xff]  ;;  %v7190_v53 = vld [vmem:[#allocation40_spill] sm:$0xff]  ;;  %s5741_s14 = sld [smem:[#allocation7 + $0x162]] }
 0x1a7   :  { %v2156_v18 = vmul.f32 %v2155_v44, %v7183_v3  ;;  %v2157_v49 = vmul.f32 %v2155_v44, %v7184_v24  ;;  %v2159_v5 = vmul.f32 %v2158_v51, %v7185_v32  ;;  %v2167_v42 = vstv %s5565_s4  ;;  %v7191_v3 = vld [vmem:[#allocation41_spill] sm:$0xff]  ;;  %v7192_v44 = vld [vmem:[#allocation42_spill] sm:$0xff]  ;;  %s5747_s16 = sld [smem:[#allocation7 + $0x176]] }
 0x1a8   :  { %v2170_v13 = vstv %s5569_s15  ;;  %v2173_v6 = vstv %s5575_s18  ;;  %v2160_v63 = vmul.f32 %v2158_v51, %v7186_v35  ;;  %v2162_v17 = vmul.f32 %v2161_v38, %v7187_v16  ;;  %v7195_v51 = vld [vmem:[#allocation45_spill] sm:$0xff]  ;;  %v7196_v16 = vld [vmem:[#allocation46_spill] sm:$0xff]  ;;  %s5754_s17 = sld [smem:[#allocation7 + $0x18a]] }
 0x1a9   :  { %v2163_v33 = vmul.f32 %v2161_v38, %v7188_v60  ;;  %v2165_v10 = vmul.f32 %v2164_v20, %v7189_v31  ;;  %v2166_v11 = vmul.f32 %v2164_v20, %v7190_v53  ;;  %v2168_v47 = vmul.f32 %v2167_v42, %v7191_v3  ;;  %s5783_s13 = sld [smem:[#allocation7 + $0xf]] }
 0x1aa   :  { %v2169_v24 = vmul.f32 %v2167_v42, %v7192_v44  ;;  %v2176_v32 = vstv %s5585_s1  ;;  %v2171_v48 = vmul.f32 %v2170_v13, %v7193_v37  ;;  %v2172_v43 = vmul.f32 %v2170_v13, %v7194_v28  ;;  %s5789_s4 = sld [smem:[#allocation7 + $0x23]] }
 0x1ab   :  { %v2174_v35 = vmul.f32 %v2173_v6, %v7195_v51  ;;  %v2175_v54 = vmul.f32 %v2173_v6, %v7196_v16  ;;  %v2179_v38 = vstv %s5593_s20  ;;  %v2182_v31 = vstv %s5599_s21  ;;  %s5795_s15 = sld [smem:[#allocation7 + $0x37]] }
 0x1ac   :  { %v2185_v20 = vadd.f32 %v2129_v26, %v2126_v45  ;;  %v2186_v53 = vadd.f32 %v2130_v4, %v2127_v19  ;;  %v2187_v42 = vadd.f32 %v2135_v7, %v2132_v61  ;;  %v2188_v44 = vadd.f32 %v2136_v21, %v2133_v50  ;;  %v7197_v45 = vld [vmem:[#allocation47_spill] sm:$0xff]  ;;  %v7198_v26 = vld [vmem:[#allocation48_spill] sm:$0xff]  ;;  %s5801_s18 = sld [smem:[#allocation7 + $0x4b]] }
 0x1ad   :  { %v2189_v3 = vadd.f32 %v2141_v39, %v2138_v46  ;;  %v2190_v60 = vadd.f32 %v2142_v40, %v2139_v25  ;;  %v2191_v37 = vadd.f32 %v2147_v41, %v2144_v1  ;;  %v2192_v13 = vadd.f32 %v2148_v9, %v2145_v62  ;;  %s5803_s1 = sld [smem:[#allocation10 + $0xd]] }
 0x1ae   :  { %v2193_v28 = vadd.f32 %v2153_v52, %v2150_v12  ;;  %v2194_v51 = vadd.f32 %v2154_v30, %v2151_v22  ;;  %v2195_v6 = vadd.f32 %v2159_v5, %v2156_v18  ;;  %v2196_v16 = vadd.f32 %v2160_v63, %v2157_v49  ;;  %v7199_v30 = vld [vmem:[#allocation50_spill] sm:$0xff]  ;;  %v7207_v12 = vld [vmem:[#allocation59_spill] sm:$0xff]  ;;  %s5805_s20 = sld [smem:[#allocation7 + $0x5f]] }
 0x1af   :  { %v2197_v55 = vadd.f32 %v2165_v10, %v2162_v17  ;;  %v2198_v59 = vadd.f32 %v2166_v11, %v2163_v33  ;;  %v2177_v19 = vmul.f32 %v2176_v32, %v7197_v45  ;;  %v2178_v4 = vmul.f32 %v2176_v32, %v7198_v26  ;;  %s5807_s21 = sld [smem:[#allocation7 + $0x73]] }
 0x1b0   :  { %v2199_v61 = vadd.f32 %v2171_v48, %v2168_v47  ;;  %v2200_v50 = vadd.f32 %v2172_v43, %v2169_v24  ;;  %v2180_v7 = vmul.f32 %v2179_v38, %v7125_v56  ;;  %v2181_v21 = vmul.f32 %v2179_v38, %v7199_v30 }
 0x1b1   :  { %v2183_v5 = vmul.f32 %v2182_v31, %v6776_v57  ;;  %v2205_v18 = vadd.f32 %v2187_v42, %v2185_v20  ;;  %v2184_v46 = vmul.f32 %v2182_v31, %v3787_v23  ;;  %v2206_v25 = vadd.f32 %v2188_v44, %v2186_v53  ;;  %v7220_v20 = vld [vmem:[#allocation57_spill] sm:$0xff] }
 0x1b2   :  { %v2207_v32 = vadd.f32 %v2191_v37, %v2189_v3  ;;  %v2209_v48 = vadd.f32 %v2195_v6, %v2193_v28  ;;  %v2208_v24 = vadd.f32 %v2192_v13, %v2190_v60  ;;  %v2210_v43 = vadd.f32 %v2196_v16, %v2194_v51  ;;  %v7209_v16 = vld [vmem:[#allocation54_spill] sm:$0xff] }
 0x1b3   :  { %v2211_v47 = vadd.f32 %v2199_v61, %v2197_v55  ;;  %v2212_v10 = vadd.f32 %v2200_v50, %v2198_v59  ;;  %v7200_v39 = vmax.f32 %v5413_v14, 0.0  ;;  %v7201_v33 = vstv %s5509_s27  ;;  %v7206_v14 = vld [vmem:[#allocation53_spill] sm:$0xff]  ;;  %s5696_s27 = sld [smem:[#allocation7 + $0xd6]]  ;;  %v7217_v51 = vld [vmem:[#allocation14_spill] sm:$0xff] }
 0x1b4   :  { %v7202_v1 = vmax.f32 %v5522_v36, 0.0  ;;  %v7203_v17 = vmov %v7201_v33  ;;  %v2011_v3 = vmax.f32 %v5562_v8, 0.0  ;;  %v7204_v28 = vmax.f32 %v5552_v2, 0.0 }
 0x1b5   :  { %v1905_v40 = vmul.f32 %v7201_v33, %v7200_v39  ;;  %v7205_v37 = vstv %s5511_s9  ;;  %v2201_v55 = vadd.f32 %v2177_v19, %v2174_v35  ;;  %v2203_v59 = vadd.f32 %v2183_v5, %v2180_v7  ;;  %s5726_s9 = sld [smem:[#allocation7 + $0x126]]  ;;  %v7238_v19 = vld [vmem:[#allocation31_spill] sm:$0xff] }
 0x1b6   :  { %v1906_v62 = vmul.f32 %v7203_v17, %v7202_v1  ;;  %v2013_v60 = vmul.f32 %v7205_v37, %v7204_v28  ;;  %v2215_v41 = vadd.f32 %v2207_v32, %v2205_v18  ;;  %v2217_v9 = vadd.f32 %v2211_v47, %v2209_v48  ;;  %v7225_v17 = vld [vmem:[#allocation18_spill] sm:$0xff] }
 0x1b7   :  { %v5680_v36 = vadd.f32 %v7207_v12, %v7206_v14  ;;  %v5684_v8 = vadd.f32 %v5543_v0, %v7209_v16  ;;  %v7211_v2 = vstv %s5526_s0  ;;  %v2202_v52 = vadd.f32 %v2178_v4, %v2175_v54  ;;  %v7213_v0 = vld [vmem:[#allocation55_spill] sm:$0xff]  ;;  %s5720_s0 = sld [smem:[#allocation7 + $0x112]]  ;;  %v7229_v12 = vld [vmem:[#allocation22_spill] sm:$0xff] }
 0x1b8   :  { %v5689_v22 = vadd.f32 %v7211_v2, %v5587_v29  ;;  %v7212_v35 = vmov %v7211_v2  ;;  %v2204_v11 = vadd.f32 %v2184_v46, %v2181_v21  ;;  %v2216_v49 = vadd.f32 %v2208_v24, %v2206_v25  ;;  %v7215_v29 = vld [vmem:[#allocation56_spill] sm:$0xff]  ;;  %v7230_v2 = vld [vmem:[#allocation23_spill] sm:$0xff] }
 0x1b9   :  { %7208 = vst [vmem:[#allocation53_spill] sm:$0xff] %v5680_v36  ;;  %v5694_v31 = vadd.f32 %v7212_v35, %v5589_v58  ;;  %v2218_v63 = vadd.f32 %v2212_v10, %v2210_v43  ;;  %v5702_v53 = vadd.f32 %v5549_v15, %v7213_v0  ;;  %v5705_v44 = vadd.f32 %v1905_v40, %v7215_v29  ;;  %v7222_v43 = vld [vmem:[#allocation15_spill] sm:$0xff]  ;;  %v7223_v10 = vld [vmem:[#allocation16_spill] sm:$0xff]  ;;  %v7224_v40 = vld [vmem:[#allocation17_spill] sm:$0xff] }
 0x1ba   :  { %7210 = vst [vmem:[#allocation59_spill] sm:$0xff] %v5684_v8  ;;  %v5708_v58 = vadd.f32 %v1906_v62, %v7217_v51  ;;  %v7219_v38 = vmov %v7205_v37  ;;  %v5717_v42 = vadd.f32 %v2013_v60, %v7220_v20  ;;  %v2213_v13 = vadd.f32 %v2203_v59, %v2201_v55  ;;  %v7227_v55 = vld [vmem:[#allocation20_spill] sm:$0xff]  ;;  %v7232_v0 = vld [vmem:[#allocation25_spill] sm:$0xff]  ;;  %v7233_v51 = vld [vmem:[#allocation26_spill] sm:$0xff] }
 0x1bb   :  { %7214 = vst [vmem:[#allocation54_spill] sm:$0xff] %v5702_v53  ;;  %v5712_v54 = vmul.f32 %v7219_v38, %v2011_v3  ;;  %v2219_v15 = vadd.f32 %v2217_v9, %v2215_v41  ;;  %v2233_v6 = vstv %s5629_s22  ;;  %v2236_v50 = vstv %s5635_s5  ;;  %v7226_v3 = vld [vmem:[#allocation19_spill] sm:$0xff]  ;;  %v7228_v41 = vld [vmem:[#allocation21_spill] sm:$0xff]  ;;  %v7241_v8 = vld [vmem:[#allocation34_spill] sm:$0xff]  ;;  %s5809_s22 = sld [smem:[#allocation7 + $0x87]] }
 0x1bc   :  { %7216 = vst [vmem:[#allocation55_spill] sm:$0xff] %v5705_v44  ;;  %v2214_v7 = vadd.f32 %v2204_v11, %v2202_v52  ;;  %v2220_v21 = vadd.f32 %v2218_v63, %v2216_v49  ;;  %v2239_v5 = vstv %s5639_s19  ;;  %v2242_v18 = vstv %s5641_s23  ;;  %v7231_v52 = vld [vmem:[#allocation24_spill] sm:$0xff]  ;;  %v7240_v44 = vld [vmem:[#allocation33_spill] sm:$0xff]  ;;  %v7242_v36 = vld [vmem:[#allocation35_spill] sm:$0xff]  ;;  %s5815_s5 = sld [smem:[#allocation7 + $0x9b]] }
 0x1bd   :  { %7218 = vst [vmem:[#allocation56_spill] sm:$0xff] %v5708_v58  ;;  %v6663_v46 = vstv %s5659_s29  ;;  %v2234_v25 = vmul.f32 %v2233_v6, %v3576_v34  ;;  %v2235_v32 = vmul.f32 %v2233_v6, %v6779_v27  ;;  %v2245_v48 = vstv %s5643_s24  ;;  %v7235_v6 = vld [vmem:[#allocation28_spill] sm:$0xff]  ;;  %s5821_s19 = sld [smem:[#allocation7 + $0xaf]] }
 0x1be   :  { %7221 = vst [vmem:[#allocation14_spill] sm:$0xff] %v5717_v42  ;;  %v2221_v24 = vadd.f32 %v2219_v15, %v2213_v13  ;;  %v2237_v47 = vmul.f32 %v2236_v50, %v7222_v43  ;;  %v2238_v39 = vmul.f32 %v2236_v50, %v7223_v10  ;;  %v2248_v33 = vstv %s5645_s25  ;;  %v7234_v13 = vld [vmem:[#allocation27_spill] sm:$0xff]  ;;  %s5823_s23 = sld [smem:[#allocation7 + $0xc3]] }
 0x1bf   :  { %v2240_v1 = vmul.f32 %v2239_v5, %v7224_v40  ;;  %v2241_v62 = vmul.f32 %v2239_v5, %v7225_v17  ;;  %v2243_v28 = vmul.f32 %v2242_v18, %v7226_v3  ;;  %v2251_v37 = vstv %s5649_s26  ;;  %v7236_v5 = vld [vmem:[#allocation29_spill] sm:$0xff]  ;;  %s5825_s24 = sld [smem:[#allocation7 + $0xd7]] }
 0x1c0   :  { %v5749_v60 = vadd.f32 %v2220_v21, %v2214_v7  ;;  %v2244_v59 = vmul.f32 %v2242_v18, %v7227_v55  ;;  %v2246_v9 = vmul.f32 %v2245_v48, %v7228_v41  ;;  %v2254_v14 = vstv %s5657_s3  ;;  %v7251_v41 = vld [vmem:[#allocation44_spill] sm:$0xff]  ;;  %s5833_s25 = sld [smem:[#allocation7 + $0xeb]] }
 0x1c1   :  { %v2247_v16 = vmul.f32 %v2245_v48, %v7229_v12  ;;  %v2249_v35 = vmul.f32 %v2248_v33, %v7230_v2  ;;  %v2250_v11 = vmul.f32 %v2248_v33, %v7231_v52  ;;  %v2257_v49 = vstv %s5674_s30  ;;  %v7237_v48 = vld [vmem:[#allocation30_spill] sm:$0xff]  ;;  %s5840_s26 = sld [smem:[#allocation7 + $0xff]] }
 0x1c2   :  { %v5762_v63 = vadd.f32 %v6663_v46, %v2221_v24  ;;  %v2252_v29 = vmul.f32 %v2251_v37, %v7232_v0  ;;  %v2253_v38 = vmul.f32 %v2251_v37, %v7233_v51  ;;  %v2260_v20 = vstv %s5676_s8  ;;  %v7239_v46 = vld [vmem:[#allocation32_spill] sm:$0xff]  ;;  %s5849_s3 = sld [smem:[#allocation7 + $0x113]] }
 0x1c3   :  { %v2255_v15 = vmul.f32 %v2254_v14, %v7234_v13  ;;  %v2256_v50 = vmul.f32 %v2254_v14, %v7235_v6  ;;  %v2263_v7 = vstv %s5696_s27  ;;  %v2266_v21 = vstv %s5698_s12  ;;  %v7245_v13 = vld [vmem:[#allocation38_spill] sm:$0xff]  ;;  %v7247_v0 = vld [vmem:[#allocation40_spill] sm:$0xff]  ;;  %s5868_s30 = sld [smem:[#allocation7 + $0x13b]] }
 0x1c4   :  { %v2258_v18 = vmul.f32 %v2257_v49, %v7236_v5  ;;  %v2259_v33 = vmul.f32 %v2257_v49, %v7237_v48  ;;  %v2269_v4 = vstv %s5714_s10  ;;  %v2272_v61 = vstv %s5720_s0  ;;  %v7243_v5 = vld [vmem:[#allocation36_spill] sm:$0xff]  ;;  %v7244_v48 = vld [vmem:[#allocation37_spill] sm:$0xff]  ;;  %s5886_s8 = sld [smem:[#allocation7 + $0x163]] }
 0x1c5   :  { %v2261_v24 = vmul.f32 %v2260_v20, %v7238_v19  ;;  %v2262_v42 = vmul.f32 %v2260_v20, %v7239_v46  ;;  %v2275_v37 = vstv %s5726_s9  ;;  %v2278_v58 = vstv %s5730_s2  ;;  %v7246_v20 = vld [vmem:[#allocation39_spill] sm:$0xff]  ;;  %s5893_s27 = sld [smem:[#allocation7 + $0x177]] }
 0x1c6   :  { %v2264_v53 = vmul.f32 %v2263_v7, %v7240_v44  ;;  %v2265_v14 = vmul.f32 %v2263_v7, %v7241_v8  ;;  %v2267_v6 = vmul.f32 %v2266_v21, %v7242_v36  ;;  %v2268_v49 = vmul.f32 %v2266_v21, %v7243_v5  ;;  %v7248_v44 = vld [vmem:[#allocation41_spill] sm:$0xff]  ;;  %v7249_v8 = vld [vmem:[#allocation43_spill] sm:$0xff]  ;;  %v7250_v21 = vld [vmem:[#allocation42_spill] sm:$0xff]  ;;  %s5899_s12 = sld [smem:[#allocation7 + $0x18b]] }
 0x1c7   :  { %v2270_v19 = vmul.f32 %v2269_v4, %v7244_v48  ;;  %v2271_v51 = vmul.f32 %v2269_v4, %v7245_v13  ;;  %v2273_v46 = vmul.f32 %v2272_v61, %v7246_v20  ;;  %v2274_v52 = vmul.f32 %v2272_v61, %v7247_v0  ;;  %s5921_s10 = sld [smem:[#allocation7 + $0x10]] }
 0x1c8   :  { %v2276_v7 = vmul.f32 %v2275_v37, %v7248_v44  ;;  %v2279_v2 = vmul.f32 %v2278_v58, %v7249_v8  ;;  %v2281_v36 = vstv %s5736_s11  ;;  %v2284_v12 = vstv %s5741_s14  ;;  %s5927_s0 = sld [smem:[#allocation7 + $0x24]] }
 0x1c9   :  { %v2277_v5 = vmul.f32 %v2275_v37, %v7250_v21  ;;  %v2280_v48 = vmul.f32 %v2278_v58, %v7251_v41  ;;  %v2287_v55 = vstv %s5747_s16  ;;  %v2290_v4 = vstv %s5754_s17  ;;  %s5933_s9 = sld [smem:[#allocation8 + $0xe]] }
 0x1ca   :  { %v2293_v20 = vadd.f32 %v2237_v47, %v2234_v25  ;;  %v2294_v61 = vadd.f32 %v2238_v39, %v2235_v32  ;;  %v2295_v0 = vadd.f32 %v2243_v28, %v2240_v1  ;;  %v2296_v13 = vadd.f32 %v2244_v59, %v2241_v62  ;;  %v7252_v47 = vld [vmem:[#allocation45_spill] sm:$0xff]  ;;  %s5939_s2 = sld [smem:[#allocation7 + $0x38]] }
 0x1cb   :  { %v2297_v44 = vadd.f32 %v2249_v35, %v2246_v9  ;;  %v2298_v8 = vadd.f32 %v2250_v11, %v2247_v16  ;;  %v2299_v3 = vadd.f32 %v2255_v15, %v2252_v29  ;;  %v2300_v17 = vadd.f32 %v2256_v50, %v2253_v38  ;;  %s5945_s11 = sld [smem:[#allocation7 + $0x4c]] }
 0x1cc   :  { %v2301_v40 = vadd.f32 %v2261_v24, %v2258_v18  ;;  %v2303_v37 = vadd.f32 %v2267_v6, %v2264_v53  ;;  %v2305_v21 = vadd.f32 %v2273_v46, %v2270_v19  ;;  %v2307_v58 = vadd.f32 %v2279_v2, %v2276_v7  ;;  %v7253_v53 = vld [vmem:[#allocation46_spill] sm:$0xff]  ;;  %s5951_s14 = sld [smem:[#allocation7 + $0x60]] }
 0x1cd   :  { %v2302_v41 = vadd.f32 %v2262_v42, %v2259_v33  ;;  %v2304_v10 = vadd.f32 %v2268_v49, %v2265_v14  ;;  %v2306_v25 = vadd.f32 %v2274_v52, %v2271_v51  ;;  %v2308_v32 = vadd.f32 %v2280_v48, %v2277_v5  ;;  %s5957_s16 = sld [smem:[#allocation7 + $0x74]] }
 0x1ce   :  { %v2282_v39 = vmul.f32 %v2281_v36, %v7252_v47  ;;  %v2285_v1 = vmul.f32 %v2284_v12, %v7197_v45  ;;  %v2288_v62 = vmul.f32 %v2287_v55, %v7125_v56  ;;  %v2291_v28 = vmul.f32 %v2290_v4, %v6776_v57  ;;  %s5961_s17 = sld [smem:[#allocation7 + $0x88]] }
 0x1cf   :  { %v2283_v19 = vmul.f32 %v2281_v36, %v7253_v53  ;;  %v2286_v42 = vmul.f32 %v2284_v12, %v7198_v26  ;;  %v2289_v46 = vmul.f32 %v2287_v55, %v7199_v30  ;;  %v2292_v59 = vmul.f32 %v2290_v4, %v3787_v23 }
 0x1d0   :  { %v2313_v9 = vadd.f32 %v2295_v0, %v2293_v20  ;;  %v2315_v16 = vadd.f32 %v2299_v3, %v2297_v44  ;;  %v2317_v2 = vadd.f32 %v2303_v37, %v2301_v40  ;;  %v2319_v35 = vadd.f32 %v2307_v58, %v2305_v21  ;;  %v7255_v3 = vld [vmem:[#allocation58_spill] sm:$0xff] }
 0x1d1   :  { %v2314_v52 = vadd.f32 %v2296_v13, %v2294_v61  ;;  %v2316_v11 = vadd.f32 %v2300_v17, %v2298_v8  ;;  %v2318_v29 = vadd.f32 %v2304_v10, %v2302_v41  ;;  %v2320_v36 = vadd.f32 %v2308_v32, %v2306_v25  ;;  %v7261_v61 = vld [vmem:[#allocation16_spill] sm:$0xff]  ;;  %v7262_v32 = vld [vmem:[#allocation17_spill] sm:$0xff] }
 0x1d2   :  { %v7254_v55 = vstv %s5659_s29  ;;  %v2226_v0 = vmax.f32 %v5762_v63, 0.0  ;;  %v2309_v44 = vadd.f32 %v2285_v1, %v2282_v39  ;;  %v2311_v40 = vadd.f32 %v2291_v28, %v2288_v62  ;;  %s5858_s29 = sld [smem:[#allocation7 + $0x127]]  ;;  %v7263_v28 = vld [vmem:[#allocation18_spill] sm:$0xff] }
 0x1d3   :  { %v5830_v12 = vadd.f32 %v7254_v55, %v5749_v60  ;;  %v5837_v8 = vadd.f32 %v5712_v54, %v7255_v3  ;;  %v6664_v10 = vstv %s5803_s1  ;;  %v2310_v17 = vadd.f32 %v2286_v42, %v2283_v19  ;;  %v7264_v42 = vld [vmem:[#allocation19_spill] sm:$0xff]  ;;  %v7270_v3 = vld [vmem:[#allocation25_spill] sm:$0xff] }
 0x1d4   :  { %v2312_v41 = vadd.f32 %v2292_v59, %v2289_v46  ;;  %v7257_v60 = vmax.f32 %v5689_v22, 0.0  ;;  %v7258_v51 = vstv %s5654_s28  ;;  %v2323_v38 = vadd.f32 %v2315_v16, %v2313_v9  ;;  %s5879_s28 = sld [smem:[#allocation7 + $0x14f]]  ;;  %v7265_v59 = vld [vmem:[#allocation20_spill] sm:$0xff]  ;;  %v7268_v55 = vld [vmem:[#allocation23_spill] sm:$0xff] }
 0x1d5   :  { %7256 = vst [vmem:[#allocation57_spill] sm:$0xff] %v5837_v8  ;;  %v2325_v13 = vadd.f32 %v2319_v35, %v2317_v2  ;;  %v2341_v15 = vstv %s5783_s13  ;;  %v7259_v54 = vmax.f32 %v5694_v31, 0.0  ;;  %v7260_v6 = vmov %v7258_v51  ;;  %v7266_v2 = vld [vmem:[#allocation21_spill] sm:$0xff]  ;;  %s5963_s13 = sld [smem:[#allocation7 + $0x9c]] }
 0x1d6   :  { %v5846_v63 = vmul.f32 %v7258_v51, %v7257_v60  ;;  %v2324_v5 = vadd.f32 %v2316_v11, %v2314_v52  ;;  %v2326_v18 = vadd.f32 %v2320_v36, %v2318_v29  ;;  %v2344_v48 = vstv %s5789_s4  ;;  %v7267_v52 = vld [vmem:[#allocation22_spill] sm:$0xff]  ;;  %v7278_v8 = vld [vmem:[#allocation33_spill] sm:$0xff]  ;;  %s5965_s4 = sld [smem:[#allocation7 + $0xb0]] }
 0x1d7   :  { %v5855_v50 = vmul.f32 %v7260_v6, %v7259_v54  ;;  %v5863_v33 = vmul.f32 %v6664_v10, %v2226_v0  ;;  %v5865_v24 = vadd.f32 %v2311_v40, %v2309_v44  ;;  %v2347_v14 = vstv %s5795_s15  ;;  %v7269_v44 = vld [vmem:[#allocation24_spill] sm:$0xff]  ;;  %v7271_v60 = vld [vmem:[#allocation26_spill] sm:$0xff]  ;;  %s5967_s15 = sld [smem:[#allocation7 + $0xc4]] }
 0x1d8   :  { %v5870_v31 = vadd.f32 %v2312_v41, %v2310_v17  ;;  %v5873_v49 = vmul.f32 %v2341_v15, %v3576_v34  ;;  %v5876_v20 = vmul.f32 %v2341_v15, %v6779_v27  ;;  %v2350_v7 = vstv %s5801_s18  ;;  %v7273_v15 = vld [vmem:[#allocation28_spill] sm:$0xff]  ;;  %s5978_s18 = sld [smem:[#allocation7 + $0xd8]] }
 0x1d9   :  { %v5881_v21 = vadd.f32 %v2325_v13, %v2323_v38  ;;  %v2345_v4 = vmul.f32 %v2344_v48, %v7222_v43  ;;  %v2346_v37 = vmul.f32 %v2344_v48, %v7261_v61  ;;  %v2353_v58 = vstv %s5805_s20  ;;  %v7272_v38 = vld [vmem:[#allocation27_spill] sm:$0xff]  ;;  %v7275_v48 = vld [vmem:[#allocation30_spill] sm:$0xff]  ;;  %v7277_v10 = vld [vmem:[#allocation32_spill] sm:$0xff]  ;;  %s5980_s20 = sld [smem:[#allocation7 + $0xec]] }
 0x1da   :  { %v5888_v25 = vadd.f32 %v2326_v18, %v2324_v5  ;;  %v2348_v39 = vmul.f32 %v2347_v14, %v7262_v32  ;;  %v2356_v1 = vstv %s5807_s21  ;;  %v2359_v62 = vstv %s5809_s22  ;;  %v7274_v5 = vld [vmem:[#allocation29_spill] sm:$0xff]  ;;  %v7288_v32 = vld [vmem:[#allocation43_spill] sm:$0xff]  ;;  %s5984_s21 = sld [smem:[#allocation7 + $0x114]] }
 0x1db   :  { %v2349_v19 = vmul.f32 %v2347_v14, %v7263_v28  ;;  %v2351_v46 = vmul.f32 %v2350_v7, %v7264_v42  ;;  %v2352_v9 = vmul.f32 %v2350_v7, %v7265_v59  ;;  %v2362_v16 = vstv %s5815_s5  ;;  %v7276_v7 = vld [vmem:[#allocation31_spill] sm:$0xff]  ;;  %v7285_v42 = vld [vmem:[#allocation40_spill] sm:$0xff]  ;;  %s6001_s22 = sld [smem:[#allocation7 + $0x128]] }
 0x1dc   :  { %v2354_v35 = vmul.f32 %v2353_v58, %v7266_v2  ;;  %v2355_v11 = vmul.f32 %v2353_v58, %v7267_v52  ;;  %v2365_v29 = vstv %s5821_s19  ;;  %v2368_v36 = vstv %s5823_s23  ;;  %v7284_v2 = vld [vmem:[#allocation39_spill] sm:$0xff]  ;;  %s6009_s5 = sld [smem:[#allocation7 + $0x13c]] }
 0x1dd   :  { %v2357_v0 = vmul.f32 %v2356_v1, %v7268_v55  ;;  %v2358_v40 = vmul.f32 %v2356_v1, %v7269_v44  ;;  %v2360_v17 = vmul.f32 %v2359_v62, %v7270_v3  ;;  %v2371_v41 = vstv %s5825_s24  ;;  %v7281_v44 = vld [vmem:[#allocation36_spill] sm:$0xff]  ;;  %s6018_s19 = sld [smem:[#allocation7 + $0x150]] }
 0x1de   :  { %v2361_v51 = vmul.f32 %v2359_v62, %v7271_v60  ;;  %v2363_v13 = vmul.f32 %v2362_v16, %v7272_v38  ;;  %v2364_v54 = vmul.f32 %v2362_v16, %v7273_v15  ;;  %v2374_v6 = vstv %s5833_s25  ;;  %v7279_v16 = vld [vmem:[#allocation34_spill] sm:$0xff]  ;;  %v7280_v38 = vld [vmem:[#allocation35_spill] sm:$0xff]  ;;  %s6027_s23 = sld [smem:[#allocation7 + $0x164]] }
 0x1df   :  { %v2366_v18 = vmul.f32 %v2365_v29, %v7274_v5  ;;  %v2367_v14 = vmul.f32 %v2365_v29, %v7275_v48  ;;  %v2369_v58 = vmul.f32 %v2368_v36, %v7276_v7  ;;  %v2377_v1 = vstv %s5840_s26  ;;  %v7282_v7 = vld [vmem:[#allocation37_spill] sm:$0xff]  ;;  %s6041_s24 = sld [smem:[#allocation7 + $0x178]] }
 0x1e0   :  { %v2370_v22 = vmul.f32 %v2368_v36, %v7277_v10  ;;  %v2372_v3 = vmul.f32 %v2371_v41, %v7278_v8  ;;  %v2380_v62 = vstv %s5849_s3  ;;  %v2383_v60 = vstv %s5858_s29  ;;  %v7283_v36 = vld [vmem:[#allocation38_spill] sm:$0xff]  ;;  %s6047_s25 = sld [smem:[#allocation7 + $0x18c]] }
 0x1e1   :  { %v2373_v15 = vmul.f32 %v2371_v41, %v7279_v16  ;;  %v2375_v5 = vmul.f32 %v2374_v6, %v7280_v38  ;;  %v2376_v55 = vmul.f32 %v2374_v6, %v7281_v44  ;;  %v2386_v29 = vstv %s5868_s30  ;;  %v7286_v16 = vld [vmem:[#allocation41_spill] sm:$0xff]  ;;  %v7287_v6 = vld [vmem:[#allocation42_spill] sm:$0xff]  ;;  %s6065_s26 = sld [smem:[#allocation7 + $0x11]] }
 0x1e2   :  { %v2378_v48 = vmul.f32 %v2377_v1, %v7282_v7  ;;  %v2379_v10 = vmul.f32 %v2377_v1, %v7283_v36  ;;  %v2389_v8 = vstv %s5879_s28  ;;  %v2392_v52 = vstv %s5886_s8  ;;  %v7289_v7 = vld [vmem:[#allocation44_spill] sm:$0xff]  ;;  %s6071_s3 = sld [smem:[#allocation7 + $0x25]] }
 0x1e3   :  { %v2381_v59 = vmul.f32 %v2380_v62, %v7284_v2  ;;  %v2382_v41 = vmul.f32 %v2380_v62, %v7285_v42  ;;  %v2384_v38 = vmul.f32 %v2383_v60, %v7286_v16  ;;  %v2395_v28 = vstv %s5893_s27  ;;  %s6077_s29 = sld [smem:[#allocation7 + $0x39]] }
 0x1e4   :  { %v2385_v44 = vmul.f32 %v2383_v60, %v7287_v6  ;;  %v2387_v61 = vmul.f32 %v2386_v29, %v7288_v32  ;;  %v2388_v43 = vmul.f32 %v2386_v29, %v7289_v7  ;;  %v2398_v1 = vstv %s5899_s12  ;;  %s6083_s30 = sld [smem:[#allocation7 + $0x4d]] }
 0x1e5   :  { %v2390_v36 = vmul.f32 %v2389_v8, %v7252_v47  ;;  %v2391_v2 = vmul.f32 %v2389_v8, %v7253_v53  ;;  %v2393_v62 = vmul.f32 %v2392_v52, %v7197_v45  ;;  %v2394_v16 = vmul.f32 %v2392_v52, %v7198_v26  ;;  %s6089_s28 = sld [smem:[#allocation7 + $0x61]] }
 0x1e6   :  { %v2396_v42 = vmul.f32 %v2395_v28, %v7125_v56  ;;  %v2397_v60 = vmul.f32 %v2395_v28, %v7199_v30  ;;  %v2401_v32 = vadd.f32 %v2345_v4, %v5873_v49  ;;  %v2402_v29 = vadd.f32 %v2346_v37, %v5876_v20  ;;  %s6093_s8 = sld [smem:[#allocation10 + $0xe]] }
 0x1e7   :  { %v2399_v47 = vmul.f32 %v2398_v1, %v6776_v57  ;;  %v2400_v8 = vmul.f32 %v2398_v1, %v3787_v23  ;;  %v2403_v53 = vadd.f32 %v2351_v46, %v2348_v39  ;;  %v2404_v45 = vadd.f32 %v2352_v9, %v2349_v19  ;;  %s6095_s27 = sld [smem:[#allocation7 + $0x75]] }
 0x1e8   :  { %v2405_v52 = vadd.f32 %v2357_v0, %v2354_v35  ;;  %v2406_v26 = vadd.f32 %v2358_v40, %v2355_v11  ;;  %v2407_v56 = vadd.f32 %v2363_v13, %v2360_v17  ;;  %v2408_v28 = vadd.f32 %v2364_v54, %v2361_v51  ;;  %s6097_s12 = sld [smem:[#allocation8 + $0xf]] }
 0x1e9   :  { %v2409_v49 = vadd.f32 %v2369_v58, %v2366_v18  ;;  %v2410_v20 = vadd.f32 %v2370_v22, %v2367_v14  ;;  %v2411_v4 = vadd.f32 %v2375_v5, %v2372_v3  ;;  %v2412_v37 = vadd.f32 %v2376_v55, %v2373_v15  ;;  %v7301_v14 = vld [vmem:[#allocation15_spill] sm:$0xff] }
 0x1ea   :  { %v2413_v30 = vadd.f32 %v2381_v59, %v2378_v48  ;;  %v2414_v1 = vadd.f32 %v2382_v41, %v2379_v10  ;;  %v2415_v39 = vadd.f32 %v2387_v61, %v2384_v38  ;;  %v2416_v19 = vadd.f32 %v2388_v43, %v2385_v44 }
 0x1eb   :  { %v7290_v46 = vmax.f32 %v5830_v12, 0.0  ;;  %v7291_v9 = vstv %s5803_s1  ;;  %v2329_v11 = vadd.f32 %v5881_v21, %v5865_v24  ;;  %v2330_v22 = vadd.f32 %v5888_v25, %v5870_v31  ;;  %s5982_s1 = sld [smem:[#allocation7 + $0x100]] }
 0x1ec   :  { %v2331_v0 = vstv %s5933_s9  ;;  %v2417_v55 = vadd.f32 %v2393_v62, %v2390_v36  ;;  %v2418_v59 = vadd.f32 %v2394_v16, %v2391_v2  ;;  %v2419_v10 = vadd.f32 %v2399_v47, %v2396_v42  ;;  %v7292_v2 = vld [vmem:[#allocation52_spill] sm:$0xff]  ;;  %v7294_v42 = vld [vmem:[#allocation53_spill] sm:$0xff]  ;;  %s6109_s9 = sld [smem:[#allocation7 + $0xb1]] }
 0x1ed   :  { %v2230_v35 = vmul.f32 %v7291_v9, %v7290_v46  ;;  %v2420_v61 = vadd.f32 %v2400_v8, %v2397_v60  ;;  %v2421_v43 = vadd.f32 %v2403_v53, %v2401_v32  ;;  %v2422_v44 = vadd.f32 %v2404_v45, %v2402_v29  ;;  %v7298_v53 = vld [vmem:[#allocation54_spill] sm:$0xff]  ;;  %v7302_v36 = vld [vmem:[#allocation16_spill] sm:$0xff]  ;;  %v7303_v62 = vld [vmem:[#allocation17_spill] sm:$0xff] }
 0x1ee   :  { %v2423_v12 = vadd.f32 %v2407_v56, %v2405_v52  ;;  %v2424_v40 = vadd.f32 %v2408_v28, %v2406_v26  ;;  %v2425_v24 = vadd.f32 %v2411_v4, %v2409_v49  ;;  %v2426_v21 = vadd.f32 %v2412_v37, %v2410_v20  ;;  %v7296_v56 = vld [vmem:[#allocation59_spill] sm:$0xff]  ;;  %v7304_v52 = vld [vmem:[#allocation18_spill] sm:$0xff] }
 0x1ef   :  { %v2427_v31 = vadd.f32 %v2415_v39, %v2413_v30  ;;  %v2428_v25 = vadd.f32 %v2416_v19, %v2414_v1  ;;  %v5988_v47 = vadd.f32 %v5846_v63, %v7292_v2  ;;  %v5992_v45 = vadd.f32 %v5855_v50, %v7294_v42  ;;  %v7305_v49 = vld [vmem:[#allocation19_spill] sm:$0xff]  ;;  %v7306_v1 = vld [vmem:[#allocation20_spill] sm:$0xff]  ;;  %v7307_v19 = vld [vmem:[#allocation21_spill] sm:$0xff] }
 0x1f0   :  { %v5996_v26 = vadd.f32 %v5863_v33, %v7296_v56  ;;  %v5999_v32 = vadd.f32 %v2230_v35, %v7298_v53  ;;  %v6003_v30 = vadd.f32 %v2331_v0, %v2329_v11  ;;  %v6005_v3 = vadd.f32 %v2331_v0, %v2330_v22  ;;  %v7308_v9 = vld [vmem:[#allocation22_spill] sm:$0xff]  ;;  %v7309_v22 = vld [vmem:[#allocation23_spill] sm:$0xff] }
 0x1f1   :  { %7293 = vst [vmem:[#allocation58_spill] sm:$0xff] %v5988_v47  ;;  %v2449_v63 = vstv %s5921_s10  ;;  %v2452_v17 = vstv %s5927_s0  ;;  %v6011_v50 = vadd.f32 %v2419_v10, %v2417_v55  ;;  %v6013_v33 = vadd.f32 %v2420_v61, %v2418_v59  ;;  %v7310_v55 = vld [vmem:[#allocation24_spill] sm:$0xff]  ;;  %v7311_v10 = vld [vmem:[#allocation25_spill] sm:$0xff]  ;;  %v7316_v42 = vld [vmem:[#allocation30_spill] sm:$0xff]  ;;  %s6099_s10 = sld [smem:[#allocation7 + $0x89]] }
 0x1f2   :  { %7295 = vst [vmem:[#allocation52_spill] sm:$0xff] %v5992_v45  ;;  %v6015_v51 = vadd.f32 %v2423_v12, %v2421_v43  ;;  %v2455_v38 = vstv %s5939_s2  ;;  %v6020_v13 = vadd.f32 %v2424_v40, %v2422_v44  ;;  %v6022_v15 = vadd.f32 %v2427_v31, %v2425_v24  ;;  %v7312_v44 = vld [vmem:[#allocation26_spill] sm:$0xff]  ;;  %v7313_v40 = vld [vmem:[#allocation27_spill] sm:$0xff]  ;;  %s6103_s0 = sld [smem:[#allocation7 + $0x9d]] }
 0x1f3   :  { %7297 = vst [vmem:[#allocation53_spill] sm:$0xff] %v5996_v26  ;;  %v6024_v54 = vadd.f32 %v2428_v25, %v2426_v21  ;;  %v2458_v5 = vstv %s5945_s11  ;;  %v2450_v18 = vmul.f32 %v2449_v63, %v3576_v34  ;;  %v2451_v48 = vmul.f32 %v2449_v63, %v6779_v27  ;;  %v7314_v21 = vld [vmem:[#allocation28_spill] sm:$0xff]  ;;  %v7315_v25 = vld [vmem:[#allocation29_spill] sm:$0xff]  ;;  %v7317_v53 = vld [vmem:[#allocation31_spill] sm:$0xff]  ;;  %s6111_s2 = sld [smem:[#allocation7 + $0xc5]] }
 0x1f4   :  { %7299 = vst [vmem:[#allocation59_spill] sm:$0xff] %v5999_v32  ;;  %v2453_v58 = vmul.f32 %v2452_v17, %v7301_v14  ;;  %v2461_v16 = vstv %s5951_s14  ;;  %v2454_v41 = vmul.f32 %v2452_v17, %v7302_v36  ;;  %v2456_v60 = vmul.f32 %v2455_v38, %v7303_v62  ;;  %v7320_v26 = vld [vmem:[#allocation34_spill] sm:$0xff]  ;;  %s6113_s11 = sld [smem:[#allocation7 + $0xd9]] }
 0x1f5   :  { %7300 = vst [vmem:[#allocation54_spill] sm:$0xff] %v6005_v3  ;;  %v2464_v29 = vstv %s5957_s16  ;;  %v2467_v8 = vstv %s5961_s17  ;;  %v2457_v28 = vmul.f32 %v2455_v38, %v7304_v52  ;;  %v2459_v20 = vmul.f32 %v2458_v5, %v7305_v49  ;;  %v7330_v49 = vld [vmem:[#allocation47_spill] sm:$0xff]  ;;  %s6119_s14 = sld [smem:[#allocation7 + $0xed]] }
 0x1f6   :  { %v2470_v4 = vstv %s5963_s13  ;;  %v2473_v37 = vstv %s5965_s4  ;;  %v2460_v39 = vmul.f32 %v2458_v5, %v7306_v1  ;;  %v2462_v46 = vmul.f32 %v2461_v16, %v7307_v19  ;;  %v7318_v5 = vld [vmem:[#allocation32_spill] sm:$0xff]  ;;  %s6123_s16 = sld [smem:[#allocation7 + $0x101]]  ;;  %v7355_v3 = vld [vmem:[#allocation35_spill] sm:$0xff] }
 0x1f7   :  { %v2463_v35 = vmul.f32 %v2461_v16, %v7308_v9  ;;  %v2476_v11 = vstv %s5967_s15  ;;  %v2465_v0 = vmul.f32 %v2464_v29, %v7309_v22  ;;  %v2466_v59 = vmul.f32 %v2464_v29, %v7310_v55  ;;  %v7319_v29 = vld [vmem:[#allocation33_spill] sm:$0xff]  ;;  %s6127_s17 = sld [smem:[#allocation7 + $0x115]] }
 0x1f8   :  { %v2468_v61 = vmul.f32 %v2467_v8, %v7311_v10  ;;  %v2479_v43 = vstv %s5978_s18  ;;  %v2469_v12 = vmul.f32 %v2467_v8, %v7312_v44  ;;  %v2471_v24 = vmul.f32 %v2470_v4, %v7313_v40  ;;  %v7326_v10 = vld [vmem:[#allocation40_spill] sm:$0xff]  ;;  %v7327_v22 = vld [vmem:[#allocation41_spill] sm:$0xff]  ;;  %s6131_s13 = sld [smem:[#allocation7 + $0x129]] }
 0x1f9   :  { %v2472_v31 = vmul.f32 %v2470_v4, %v7314_v21  ;;  %v2474_v2 = vmul.f32 %v2473_v37, %v7315_v25  ;;  %v2475_v56 = vmul.f32 %v2473_v37, %v7316_v42  ;;  %v2477_v63 = vmul.f32 %v2476_v11, %v7317_v53  ;;  %v7321_v37 = vld [vmem:[#allocation35_spill] sm:$0xff]  ;;  %v7322_v42 = vld [vmem:[#allocation36_spill] sm:$0xff]  ;;  %s6142_s4 = sld [smem:[#allocation7 + $0x13d]] }
 0x1fa   :  { %v2482_v17 = vstv %s5980_s20  ;;  %v2485_v38 = vstv %s5982_s1  ;;  %v2478_v16 = vmul.f32 %v2476_v11, %v7318_v5  ;;  %v2480_v32 = vmul.f32 %v2479_v43, %v7319_v29  ;;  %v7323_v11 = vld [vmem:[#allocation37_spill] sm:$0xff]  ;;  %v7324_v29 = vld [vmem:[#allocation38_spill] sm:$0xff]  ;;  %s6153_s15 = sld [smem:[#allocation7 + $0x151]] }
 0x1fb   :  { %v2481_v45 = vmul.f32 %v2479_v43, %v7320_v26  ;;  %v2488_v8 = vstv %s5984_s21  ;;  %v2491_v47 = vstv %s6001_s22  ;;  %v2494_v40 = vstv %s6009_s5  ;;  %v7325_v43 = vld [vmem:[#allocation39_spill] sm:$0xff]  ;;  %s6160_s18 = sld [smem:[#allocation7 + $0x165]] }
 0x1fc   :  { %v2497_v4 = vstv %s6018_s19  ;;  %v2500_v21 = vstv %s6027_s23  ;;  %v2483_v53 = vmul.f32 %v2482_v17, %v7321_v37  ;;  %v2484_v25 = vmul.f32 %v2482_v17, %v7322_v42  ;;  %v7328_v37 = vld [vmem:[#allocation43_spill] sm:$0xff]  ;;  %v7329_v42 = vld [vmem:[#allocation45_spill] sm:$0xff]  ;;  %s6171_s20 = sld [smem:[#allocation7 + $0x179]] }
 0x1fd   :  { %v2486_v5 = vmul.f32 %v2485_v38, %v7323_v11  ;;  %v2487_v44 = vmul.f32 %v2485_v38, %v7324_v29  ;;  %v2489_v26 = vmul.f32 %v2488_v8, %v7325_v43  ;;  %v2490_v55 = vmul.f32 %v2488_v8, %v7326_v10  ;;  %s6177_s1 = sld [smem:[#allocation7 + $0x18d]] }
 0x1fe   :  { %v2492_v9 = vmul.f32 %v2491_v47, %v7327_v22  ;;  %v2493_v19 = vmul.f32 %v2491_v47, %v7287_v6  ;;  %v2495_v1 = vmul.f32 %v2494_v40, %v7328_v37  ;;  %v2496_v17 = vmul.f32 %v2494_v40, %v7289_v7  ;;  %s6195_s21 = sld [smem:[#allocation7 + $0x12]] }
 0x1ff   :  { %v2498_v11 = vmul.f32 %v2497_v4, %v7329_v42  ;;  %v2501_v38 = vmul.f32 %v2500_v21, %v7330_v49  ;;  %v2503_v29 = vstv %s6041_s24  ;;  %v2506_v43 = vstv %s6047_s25  ;;  %s6201_s22 = sld [smem:[#allocation7 + $0x26]] }
 0x200   :  { %v2509_v52 = vadd.f32 %v2453_v58, %v2450_v18  ;;  %v2510_v8 = vadd.f32 %v2454_v41, %v2451_v48  ;;  %v2511_v22 = vadd.f32 %v2459_v20, %v2456_v60  ;;  %v2512_v47 = vadd.f32 %v2460_v39, %v2457_v28  ;;  %v7331_v18 = vld [vmem:[#allocation49_spill] sm:$0xff]  ;;  %v7332_v28 = vld [vmem:[#allocation46_spill] sm:$0xff]  ;;  %v7333_v39 = vld [vmem:[#allocation48_spill] sm:$0xff]  ;;  %s6207_s5 = sld [smem:[#allocation7 + $0x3a]] }
 0x201   :  { %v2513_v6 = vadd.f32 %v2465_v0, %v2462_v46  ;;  %v2514_v10 = vadd.f32 %v2466_v59, %v2463_v35  ;;  %v2515_v37 = vadd.f32 %v2471_v24, %v2468_v61  ;;  %v2516_v40 = vadd.f32 %v2472_v31, %v2469_v12  ;;  %v7334_v35 = vld [vmem:[#allocation50_spill] sm:$0xff]  ;;  %s6213_s19 = sld [smem:[#allocation7 + $0x4e]] }
 0x202   :  { %v2517_v7 = vadd.f32 %v2477_v63, %v2474_v2  ;;  %v2518_v42 = vadd.f32 %v2478_v16, %v2475_v56  ;;  %v2519_v49 = vadd.f32 %v2483_v53, %v2480_v32  ;;  %v2520_v62 = vadd.f32 %v2484_v25, %v2481_v45  ;;  %v7335_v63 = vld [vmem:[#allocation15_spill] sm:$0xff]  ;;  %v7336_v16 = vld [vmem:[#allocation16_spill] sm:$0xff]  ;;  %s6219_s23 = sld [smem:[#allocation7 + $0x62]] }
 0x203   :  { %v2521_v36 = vadd.f32 %v2489_v26, %v2486_v5  ;;  %v2522_v14 = vadd.f32 %v2490_v55, %v2487_v44  ;;  %v2504_v48 = vmul.f32 %v2503_v29, %v7331_v18  ;;  %v2507_v58 = vmul.f32 %v2506_v43, %v6776_v57  ;;  %s6225_s24 = sld [smem:[#allocation8 + $0x10]] }
 0x204   :  { %v2523_v41 = vadd.f32 %v2495_v1, %v2492_v9  ;;  %v2524_v60 = vadd.f32 %v2496_v17, %v2493_v19  ;;  %v2499_v20 = vmul.f32 %v2497_v4, %v7332_v28  ;;  %v2502_v46 = vmul.f32 %v2500_v21, %v7333_v39  ;;  %s6231_s25 = sld [smem:[#allocation10 + $0xf]] }
 0x205   :  { %v2505_v0 = vmul.f32 %v2503_v29, %v7334_v35  ;;  %v2508_v45 = vmul.f32 %v2506_v43, %v3787_v23  ;;  %v2529_v26 = vadd.f32 %v2511_v22, %v2509_v52  ;;  %v2530_v32 = vadd.f32 %v2512_v47, %v2510_v8  ;;  %v7338_v8 = vld [vmem:[#allocation18_spill] sm:$0xff] }
 0x206   :  { %v2531_v55 = vadd.f32 %v2515_v37, %v2513_v6  ;;  %v2533_v59 = vadd.f32 %v2519_v49, %v2517_v7  ;;  %v2532_v1 = vadd.f32 %v2516_v40, %v2514_v10  ;;  %v2534_v19 = vadd.f32 %v2520_v62, %v2518_v42  ;;  %v7339_v40 = vld [vmem:[#allocation19_spill] sm:$0xff]  ;;  %v7353_v49 = vld [vmem:[#allocation33_spill] sm:$0xff] }
 0x207   :  { %v2535_v9 = vadd.f32 %v2523_v41, %v2521_v36  ;;  %v2536_v61 = vadd.f32 %v2524_v60, %v2522_v14  ;;  %v2435_v44 = vadd.f32 %v6022_v15, %v6015_v51  ;;  %v2436_v52 = vadd.f32 %v6024_v54, %v6020_v13  ;;  %v7354_v13 = vld [vmem:[#allocation34_spill] sm:$0xff] }
 0x208   :  { %v2525_v22 = vadd.f32 %v2501_v38, %v2498_v11  ;;  %v2527_v6 = vadd.f32 %v2507_v58, %v2504_v48  ;;  %v2526_v36 = vadd.f32 %v2502_v46, %v2499_v20  ;;  %v2528_v14 = vadd.f32 %v2508_v45, %v2505_v0  ;;  %v7337_v11 = vld [vmem:[#allocation17_spill] sm:$0xff]  ;;  %v7340_v58 = vld [vmem:[#allocation20_spill] sm:$0xff]  ;;  %v7342_v0 = vld [vmem:[#allocation22_spill] sm:$0xff] }
 0x209   :  { %v2539_v10 = vadd.f32 %v2531_v55, %v2529_v26  ;;  %v2541_v51 = vadd.f32 %v2535_v9, %v2533_v59  ;;  %v2557_v15 = vstv %s6065_s26  ;;  %v2540_v54 = vadd.f32 %v2532_v1, %v2530_v32  ;;  %v7341_v20 = vld [vmem:[#allocation21_spill] sm:$0xff]  ;;  %v7343_v55 = vld [vmem:[#allocation23_spill] sm:$0xff]  ;;  %v7344_v1 = vld [vmem:[#allocation24_spill] sm:$0xff]  ;;  %s6233_s26 = sld [smem:[#allocation7 + $0x76]] }
 0x20a   :  { %v2542_v12 = vadd.f32 %v2536_v61, %v2534_v19  ;;  %v2560_v24 = vstv %s6071_s3  ;;  %v6134_v21 = vadd.f32 %v2435_v44, %v6011_v50  ;;  %v6137_v31 = vadd.f32 %v2436_v52, %v6013_v33  ;;  %v7345_v9 = vld [vmem:[#allocation25_spill] sm:$0xff]  ;;  %v7346_v44 = vld [vmem:[#allocation26_spill] sm:$0xff]  ;;  %s6235_s3 = sld [smem:[#allocation7 + $0x8a]] }
 0x20b   :  { %v6139_v25 = vadd.f32 %v2527_v6, %v2525_v22  ;;  %v2563_v2 = vstv %s6077_s29  ;;  %v6144_v42 = vadd.f32 %v2528_v14, %v2526_v36  ;;  %v6147_v56 = vmul.f32 %v2557_v15, %v3576_v34  ;;  %v7347_v22 = vld [vmem:[#allocation27_spill] sm:$0xff]  ;;  %v7348_v36 = vld [vmem:[#allocation28_spill] sm:$0xff]  ;;  %s6237_s29 = sld [smem:[#allocation8 + $0x11]] }
 0x20c   :  { %v6150_v53 = vmul.f32 %v2557_v15, %v6779_v27  ;;  %v2566_v50 = vstv %s6083_s30  ;;  %v6155_v33 = vadd.f32 %v2541_v51, %v2539_v10  ;;  %v2561_v5 = vmul.f32 %v2560_v24, %v7335_v63  ;;  %v7349_v15 = vld [vmem:[#allocation29_spill] sm:$0xff]  ;;  %s6241_s30 = sld [smem:[#allocation7 + $0x9e]] }
 0x20d   :  { %v2562_v29 = vmul.f32 %v2560_v24, %v7336_v16  ;;  %v2569_v4 = vstv %s6089_s28  ;;  %v6162_v37 = vadd.f32 %v2542_v12, %v2540_v54  ;;  %v2564_v43 = vmul.f32 %v2563_v2, %v7337_v11  ;;  %v7350_v12 = vld [vmem:[#allocation30_spill] sm:$0xff]  ;;  %v7366_v11 = vld [vmem:[#allocation47_spill] sm:$0xff]  ;;  %s6247_s28 = sld [smem:[#allocation7 + $0xb2]] }
 0x20e   :  { %v2572_v17 = vstv %s6095_s27  ;;  %v2575_v38 = vstv %s6099_s10  ;;  %v2565_v47 = vmul.f32 %v2563_v2, %v7338_v8  ;;  %v2567_v48 = vmul.f32 %v2566_v50, %v7339_v40  ;;  %v7351_v2 = vld [vmem:[#allocation31_spill] sm:$0xff]  ;;  %s6249_s27 = sld [smem:[#allocation7 + $0xc6]] }
 0x20f   :  { %v2568_v41 = vmul.f32 %v2566_v50, %v7340_v58  ;;  %v2578_v60 = vstv %s6103_s0  ;;  %v2570_v46 = vmul.f32 %v2569_v4, %v7341_v20  ;;  %v2571_v45 = vmul.f32 %v2569_v4, %v7342_v0  ;;  %v7352_v4 = vld [vmem:[#allocation32_spill] sm:$0xff]  ;;  %v7365_v58 = vld [vmem:[#allocation45_spill] sm:$0xff]  ;;  %s6251_s10 = sld [smem:[#allocation7 + $0xda]] }
 0x210   :  { %v2581_v26 = vstv %s6109_s9  ;;  %v2584_v32 = vstv %s6111_s2  ;;  %v2573_v59 = vmul.f32 %v2572_v17, %v7343_v55  ;;  %v2574_v19 = vmul.f32 %v2572_v17, %v7344_v1  ;;  %v7360_v1 = vld [vmem:[#allocation40_spill] sm:$0xff]  ;;  %v7361_v55 = vld [vmem:[#allocation41_spill] sm:$0xff]  ;;  %s6260_s0 = sld [smem:[#allocation7 + $0xee]] }
 0x211   :  { %v2576_v61 = vmul.f32 %v2575_v38, %v7345_v9  ;;  %v2577_v52 = vmul.f32 %v2575_v38, %v7346_v44  ;;  %v2579_v6 = vmul.f32 %v2578_v60, %v7347_v22  ;;  %v2580_v14 = vmul.f32 %v2578_v60, %v7348_v36  ;;  %v7356_v22 = vld [vmem:[#allocation36_spill] sm:$0xff]  ;;  %v7357_v44 = vld [vmem:[#allocation37_spill] sm:$0xff]  ;;  %s6269_s9 = sld [smem:[#allocation7 + $0x102]] }
 0x212   :  { %v2587_v10 = vstv %s6113_s11  ;;  %v2590_v51 = vstv %s6119_s14  ;;  %v2582_v54 = vmul.f32 %v2581_v26, %v7349_v15  ;;  %v2583_v24 = vmul.f32 %v2581_v26, %v7350_v12  ;;  %v7358_v26 = vld [vmem:[#allocation38_spill] sm:$0xff]  ;;  %v7364_v0 = vld [vmem:[#allocation44_spill] sm:$0xff]  ;;  %s6272_s2 = sld [smem:[#allocation7 + $0x116]] }
 0x213   :  { %v2585_v50 = vmul.f32 %v2584_v32, %v7351_v2  ;;  %v2586_v17 = vmul.f32 %v2584_v32, %v7352_v4  ;;  %v2588_v38 = vmul.f32 %v2587_v10, %v7353_v49  ;;  %v2589_v62 = vmul.f32 %v2587_v10, %v7354_v13  ;;  %v7359_v13 = vld [vmem:[#allocation39_spill] sm:$0xff]  ;;  %s6285_s11 = sld [smem:[#allocation7 + $0x12a]] }
 0x214   :  { %v2593_v7 = vstv %s6123_s16  ;;  %v2596_v60 = vstv %s6127_s17  ;;  %v2591_v36 = vmul.f32 %v2590_v51, %v7355_v3  ;;  %v2592_v15 = vmul.f32 %v2590_v51, %v7356_v22  ;;  %v7362_v22 = vld [vmem:[#allocation42_spill] sm:$0xff]  ;;  %s6302_s14 = sld [smem:[#allocation7 + $0x152]] }
 0x215   :  { %v2594_v9 = vmul.f32 %v2593_v7, %v7357_v44  ;;  %v2595_v12 = vmul.f32 %v2593_v7, %v7358_v26  ;;  %v2599_v2 = vstv %s6131_s13  ;;  %v2602_v32 = vstv %s6142_s4  ;;  %v7363_v7 = vld [vmem:[#allocation43_spill] sm:$0xff]  ;;  %s6310_s16 = sld [smem:[#allocation7 + $0x166]] }
 0x216   :  { %v2605_v49 = vstv %s6153_s15  ;;  %v2608_v10 = vstv %s6160_s18  ;;  %v2597_v4 = vmul.f32 %v2596_v60, %v7359_v13  ;;  %v2598_v3 = vmul.f32 %v2596_v60, %v7360_v1  ;;  %s6320_s17 = sld [smem:[#allocation7 + $0x17a]] }
 0x217   :  { %v2600_v51 = vmul.f32 %v2599_v2, %v7361_v55  ;;  %v2601_v44 = vmul.f32 %v2599_v2, %v7362_v22  ;;  %v2603_v26 = vmul.f32 %v2602_v32, %v7363_v7  ;;  %v2604_v20 = vmul.f32 %v2602_v32, %v7364_v0  ;;  %s6326_s13 = sld [smem:[#allocation7 + $0x18e]] }
 0x218   :  { %v2606_v40 = vmul.f32 %v2605_v49, %v7365_v58  ;;  %v2607_v8 = vmul.f32 %v2605_v49, %v7332_v28  ;;  %v2609_v13 = vmul.f32 %v2608_v10, %v7366_v11  ;;  %v2610_v60 = vmul.f32 %v2608_v10, %v7333_v39  ;;  %s6348_s4 = sld [smem:[#allocation7 + $0x13]] }
 0x219   :  { %v2611_v1 = vstv %s6171_s20  ;;  %v2614_v55 = vstv %s6177_s1  ;;  %v2617_v32 = vadd.f32 %v2561_v5, %v6147_v56  ;;  %v2618_v58 = vadd.f32 %v2562_v29, %v6150_v53  ;;  %s6354_s15 = sld [smem:[#allocation7 + $0x27]] }
 0x21a   :  { %v2612_v2 = vmul.f32 %v2611_v1, %v7331_v18  ;;  %v2615_v7 = vmul.f32 %v2614_v55, %v6776_v57  ;;  %v2619_v49 = vadd.f32 %v2567_v48, %v2564_v43  ;;  %v2620_v28 = vadd.f32 %v2568_v41, %v2565_v47  ;;  %s6360_s18 = sld [smem:[#allocation7 + $0x3b]] }
 0x21b   :  { %v2621_v0 = vadd.f32 %v2573_v59, %v2570_v46  ;;  %v2622_v11 = vadd.f32 %v2574_v19, %v2571_v45  ;;  %v2623_v10 = vadd.f32 %v2579_v6, %v2576_v61  ;;  %v2624_v39 = vadd.f32 %v2580_v14, %v2577_v52  ;;  %s6366_s20 = sld [smem:[#allocation7 + $0x4f]] }
 0x21c   :  { %v2625_v22 = vadd.f32 %v2585_v50, %v2582_v54  ;;  %v2626_v16 = vadd.f32 %v2586_v17, %v2583_v24  ;;  %v2627_v18 = vadd.f32 %v2591_v36, %v2588_v38  ;;  %v2628_v57 = vadd.f32 %v2592_v15, %v2589_v62  ;;  %v7372_v36 = vld [vmem:[#allocation15_spill] sm:$0xff]  ;;  %v7373_v50 = vld [vmem:[#allocation16_spill] sm:$0xff]  ;;  %v7374_v38 = vld [vmem:[#allocation17_spill] sm:$0xff]  ;;  %s6372_s1 = sld [smem:[#allocation7 + $0x63]] }
 0x21d   :  { %v2629_v63 = vadd.f32 %v2597_v4, %v2594_v9  ;;  %v2630_v56 = vadd.f32 %v2598_v3, %v2595_v12  ;;  %v2613_v53 = vmul.f32 %v2611_v1, %v7334_v35  ;;  %v2616_v5 = vmul.f32 %v2614_v55, %v3787_v23 }
 0x21e   :  { %v2631_v29 = vadd.f32 %v2603_v26, %v2600_v51  ;;  %v2632_v43 = vadd.f32 %v2604_v20, %v2601_v44  ;;  %v2545_v47 = vadd.f32 %v6155_v33, %v6139_v25  ;;  %v2546_v62 = vadd.f32 %v6162_v37, %v6144_v42  ;;  %v7375_v51 = vld [vmem:[#allocation18_spill] sm:$0xff] }
 0x21f   :  { %v2637_v48 = vadd.f32 %v2619_v49, %v2617_v32  ;;  %v2638_v3 = vadd.f32 %v2620_v28, %v2618_v58  ;;  %v2639_v41 = vadd.f32 %v2623_v10, %v2621_v0  ;;  %v2640_v46 = vadd.f32 %v2624_v39, %v2622_v11  ;;  %v7376_v32 = vld [vmem:[#allocation19_spill] sm:$0xff]  ;;  %v7377_v10 = vld [vmem:[#allocation20_spill] sm:$0xff] }
 0x220   :  { %v2641_v45 = vadd.f32 %v2627_v18, %v2625_v22  ;;  %v2642_v20 = vadd.f32 %v2628_v57, %v2626_v16  ;;  %v2633_v55 = vadd.f32 %v2609_v13, %v2606_v40  ;;  %v2635_v59 = vadd.f32 %v2615_v7, %v2612_v2 }
 0x221   :  { %v2643_v25 = vadd.f32 %v2631_v29, %v2629_v63  ;;  %v2644_v33 = vadd.f32 %v2632_v43, %v2630_v56  ;;  %v7367_v28 = vmax.f32 %v6003_v30, 0.0  ;;  %v7368_v42 = vstv %s6093_s8  ;;  %v7379_v29 = vld [vmem:[#allocation22_spill] sm:$0xff] }
 0x222   :  { %v2547_v58 = vstv %s6225_s24  ;;  %v2634_v39 = vadd.f32 %v2610_v60, %v2607_v8  ;;  %v2636_v18 = vadd.f32 %v2616_v5, %v2613_v53  ;;  %v7370_v57 = vstv %s6097_s12  ;;  %s6294_s12 = sld [smem:[#allocation7 + $0x13e]]  ;;  %v7378_v53 = vld [vmem:[#allocation21_spill] sm:$0xff] }
 0x223   :  { %v6257_v37 = vmul.f32 %v7368_v42, %v7367_v28  ;;  %v6265_v13 = vadd.f32 %v7370_v57, %v6134_v21  ;;  %v2647_v16 = vadd.f32 %v2639_v41, %v2637_v48  ;;  %v2665_v11 = vstv %s6195_s21  ;;  %v7381_v48 = vld [vmem:[#allocation24_spill] sm:$0xff]  ;;  %s6378_s21 = sld [smem:[#allocation10 + $0x10]] }
 0x224   :  { %v2648_v30 = vadd.f32 %v2640_v46, %v2638_v3  ;;  %v2649_v40 = vadd.f32 %v2643_v25, %v2641_v45  ;;  %v2650_v0 = vadd.f32 %v2644_v33, %v2642_v20  ;;  %v2668_v8 = vstv %s6201_s22  ;;  %v7382_v45 = vld [vmem:[#allocation25_spill] sm:$0xff]  ;;  %v7384_v25 = vld [vmem:[#allocation27_spill] sm:$0xff]  ;;  %v7385_v28 = vld [vmem:[#allocation28_spill] sm:$0xff]  ;;  %s6380_s22 = sld [smem:[#allocation7 + $0x77]] }
 0x225   :  { %7369 = vst [vmem:[#allocation60_spill] sm:$0xff] %v6257_v37  ;;  %v7371_v1 = vmov %v7370_v57  ;;  %v6279_v21 = vadd.f32 %v2547_v58, %v2545_v47  ;;  %v6281_v9 = vadd.f32 %v2547_v58, %v2546_v62  ;;  %v6283_v61 = vadd.f32 %v2635_v59, %v2633_v55  ;;  %v7380_v47 = vld [vmem:[#allocation23_spill] sm:$0xff]  ;;  %v7383_v55 = vld [vmem:[#allocation26_spill] sm:$0xff]  ;;  %v7386_v58 = vld [vmem:[#allocation29_spill] sm:$0xff]  ;;  %s6392_s24 = sld [smem:[#allocation7 + $0xb3]] }
 0x226   :  { %v6277_v19 = vadd.f32 %v7371_v1, %v6137_v31  ;;  %v6287_v44 = vadd.f32 %v2636_v18, %v2634_v39  ;;  %v6291_v22 = vmul.f32 %v2665_v11, %v3576_v34  ;;  %v2671_v6 = vstv %s6207_s5  ;;  %v7387_v18 = vld [vmem:[#allocation30_spill] sm:$0xff]  ;;  %v7390_v1 = vld [vmem:[#allocation33_spill] sm:$0xff]  ;;  %s6382_s5 = sld [smem:[#allocation7 + $0x8b]] }
 0x227   :  { %v6297_v31 = vmul.f32 %v2665_v11, %v6779_v27  ;;  %v2669_v14 = vmul.f32 %v2668_v8, %v7372_v36  ;;  %v2674_v15 = vstv %s6213_s19  ;;  %v2677_v54 = vstv %s6219_s23  ;;  %v7394_v37 = vld [vmem:[#allocation37_spill] sm:$0xff]  ;;  %s6384_s19 = sld [smem:[#allocation8 + $0x12]] }
 0x228   :  { %v6304_v12 = vadd.f32 %v2649_v40, %v2647_v16  ;;  %v6306_v24 = vadd.f32 %v2650_v0, %v2648_v30  ;;  %v2670_v4 = vmul.f32 %v2668_v8, %v7373_v50  ;;  %v2680_v17 = vstv %s6233_s26  ;;  %v7388_v30 = vld [vmem:[#allocation31_spill] sm:$0xff]  ;;  %v7389_v0 = vld [vmem:[#allocation32_spill] sm:$0xff]  ;;  %s6390_s23 = sld [smem:[#allocation7 + $0x9f]] }
 0x229   :  { %v2672_v26 = vmul.f32 %v2671_v6, %v7374_v38  ;;  %v2673_v7 = vmul.f32 %v2671_v6, %v7375_v51  ;;  %v2683_v60 = vstv %s6235_s3  ;;  %v2686_v2 = vstv %s6241_s30  ;;  %s6394_s26 = sld [smem:[#allocation7 + $0xc7]] }
 0x22a   :  { %v2675_v49 = vmul.f32 %v2674_v15, %v7376_v32  ;;  %v2676_v56 = vmul.f32 %v2674_v15, %v7377_v10  ;;  %v2678_v5 = vmul.f32 %v2677_v54, %v7378_v53  ;;  %v2679_v43 = vmul.f32 %v2677_v54, %v7379_v29  ;;  %v7391_v15 = vld [vmem:[#allocation34_spill] sm:$0xff]  ;;  %v7404_v29 = vld [vmem:[#allocation47_spill] sm:$0xff]  ;;  %v7405_v10 = vld [vmem:[#allocation48_spill] sm:$0xff]  ;;  %s6396_s3 = sld [smem:[#allocation7 + $0xdb]] }
 0x22b   :  { %v2681_v62 = vmul.f32 %v2680_v17, %v7380_v47  ;;  %v2682_v3 = vmul.f32 %v2680_v17, %v7381_v48  ;;  %v2689_v41 = vstv %s6247_s28  ;;  %v2692_v46 = vstv %s6249_s27  ;;  %v7392_v17 = vld [vmem:[#allocation35_spill] sm:$0xff]  ;;  %v7403_v48 = vld [vmem:[#allocation46_spill] sm:$0xff]  ;;  %s6400_s30 = sld [smem:[#allocation7 + $0xef]] }
 0x22c   :  { %v2684_v20 = vmul.f32 %v2683_v60, %v7382_v45  ;;  %v2685_v59 = vmul.f32 %v2683_v60, %v7383_v55  ;;  %v2687_v33 = vmul.f32 %v2686_v2, %v7384_v25  ;;  %v2688_v42 = vmul.f32 %v2686_v2, %v7385_v28  ;;  %v7393_v2 = vld [vmem:[#allocation36_spill] sm:$0xff]  ;;  %v7396_v25 = vld [vmem:[#allocation39_spill] sm:$0xff]  ;;  %s6404_s28 = sld [smem:[#allocation7 + $0x103]] }
 0x22d   :  { %v2690_v39 = vmul.f32 %v2689_v41, %v7386_v58  ;;  %v2691_v57 = vmul.f32 %v2689_v41, %v7387_v18  ;;  %v2695_v16 = vstv %s6251_s10  ;;  %v2698_v11 = vstv %s6260_s0  ;;  %v7395_v58 = vld [vmem:[#allocation38_spill] sm:$0xff]  ;;  %s6413_s27 = sld [smem:[#allocation7 + $0x117]] }
 0x22e   :  { %v2693_v40 = vmul.f32 %v2692_v46, %v7388_v30  ;;  %v2694_v8 = vmul.f32 %v2692_v46, %v7389_v0  ;;  %v2696_v6 = vmul.f32 %v2695_v16, %v7390_v1  ;;  %v2697_v54 = vmul.f32 %v2695_v16, %v7391_v15  ;;  %v7397_v30 = vld [vmem:[#allocation40_spill] sm:$0xff]  ;;  %v7399_v1 = vld [vmem:[#allocation42_spill] sm:$0xff]  ;;  %v7400_v0 = vld [vmem:[#allocation43_spill] sm:$0xff]  ;;  %s6420_s10 = sld [smem:[#allocation7 + $0x12b]] }
 0x22f   :  { %v2699_v60 = vmul.f32 %v2698_v11, %v7392_v17  ;;  %v2700_v63 = vmul.f32 %v2698_v11, %v7393_v2  ;;  %v2701_v52 = vstv %s6269_s9  ;;  %v2704_v41 = vstv %s6272_s2  ;;  %v7398_v11 = vld [vmem:[#allocation41_spill] sm:$0xff]  ;;  %s6424_s0 = sld [smem:[#allocation7 + $0x13f]] }
 0x230   :  { %v2702_v18 = vmul.f32 %v2701_v52, %v7394_v37  ;;  %v2703_v28 = vmul.f32 %v2701_v52, %v7395_v58  ;;  %v2705_v55 = vmul.f32 %v2704_v41, %v7396_v25  ;;  %v2706_v45 = vmul.f32 %v2704_v41, %v7397_v30  ;;  %v7401_v58 = vld [vmem:[#allocation44_spill] sm:$0xff]  ;;  %v7402_v41 = vld [vmem:[#allocation45_spill] sm:$0xff]  ;;  %s6436_s9 = sld [smem:[#allocation7 + $0x167]] }
 0x231   :  { %v2707_v46 = vstv %s6285_s11  ;;  %v2710_v16 = vstv %s6294_s12  ;;  %v2713_v15 = vstv %s6302_s14  ;;  %v2716_v17 = vstv %s6310_s16  ;;  %s6448_s2 = sld [smem:[#allocation7 + $0x17b]] }
 0x232   :  { %v2708_v2 = vmul.f32 %v2707_v46, %v7398_v11  ;;  %v2709_v37 = vmul.f32 %v2707_v46, %v7399_v1  ;;  %v2711_v52 = vmul.f32 %v2710_v16, %v7400_v0  ;;  %v2712_v25 = vmul.f32 %v2710_v16, %v7401_v58  ;;  %v7406_v16 = vld [vmem:[#allocation49_spill] sm:$0xff]  ;;  %v7407_v1 = vld [vmem:[#allocation51_spill] sm:$0xff]  ;;  %s6454_s11 = sld [smem:[#allocation7 + $0x18f]] }
 0x233   :  { %v2714_v30 = vmul.f32 %v2713_v15, %v7402_v41  ;;  %v2715_v47 = vmul.f32 %v2713_v15, %v7403_v48  ;;  %v2717_v53 = vmul.f32 %v2716_v17, %v7404_v29  ;;  %v2718_v32 = vmul.f32 %v2716_v17, %v7405_v10  ;;  %s6494_s12 = sld [smem:[#allocation10 + $0x11]] }
 0x234   :  { %v2719_v51 = vstv %s6320_s17  ;;  %v2722_v11 = vstv %s6326_s13  ;;  %v2725_v46 = vadd.f32 %v2669_v14, %v6291_v22  ;;  %v2726_v0 = vadd.f32 %v2670_v4, %v6297_v31  ;;  %s6496_s14 = sld [smem:[#allocation8 + $0x13]] }
 0x235   :  { %v2720_v58 = vmul.f32 %v2719_v51, %v7406_v16  ;;  %v2721_v41 = vmul.f32 %v2719_v51, %v7334_v35  ;;  %v2723_v15 = vmul.f32 %v2722_v11, %v7407_v1  ;;  %v2724_v29 = vmul.f32 %v2722_v11, %v3787_v23  ;;  %v7410_v11 = vld [vmem:[#allocation17_spill] sm:$0xff]  ;;  %s6498_s16 = sld [smem:[#allocation10 + $0x12]] }
 0x236   :  { %v2727_v17 = vadd.f32 %v2675_v49, %v2672_v26  ;;  %v2728_v10 = vadd.f32 %v2676_v56, %v2673_v7  ;;  %v2729_v48 = vadd.f32 %v2681_v62, %v2678_v5  ;;  %v2730_v38 = vadd.f32 %v2682_v3, %v2679_v43  ;;  %s6506_s17 = sld [smem:[#allocation10 + $0x13]] }
 0x237   :  { %v2731_v22 = vadd.f32 %v2687_v33, %v2684_v20  ;;  %v2732_v31 = vadd.f32 %v2688_v42, %v2685_v59  ;;  %v2733_v14 = vadd.f32 %v2693_v40, %v2690_v39  ;;  %v2734_v4 = vadd.f32 %v2694_v8, %v2691_v57 }
 0x238   :  { %v2735_v16 = vadd.f32 %v2699_v60, %v2696_v6  ;;  %v2736_v51 = vadd.f32 %v2700_v63, %v2697_v54  ;;  %v2737_v35 = vadd.f32 %v2705_v55, %v2702_v18  ;;  %v2738_v1 = vadd.f32 %v2706_v45, %v2703_v28 }
 0x239   :  { %v2653_v26 = vadd.f32 %v6304_v12, %v6283_v61  ;;  %v2654_v7 = vadd.f32 %v6306_v24, %v6287_v44  ;;  %v2739_v49 = vadd.f32 %v2711_v52, %v2708_v2  ;;  %v2740_v56 = vadd.f32 %v2712_v25, %v2709_v37  ;;  %v7443_v24 = vld [vmem:[#allocation50_spill] sm:$0xff] }
 0x23a   :  { %v2741_v5 = vadd.f32 %v2717_v53, %v2714_v30  ;;  %v2742_v43 = vadd.f32 %v2718_v32, %v2715_v47  ;;  %v2745_v62 = vadd.f32 %v2727_v17, %v2725_v46  ;;  %v2746_v3 = vadd.f32 %v2728_v10, %v2726_v0  ;;  %v7413_v17 = vld [vmem:[#allocation20_spill] sm:$0xff]  ;;  %v7442_v32 = vld [vmem:[#allocation49_spill] sm:$0xff] }
 0x23b   :  { %v2747_v63 = vadd.f32 %v2731_v22, %v2729_v48  ;;  %v2748_v45 = vadd.f32 %v2732_v31, %v2730_v38  ;;  %v2749_v20 = vadd.f32 %v2735_v16, %v2733_v14  ;;  %v2750_v55 = vadd.f32 %v2736_v51, %v2734_v4  ;;  %v7415_v51 = vld [vmem:[#allocation22_spill] sm:$0xff] }
 0x23c   :  { %v2743_v61 = vadd.f32 %v2723_v15, %v2720_v58  ;;  %v2744_v44 = vadd.f32 %v2724_v29, %v2721_v41  ;;  %v2751_v37 = vadd.f32 %v2739_v49, %v2737_v35  ;;  %v2752_v12 = vadd.f32 %v2740_v56, %v2738_v1  ;;  %v7411_v41 = vld [vmem:[#allocation18_spill] sm:$0xff]  ;;  %v7412_v15 = vld [vmem:[#allocation19_spill] sm:$0xff]  ;;  %v7417_v56 = vld [vmem:[#allocation24_spill] sm:$0xff] }
 0x23d   :  { %v2755_v10 = vadd.f32 %v2747_v63, %v2745_v62  ;;  %v2756_v38 = vadd.f32 %v2748_v45, %v2746_v3  ;;  %v7408_v59 = vstv %s6237_s29  ;;  %v2773_v33 = vstv %s6348_s4  ;;  %s6430_s29 = sld [smem:[#allocation7 + $0x153]]  ;;  %v7418_v3 = vld [vmem:[#allocation25_spill] sm:$0xff]  ;;  %v7419_v45 = vld [vmem:[#allocation26_spill] sm:$0xff] }
 0x23e   :  { %v2757_v29 = vadd.f32 %v2751_v37, %v2749_v20  ;;  %v2758_v35 = vadd.f32 %v2752_v12, %v2750_v55  ;;  %v6409_v25 = vadd.f32 %v7408_v59, %v2653_v26  ;;  %v2776_v28 = vstv %s6354_s15  ;;  %v7420_v55 = vld [vmem:[#allocation27_spill] sm:$0xff]  ;;  %v7422_v12 = vld [vmem:[#allocation29_spill] sm:$0xff] }
 0x23f   :  { %v7409_v42 = vmov %v7408_v59  ;;  %v2753_v39 = vadd.f32 %v2743_v61, %v2741_v5  ;;  %v2754_v18 = vadd.f32 %v2744_v44, %v2742_v43  ;;  %v2779_v57 = vstv %s6360_s18  ;;  %v7421_v44 = vld [vmem:[#allocation28_spill] sm:$0xff] }
 0x240   :  { %v6417_v58 = vadd.f32 %v7409_v42, %v2654_v7  ;;  %v2759_v30 = vadd.f32 %v2757_v29, %v2755_v10  ;;  %v2760_v40 = vadd.f32 %v2758_v35, %v2756_v38  ;;  %v2782_v8 = vstv %s6366_s20  ;;  %v7416_v7 = vld [vmem:[#allocation23_spill] sm:$0xff]  ;;  %v7423_v38 = vld [vmem:[#allocation30_spill] sm:$0xff]  ;;  %v7425_v42 = vld [vmem:[#allocation32_spill] sm:$0xff] }
 0x241   :  { %v2774_v1 = vmul.f32 %v2773_v33, %v3576_v34  ;;  %v2775_v6 = vmul.f32 %v2773_v33, %v6779_v27  ;;  %v2777_v54 = vmul.f32 %v2776_v28, %v7372_v36  ;;  %v2785_v60 = vstv %s6372_s1  ;;  %v7424_v33 = vld [vmem:[#allocation31_spill] sm:$0xff] }
 0x242   :  { %v2778_v2 = vmul.f32 %v2776_v28, %v7373_v50  ;;  %v2780_v52 = vmul.f32 %v2779_v57, %v7410_v11  ;;  %v2781_v46 = vmul.f32 %v2779_v57, %v7411_v41  ;;  %v2788_v16 = vstv %s6380_s22  ;;  %v7414_v50 = vld [vmem:[#allocation21_spill] sm:$0xff]  ;;  %v7429_v11 = vld [vmem:[#allocation36_spill] sm:$0xff] }
 0x243   :  { %v2783_v34 = vmul.f32 %v2782_v8, %v7412_v15  ;;  %v2784_v27 = vmul.f32 %v2782_v8, %v7413_v17  ;;  %v2791_v22 = vstv %s6382_s5  ;;  %v2794_v36 = vstv %s6390_s23  ;;  %v7428_v8 = vld [vmem:[#allocation35_spill] sm:$0xff]  ;;  %v7430_v17 = vld [vmem:[#allocation37_spill] sm:$0xff] }
 0x244   :  { %v6442_v31 = vadd.f32 %v2759_v30, %v2753_v39  ;;  %v6444_v14 = vadd.f32 %v2760_v40, %v2754_v18  ;;  %v2786_v4 = vmul.f32 %v2785_v60, %v7414_v50  ;;  %v2787_v26 = vmul.f32 %v2785_v60, %v7415_v51  ;;  %v7426_v18 = vld [vmem:[#allocation33_spill] sm:$0xff]  ;;  %v7427_v30 = vld [vmem:[#allocation34_spill] sm:$0xff]  ;;  %v7432_v51 = vld [vmem:[#allocation39_spill] sm:$0xff] }
 0x245   :  { %v2789_v49 = vmul.f32 %v2788_v16, %v7416_v7  ;;  %v2790_v5 = vmul.f32 %v2788_v16, %v7417_v56  ;;  %v2797_v43 = vstv %s6392_s24  ;;  %v2800_v62 = vstv %s6394_s26  ;;  %v7433_v56 = vld [vmem:[#allocation40_spill] sm:$0xff] }
 0x246   :  { %v2792_v63 = vmul.f32 %v2791_v22, %v7418_v3  ;;  %v2793_v20 = vmul.f32 %v2791_v22, %v7419_v45  ;;  %v2795_v61 = vmul.f32 %v2794_v36, %v7420_v55  ;;  %v2796_v37 = vmul.f32 %v2794_v36, %v7421_v44  ;;  %v7431_v36 = vld [vmem:[#allocation38_spill] sm:$0xff]  ;;  %v7434_v44 = vld [vmem:[#allocation41_spill] sm:$0xff] }
 0x247   :  { %v2798_v10 = vmul.f32 %v2797_v43, %v7422_v12  ;;  %v2799_v29 = vmul.f32 %v2797_v43, %v7423_v38  ;;  %v2803_v35 = vstv %s6396_s3  ;;  %v2806_v59 = vstv %s6400_s30  ;;  %v7435_v38 = vld [vmem:[#allocation42_spill] sm:$0xff] }
 0x248   :  { %v2801_v28 = vmul.f32 %v2800_v62, %v7424_v33  ;;  %v2802_v39 = vmul.f32 %v2800_v62, %v7425_v42  ;;  %v2804_v57 = vmul.f32 %v2803_v35, %v7426_v18  ;;  %v2805_v40 = vmul.f32 %v2803_v35, %v7427_v30  ;;  %v7437_v42 = vld [vmem:[#allocation44_spill] sm:$0xff]  ;;  %v7438_v30 = vld [vmem:[#allocation45_spill] sm:$0xff] }
 0x249   :  { %v2807_v60 = vmul.f32 %v2806_v59, %v7428_v8  ;;  %v2808_v41 = vmul.f32 %v2806_v59, %v7429_v11  ;;  %v2809_v16 = vstv %s6404_s28  ;;  %v2812_v15 = vstv %s6413_s27  ;;  %v7436_v59 = vld [vmem:[#allocation43_spill] sm:$0xff]  ;;  %v7439_v11 = vld [vmem:[#allocation46_spill] sm:$0xff] }
 0x24a   :  { %v2810_v22 = vmul.f32 %v2809_v16, %v7430_v17  ;;  %v2811_v50 = vmul.f32 %v2809_v16, %v7431_v36  ;;  %v2813_v7 = vmul.f32 %v2812_v15, %v7432_v51  ;;  %v2814_v43 = vmul.f32 %v2812_v15, %v7433_v56  ;;  %v7440_v17 = vld [vmem:[#allocation47_spill] sm:$0xff]  ;;  %v7441_v51 = vld [vmem:[#allocation48_spill] sm:$0xff] }
 0x24b   :  { %v2815_v62 = vstv %s6420_s10  ;;  %v2818_v3 = vstv %s6424_s0  ;;  %v2821_v45 = vstv %s6430_s29  ;;  %v2824_v55 = vstv %s6436_s9 }
 0x24c   :  { %v2816_v12 = vmul.f32 %v2815_v62, %v7434_v44  ;;  %v2817_v35 = vmul.f32 %v2815_v62, %v7435_v38  ;;  %v2819_v33 = vmul.f32 %v2818_v3, %v7436_v59  ;;  %v2820_v18 = vmul.f32 %v2818_v3, %v7437_v42  ;;  %v7444_v38 = vld [vmem:[#allocation51_spill] sm:$0xff] }
 0x24d   :  { %v2822_v8 = vmul.f32 %v2821_v45, %v7438_v30  ;;  %v2823_v16 = vmul.f32 %v2821_v45, %v7439_v11  ;;  %v2825_v36 = vmul.f32 %v2824_v55, %v7440_v17  ;;  %v2826_v15 = vmul.f32 %v2824_v55, %v7441_v51 }
 0x24e   :  { %v2827_v56 = vstv %s6448_s2  ;;  %v2830_v48 = vstv %s6454_s11  ;;  %v2833_v47 = vadd.f32 %v2777_v54, %v2774_v1  ;;  %v2834_v53 = vadd.f32 %v2778_v2, %v2775_v6 }
 0x24f   :  { %v2828_v44 = vmul.f32 %v2827_v56, %v7442_v32  ;;  %v2829_v62 = vmul.f32 %v2827_v56, %v7443_v24  ;;  %v2831_v59 = vmul.f32 %v2830_v48, %v7444_v38  ;;  %v2832_v3 = vmul.f32 %v2830_v48, %v3787_v23 }
 0x250   :  { %v2835_v42 = vadd.f32 %v2783_v34, %v2780_v52  ;;  %v2836_v30 = vadd.f32 %v2784_v27, %v2781_v46  ;;  %v2837_v0 = vadd.f32 %v2789_v49, %v2786_v4  ;;  %v2838_v45 = vadd.f32 %v2790_v5, %v2787_v26 }
 0x251   :  { %v2839_v11 = vadd.f32 %v2795_v61, %v2792_v63  ;;  %v2840_v55 = vadd.f32 %v2796_v37, %v2793_v20  ;;  %v2841_v17 = vadd.f32 %v2801_v28, %v2798_v10  ;;  %v2842_v51 = vadd.f32 %v2802_v39, %v2799_v29 }
 0x252   :  { %v2843_v1 = vadd.f32 %v2807_v60, %v2804_v57  ;;  %v2844_v32 = vadd.f32 %v2808_v41, %v2805_v40  ;;  %v2845_v24 = vadd.f32 %v2813_v7, %v2810_v22  ;;  %v2846_v6 = vadd.f32 %v2814_v43, %v2811_v50  ;;  %v7447_v60 = vld [vmem:[#allocation54_spill] sm:$0xff] }
 0x253   :  { %v2847_v23 = vadd.f32 %v2819_v33, %v2816_v12  ;;  %v2848_v48 = vadd.f32 %v2820_v18, %v2817_v35  ;;  %v2849_v54 = vadd.f32 %v2825_v36, %v2822_v8  ;;  %v2850_v2 = vadd.f32 %v2826_v15, %v2823_v16 }
 0x254   :  { %v2851_v52 = vadd.f32 %v2831_v59, %v2828_v44  ;;  %v2852_v46 = vadd.f32 %v2832_v3, %v2829_v62  ;;  %v2853_v34 = vadd.f32 %v2835_v42, %v2833_v47  ;;  %v2854_v27 = vadd.f32 %v2836_v30, %v2834_v53 }
 0x255   :  { %v2855_v4 = vadd.f32 %v2839_v11, %v2837_v0  ;;  %v2856_v26 = vadd.f32 %v2840_v55, %v2838_v45  ;;  %v2857_v49 = vadd.f32 %v2843_v1, %v2841_v17  ;;  %v2858_v5 = vadd.f32 %v2844_v32, %v2842_v51  ;;  %v7458_v45 = vld [vmem:[#allocation55_spill] sm:$0xff]  ;;  %v7459_v11 = vld [vmem:[#allocation60_spill] sm:$0xff]  ;;  %v7461_v1 = vld [vmem:[#allocation14_spill] sm:$0xff] }
 0x256   :  { %v7445_v63 = vstv %s6384_s19  ;;  %v2859_v10 = vadd.f32 %v2847_v23, %v2845_v24  ;;  %v2860_v29 = vadd.f32 %v2848_v48, %v2846_v6  ;;  %v2658_v53 = vmax.f32 %v6409_v25, 0.0  ;;  %v7460_v17 = vld [vmem:[#allocation56_spill] sm:$0xff]  ;;  %v7462_v23 = vld [vmem:[#allocation57_spill] sm:$0xff] }
 0x257   :  { %v2764_v20 = vadd.f32 %v7445_v63, %v6442_v31  ;;  %v7446_v61 = vmov %v7445_v63  ;;  %v2659_v47 = vmax.f32 %v6417_v58, 0.0  ;;  %v2863_v0 = vadd.f32 %v2855_v4, %v2853_v34 }
 0x258   :  { %v2765_v37 = vadd.f32 %v7446_v61, %v6444_v14  ;;  %v2864_v28 = vadd.f32 %v2856_v26, %v2854_v27  ;;  %v2861_v39 = vadd.f32 %v2851_v52, %v2849_v54  ;;  %v2862_v31 = vadd.f32 %v2852_v46, %v2850_v2  ;;  %v7463_v54 = vld [vmem:[#allocation58_spill] sm:$0xff]  ;;  %v7464_v52 = vld [vmem:[#allocation52_spill] sm:$0xff]  ;;  %v7465_v27 = vld [vmem:[#allocation53_spill] sm:$0xff] }
 0x259   :  { %v2865_v57 = vadd.f32 %v2859_v10, %v2857_v49  ;;  %v2866_v40 = vadd.f32 %v2860_v29, %v2858_v5  ;;  %v7448_v14 = vmax.f32 %v7447_v60, 0.0  ;;  %v7449_v41 = vstv %s6093_s8  ;;  %v7466_v26 = vld [vmem:[#allocation59_spill] sm:$0xff] }
 0x25a   :  { %v7450_v50 = vmax.f32 %v6265_v13, 0.0  ;;  %v7451_v7 = vstv %s6231_s25  ;;  %v7452_v43 = vmax.f32 %v6277_v19, 0.0  ;;  %v2660_v35 = vstv %s6494_s12 }
 0x25b   :  { %v2338_v22 = vmul.f32 %v7449_v41, %v7448_v14  ;;  %v7453_v58 = vmov %v7451_v7  ;;  %v2766_v33 = vmax.f32 %v2764_v20, 0.0  ;;  %v2767_v18 = vmax.f32 %v2765_v37, 0.0 }
 0x25c   :  { %v2445_v25 = vmul.f32 %v7451_v7, %v7450_v50  ;;  %v2446_v12 = vmul.f32 %v7453_v58, %v7452_v43  ;;  %v2867_v8 = vadd.f32 %v2865_v57, %v2863_v0  ;;  %v2868_v16 = vadd.f32 %v2866_v40, %v2864_v28 }
 0x25d   :  { %v7454_v36 = vmax.f32 %v6279_v21, 0.0  ;;  %v7455_v15 = vstv %s6378_s21  ;;  %v7456_v44 = vmax.f32 %v6281_v9, 0.0  ;;  %v2768_v13 = vstv %s6498_s16 }
 0x25e   :  { %v7457_v62 = vmov %v7455_v15  ;;  %v2871_v59 = vstv %s6496_s14  ;;  %v2661_v3 = vmul.f32 %v2660_v35, %v2658_v53  ;;  %v2662_v19 = vmul.f32 %v2660_v35, %v2659_v47 }
 0x25f   :  { %v2553_v56 = vmul.f32 %v7455_v15, %v7454_v36  ;;  %v2554_v38 = vmul.f32 %v7457_v62, %v7456_v44  ;;  %v2869_v42 = vadd.f32 %v2867_v8, %v2861_v39  ;;  %v2870_v30 = vadd.f32 %v2868_v16, %v2862_v31 }
 0x260   :  { %v2339_v55 = vadd.f32 %v7459_v11, %v7458_v45  ;;  %v2340_v51 = vadd.f32 %v2338_v22, %v7460_v17  ;;  %v2447_v21 = vadd.f32 %v2445_v25, %v7461_v1  ;;  %v2769_v32 = vmul.f32 %v2768_v13, %v2766_v33 }
 0x261   :  { %v2770_v24 = vmul.f32 %v2768_v13, %v2767_v18  ;;  %v2872_v6 = vadd.f32 %v2871_v59, %v2869_v42  ;;  %v2873_v9 = vadd.f32 %v2871_v59, %v2870_v30  ;;  %v2448_v48 = vadd.f32 %v2446_v12, %v7462_v23 }
 0x262   :  { %v2555_v2 = vadd.f32 %v2553_v56, %v7463_v54  ;;  %v2556_v46 = vadd.f32 %v2554_v38, %v7464_v52  ;;  %v2876_v34 = vstv %s6506_s17  ;;  %v2663_v4 = vadd.f32 %v2661_v3, %v7465_v27 }
 0x263   :  { %v2664_v49 = vadd.f32 %v2662_v19, %v7466_v26  ;;  %v2874_v5 = vmax.f32 %v2872_v6, 0.0  ;;  %v2875_v63 = vmax.f32 %v2873_v9, 0.0  ;;  %v2771_v20 = vadd.f32 %v2769_v32, %v2339_v55 }
 0x264   :  { %v2772_v61 = vadd.f32 %v2770_v24, %v2340_v51  ;;  %v2881_v47 = vadd.f32 %v2663_v4, %v2555_v2  ;;  %v2887_v31 = vstv %s6558_s6 }
 0x265   :  { %v2877_v37 = vmul.f32 %v2876_v34, %v2874_v5  ;;  %v2878_v10 = vmul.f32 %v2876_v34, %v2875_v63  ;;  %v2882_v0 = vadd.f32 %v2664_v49, %v2556_v46 }
 0x267   :  { %v2879_v29 = vadd.f32 %v2877_v37, %v2447_v21  ;;  %v2880_v53 = vadd.f32 %v2878_v10, %v2448_v48 }
 0x269   :  { %v2883_v28 = vadd.f32 %v2879_v29, %v2771_v20  ;;  %v2884_v39 = vadd.f32 %v2880_v53, %v2772_v61 }
 0x26b   :  { %v2885_v57 = vadd.f32 %v2883_v28, %v2881_v47  ;;  %v2886_v40 = vadd.f32 %v2884_v39, %v2882_v0 }
 0x26d   :  { %v2888_v60 = vadd.f32 %v2887_v31, %v2885_v57  ;;  %v2889_v14 = vadd.f32 %v2887_v31, %v2886_v40 }
 0x26f   :  { %2890 = vst [vmem:[%s6559_s7] sm:$0xff] %v2888_v60 }
 0x270   :  { %2891 = vst [vmem:[%s6559_s7 + $0x8] sm:$0xff] %v2889_v14 }
 0x271   :  { %2896 = vsyncpa [#allocation4], 1 }
 0x272   :  { %2897 = vsyncpa [#allocation6], 1 }
 0x273   :  { %2898 = vsyncpa [#allocation9], 1 }

</bundles_post_ra>
